<compile_context>
chip_gen: v5e
topology: v5e:2x2
jax: 0.10.0
libtpu: 0.0.40
codegen_flags: <defaults>
</compile_context>

<pallas_src>
import functools

import jax
import jax.numpy as jnp
from jax.experimental import pallas as pl
from jax.experimental.pallas import tpu as pltpu


# ----------------------------------------------------------------------------- #
# Fused kernel: conv1+bn1+relu -> conv2+bn2+relu -> conv3+bn3 + residual + relu
# ----------------------------------------------------------------------------- #
def _residual_block_kernel(x_ref, rowf_ref, lanef_ref,
                           w1_ref, b1_ref, w2_ref, b2_ref, w3_ref, b3_ref,
                           o_ref, x1_buf, x2_buf,
                           *, hp: int, mr: int, out_rows: int):
    lanes = o_ref.shape[-1]
    buf_end = out_rows + 2 * mr
    zeros_margin = jnp.zeros((mr, lanes), jnp.float32)

    # (2) Zero ONLY the margin rows of the scratch activations; the interior rows are
    # fully overwritten by the masked stores below.  Runs every grid step on purpose
    # (core-parallel v7x grids give each core its own scratch instance).
    x1_buf[0:mr, :] = zeros_margin
    x1_buf[buf_end - mr:buf_end, :] = zeros_margin
    x2_buf[0:mr, :] = zeros_margin
    x2_buf[buf_end - mr:buf_end, :] = zeros_margin

    def conv_bn(src_ref, w_ref, b_ref):
        """3x3x3 conv + folded BN: 9 shifted-row matmuls vs banded (128,128) weights."""
        # (5) accumulator starts from the lane-tiled bias (saves a final add).
        acc = jnp.broadcast_to(b_ref[...], (out_rows, lanes))
        # (3) one f32 window load + one bf16 cast per kh; kd taps are even-offset slices.
        for kh in range(3):
            start = mr + (kh - 1) - hp
            win = src_ref[start:start + out_rows + 2 * hp, :].astype(jnp.bfloat16)
            for kd in range(3):
                acc = acc + jnp.dot(win[kd * hp:kd * hp + out_rows, :],
                                    w_ref[kd * 3 + kh],
                                    preferred_element_type=jnp.float32)
        return acc

    def mask(y):
        # (1)/(5) interior mask re-built at each use site from the two factored flags
        # (no (out_rows, lanes) mask value kept live across the kernel).
        return y * rowf_ref[...] * lanef_ref[...]

    # x1 = relu(bn1(conv1(x)))   -- masked store re-establishes the zero halos.
    x1_buf[mr:mr + out_rows, :] = mask(jnp.maximum(conv_bn(x_ref, w1_ref, b1_ref), 0.0))

    # x2 = relu(bn2(conv2(x1)))
    x2_buf[mr:mr + out_rows, :] = mask(jnp.maximum(conv_bn(x1_buf, w2_ref, b2_ref), 0.0))

    # out = relu(x1 + bn3(conv3(x2)))
    # (1) residual re-reads x1 from VMEM scratch (identical to y1 at interior voxels).
    y3 = conv_bn(x2_buf, w3_ref, b3_ref)
    # Halo rows/lanes of o_ref hold garbage; the wrapper slices the interior only.
    o_ref[...] = jnp.maximum(x1_buf[mr:mr + out_rows, :] + y3, 0.0)


# ----------------------------------------------------------------------------- #
# Geometry of the internal lane-dense layout
# ----------------------------------------------------------------------------- #
def _geometry(n, d, h, w, c_in, c_out, samples_per_block=None):
    c_pad = max(c_in, c_out)
    dp, hp = d + 2, h + 2
    wp = max(w + 2, pl.cdiv(128, c_pad))
    while (wp * c_pad) % 128 != 0:                 # keep lane dim 128-aligned
        wp += 1
    rows = dp * hp                                 # per-sample (d,h) rows incl. halos
    mr = hp + 1                                    # row margin >= max |row shift|
    buf_rows = rows + 2 * mr
    # (4) stack samples along the sublane dim; default = all samples in one grid step
    # (best for v5e/v6e).  On v7x set samples_per_block=1 so each TensorCore gets one.
    s = n if samples_per_block is None else samples_per_block
    assert n % s == 0
    return dict(n=n, s=s, nb=n // s, d=d, h=h, w=w, c_in=c_in, c_out=c_out,
                c_pad=c_pad, dp=dp, hp=hp, wp=wp, lanes=wp * c_pad,
                rows=rows, mr=mr, buf_rows=buf_rows,
                blk_rows=s * buf_rows, out_rows=s * buf_rows - 2 * mr)


# ----------------------------------------------------------------------------- #
# Parameter preparation: fold BN scale + kw taps into banded bf16 weight matrices
# ----------------------------------------------------------------------------- #
def _banded_weight(w_dhwio, scale, wp, c_pad):
    """(3,3,3,Cin,Cout) conv weight (*BN scale) -> (9, wp*Cpad, wp*Cpad) banded bf16.

    B[kd*3+kh, wq*Cpad+ci, wo*Cpad+co] = scale[co]*w[kd,kh,wq-wo+1,ci,co] if |wq-wo|<=1.
    """
    _, _, _, cin, cout = w_dhwio.shape
    wf = (w_dhwio * scale[None, None, None, None, :]).astype(jnp.float32)
    wf = jnp.pad(wf, ((0, 0), (0, 0), (0, 0), (0, c_pad - cin), (0, c_pad - cout)))
    b = jnp.zeros((3, 3, wp, c_pad, wp, c_pad), jnp.float32)
    for kw in range(3):
        for wo in range(wp):
            wq = wo + kw - 1
            if 0 <= wq < wp:
                b = b.at[:, :, wq, :, wo, :].set(wf[:, :, kw, :, :])
    return b.reshape(9, wp * c_pad, wp * c_pad).astype(jnp.bfloat16)


def prepare_kernel_params(raw, geom):
    wp, c_pad, c_out = geom["wp"], geom["c_pad"], geom["c_out"]
    kp = {}
    for i in (1, 2, 3):
        kp[f"w{i}"] = _banded_weight(raw[f"w{i}"], raw[f"s{i}"], wp, c_pad)
        bias = jnp.pad(raw[f"b{i}"], (0, c_pad - c_out))
        kp[f"b{i}"] = jnp.tile(bias, wp).reshape(1, wp * c_pad).astype(jnp.float32)
    return kp


# ----------------------------------------------------------------------------- #
# Forward wrapper
# ----------------------------------------------------------------------------- #
def residual_block_forward(x_ncdhw, kp, geom):
    """x: (N, C_in, D, H, W) float32 (PyTorch NCDHW) -> (N, C_out, D, H, W)."""
    n, s, nb = geom["n"], geom["s"], geom["nb"]
    d, h, w = geom["d"], geom["h"], geom["w"]
    c_in, c_out, c_pad = geom["c_in"], geom["c_out"], geom["c_pad"]
    dp, hp, wp = geom["dp"], geom["hp"], geom["wp"]
    lanes, rows, mr = geom["lanes"], geom["rows"], geom["mr"]
    buf_rows, blk_rows, out_rows = geom["buf_rows"], geom["blk_rows"], geom["out_rows"]

    # NCDHW -> NDHWC, zero halos on D/H/W, pad width to wp and channels to c_pad,
    # flatten to (rows, lanes), add zero row margins, stack s samples per block.
    xt = jnp.transpose(x_ncdhw, (0, 2, 3, 4, 1)).astype(jnp.float32)
    xp = jnp.pad(xt, ((0, 0), (1, 1), (1, 1), (1, wp - 1 - w), (0, c_pad - c_in)))
    xb = jnp.pad(xp.reshape(n, rows, lanes), ((0, 0), (mr, mr), (0, 0)))
    xs = xb.reshape(nb, blk_rows, lanes)

    # (5) factored interior mask: per-output-row flag + per-lane flag (~1 KiB total).
    j = jnp.arange(out_rows)
    q = (j + mr) % buf_rows - mr                   # local (d,h) row index within a sample
    di, hi = q // hp, q % hp
    rowf = ((q >= 0) & (q < rows) & (di >= 1) & (di <= d)
            & (hi >= 1) & (hi <= h)).astype(jnp.float32)[:, None]          # (out_rows, 1)
    lam = jnp.arange(lanes)
    wq, co = lam // c_pad, lam % c_pad
    lanef = ((wq >= 1) & (wq <= w) & (co < c_out)).astype(jnp.float32)[None, :]  # (1,lanes)

    kernel = functools.partial(_residual_block_kernel, hp=hp, mr=mr, out_rows=out_rows)
    out = pl.pallas_call(
        kernel,
        out_shape=jax.ShapeDtypeStruct((nb, out_rows, lanes), jnp.float32),
        grid=(nb,),
        in_specs=[
            pl.BlockSpec((None, blk_rows, lanes), lambda i: (i, 0, 0)),   # stacked x
            pl.BlockSpec((out_rows, 1), lambda i: (0, 0)),                # row flag
            pl.BlockSpec((1, lanes), lambda i: (0, 0)),                   # lane flag
            pl.BlockSpec((9, lanes, lanes), lambda i: (0, 0, 0)),         # banded W1
            pl.BlockSpec((1, lanes), lambda i: (0, 0)),                   # bias1
            pl.BlockSpec((9, lanes, lanes), lambda i: (0, 0, 0)),         # banded W2
            pl.BlockSpec((1, lanes), lambda i: (0, 0)),                   # bias2
            pl.BlockSpec((9, lanes, lanes), lambda i: (0, 0, 0)),         # banded W3
            pl.BlockSpec((1, lanes), lambda i: (0, 0)),                   # bias3
        ],
        out_specs=pl.BlockSpec((None, out_rows, lanes), lambda i: (i, 0, 0)),
        scratch_shapes=[pltpu.VMEM((blk_rows, lanes), jnp.float32),       # x1 (VMEM only)
                        pltpu.VMEM((blk_rows, lanes), jnp.float32)],      # x2 (VMEM only)
        compiler_params=pltpu.CompilerParams(
            dimension_semantics=("parallel",),
            vmem_limit_bytes=32 * 1024 * 1024),
    )(xs, rowf, lanef, kp["w1"], kp["b1"], kp["w2"], kp["b2"], kp["w3"], kp["b3"])

    # Gather each sample's interior rows back out of the stacked layout.
    parts = [out[:, i * buf_rows:i * buf_rows + rows, :] for i in range(s)]
    y = jnp.stack(parts, axis=1).reshape(n, dp, hp, wp, c_pad)
    y = y[:, 1:d + 1, 1:h + 1, 1:w + 1, :c_out]
    return jnp.transpose(y, (0, 4, 1, 2, 3))       # back to PyTorch NCDHW


# ----------------------------------------------------------------------------- #
# Pure-JAX reference (lax conv) matching the kernel's quantization points
# ----------------------------------------------------------------------------- #
def _conv3d_same(x_ndhwc, w_dhwio):
    return jax.lax.conv_general_dilated(
        x_ndhwc, w_dhwio, window_strides=(1, 1, 1), padding="SAME",
        dimension_numbers=("NDHWC", "DHWIO", "NDHWC"),
        precision=jax.lax.Precision.HIGHEST)


def residual_block_ref(x_ncdhw, raw):
    q = lambda a: a.astype(jnp.bfloat16).astype(jnp.float32)   # bf16 matmul inputs
    x = jnp.transpose(x_ncdhw, (0, 2, 3, 4, 1)).astype(jnp.float32)

    def cb(inp, i):
        wq = q(raw[f"w{i}"] * raw[f"s{i}"][None, None, None, None, :])
        return _conv3d_same(q(inp), wq) + raw[f"b{i}"]

    y1 = jnp.maximum(cb(x, 1), 0.0)
    y2 = jnp.maximum(cb(y1, 2), 0.0)
    y3 = cb(y2, 3)
    out = jnp.maximum(y1 + y3, 0.0)
    return jnp.transpose(out, (0, 4, 1, 2, 3))


# ----------------------------------------------------------------------------- #
# Deterministic parameter construction (BN folded with default running stats)
# ----------------------------------------------------------------------------- #
def make_params(key, c_in, c_out, eps=1e-5):
    ks = jax.random.split(key, 9)
    raw = {}
    shapes = [(c_in, c_out), (c_out, c_out), (c_out, c_out)]
    for idx, (ci, co) in enumerate(shapes, start=1):
        kw_, kg, kb = ks[3 * (idx - 1):3 * idx]
        fan_in = 27 * ci
        w = jax.random.normal(kw_, (3, 3, 3, ci, co), jnp.float32) / jnp.sqrt(float(fan_in))
        gamma = 1.0 + 0.1 * jax.random.normal(kg, (co,), jnp.float32)
        beta = 0.1 * jax.random.normal(kb, (co,), jnp.float32)
        raw[f"w{idx}"] = w                                    # DHWIO conv weight
        raw[f"s{idx}"] = gamma / jnp.sqrt(1.0 + eps)          # BN fold (mean=0, var=1)
        raw[f"b{idx}"] = beta
    return raw


# ----------------------------------------------------------------------------- #
if __name__ == "__main__":
    key = jax.random.PRNGKey(0)
    k_x, k_p = jax.random.split(key)

    # PyTorch NCDHW input: (batch=2, in_channel=4, D=8, H=8, W=8), out_channel=8
    N, C_IN, C_OUT, D, H, W = 2, 4, 8, 8, 8, 8
    x = jax.random.normal(k_x, (N, C_IN, D, H, W), jnp.float32)

    raw = make_params(k_p, C_IN, C_OUT)
    # Default: stack both samples in one grid step (v5e/v6e sweet spot).
    # On v7x, pass samples_per_block=1 so the two TensorCores split the batch.
    geom = _geometry(N, D, H, W, C_IN, C_OUT)
    kp = prepare_kernel_params(raw, geom)

    out = jax.block_until_ready(residual_block_forward(x, kp, geom))
    ref = jax.block_until_ready(residual_block_ref(x, raw))

    assert out.shape == (N, C_OUT, D, H, W), out.shape
    max_err = float(jnp.max(jnp.abs(out - ref)))
    assert jnp.allclose(out, ref, atol=2e-3, rtol=2e-3), max_err

    print("KERNEL_OK")
</pallas_src>

<mosaic_0001>
module attributes {stable_mosaic.version = 11 : i64} {
  func.func @_residual_block_kernel(%arg0: i32, %arg1: memref<1x244x128xf32, #tpu.memory_space<vmem>>, %arg2: memref<222x1xf32, #tpu.memory_space<vmem>>, %arg3: memref<1x128xf32, #tpu.memory_space<vmem>>, %arg4: memref<9x128x128xbf16, #tpu.memory_space<vmem>>, %arg5: memref<1x128xf32, #tpu.memory_space<vmem>>, %arg6: memref<9x128x128xbf16, #tpu.memory_space<vmem>>, %arg7: memref<1x128xf32, #tpu.memory_space<vmem>>, %arg8: memref<9x128x128xbf16, #tpu.memory_space<vmem>>, %arg9: memref<1x128xf32, #tpu.memory_space<vmem>>, %arg10: memref<1x222x128xf32, #tpu.memory_space<vmem>>, %arg11: memref<244x128xf32, #tpu.memory_space<vmem>>, %arg12: memref<244x128xf32, #tpu.memory_space<vmem>>) attributes {dimension_semantics = [#tpu.dimension_semantics<parallel>], iteration_bounds = array<i64: 1>, scalar_prefetch = 0 : i64, scratch_operands = 2 : i64, tpu.core_type = #tpu.core_type<tc>, window_params = [{transform_indices = @transform_0, window_bounds = array<i64: 1, 244, 128>}, {pipeline_mode = #tpu.pipeline_mode<synchronous>, transform_indices = @transform_1, window_bounds = array<i64: 222, 1>}, {pipeline_mode = #tpu.pipeline_mode<synchronous>, transform_indices = @transform_2, window_bounds = array<i64: 1, 128>}, {pipeline_mode = #tpu.pipeline_mode<synchronous>, transform_indices = @transform_3, window_bounds = array<i64: 9, 128, 128>}, {pipeline_mode = #tpu.pipeline_mode<synchronous>, transform_indices = @transform_4, window_bounds = array<i64: 1, 128>}, {pipeline_mode = #tpu.pipeline_mode<synchronous>, transform_indices = @transform_5, window_bounds = array<i64: 9, 128, 128>}, {pipeline_mode = #tpu.pipeline_mode<synchronous>, transform_indices = @transform_6, window_bounds = array<i64: 1, 128>}, {pipeline_mode = #tpu.pipeline_mode<synchronous>, transform_indices = @transform_7, window_bounds = array<i64: 9, 128, 128>}, {pipeline_mode = #tpu.pipeline_mode<synchronous>, transform_indices = @transform_8, window_bounds = array<i64: 1, 128>}, {transform_indices = @transform_9, window_bounds = array<i64: 1, 222, 128>}]} {
    %cst = arith.constant 0.000000e+00 : f32
    %0 = vector.broadcast %cst : f32 to vector<11x128xf32>
    %c0 = arith.constant 0 : index
    %c0_0 = arith.constant 0 : index
    %1 = vector.load %arg11[%c0, %c0_0] : memref<244x128xf32, #tpu.memory_space<vmem>>, vector<11x128xf32>
    tpu.vector_store %arg11[%c0, %c0_0], %0 {strides = array<i32>} : memref<244x128xf32, #tpu.memory_space<vmem>>, vector<11x128xf32>,
    %c233 = arith.constant 233 : index
    %c0_1 = arith.constant 0 : index
    %2 = vector.load %arg11[%c233, %c0_1] : memref<244x128xf32, #tpu.memory_space<vmem>>, vector<11x128xf32>
    tpu.vector_store %arg11[%c233, %c0_1], %0 {strides = array<i32>} : memref<244x128xf32, #tpu.memory_space<vmem>>, vector<11x128xf32>,
    %c0_2 = arith.constant 0 : index
    %c0_3 = arith.constant 0 : index
    %3 = vector.load %arg12[%c0_2, %c0_3] : memref<244x128xf32, #tpu.memory_space<vmem>>, vector<11x128xf32>
    tpu.vector_store %arg12[%c0_2, %c0_3], %0 {strides = array<i32>} : memref<244x128xf32, #tpu.memory_space<vmem>>, vector<11x128xf32>,
    %c233_4 = arith.constant 233 : index
    %c0_5 = arith.constant 0 : index
    %4 = vector.load %arg12[%c233_4, %c0_5] : memref<244x128xf32, #tpu.memory_space<vmem>>, vector<11x128xf32>
    tpu.vector_store %arg12[%c233_4, %c0_5], %0 {strides = array<i32>} : memref<244x128xf32, #tpu.memory_space<vmem>>, vector<11x128xf32>,
    %c0_6 = arith.constant 0 : index
    %c0_7 = arith.constant 0 : index
    %5 = vector.load %arg5[%c0_6, %c0_7] : memref<1x128xf32, #tpu.memory_space<vmem>>, vector<1x128xf32>
    %6 = vector.shape_cast %5 : vector<1x128xf32> to vector<1x128xf32>
    %7 = vector.broadcast %6 : vector<1x128xf32> to vector<222x128xf32>
    %c0_8 = arith.constant 0 : index
    %c0_9 = arith.constant 0 : index
    %c0_10 = arith.constant 0 : index
    %8 = vector.load %arg1[%c0_8, %c0_9, %c0_10] : memref<1x244x128xf32, #tpu.memory_space<vmem>>, vector<1x242x128xf32>
    %9 = vector.shape_cast %8 : vector<1x242x128xf32> to vector<242x128xf32>
    %10 = arith.truncf %9 : vector<242x128xf32> to vector<242x128xbf16>
    %11 = vector.extract_strided_slice %10 {offsets = [0, 0], sizes = [222, 128], strides = [1, 1]} : vector<242x128xbf16> to vector<222x128xbf16>
    %c0_11 = arith.constant 0 : index
    %c0_12 = arith.constant 0 : index
    %c0_13 = arith.constant 0 : index
    %12 = vector.load %arg4[%c0_11, %c0_12, %c0_13] : memref<9x128x128xbf16, #tpu.memory_space<vmem>>, vector<1x128x128xbf16>
    %13 = vector.shape_cast %12 : vector<1x128x128xbf16> to vector<128x128xbf16>
    %cst_14 = arith.constant dense<0.000000e+00> : vector<222x128xf32>
    %14 = tpu.matmul %11, %13, %cst_14 {dimension_numbers = #tpu.dot_dimension_numbers<[1], [0], [0], [1], [0, 0, 1, 1], [], []>} : vector<222x128xbf16>, vector<128x128xbf16>, vector<222x128xf32> -> vector<222x128xf32>
    %15 = arith.addf %7, %14 : vector<222x128xf32>
    %16 = vector.extract_strided_slice %10 {offsets = [10, 0], sizes = [222, 128], strides = [1, 1]} : vector<242x128xbf16> to vector<222x128xbf16>
    %c3 = arith.constant 3 : index
    %c0_15 = arith.constant 0 : index
    %c0_16 = arith.constant 0 : index
    %17 = vector.load %arg4[%c3, %c0_15, %c0_16] : memref<9x128x128xbf16, #tpu.memory_space<vmem>>, vector<1x128x128xbf16>
    %18 = vector.shape_cast %17 : vector<1x128x128xbf16> to vector<128x128xbf16>
    %cst_17 = arith.constant dense<0.000000e+00> : vector<222x128xf32>
    %19 = tpu.matmul %16, %18, %cst_17 {dimension_numbers = #tpu.dot_dimension_numbers<[1], [0], [0], [1], [0, 0, 1, 1], [], []>} : vector<222x128xbf16>, vector<128x128xbf16>, vector<222x128xf32> -> vector<222x128xf32>
    %20 = arith.addf %15, %19 : vector<222x128xf32>
    %21 = vector.extract_strided_slice %10 {offsets = [20, 0], sizes = [222, 128], strides = [1, 1]} : vector<242x128xbf16> to vector<222x128xbf16>
    %c6 = arith.constant 6 : index
    %c0_18 = arith.constant 0 : index
    %c0_19 = arith.constant 0 : index
    %22 = vector.load %arg4[%c6, %c0_18, %c0_19] : memref<9x128x128xbf16, #tpu.memory_space<vmem>>, vector<1x128x128xbf16>
    %23 = vector.shape_cast %22 : vector<1x128x128xbf16> to vector<128x128xbf16>
    %cst_20 = arith.constant dense<0.000000e+00> : vector<222x128xf32>
    %24 = tpu.matmul %21, %23, %cst_20 {dimension_numbers = #tpu.dot_dimension_numbers<[1], [0], [0], [1], [0, 0, 1, 1], [], []>} : vector<222x128xbf16>, vector<128x128xbf16>, vector<222x128xf32> -> vector<222x128xf32>
    %25 = arith.addf %20, %24 : vector<222x128xf32>
    %c0_21 = arith.constant 0 : index
    %c1 = arith.constant 1 : index
    %c0_22 = arith.constant 0 : index
    %26 = vector.load %arg1[%c0_21, %c1, %c0_22] : memref<1x244x128xf32, #tpu.memory_space<vmem>>, vector<1x242x128xf32>
    %27 = vector.shape_cast %26 : vector<1x242x128xf32> to vector<242x128xf32>
    %28 = arith.truncf %27 : vector<242x128xf32> to vector<242x128xbf16>
    %29 = vector.extract_strided_slice %28 {offsets = [0, 0], sizes = [222, 128], strides = [1, 1]} : vector<242x128xbf16> to vector<222x128xbf16>
    %c1_23 = arith.constant 1 : index
    %c0_24 = arith.constant 0 : index
    %c0_25 = arith.constant 0 : index
    %30 = vector.load %arg4[%c1_23, %c0_24, %c0_25] : memref<9x128x128xbf16, #tpu.memory_space<vmem>>, vector<1x128x128xbf16>
    %31 = vector.shape_cast %30 : vector<1x128x128xbf16> to vector<128x128xbf16>
    %cst_26 = arith.constant dense<0.000000e+00> : vector<222x128xf32>
    %32 = tpu.matmul %29, %31, %cst_26 {dimension_numbers = #tpu.dot_dimension_numbers<[1], [0], [0], [1], [0, 0, 1, 1], [], []>} : vector<222x128xbf16>, vector<128x128xbf16>, vector<222x128xf32> -> vector<222x128xf32>
    %33 = arith.addf %25, %32 : vector<222x128xf32>
    %34 = vector.extract_strided_slice %28 {offsets = [10, 0], sizes = [222, 128], strides = [1, 1]} : vector<242x128xbf16> to vector<222x128xbf16>
    %c4 = arith.constant 4 : index
    %c0_27 = arith.constant 0 : index
    %c0_28 = arith.constant 0 : index
    %35 = vector.load %arg4[%c4, %c0_27, %c0_28] : memref<9x128x128xbf16, #tpu.memory_space<vmem>>, vector<1x128x128xbf16>
    %36 = vector.shape_cast %35 : vector<1x128x128xbf16> to vector<128x128xbf16>
    %cst_29 = arith.constant dense<0.000000e+00> : vector<222x128xf32>
    %37 = tpu.matmul %34, %36, %cst_29 {dimension_numbers = #tpu.dot_dimension_numbers<[1], [0], [0], [1], [0, 0, 1, 1], [], []>} : vector<222x128xbf16>, vector<128x128xbf16>, vector<222x128xf32> -> vector<222x128xf32>
    %38 = arith.addf %33, %37 : vector<222x128xf32>
    %39 = vector.extract_strided_slice %28 {offsets = [20, 0], sizes = [222, 128], strides = [1, 1]} : vector<242x128xbf16> to vector<222x128xbf16>
    %c7 = arith.constant 7 : index
    %c0_30 = arith.constant 0 : index
    %c0_31 = arith.constant 0 : index
    %40 = vector.load %arg4[%c7, %c0_30, %c0_31] : memref<9x128x128xbf16, #tpu.memory_space<vmem>>, vector<1x128x128xbf16>
    %41 = vector.shape_cast %40 : vector<1x128x128xbf16> to vector<128x128xbf16>
    %cst_32 = arith.constant dense<0.000000e+00> : vector<222x128xf32>
    %42 = tpu.matmul %39, %41, %cst_32 {dimension_numbers = #tpu.dot_dimension_numbers<[1], [0], [0], [1], [0, 0, 1, 1], [], []>} : vector<222x128xbf16>, vector<128x128xbf16>, vector<222x128xf32> -> vector<222x128xf32>
    %43 = arith.addf %38, %42 : vector<222x128xf32>
    %c0_33 = arith.constant 0 : index
    %c2 = arith.constant 2 : index
    %c0_34 = arith.constant 0 : index
    %44 = vector.load %arg1[%c0_33, %c2, %c0_34] : memref<1x244x128xf32, #tpu.memory_space<vmem>>, vector<1x242x128xf32>
    %45 = vector.shape_cast %44 : vector<1x242x128xf32> to vector<242x128xf32>
    %46 = arith.truncf %45 : vector<242x128xf32> to vector<242x128xbf16>
    %47 = vector.extract_strided_slice %46 {offsets = [0, 0], sizes = [222, 128], strides = [1, 1]} : vector<242x128xbf16> to vector<222x128xbf16>
    %c2_35 = arith.constant 2 : index
    %c0_36 = arith.constant 0 : index
    %c0_37 = arith.constant 0 : index
    %48 = vector.load %arg4[%c2_35, %c0_36, %c0_37] : memref<9x128x128xbf16, #tpu.memory_space<vmem>>, vector<1x128x128xbf16>
    %49 = vector.shape_cast %48 : vector<1x128x128xbf16> to vector<128x128xbf16>
    %cst_38 = arith.constant dense<0.000000e+00> : vector<222x128xf32>
    %50 = tpu.matmul %47, %49, %cst_38 {dimension_numbers = #tpu.dot_dimension_numbers<[1], [0], [0], [1], [0, 0, 1, 1], [], []>} : vector<222x128xbf16>, vector<128x128xbf16>, vector<222x128xf32> -> vector<222x128xf32>
    %51 = arith.addf %43, %50 : vector<222x128xf32>
    %52 = vector.extract_strided_slice %46 {offsets = [10, 0], sizes = [222, 128], strides = [1, 1]} : vector<242x128xbf16> to vector<222x128xbf16>
    %c5 = arith.constant 5 : index
    %c0_39 = arith.constant 0 : index
    %c0_40 = arith.constant 0 : index
    %53 = vector.load %arg4[%c5, %c0_39, %c0_40] : memref<9x128x128xbf16, #tpu.memory_space<vmem>>, vector<1x128x128xbf16>
    %54 = vector.shape_cast %53 : vector<1x128x128xbf16> to vector<128x128xbf16>
    %cst_41 = arith.constant dense<0.000000e+00> : vector<222x128xf32>
    %55 = tpu.matmul %52, %54, %cst_41 {dimension_numbers = #tpu.dot_dimension_numbers<[1], [0], [0], [1], [0, 0, 1, 1], [], []>} : vector<222x128xbf16>, vector<128x128xbf16>, vector<222x128xf32> -> vector<222x128xf32>
    %56 = arith.addf %51, %55 : vector<222x128xf32>
    %57 = vector.extract_strided_slice %46 {offsets = [20, 0], sizes = [222, 128], strides = [1, 1]} : vector<242x128xbf16> to vector<222x128xbf16>
    %c8 = arith.constant 8 : index
    %c0_42 = arith.constant 0 : index
    %c0_43 = arith.constant 0 : index
    %58 = vector.load %arg4[%c8, %c0_42, %c0_43] : memref<9x128x128xbf16, #tpu.memory_space<vmem>>, vector<1x128x128xbf16>
    %59 = vector.shape_cast %58 : vector<1x128x128xbf16> to vector<128x128xbf16>
    %cst_44 = arith.constant dense<0.000000e+00> : vector<222x128xf32>
    %60 = tpu.matmul %57, %59, %cst_44 {dimension_numbers = #tpu.dot_dimension_numbers<[1], [0], [0], [1], [0, 0, 1, 1], [], []>} : vector<222x128xbf16>, vector<128x128xbf16>, vector<222x128xf32> -> vector<222x128xf32>
    %61 = arith.addf %56, %60 : vector<222x128xf32>
    %cst_45 = arith.constant 0.000000e+00 : f32
    %62 = vector.broadcast %cst_45 : f32 to vector<222x128xf32>
    %63 = arith.maximumf %61, %62 : vector<222x128xf32>
    %c0_46 = arith.constant 0 : index
    %c0_47 = arith.constant 0 : index
    %64 = vector.load %arg2[%c0_46, %c0_47] : memref<222x1xf32, #tpu.memory_space<vmem>>, vector<222x1xf32>
    %65 = vector.broadcast %64 : vector<222x1xf32> to vector<222x128xf32>
    %66 = arith.mulf %63, %65 : vector<222x128xf32>
    %c0_48 = arith.constant 0 : index
    %c0_49 = arith.constant 0 : index
    %67 = vector.load %arg3[%c0_48, %c0_49] : memref<1x128xf32, #tpu.memory_space<vmem>>, vector<1x128xf32>
    %68 = vector.broadcast %67 : vector<1x128xf32> to vector<222x128xf32>
    %69 = arith.mulf %66, %68 : vector<222x128xf32>
    %c11 = arith.constant 11 : index
    %c0_50 = arith.constant 0 : index
    %70 = vector.load %arg11[%c11, %c0_50] : memref<244x128xf32, #tpu.memory_space<vmem>>, vector<222x128xf32>
    tpu.vector_store %arg11[%c11, %c0_50], %69 {strides = array<i32>} : memref<244x128xf32, #tpu.memory_space<vmem>>, vector<222x128xf32>,
    %c0_51 = arith.constant 0 : index
    %c0_52 = arith.constant 0 : index
    %71 = vector.load %arg7[%c0_51, %c0_52] : memref<1x128xf32, #tpu.memory_space<vmem>>, vector<1x128xf32>
    %72 = vector.shape_cast %71 : vector<1x128xf32> to vector<1x128xf32>
    %73 = vector.broadcast %72 : vector<1x128xf32> to vector<222x128xf32>
    %c0_53 = arith.constant 0 : index
    %c0_54 = arith.constant 0 : index
    %74 = vector.load %arg11[%c0_53, %c0_54] : memref<244x128xf32, #tpu.memory_space<vmem>>, vector<242x128xf32>
    %75 = arith.truncf %74 : vector<242x128xf32> to vector<242x128xbf16>
    %76 = vector.extract_strided_slice %75 {offsets = [0, 0], sizes = [222, 128], strides = [1, 1]} : vector<242x128xbf16> to vector<222x128xbf16>
    %c0_55 = arith.constant 0 : index
    %c0_56 = arith.constant 0 : index
    %c0_57 = arith.constant 0 : index
    %77 = vector.load %arg6[%c0_55, %c0_56, %c0_57] : memref<9x128x128xbf16, #tpu.memory_space<vmem>>, vector<1x128x128xbf16>
    %78 = vector.shape_cast %77 : vector<1x128x128xbf16> to vector<128x128xbf16>
    %cst_58 = arith.constant dense<0.000000e+00> : vector<222x128xf32>
    %79 = tpu.matmul %76, %78, %cst_58 {dimension_numbers = #tpu.dot_dimension_numbers<[1], [0], [0], [1], [0, 0, 1, 1], [], []>} : vector<222x128xbf16>, vector<128x128xbf16>, vector<222x128xf32> -> vector<222x128xf32>
    %80 = arith.addf %73, %79 : vector<222x128xf32>
    %81 = vector.extract_strided_slice %75 {offsets = [10, 0], sizes = [222, 128], strides = [1, 1]} : vector<242x128xbf16> to vector<222x128xbf16>
    %c3_59 = arith.constant 3 : index
    %c0_60 = arith.constant 0 : index
    %c0_61 = arith.constant 0 : index
    %82 = vector.load %arg6[%c3_59, %c0_60, %c0_61] : memref<9x128x128xbf16, #tpu.memory_space<vmem>>, vector<1x128x128xbf16>
    %83 = vector.shape_cast %82 : vector<1x128x128xbf16> to vector<128x128xbf16>
    %cst_62 = arith.constant dense<0.000000e+00> : vector<222x128xf32>
    %84 = tpu.matmul %81, %83, %cst_62 {dimension_numbers = #tpu.dot_dimension_numbers<[1], [0], [0], [1], [0, 0, 1, 1], [], []>} : vector<222x128xbf16>, vector<128x128xbf16>, vector<222x128xf32> -> vector<222x128xf32>
    %85 = arith.addf %80, %84 : vector<222x128xf32>
    %86 = vector.extract_strided_slice %75 {offsets = [20, 0], sizes = [222, 128], strides = [1, 1]} : vector<242x128xbf16> to vector<222x128xbf16>
    %c6_63 = arith.constant 6 : index
    %c0_64 = arith.constant 0 : index
    %c0_65 = arith.constant 0 : index
    %87 = vector.load %arg6[%c6_63, %c0_64, %c0_65] : memref<9x128x128xbf16, #tpu.memory_space<vmem>>, vector<1x128x128xbf16>
    %88 = vector.shape_cast %87 : vector<1x128x128xbf16> to vector<128x128xbf16>
    %cst_66 = arith.constant dense<0.000000e+00> : vector<222x128xf32>
    %89 = tpu.matmul %86, %88, %cst_66 {dimension_numbers = #tpu.dot_dimension_numbers<[1], [0], [0], [1], [0, 0, 1, 1], [], []>} : vector<222x128xbf16>, vector<128x128xbf16>, vector<222x128xf32> -> vector<222x128xf32>
    %90 = arith.addf %85, %89 : vector<222x128xf32>
    %c1_67 = arith.constant 1 : index
    %c0_68 = arith.constant 0 : index
    %91 = vector.load %arg11[%c1_67, %c0_68] : memref<244x128xf32, #tpu.memory_space<vmem>>, vector<242x128xf32>
    %92 = arith.truncf %91 : vector<242x128xf32> to vector<242x128xbf16>
    %93 = vector.extract_strided_slice %92 {offsets = [0, 0], sizes = [222, 128], strides = [1, 1]} : vector<242x128xbf16> to vector<222x128xbf16>
    %c1_69 = arith.constant 1 : index
    %c0_70 = arith.constant 0 : index
    %c0_71 = arith.constant 0 : index
    %94 = vector.load %arg6[%c1_69, %c0_70, %c0_71] : memref<9x128x128xbf16, #tpu.memory_space<vmem>>, vector<1x128x128xbf16>
    %95 = vector.shape_cast %94 : vector<1x128x128xbf16> to vector<128x128xbf16>
    %cst_72 = arith.constant dense<0.000000e+00> : vector<222x128xf32>
    %96 = tpu.matmul %93, %95, %cst_72 {dimension_numbers = #tpu.dot_dimension_numbers<[1], [0], [0], [1], [0, 0, 1, 1], [], []>} : vector<222x128xbf16>, vector<128x128xbf16>, vector<222x128xf32> -> vector<222x128xf32>
    %97 = arith.addf %90, %96 : vector<222x128xf32>
    %98 = vector.extract_strided_slice %92 {offsets = [10, 0], sizes = [222, 128], strides = [1, 1]} : vector<242x128xbf16> to vector<222x128xbf16>
    %c4_73 = arith.constant 4 : index
    %c0_74 = arith.constant 0 : index
    %c0_75 = arith.constant 0 : index
    %99 = vector.load %arg6[%c4_73, %c0_74, %c0_75] : memref<9x128x128xbf16, #tpu.memory_space<vmem>>, vector<1x128x128xbf16>
    %100 = vector.shape_cast %99 : vector<1x128x128xbf16> to vector<128x128xbf16>
    %cst_76 = arith.constant dense<0.000000e+00> : vector<222x128xf32>
    %101 = tpu.matmul %98, %100, %cst_76 {dimension_numbers = #tpu.dot_dimension_numbers<[1], [0], [0], [1], [0, 0, 1, 1], [], []>} : vector<222x128xbf16>, vector<128x128xbf16>, vector<222x128xf32> -> vector<222x128xf32>
    %102 = arith.addf %97, %101 : vector<222x128xf32>
    %103 = vector.extract_strided_slice %92 {offsets = [20, 0], sizes = [222, 128], strides = [1, 1]} : vector<242x128xbf16> to vector<222x128xbf16>
    %c7_77 = arith.constant 7 : index
    %c0_78 = arith.constant 0 : index
    %c0_79 = arith.constant 0 : index
    %104 = vector.load %arg6[%c7_77, %c0_78, %c0_79] : memref<9x128x128xbf16, #tpu.memory_space<vmem>>, vector<1x128x128xbf16>
    %105 = vector.shape_cast %104 : vector<1x128x128xbf16> to vector<128x128xbf16>
    %cst_80 = arith.constant dense<0.000000e+00> : vector<222x128xf32>
    %106 = tpu.matmul %103, %105, %cst_80 {dimension_numbers = #tpu.dot_dimension_numbers<[1], [0], [0], [1], [0, 0, 1, 1], [], []>} : vector<222x128xbf16>, vector<128x128xbf16>, vector<222x128xf32> -> vector<222x128xf32>
    %107 = arith.addf %102, %106 : vector<222x128xf32>
    %c2_81 = arith.constant 2 : index
    %c0_82 = arith.constant 0 : index
    %108 = vector.load %arg11[%c2_81, %c0_82] : memref<244x128xf32, #tpu.memory_space<vmem>>, vector<242x128xf32>
    %109 = arith.truncf %108 : vector<242x128xf32> to vector<242x128xbf16>
    %110 = vector.extract_strided_slice %109 {offsets = [0, 0], sizes = [222, 128], strides = [1, 1]} : vector<242x128xbf16> to vector<222x128xbf16>
    %c2_83 = arith.constant 2 : index
    %c0_84 = arith.constant 0 : index
    %c0_85 = arith.constant 0 : index
    %111 = vector.load %arg6[%c2_83, %c0_84, %c0_85] : memref<9x128x128xbf16, #tpu.memory_space<vmem>>, vector<1x128x128xbf16>
    %112 = vector.shape_cast %111 : vector<1x128x128xbf16> to vector<128x128xbf16>
    %cst_86 = arith.constant dense<0.000000e+00> : vector<222x128xf32>
    %113 = tpu.matmul %110, %112, %cst_86 {dimension_numbers = #tpu.dot_dimension_numbers<[1], [0], [0], [1], [0, 0, 1, 1], [], []>} : vector<222x128xbf16>, vector<128x128xbf16>, vector<222x128xf32> -> vector<222x128xf32>
    %114 = arith.addf %107, %113 : vector<222x128xf32>
    %115 = vector.extract_strided_slice %109 {offsets = [10, 0], sizes = [222, 128], strides = [1, 1]} : vector<242x128xbf16> to vector<222x128xbf16>
    %c5_87 = arith.constant 5 : index
    %c0_88 = arith.constant 0 : index
    %c0_89 = arith.constant 0 : index
    %116 = vector.load %arg6[%c5_87, %c0_88, %c0_89] : memref<9x128x128xbf16, #tpu.memory_space<vmem>>, vector<1x128x128xbf16>
    %117 = vector.shape_cast %116 : vector<1x128x128xbf16> to vector<128x128xbf16>
    %cst_90 = arith.constant dense<0.000000e+00> : vector<222x128xf32>
    %118 = tpu.matmul %115, %117, %cst_90 {dimension_numbers = #tpu.dot_dimension_numbers<[1], [0], [0], [1], [0, 0, 1, 1], [], []>} : vector<222x128xbf16>, vector<128x128xbf16>, vector<222x128xf32> -> vector<222x128xf32>
    %119 = arith.addf %114, %118 : vector<222x128xf32>
    %120 = vector.extract_strided_slice %109 {offsets = [20, 0], sizes = [222, 128], strides = [1, 1]} : vector<242x128xbf16> to vector<222x128xbf16>
    %c8_91 = arith.constant 8 : index
    %c0_92 = arith.constant 0 : index
    %c0_93 = arith.constant 0 : index
    %121 = vector.load %arg6[%c8_91, %c0_92, %c0_93] : memref<9x128x128xbf16, #tpu.memory_space<vmem>>, vector<1x128x128xbf16>
    %122 = vector.shape_cast %121 : vector<1x128x128xbf16> to vector<128x128xbf16>
    %cst_94 = arith.constant dense<0.000000e+00> : vector<222x128xf32>
    %123 = tpu.matmul %120, %122, %cst_94 {dimension_numbers = #tpu.dot_dimension_numbers<[1], [0], [0], [1], [0, 0, 1, 1], [], []>} : vector<222x128xbf16>, vector<128x128xbf16>, vector<222x128xf32> -> vector<222x128xf32>
    %124 = arith.addf %119, %123 : vector<222x128xf32>
    %cst_95 = arith.constant 0.000000e+00 : f32
    %125 = vector.broadcast %cst_95 : f32 to vector<222x128xf32>
    %126 = arith.maximumf %124, %125 : vector<222x128xf32>
    %c0_96 = arith.constant 0 : index
    %c0_97 = arith.constant 0 : index
    %127 = vector.load %arg2[%c0_96, %c0_97] : memref<222x1xf32, #tpu.memory_space<vmem>>, vector<222x1xf32>
    %128 = vector.broadcast %127 : vector<222x1xf32> to vector<222x128xf32>
    %129 = arith.mulf %126, %128 : vector<222x128xf32>
    %c0_98 = arith.constant 0 : index
    %c0_99 = arith.constant 0 : index
    %130 = vector.load %arg3[%c0_98, %c0_99] : memref<1x128xf32, #tpu.memory_space<vmem>>, vector<1x128xf32>
    %131 = vector.broadcast %130 : vector<1x128xf32> to vector<222x128xf32>
    %132 = arith.mulf %129, %131 : vector<222x128xf32>
    %c11_100 = arith.constant 11 : index
    %c0_101 = arith.constant 0 : index
    %133 = vector.load %arg12[%c11_100, %c0_101] : memref<244x128xf32, #tpu.memory_space<vmem>>, vector<222x128xf32>
    tpu.vector_store %arg12[%c11_100, %c0_101], %132 {strides = array<i32>} : memref<244x128xf32, #tpu.memory_space<vmem>>, vector<222x128xf32>,
    %c0_102 = arith.constant 0 : index
    %c0_103 = arith.constant 0 : index
    %134 = vector.load %arg9[%c0_102, %c0_103] : memref<1x128xf32, #tpu.memory_space<vmem>>, vector<1x128xf32>
    %135 = vector.shape_cast %134 : vector<1x128xf32> to vector<1x128xf32>
    %136 = vector.broadcast %135 : vector<1x128xf32> to vector<222x128xf32>
    %c0_104 = arith.constant 0 : index
    %c0_105 = arith.constant 0 : index
    %137 = vector.load %arg12[%c0_104, %c0_105] : memref<244x128xf32, #tpu.memory_space<vmem>>, vector<242x128xf32>
    %138 = arith.truncf %137 : vector<242x128xf32> to vector<242x128xbf16>
    %139 = vector.extract_strided_slice %138 {offsets = [0, 0], sizes = [222, 128], strides = [1, 1]} : vector<242x128xbf16> to vector<222x128xbf16>
    %c0_106 = arith.constant 0 : index
    %c0_107 = arith.constant 0 : index
    %c0_108 = arith.constant 0 : index
    %140 = vector.load %arg8[%c0_106, %c0_107, %c0_108] : memref<9x128x128xbf16, #tpu.memory_space<vmem>>, vector<1x128x128xbf16>
    %141 = vector.shape_cast %140 : vector<1x128x128xbf16> to vector<128x128xbf16>
    %cst_109 = arith.constant dense<0.000000e+00> : vector<222x128xf32>
    %142 = tpu.matmul %139, %141, %cst_109 {dimension_numbers = #tpu.dot_dimension_numbers<[1], [0], [0], [1], [0, 0, 1, 1], [], []>} : vector<222x128xbf16>, vector<128x128xbf16>, vector<222x128xf32> -> vector<222x128xf32>
    %143 = arith.addf %136, %142 : vector<222x128xf32>
    %144 = vector.extract_strided_slice %138 {offsets = [10, 0], sizes = [222, 128], strides = [1, 1]} : vector<242x128xbf16> to vector<222x128xbf16>
    %c3_110 = arith.constant 3 : index
    %c0_111 = arith.constant 0 : index
    %c0_112 = arith.constant 0 : index
    %145 = vector.load %arg8[%c3_110, %c0_111, %c0_112] : memref<9x128x128xbf16, #tpu.memory_space<vmem>>, vector<1x128x128xbf16>
    %146 = vector.shape_cast %145 : vector<1x128x128xbf16> to vector<128x128xbf16>
    %cst_113 = arith.constant dense<0.000000e+00> : vector<222x128xf32>
    %147 = tpu.matmul %144, %146, %cst_113 {dimension_numbers = #tpu.dot_dimension_numbers<[1], [0], [0], [1], [0, 0, 1, 1], [], []>} : vector<222x128xbf16>, vector<128x128xbf16>, vector<222x128xf32> -> vector<222x128xf32>
    %148 = arith.addf %143, %147 : vector<222x128xf32>
    %149 = vector.extract_strided_slice %138 {offsets = [20, 0], sizes = [222, 128], strides = [1, 1]} : vector<242x128xbf16> to vector<222x128xbf16>
    %c6_114 = arith.constant 6 : index
    %c0_115 = arith.constant 0 : index
    %c0_116 = arith.constant 0 : index
    %150 = vector.load %arg8[%c6_114, %c0_115, %c0_116] : memref<9x128x128xbf16, #tpu.memory_space<vmem>>, vector<1x128x128xbf16>
    %151 = vector.shape_cast %150 : vector<1x128x128xbf16> to vector<128x128xbf16>
    %cst_117 = arith.constant dense<0.000000e+00> : vector<222x128xf32>
    %152 = tpu.matmul %149, %151, %cst_117 {dimension_numbers = #tpu.dot_dimension_numbers<[1], [0], [0], [1], [0, 0, 1, 1], [], []>} : vector<222x128xbf16>, vector<128x128xbf16>, vector<222x128xf32> -> vector<222x128xf32>
    %153 = arith.addf %148, %152 : vector<222x128xf32>
    %c1_118 = arith.constant 1 : index
    %c0_119 = arith.constant 0 : index
    %154 = vector.load %arg12[%c1_118, %c0_119] : memref<244x128xf32, #tpu.memory_space<vmem>>, vector<242x128xf32>
    %155 = arith.truncf %154 : vector<242x128xf32> to vector<242x128xbf16>
    %156 = vector.extract_strided_slice %155 {offsets = [0, 0], sizes = [222, 128], strides = [1, 1]} : vector<242x128xbf16> to vector<222x128xbf16>
    %c1_120 = arith.constant 1 : index
    %c0_121 = arith.constant 0 : index
    %c0_122 = arith.constant 0 : index
    %157 = vector.load %arg8[%c1_120, %c0_121, %c0_122] : memref<9x128x128xbf16, #tpu.memory_space<vmem>>, vector<1x128x128xbf16>
    %158 = vector.shape_cast %157 : vector<1x128x128xbf16> to vector<128x128xbf16>
    %cst_123 = arith.constant dense<0.000000e+00> : vector<222x128xf32>
    %159 = tpu.matmul %156, %158, %cst_123 {dimension_numbers = #tpu.dot_dimension_numbers<[1], [0], [0], [1], [0, 0, 1, 1], [], []>} : vector<222x128xbf16>, vector<128x128xbf16>, vector<222x128xf32> -> vector<222x128xf32>
    %160 = arith.addf %153, %159 : vector<222x128xf32>
    %161 = vector.extract_strided_slice %155 {offsets = [10, 0], sizes = [222, 128], strides = [1, 1]} : vector<242x128xbf16> to vector<222x128xbf16>
    %c4_124 = arith.constant 4 : index
    %c0_125 = arith.constant 0 : index
    %c0_126 = arith.constant 0 : index
    %162 = vector.load %arg8[%c4_124, %c0_125, %c0_126] : memref<9x128x128xbf16, #tpu.memory_space<vmem>>, vector<1x128x128xbf16>
    %163 = vector.shape_cast %162 : vector<1x128x128xbf16> to vector<128x128xbf16>
    %cst_127 = arith.constant dense<0.000000e+00> : vector<222x128xf32>
    %164 = tpu.matmul %161, %163, %cst_127 {dimension_numbers = #tpu.dot_dimension_numbers<[1], [0], [0], [1], [0, 0, 1, 1], [], []>} : vector<222x128xbf16>, vector<128x128xbf16>, vector<222x128xf32> -> vector<222x128xf32>
    %165 = arith.addf %160, %164 : vector<222x128xf32>
    %166 = vector.extract_strided_slice %155 {offsets = [20, 0], sizes = [222, 128], strides = [1, 1]} : vector<242x128xbf16> to vector<222x128xbf16>
    %c7_128 = arith.constant 7 : index
    %c0_129 = arith.constant 0 : index
    %c0_130 = arith.constant 0 : index
    %167 = vector.load %arg8[%c7_128, %c0_129, %c0_130] : memref<9x128x128xbf16, #tpu.memory_space<vmem>>, vector<1x128x128xbf16>
    %168 = vector.shape_cast %167 : vector<1x128x128xbf16> to vector<128x128xbf16>
    %cst_131 = arith.constant dense<0.000000e+00> : vector<222x128xf32>
    %169 = tpu.matmul %166, %168, %cst_131 {dimension_numbers = #tpu.dot_dimension_numbers<[1], [0], [0], [1], [0, 0, 1, 1], [], []>} : vector<222x128xbf16>, vector<128x128xbf16>, vector<222x128xf32> -> vector<222x128xf32>
    %170 = arith.addf %165, %169 : vector<222x128xf32>
    %c2_132 = arith.constant 2 : index
    %c0_133 = arith.constant 0 : index
    %171 = vector.load %arg12[%c2_132, %c0_133] : memref<244x128xf32, #tpu.memory_space<vmem>>, vector<242x128xf32>
    %172 = arith.truncf %171 : vector<242x128xf32> to vector<242x128xbf16>
    %173 = vector.extract_strided_slice %172 {offsets = [0, 0], sizes = [222, 128], strides = [1, 1]} : vector<242x128xbf16> to vector<222x128xbf16>
    %c2_134 = arith.constant 2 : index
    %c0_135 = arith.constant 0 : index
    %c0_136 = arith.constant 0 : index
    %174 = vector.load %arg8[%c2_134, %c0_135, %c0_136] : memref<9x128x128xbf16, #tpu.memory_space<vmem>>, vector<1x128x128xbf16>
    %175 = vector.shape_cast %174 : vector<1x128x128xbf16> to vector<128x128xbf16>
    %cst_137 = arith.constant dense<0.000000e+00> : vector<222x128xf32>
    %176 = tpu.matmul %173, %175, %cst_137 {dimension_numbers = #tpu.dot_dimension_numbers<[1], [0], [0], [1], [0, 0, 1, 1], [], []>} : vector<222x128xbf16>, vector<128x128xbf16>, vector<222x128xf32> -> vector<222x128xf32>
    %177 = arith.addf %170, %176 : vector<222x128xf32>
    %178 = vector.extract_strided_slice %172 {offsets = [10, 0], sizes = [222, 128], strides = [1, 1]} : vector<242x128xbf16> to vector<222x128xbf16>
    %c5_138 = arith.constant 5 : index
    %c0_139 = arith.constant 0 : index
    %c0_140 = arith.constant 0 : index
    %179 = vector.load %arg8[%c5_138, %c0_139, %c0_140] : memref<9x128x128xbf16, #tpu.memory_space<vmem>>, vector<1x128x128xbf16>
    %180 = vector.shape_cast %179 : vector<1x128x128xbf16> to vector<128x128xbf16>
    %cst_141 = arith.constant dense<0.000000e+00> : vector<222x128xf32>
    %181 = tpu.matmul %178, %180, %cst_141 {dimension_numbers = #tpu.dot_dimension_numbers<[1], [0], [0], [1], [0, 0, 1, 1], [], []>} : vector<222x128xbf16>, vector<128x128xbf16>, vector<222x128xf32> -> vector<222x128xf32>
    %182 = arith.addf %177, %181 : vector<222x128xf32>
    %183 = vector.extract_strided_slice %172 {offsets = [20, 0], sizes = [222, 128], strides = [1, 1]} : vector<242x128xbf16> to vector<222x128xbf16>
    %c8_142 = arith.constant 8 : index
    %c0_143 = arith.constant 0 : index
    %c0_144 = arith.constant 0 : index
    %184 = vector.load %arg8[%c8_142, %c0_143, %c0_144] : memref<9x128x128xbf16, #tpu.memory_space<vmem>>, vector<1x128x128xbf16>
    %185 = vector.shape_cast %184 : vector<1x128x128xbf16> to vector<128x128xbf16>
    %cst_145 = arith.constant dense<0.000000e+00> : vector<222x128xf32>
    %186 = tpu.matmul %183, %185, %cst_145 {dimension_numbers = #tpu.dot_dimension_numbers<[1], [0], [0], [1], [0, 0, 1, 1], [], []>} : vector<222x128xbf16>, vector<128x128xbf16>, vector<222x128xf32> -> vector<222x128xf32>
    %187 = arith.addf %182, %186 : vector<222x128xf32>
    %c11_146 = arith.constant 11 : index
    %c0_147 = arith.constant 0 : index
    %188 = vector.load %arg11[%c11_146, %c0_147] : memref<244x128xf32, #tpu.memory_space<vmem>>, vector<222x128xf32>
    %189 = arith.addf %188, %187 : vector<222x128xf32>
    %cst_148 = arith.constant 0.000000e+00 : f32
    %190 = vector.broadcast %cst_148 : f32 to vector<222x128xf32>
    %191 = arith.maximumf %189, %190 : vector<222x128xf32>
    %c0_149 = arith.constant 0 : index
    %c0_150 = arith.constant 0 : index
    %c0_151 = arith.constant 0 : index
    %192 = vector.load %arg10[%c0_149, %c0_150, %c0_151] : memref<1x222x128xf32, #tpu.memory_space<vmem>>, vector<1x222x128xf32>
    %193 = vector.shape_cast %192 : vector<1x222x128xf32> to vector<222x128xf32>
    %194 = vector.shape_cast %191 : vector<222x128xf32> to vector<1x222x128xf32>
    tpu.vector_store %arg10[%c0_149, %c0_150, %c0_151], %194 {strides = array<i32>} : memref<1x222x128xf32, #tpu.memory_space<vmem>>, vector<1x222x128xf32>,
    return
  }
  func.func @transform_0(%arg0: i32) -> (i32, i32, i32) {
    %c0_i32 = arith.constant 0 : i32
    %c0_i32_0 = arith.constant 0 : i32
    %c0_i32_1 = arith.constant 0 : i32
    return %arg0, %c0_i32, %c0_i32_0 : i32, i32, i32
  }
  func.func @transform_1(%arg0: i32) -> (i32, i32) {
    %c0_i32 = arith.constant 0 : i32
    %c0_i32_0 = arith.constant 0 : i32
    %c0_i32_1 = arith.constant 0 : i32
    return %c0_i32, %c0_i32_0 : i32, i32
  }
  func.func @transform_2(%arg0: i32) -> (i32, i32) {
    %c0_i32 = arith.constant 0 : i32
    %c0_i32_0 = arith.constant 0 : i32
    %c0_i32_1 = arith.constant 0 : i32
    return %c0_i32, %c0_i32_0 : i32, i32
  }
  func.func @transform_3(%arg0: i32) -> (i32, i32, i32) {
    %c0_i32 = arith.constant 0 : i32
    %c0_i32_0 = arith.constant 0 : i32
    %c0_i32_1 = arith.constant 0 : i32
    %c0_i32_2 = arith.constant 0 : i32
    return %c0_i32, %c0_i32_0, %c0_i32_1 : i32, i32, i32
  }
  func.func @transform_4(%arg0: i32) -> (i32, i32) {
    %c0_i32 = arith.constant 0 : i32
    %c0_i32_0 = arith.constant 0 : i32
    %c0_i32_1 = arith.constant 0 : i32
    return %c0_i32, %c0_i32_0 : i32, i32
  }
  func.func @transform_5(%arg0: i32) -> (i32, i32, i32) {
    %c0_i32 = arith.constant 0 : i32
    %c0_i32_0 = arith.constant 0 : i32
    %c0_i32_1 = arith.constant 0 : i32
    %c0_i32_2 = arith.constant 0 : i32
    return %c0_i32, %c0_i32_0, %c0_i32_1 : i32, i32, i32
  }
  func.func @transform_6(%arg0: i32) -> (i32, i32) {
    %c0_i32 = arith.constant 0 : i32
    %c0_i32_0 = arith.constant 0 : i32
    %c0_i32_1 = arith.constant 0 : i32
    return %c0_i32, %c0_i32_0 : i32, i32
  }
  func.func @transform_7(%arg0: i32) -> (i32, i32, i32) {
    %c0_i32 = arith.constant 0 : i32
    %c0_i32_0 = arith.constant 0 : i32
    %c0_i32_1 = arith.constant 0 : i32
    %c0_i32_2 = arith.constant 0 : i32
    return %c0_i32, %c0_i32_0, %c0_i32_1 : i32, i32, i32
  }
  func.func @transform_8(%arg0: i32) -> (i32, i32) {
    %c0_i32 = arith.constant 0 : i32
    %c0_i32_0 = arith.constant 0 : i32
    %c0_i32_1 = arith.constant 0 : i32
    return %c0_i32, %c0_i32_0 : i32, i32
  }
  func.func @transform_9(%arg0: i32) -> (i32, i32, i32) {
    %c0_i32 = arith.constant 0 : i32
    %c0_i32_0 = arith.constant 0 : i32
    %c0_i32_1 = arith.constant 0 : i32
    return %arg0, %c0_i32, %c0_i32_0 : i32, i32, i32
  }
}

</mosaic_0001>

<bundles_post_ra>
// kernel: tpu_custom_call.1
= control target key start
LH: loop header
LB: loop body
LE: loop exit
PB: predicated region body
PF: predicated region fallthrough
CT: control target
= control target key end

     0   :  { %14 = vsyncpa [#allocation5], 0  ;;  %s12705_s0 = inlined_call_operand.vmem [shape: f32[1,244,128], index: 0, kind: input, shape index: {}]   ;;  %s12706_s1 = inlined_call_operand.vmem [shape: f32[222,1], index: 1, kind: input, shape index: {}]   ;;  %s12707_s2 = inlined_call_operand.vmem [shape: f32[1,128], index: 2, kind: input, shape index: {}]   ;;  %s12708_s3 = inlined_call_operand.vmem [shape: bf16[9,128,128], index: 3, kind: input, shape index: {}]   ;;  %s12709_s4 = inlined_call_operand.vmem [shape: f32[1,128], index: 4, kind: input, shape index: {}]   ;;  %s12710_s5 = inlined_call_operand.hbm [shape: bf16[9,128,128], index: 5, kind: input, shape index: {}]   ;;  %s12711_s6 = inlined_call_operand.vmem [shape: f32[1,128], index: 6, kind: input, shape index: {}]   ;;  %s12712_s7 = inlined_call_operand.hbm [shape: bf16[9,128,128], index: 7, kind: input, shape index: {}]   ;;  %s12713_s8 = inlined_call_operand.vmem [shape: f32[1,128], index: 8, kind: input, shape index: {}]   ;;  %s12714_s9 = inlined_call_operand.vmem [shape: f32[1,222,128], index: 9, kind: output, shape index: {}]  }
   0x1   :  { %s30_s11 = sshll.u32 %s12710_s5, 4  ;;  %s31_s11 = int_to_ptr.hbm [resolvable:$true] %s30_s11 }
   0x2   :  { %15 = vsyncpa [#allocation7], 0  ;;  %s8985_s12 = smov [#allocation4]   ;;  %s45_s16 = sshll.u32 %s12712_s7, 4  ;;  %s46_s16 = int_to_ptr.hbm [resolvable:$true] %s45_s16 }
   0x3   :  { %s32_s13 = sshll.u32 %s8985_s12, 4  ;;  %s8986_s17 = smov 64   ;;  %s33_s13 = int_to_ptr.vmem [resolvable:$true] %s32_s13 }
   0x4   :  { %s8987_s18 = smov 4   ;;  %s8988_s19 = smov [#allocation6]  }
   0x5   :  { %38 = dma.hbm_to_vmem [thread:$0]  %s31_s11, 9216, %s33_s13, [#allocation5], %s8986_s17, %s8986_s17, %s8987_s18  }
   0x6   :  { %s47_s20 = sshll.u32 %s8988_s19, 4  ;;  %s48_s20 = int_to_ptr.vmem [resolvable:$true] %s47_s20 }
   0x7   :  { %53 = dma.hbm_to_vmem [thread:$0]  %s46_s16, 9216, %s48_s20, [#allocation7], %s8986_s17, %s8986_s17, %s8987_s18  }
   0x8   :  { %8981 = dma.done.wait [#allocation5], 9216  }
   0x9   :  { %8982 = vsyncadd [#allocation5], 4294958080 }
   0xa   :  { %8983 = dma.done.wait [#allocation7], 9216  }
   0xb   :  { %8984 = vsyncadd [#allocation7], 4294958080  ;;  %v8680_v0 = vld [vmem:[%s12708_s3 + $0x38] sm:$0xff]  ;;  %v8679_v3 = vld [vmem:[%s12708_s3 + $0x30] sm:$0xff]  ;;  %vm646_vm0 = vcmask 1045504   ;;  %vm426_vm1 = vcmask 1046528  }
   0xc   :  { %v9054_v1 = vld [vmem:[%s12708_s3 + $0x1b8] sm:$0xff]  ;;  %286 = vmatpush.bf16.msra.mxu0 %v8680_v0  ;;  %8889 = vmatpush.bf16.msra.mxu3 %v8680_v0  ;;  %v9069_v4 = vld [vmem:[%s12708_s3 + $0x1b0] sm:$0xff]  ;;  %v8678_v6 = vld [vmem:[%s12708_s3 + $0x28] sm:$0xff] }
   0xd   :  { %v9059_v2 = vld [vmem:[%s12708_s3 + $0xf8] sm:$0xff]  ;;  %738 = vmatpush.bf16.msra.mxu2 %v9054_v1  ;;  %v9074_v5 = vld [vmem:[%s12708_s3 + $0xf0] sm:$0xff]  ;;  %v9084_v7 = vld [vmem:[%s12708_s3 + $0x1a8] sm:$0xff] }
   0xe   :  { %516 = vmatpush.bf16.msra.mxu1 %v9059_v2  ;;  %v9089_v8 = vld [vmem:[%s12708_s3 + $0xe8] sm:$0xff]  ;;  %v8677_v9 = vld [vmem:[%s12708_s3 + $0x20] sm:$0xff]  ;;  %v78_v13 = vld [vmem:[%s12705_s0 + $0x10] sm:$0xff] }
   0xf   :  { %v9097_v10 = vld [vmem:[%s12708_s3 + $0x1a0] sm:$0xff]  ;;  %v77_v12 = vld [vmem:[%s12705_s0 + $0x8] sm:$0xff]  ;;  %v79_v14 = vld [vmem:[%s12705_s0 + $0x18] sm:$0xff]  ;;  %v109_v18 = vpack.c.bf16 %v78_v13, %v78_v13 }
  0x10   :  { %287 = vmatpush.bf16.msra.mxu0 %v8679_v3  ;;  %8890 = vmatpush.bf16.msra.mxu3 %v8679_v3  ;;  %v9102_v11 = vld [vmem:[%s12708_s3 + $0xe0] sm:$0xff]  ;;  %v81_v16 = vld [vmem:[%s12705_s0 + $0x28] sm:$0xff]  ;;  %v8676_v17 = vld [vmem:[%s12708_s3 + $0x18] sm:$0xff]  ;;  %v110_v19 = vpack.c.bf16 %v79_v14, %v79_v14  ;;  %v108_v22 = vpack.c.bf16 %v77_v12, %v77_v12 }
  0x11   :  { %739 = vmatpush.bf16.msra.mxu2 %v9069_v4  ;;  %v80_v15 = vld [vmem:[%s12705_s0 + $0x20] sm:$0xff]  ;;  %v9129_v20 = vld [vmem:[%s12708_s3 + $0x198] sm:$0xff]  ;;  %v112_v24 = vpack.c.bf16 %v81_v16, %v81_v16  ;;  %v8675_v25 = vld [vmem:[%s12708_s3 + $0x10] sm:$0xff]  ;;  %v184_v29 = vunpack.c.l.b16 %v109_v18 }
  0x12   :  { %517 = vmatpush.bf16.msra.mxu1 %v9074_v5  ;;  %v9134_v21 = vld [vmem:[%s12708_s3 + $0xd8] sm:$0xff]  ;;  %v111_v23 = vpack.c.bf16 %v80_v15, %v80_v15  ;;  %v76_v26 = vld [vmem:[%s12705_s0] sm:$0xff]  ;;  %v98_v27 = vld [vmem:[%s12705_s0 + $0xb0] sm:$0xff]  ;;  %v185_v30 = vunpack.c.l.b16 %v110_v19  ;;  %v183_v33 = vunpack.c.l.b16 %v108_v22 }
  0x13   :  { %v99_v28 = vld [vmem:[%s12705_s0 + $0xb8] sm:$0xff]  ;;  %v9153_v31 = vld [vmem:[%s12708_s3 + $0x190] sm:$0xff]  ;;  %v9160_v35 = vunpack.c.l.b16 %v112_v24  ;;  %v107_v36 = vpack.c.bf16 %v76_v26, %v76_v26  ;;  %v129_v37 = vpack.c.bf16 %v98_v27, %v98_v27  ;;  %v8674_v39 = vld [vmem:[%s12708_s3 + $0x8] sm:$0xff] }
  0x14   :  { %288 = vmatpush.bf16.msra.mxu0 %v8678_v6  ;;  %8891 = vmatpush.bf16.msra.mxu3 %v8678_v6  ;;  %v9158_v32 = vld [vmem:[%s12708_s3 + $0xd0] sm:$0xff]  ;;  %v186_v34 = vunpack.c.l.b16 %v111_v23  ;;  %v130_v38 = vpack.c.bf16 %v99_v28, %v99_v28  ;;  %v9165_v40 = vpack.c.b16 %v185_v30, %v184_v29  ;;  %v9172_v41 = vld [vmem:[%s12708_s3 + $0x188] sm:$0xff]  ;;  %v412_v44 = vpack.c.b16 %v184_v29, %v183_v33  ;;  %v8673_v49 = vld [vmem:[%s12708_s3] sm:$0xff] }
  0x15   :  { %740 = vmatpush.bf16.msra.mxu2 %v9084_v7  ;;  %v9177_v42 = vld [vmem:[%s12708_s3 + $0xc8] sm:$0xff]  ;;  %v182_v46 = vunpack.c.l.b16 %v107_v36  ;;  %v9182_v47 = vunpack.c.l.b16 %v129_v37  ;;  %v9192_v50 = vld [vmem:[%s12708_s3 + $0x180] sm:$0xff]  ;;  %v82_v56 = vld [vmem:[%s12705_s0 + $0x30] sm:$0xff] }
  0x16   :  { %518 = vmatpush.bf16.msra.mxu1 %v9089_v8  ;;  %v9180_v43 = vpack.c.b16 %v9160_v35, %v186_v34  ;;  %v413_v45 = vpack.c.b16 %v186_v34, %v185_v30  ;;  %v9184_v48 = vunpack.c.l.b16 %v130_v38  ;;  %v9199_v51 = vld [vmem:[%s12708_s3 + $0xc0] sm:$0xff]  ;;  %v647_v52 = vrot.slane %v9165_v40, 2  ;;  %v8712_v57 = vld [vmem:[%s12708_s3 + $0x138] sm:$0xff]  ;;  %v8711_v3 = vld [vmem:[%s12708_s3 + $0x130] sm:$0xff] }
  0x17   :  { %v427_v54 = vrot.slane %v412_v44, 1  ;;  %v83_v58 = vld [vmem:[%s12705_s0 + $0x38] sm:$0xff]  ;;  %v210_v59 = vpack.c.b16 %v183_v33, %v182_v46  ;;  %v113_v61 = vpack.c.bf16 %v82_v56, %v82_v56  ;;  %v100_v6 = vld [vmem:[%s12705_s0 + $0xc0] sm:$0xff]  ;;  %v85_v24 = vld [vmem:[%s12705_s0 + $0x48] sm:$0xff] }
  0x18   :  { %289 = vmatpush.bf16.msra.mxu0 %v8677_v9  ;;  %8892 = vmatpush.bf16.msra.mxu3 %v8677_v9  ;;  %v648_v53 = vrot.slane %v9180_v43, 2  ;;  %v428_v55 = vrot.slane %v413_v45, 1  ;;  %v9214_v60 = vpack.c.b16 %v9184_v48, %v9182_v47  ;;  %v114_v0 = vpack.c.bf16 %v83_v58, %v83_v58  ;;  %v101_v9 = vld [vmem:[%s12705_s0 + $0xc8] sm:$0xff]  ;;  %v103_v29 = vld [vmem:[%s12705_s0 + $0xd8] sm:$0xff]  ;;  %v86_v44 = vld [vmem:[%s12705_s0 + $0x50] sm:$0xff] }
  0x19   :  { %741 = vmatpush.bf16.msra.mxu2 %v9097_v10  ;;  %v188_v12 = vunpack.c.l.b16 %v113_v61  ;;  %v131_v14 = vpack.c.bf16 %v100_v6, %v100_v6  ;;  %v132_v15 = vpack.c.bf16 %v101_v9, %v101_v9  ;;  %v116_v28 = vpack.c.bf16 %v85_v24, %v85_v24 }
  0x1a   :  { %519 = vmatpush.bf16.msra.mxu1 %v9102_v11  ;;  %v649_v62 = vsel %vm646_vm0, %v647_v52, %v648_v53  ;;  %v429_v63 = vsel %vm426_vm1, %v427_v54, %v428_v55  ;;  %v189_v13 = vunpack.c.l.b16 %v114_v0 }
  0x1b   :  { %v206_v18 = vunpack.c.l.b16 %v131_v14  ;;  %v207_v19 = vunpack.c.l.b16 %v132_v15  ;;  %v191_v33 = vunpack.c.l.b16 %v116_v28 }
  0x1c   :  { %290 = vmatpush.bf16.msra.mxu0 %v8676_v17  ;;  %8893 = vmatpush.bf16.msra.mxu3 %v8676_v17  ;;  %v9235_v16 = vpack.c.b16 %v189_v13, %v188_v12  ;;  %v414_v17 = vpack.c.b16 %v188_v12, %v9160_v35  ;;  %v8708_v12 = vld [vmem:[%s12708_s3 + $0x118] sm:$0xff] }
  0x1d   :  { %742 = vmatpush.bf16.msra.mxu2 %v9129_v20 }
  0x1e   :  { %520 = vmatpush.bf16.msra.mxu1 %v9134_v21  ;;  %v650_v22 = vrot.slane %v9235_v16, 2  ;;  %v430_v23 = vrot.slane %v414_v17, 1 }
  0x20   :  { %291 = vmatpush.bf16.msra.mxu0 %v8675_v25  ;;  %8894 = vmatpush.bf16.msra.mxu3 %v8675_v25  ;;  %v9247_v25 = vpack.c.b16 %v207_v19, %v206_v18  ;;  %v431_v26 = vsel %vm426_vm1, %v428_v55, %v430_v23 }
  0x21   :  { %743 = vmatpush.bf16.msra.mxu2 %v9153_v31 }
  0x22   :  { %521 = vmatpush.bf16.msra.mxu1 %v9158_v32 }
  0x24   :  { %292 = vmatpush.bf16.msra.mxu0 %v8674_v39  ;;  %8895 = vmatpush.bf16.msra.mxu3 %v8674_v39 }
  0x25   :  { %744 = vmatpush.bf16.msra.mxu2 %v9172_v41 }
  0x26   :  { %522 = vmatpush.bf16.msra.mxu1 %v9177_v42 }
  0x28   :  { %293 = vmatpush.bf16.msra.mxu0 %v8673_v49  ;;  %8896 = vmatpush.bf16.msra.mxu3 %v8673_v49  ;;  %v117_v49 = vpack.c.bf16 %v86_v44, %v86_v44 }
  0x29   :  { %745 = vmatpush.bf16.msra.mxu2 %v9192_v50 }
  0x2a   :  { %523 = vmatpush.bf16.msra.mxu1 %v9199_v51 }
  0x2b   :  { %294 = vmatmul.bf16.vlgmr.msra.gmra.mxu0 %v210_v59  ;;  %349 = vmatmul.bf16.vlgmr.msra.gmra.mxu3 %v9214_v60 }
  0x2c   :  { %1285 = vmatpush.bf16.msrb.mxu0 %v8712_v57  ;;  %8897 = vmatpush.bf16.msrb.mxu3 %v9059_v2  ;;  %v8710_v2 = vld [vmem:[%s12708_s3 + $0x128] sm:$0xff] }
  0x2d   :  { %746 = vmatmul.bf16.vlgmr.msra.gmra.mxu2 %v649_v62  ;;  %524 = vmatmul.bf16.vlgmr.msra.gmra.mxu1 %v429_v63  ;;  %v104_v62 = vld [vmem:[%s12705_s0 + $0xe0] sm:$0xff] }
  0x2e   :  { %v135_v63 = vpack.c.bf16 %v104_v62, %v104_v62  ;;  %v8700_v62 = vld [vmem:[%s12708_s3 + $0x58] sm:$0xff] }
  0x30   :  { %8898 = vmatpush.bf16.msrb.mxu3 %v9074_v5  ;;  %1286 = vmatpush.bf16.msrb.mxu0 %v8711_v3  ;;  %v84_v5 = vld [vmem:[%s12705_s0 + $0x40] sm:$0xff] }
  0x31   :  { %v115_v27 = vpack.c.bf16 %v84_v5, %v84_v5 }
  0x33   :  { %v190_v30 = vunpack.c.l.b16 %v115_v27 }
  0x34   :  { %8899 = vmatpush.bf16.msrb.mxu3 %v9089_v8  ;;  %1287 = vmatpush.bf16.msrb.mxu0 %v8710_v2  ;;  %v651_v8 = vsel %vm646_vm0, %v648_v53, %v650_v22  ;;  %v192_v53 = vunpack.c.l.b16 %v117_v49 }
  0x35   :  { %v9261_v35 = vpack.c.b16 %v191_v33, %v190_v30  ;;  %v415_v36 = vpack.c.b16 %v190_v30, %v189_v13  ;;  %v92_v30 = vld [vmem:[%s12705_s0 + $0x80] sm:$0xff] }
  0x36   :  { %v416_v57 = vpack.c.b16 %v192_v53, %v191_v33  ;;  %v93_v33 = vld [vmem:[%s12705_s0 + $0x88] sm:$0xff] }
  0x37   :  { %v652_v39 = vrot.slane %v9261_v35, 2 }
  0x38   :  { %8900 = vmatpush.bf16.msrb.mxu3 %v9102_v11  ;;  %v102_v11 = vld [vmem:[%s12705_s0 + $0xd0] sm:$0xff]  ;;  %v434_v61 = vrot.slane %v416_v57, 1 }
  0x39   :  { %v133_v34 = vpack.c.bf16 %v102_v11, %v102_v11 }
  0x3b   :  { %299 = vmatmul.bf16.gmra.mxu0 %v9165_v40  ;;  %354 = vmatmul.bf16.gmra.mxu3 %v9247_v25  ;;  %v208_v37 = vunpack.c.l.b16 %v133_v34  ;;  %v432_v40 = vrot.slane %v415_v36, 1  ;;  %v124_v36 = vpack.c.bf16 %v93_v33, %v93_v33  ;;  %v8705_v33 = vld [vmem:[%s12708_s3 + $0x100] sm:$0xff] }
  0x3c   :  { %8901 = vmatpush.bf16.msrb.mxu3 %v9134_v21  ;;  %v134_v21 = vpack.c.bf16 %v103_v29, %v103_v29 }
  0x3d   :  { %751 = vmatmul.bf16.gmra.mxu2 %v651_v8  ;;  %529 = vmatmul.bf16.gmra.mxu1 %v431_v26  ;;  %v433_v46 = vsel %vm426_vm1, %v430_v23, %v432_v40  ;;  %v424_v55 = vpack.c.b16 %v208_v37, %v207_v19  ;;  %v435_v3 = vsel %vm426_vm1, %v432_v40, %v434_v61  ;;  %v90_v19 = vld [vmem:[%s12705_s0 + $0x70] sm:$0xff] }
  0x3e   :  { %v209_v38 = vunpack.c.l.b16 %v134_v21  ;;  %v8703_v40 = vld [vmem:[%s12708_s3 + $0x70] sm:$0xff] }
  0x3f   :  { %v450_v58 = vrot.slane %v424_v55, 1 }
  0x40   :  { %8902 = vmatpush.bf16.msrb.mxu3 %v9158_v32  ;;  %v87_v32 = vld [vmem:[%s12705_s0 + $0x58] sm:$0xff]  ;;  %v9272_v45 = vpack.c.b16 %v209_v38, %v208_v37 }
  0x41   :  { %v118_v52 = vpack.c.bf16 %v87_v32, %v87_v32  ;;  %v8704_v37 = vld [vmem:[%s12708_s3 + $0x78] sm:$0xff] }
  0x42   :  { %v670_v49 = vrot.slane %v9272_v45, 2 }
  0x43   :  { %v193_v54 = vunpack.c.l.b16 %v118_v52 }
  0x44   :  { %8903 = vmatpush.bf16.msrb.mxu3 %v9177_v42  ;;  %v653_v42 = vsel %vm646_vm0, %v650_v22, %v652_v39 }
  0x45   :  { %v215_v56 = vpack.c.b16 %v193_v54, %v192_v53  ;;  %v105_v53 = vld [vmem:[%s12705_s0 + $0xe8] sm:$0xff] }
  0x47   :  { %v654_v59 = vrot.slane %v215_v56, 2 }
  0x48   :  { %8904 = vmatpush.bf16.msrb.mxu3 %v9199_v51  ;;  %v8709_v51 = vld [vmem:[%s12708_s3 + $0x120] sm:$0xff] }
  0x49   :  { %1288 = vmatpush.bf16.msrb.mxu0 %v8709_v51  ;;  %v655_v0 = vsel %vm646_vm0, %v652_v39, %v654_v59  ;;  %v199_v39 = vunpack.c.l.b16 %v124_v36 }
  0x4b   :  { %304 = vmatmul.bf16.gmra.mxu0 %v9180_v43  ;;  %359 = vmatmul.bf16.gmra.mxu3 %v9272_v45  ;;  %v8701_v45 = vld [vmem:[%s12708_s3 + $0x60] sm:$0xff] }
  0x4c   :  { %8905 = vmatpush.bf16.msra.mxu3 %v9054_v1  ;;  %v423_v1 = vpack.c.b16 %v206_v18, %v9184_v48  ;;  %v89_v48 = vld [vmem:[%s12705_s0 + $0x68] sm:$0xff] }
  0x4d   :  { %756 = vmatmul.bf16.gmra.mxu2 %v653_v42  ;;  %534 = vmatmul.bf16.gmra.mxu1 %v433_v46  ;;  %v120_v9 = vpack.c.bf16 %v89_v48, %v89_v48  ;;  %v8702_v42 = vld [vmem:[%s12708_s3 + $0x68] sm:$0xff]  ;;  %v668_v46 = vrot.slane %v9247_v25, 2  ;;  %v8716_v25 = vld [vmem:[%s12708_s3 + $0x1d8] sm:$0xff] }
  0x4e   :  { %v9285_v43 = vrot.slane %v423_v1, 1  ;;  %1289 = vmatpush.bf16.msrb.mxu0 %v8708_v12  ;;  %v95_v1 = vld [vmem:[%s12705_s0 + $0x98] sm:$0xff]  ;;  %v8698_v12 = vld [vmem:[%s12708_s3 + $0x48] sm:$0xff] }
  0x4f   :  { %v195_v2 = vunpack.c.l.b16 %v120_v9  ;;  %v671_v55 = vsel %vm646_vm0, %v668_v46, %v670_v49 }
  0x50   :  { %8906 = vmatpush.bf16.msra.mxu3 %v9069_v4  ;;  %v88_v4 = vld [vmem:[%s12705_s0 + $0x60] sm:$0xff] }
  0x51   :  { %v119_v6 = vpack.c.bf16 %v88_v4, %v88_v4 }
  0x53   :  { %v194_v13 = vunpack.c.l.b16 %v119_v6 }
  0x54   :  { %8907 = vmatpush.bf16.msra.mxu3 %v9084_v7  ;;  %v451_v7 = vsel %vm426_vm1, %v9285_v43, %v450_v58 }
  0x55   :  { %v216_v15 = vpack.c.b16 %v195_v2, %v194_v13 }
  0x57   :  { %v656_v17 = vrot.slane %v216_v15, 2 }
  0x58   :  { %8908 = vmatpush.bf16.msra.mxu3 %v9097_v10  ;;  %v9303_v10 = vunpack.c.l.b16 %v135_v63  ;;  %v8699_v63 = vld [vmem:[%s12708_s3 + $0x50] sm:$0xff] }
  0x59   :  { %v657_v23 = vsel %vm646_vm0, %v654_v59, %v656_v17 }
  0x5a   :  { %v425_v14 = vpack.c.b16 %v9303_v10, %v209_v38 }
  0x5b   :  { %309 = vmatmul.bf16.gmra.mxu0 %v9235_v16  ;;  %579 = vmatmul.bf16.vlgmr.msrb.gmra.mxu3 %v451_v7 }
  0x5c   :  { %8909 = vmatpush.bf16.msra.mxu3 %v9129_v20  ;;  %v417_v20 = vpack.c.b16 %v194_v13, %v193_v54  ;;  %v452_v16 = vrot.slane %v425_v14, 1  ;;  %v94_v54 = vld [vmem:[%s12705_s0 + $0x90] sm:$0xff] }
  0x5d   :  { %761 = vmatmul.bf16.gmra.mxu2 %v655_v0  ;;  %539 = vmatmul.bf16.gmra.mxu1 %v435_v3  ;;  %v125_v59 = vpack.c.bf16 %v94_v54, %v94_v54  ;;  %v8706_v3 = vld [vmem:[%s12708_s3 + $0x108] sm:$0xff] }
  0x5e   :  { %v436_v18 = vrot.slane %v417_v20, 1  ;;  %v453_v22 = vsel %vm426_vm1, %v450_v58, %v452_v16  ;;  %v97_v20 = vld [vmem:[%s12705_s0 + $0xa8] sm:$0xff] }
  0x5f   :  { %v200_v48 = vunpack.c.l.b16 %v125_v59 }
  0x60   :  { %8910 = vmatpush.bf16.msra.mxu3 %v9153_v31  ;;  %v91_v31 = vld [vmem:[%s12705_s0 + $0x78] sm:$0xff]  ;;  %v437_v5 = vsel %vm426_vm1, %v434_v61, %v436_v18  ;;  %v126_v61 = vpack.c.bf16 %v95_v1, %v95_v1 }
  0x61   :  { %v122_v24 = vpack.c.bf16 %v91_v31, %v91_v31  ;;  %v420_v9 = vpack.c.b16 %v200_v48, %v199_v39  ;;  %v8724_v1 = vld [vmem:[%s12708_s3 + $0x98] sm:$0xff] }
  0x62   :  { %v201_v7 = vunpack.c.l.b16 %v126_v61 }
  0x63   :  { %v197_v26 = vunpack.c.l.b16 %v122_v24  ;;  %v442_v14 = vrot.slane %v420_v9, 1  ;;  %v8736_v9 = vld [vmem:[%s12708_s3 + $0x178] sm:$0xff] }
  0x64   :  { %8911 = vmatpush.bf16.msra.mxu3 %v9172_v41  ;;  %v121_v41 = vpack.c.bf16 %v90_v19, %v90_v19  ;;  %v9377_v6 = vpack.c.b16 %v201_v7, %v200_v48 }
  0x66   :  { %v196_v8 = vunpack.c.l.b16 %v121_v41 }
  0x68   :  { %8912 = vmatpush.bf16.msra.mxu3 %v9192_v50  ;;  %v8707_v50 = vld [vmem:[%s12708_s3 + $0x110] sm:$0xff]  ;;  %v9325_v27 = vpack.c.b16 %v197_v26, %v196_v8  ;;  %v418_v28 = vpack.c.b16 %v196_v8, %v195_v2  ;;  %v662_v2 = vrot.slane %v9377_v6, 2  ;;  %v8720_v8 = vld [vmem:[%s12708_s3 + $0x1f8] sm:$0xff] }
  0x69   :  { %1290 = vmatpush.bf16.msrb.mxu0 %v8707_v50  ;;  %1506 = vmatpush.bf16.msrb.mxu1 %v8720_v8 }
  0x6a   :  { %v658_v11 = vrot.slane %v9325_v27, 2  ;;  %v438_v29 = vrot.slane %v418_v28, 1 }
  0x6b   :  { %314 = vmatmul.bf16.gmra.mxu0 %v9261_v35  ;;  %584 = vmatmul.bf16.gmra.mxu3 %v453_v22  ;;  %v123_v35 = vpack.c.bf16 %v92_v30, %v92_v30  ;;  %v8726_v30 = vld [vmem:[%s12708_s3 + $0xa8] sm:$0xff] }
  0x6c   :  { %v659_v34 = vsel %vm646_vm0, %v656_v17, %v658_v11  ;;  %v439_v21 = vsel %vm426_vm1, %v436_v18, %v438_v29  ;;  %1056 = vmatpush.bf16.msrb.mxu3 %v8704_v37  ;;  %v8718_v37 = vld [vmem:[%s12708_s3 + $0x1e8] sm:$0xff] }
  0x6d   :  { %766 = vmatmul.bf16.gmra.mxu2 %v657_v23  ;;  %544 = vmatmul.bf16.gmra.mxu1 %v437_v5  ;;  %v198_v38 = vunpack.c.l.b16 %v123_v35  ;;  %v128_v23 = vpack.c.bf16 %v97_v20, %v97_v20  ;;  %v8728_v5 = vld [vmem:[%s12708_s3 + $0xb8] sm:$0xff] }
  0x6e   :  { %1291 = vmatpush.bf16.msrb.mxu0 %v8706_v3  ;;  %1824 = vmatpush.bf16.msrb.mxu2 %v8728_v5  ;;  %v847_v5 = vld [vmem:[%s12705_s0 + $0x11] sm:$0xff] }
  0x6f   :  { %v9342_v44 = vpack.c.b16 %v199_v39, %v198_v38  ;;  %v419_v32 = vpack.c.b16 %v198_v38, %v197_v26  ;;  %v203_v50 = vunpack.c.l.b16 %v128_v23  ;;  %v8727_v26 = vld [vmem:[%s12708_s3 + $0xb0] sm:$0xff]  ;;  %v8725_v38 = vld [vmem:[%s12708_s3 + $0xa0] sm:$0xff]  ;;  %v878_v8 = vpack.c.bf16 %v847_v5, %v847_v5 }
  0x70   :  { %1057 = vmatpush.bf16.msrb.mxu3 %v8703_v40 }
  0x71   :  { %v660_v52 = vrot.slane %v9342_v44, 2  ;;  %v440_v51 = vrot.slane %v419_v32, 1  ;;  %v666_v32 = vrot.slane %v9214_v60, 2  ;;  %v422_v48 = vpack.c.b16 %v9182_v47, %v203_v50  ;;  %v8714_v47 = vld [vmem:[%s12708_s3 + $0x1c8] sm:$0xff] }
  0x72   :  { %1825 = vmatpush.bf16.msrb.mxu2 %v8727_v26  ;;  %1292 = vmatpush.bf16.msrb.mxu0 %v8705_v33 }
  0x73   :  { %v661_v57 = vsel %vm646_vm0, %v658_v11, %v660_v52  ;;  %v441_v58 = vsel %vm426_vm1, %v438_v29, %v440_v51  ;;  %v663_v19 = vsel %vm646_vm0, %v660_v52, %v662_v2  ;;  %v443_v31 = vsel %vm426_vm1, %v440_v51, %v442_v14  ;;  %v8719_v29 = vld [vmem:[%s12708_s3 + $0x1f0] sm:$0xff] }
  0x74   :  { %1058 = vmatpush.bf16.msrb.mxu3 %v8702_v42  ;;  %1507 = vmatpush.bf16.msrb.mxu1 %v8719_v29  ;;  %v9443_v60 = vsel %vm646_vm0, %v666_v32, %v668_v46 }
  0x76   :  { %1826 = vmatpush.bf16.msrb.mxu2 %v8726_v30 }
  0x78   :  { %1059 = vmatpush.bf16.msrb.mxu3 %v8701_v45  ;;  %1508 = vmatpush.bf16.msrb.mxu1 %v8718_v37  ;;  %v845_v45 = vld [vmem:[%s12705_s0 + $0x1] sm:$0xff] }
  0x79   :  { %v849_v37 = vld [vmem:[%s12705_s0 + $0x21] sm:$0xff] }
  0x7a   :  { %1827 = vmatpush.bf16.msrb.mxu2 %v8725_v38  ;;  %v1615_v38 = vld [vmem:[%s12705_s0 + $0x12] sm:$0xff] }
  0x7b   :  { %319 = vmatmul.bf16.gmra.mxu0 %v215_v56  ;;  %589 = vmatmul.bf16.gmra.mxu3 %v452_v16  ;;  %v136_v56 = vpack.c.bf16 %v105_v53, %v105_v53  ;;  %v8697_v16 = vld [vmem:[%s12708_s3 + $0x40] sm:$0xff] }
  0x7c   :  { %1060 = vmatpush.bf16.msrb.mxu3 %v8700_v62  ;;  %v8717_v53 = vld [vmem:[%s12708_s3 + $0x1e0] sm:$0xff] }
  0x7d   :  { %771 = vmatmul.bf16.gmra.mxu2 %v659_v34  ;;  %549 = vmatmul.bf16.gmra.mxu1 %v439_v21  ;;  %v642_v4 = vunpack.c.l.b16 %v136_v56  ;;  %v9422_v21 = vld [vmem:[%s12709_s4] ss:$0 sm:$0xff]  ;;  %v876_v56 = vpack.c.bf16 %v845_v45, %v845_v45 }
  0x7e   :  { %1509 = vmatpush.bf16.msrb.mxu1 %v8717_v53  ;;  %1828 = vmatpush.bf16.msrb.mxu2 %v8724_v1 }
  0x7f   :  { %v644_v0 = vpack.c.b16 %v642_v4, %v9303_v10  ;;  %v106_v10 = vld [vmem:[%s12705_s0 + $0xf0] sm:$0x3] }
  0x80   :  { %1061 = vmatpush.bf16.msrb.mxu3 %v8699_v63  ;;  %v137_v18 = vpack.c.bf16 %v106_v10, %v106_v10 }
  0x81   :  { %v672_v13 = vrot.slane %v644_v0, 2  ;;  %v952_v0 = vunpack.c.l.b16 %v876_v56 }
  0x82   :  { %v643_v41 = vunpack.c.l.b16 %v137_v18  ;;  %1510 = vmatpush.bf16.msrb.mxu1 %v8716_v25 }
  0x83   :  { %v673_v17 = vsel %vm646_vm0, %v670_v49, %v672_v13 }
  0x84   :  { %1062 = vmatpush.bf16.msrb.mxu3 %v8698_v12  ;;  %v8722_v12 = vld [vmem:[%s12708_s3 + $0x88] sm:$0xff] }
  0x88   :  { %1063 = vmatpush.bf16.msrb.mxu3 %v8697_v16 }
  0x8b   :  { %324 = vmatmul.bf16.gmra.mxu0 %v216_v15  ;;  %801 = vmatmul.bf16.vlgmr.msra.gmra.mxu3 %v671_v55  ;;  %v96_v15 = vld [vmem:[%s12705_s0 + $0xa0] sm:$0xff] }
  0x8c   :  { %v127_v22 = vpack.c.bf16 %v96_v15, %v96_v15  ;;  %2053 = vmatpush.bf16.msra.mxu3 %v8736_v9  ;;  %v8721_v15 = vld [vmem:[%s12708_s3 + $0x80] sm:$0xff]  ;;  %v8735_v9 = vld [vmem:[%s12708_s3 + $0x170] sm:$0xff] }
  0x8d   :  { %776 = vmatmul.bf16.gmra.mxu2 %v661_v57  ;;  %554 = vmatmul.bf16.gmra.mxu1 %v441_v58  ;;  %v8723_v58 = vld [vmem:[%s12708_s3 + $0x90] sm:$0xff] }
  0x8e   :  { %v202_v24 = vunpack.c.l.b16 %v127_v22  ;;  %1829 = vmatpush.bf16.msrb.mxu2 %v8723_v58  ;;  %v8713_v22 = vld [vmem:[%s12708_s3 + $0x1c0] sm:$0xff] }
  0x90   :  { %v9408_v28 = vpack.c.b16 %v203_v50, %v202_v24  ;;  %v421_v11 = vpack.c.b16 %v202_v24, %v201_v7  ;;  %v8715_v7 = vld [vmem:[%s12708_s3 + $0x1d0] sm:$0xff]  ;;  %v8744_v24 = vld [vmem:[%s12708_s3 + $0x238] sm:$0xff]  ;;  %2054 = vmatpush.bf16.msra.mxu3 %v8735_v9 }
  0x91   :  { %1511 = vmatpush.bf16.msrb.mxu1 %v8715_v7  ;;  %2274 = vmatpush.bf16.msra.mxu0 %v8744_v24 }
  0x92   :  { %v664_v35 = vrot.slane %v9408_v28, 2  ;;  %v444_v36 = vrot.slane %v421_v11, 1  ;;  %1830 = vmatpush.bf16.msrb.mxu2 %v8722_v12 }
  0x94   :  { %v665_v52 = vsel %vm646_vm0, %v662_v2, %v664_v35  ;;  %v445_v51 = vsel %vm426_vm1, %v442_v14, %v444_v36 }
  0x95   :  { %1512 = vmatpush.bf16.msrb.mxu1 %v8714_v47 }
  0x96   :  { %1831 = vmatpush.bf16.msrb.mxu2 %v8721_v15 }
  0x99   :  { %1513 = vmatpush.bf16.msrb.mxu1 %v8713_v22 }
  0x9b   :  { %329 = vmatmul.bf16.gmra.mxu0 %v9325_v27  ;;  %806 = vmatmul.bf16.gmra.mxu3 %v673_v17  ;;  %v645_v27 = vpack.c.b16 %v643_v41, %v643_v41  ;;  %v848_v41 = vld [vmem:[%s12705_s0 + $0x19] sm:$0xff] }
  0x9c   :  { %v879_v26 = vpack.c.bf16 %v848_v41, %v848_v41 }
  0x9d   :  { %781 = vmatmul.bf16.gmra.mxu2 %v663_v19  ;;  %559 = vmatmul.bf16.gmra.mxu1 %v443_v31  ;;  %v674_v34 = vrot.slane %v645_v27, 2  ;;  %v667_v19 = vsel %vm646_vm0, %v664_v35, %v666_v32 }
  0x9e   :  { %v955_v35 = vunpack.c.l.b16 %v879_v26 }
  0x9f   :  { %v675_v40 = vsel %vm646_vm0, %v672_v13, %v674_v34  ;;  %v446_v13 = vrot.slane %v422_v48, 1  ;;  %v954_v34 = vunpack.c.l.b16 %v878_v8 }
  0xa1   :  { %v447_v31 = vsel %vm426_vm1, %v444_v36, %v446_v13  ;;  %v1614_v36 = vld [vmem:[%s12705_s0 + $0xa] sm:$0xff] }
  0xa2   :  { %v1645_v32 = vpack.c.bf16 %v1614_v36, %v1614_v36 }
  0xa8   :  { %v295_v39 = vpop.f32.mrf.mxu0 }
  0xa9   :  { %v365_v42 = vadd.f32 %v9422_v21, %v295_v39 }
  0xaa   :  { %v525_v49 = vpop.f32.mrf.mxu1 }
  0xab   :  { %v595_v54 = vadd.f32 %v525_v49, %v365_v42  ;;  %334 = vmatmul.bf16.gmra.mxu0 %v9342_v44  ;;  %811 = vmatmul.bf16.gmra.mxu3 %v675_v40  ;;  %v846_v44 = vld [vmem:[%s12705_s0 + $0x9] sm:$0xff]  ;;  %v1646_v42 = vpack.c.bf16 %v1615_v38, %v1615_v38 }
  0xac   :  { %v877_v57 = vpack.c.bf16 %v846_v44, %v846_v44  ;;  %v850_v40 = vld [vmem:[%s12705_s0 + $0x29] sm:$0xff]  ;;  %v449_v44 = vsel %vm426_vm1, %v446_v13, %v9285_v43 }
  0xad   :  { %786 = vmatmul.bf16.gmra.mxu2 %v665_v52  ;;  %564 = vmatmul.bf16.gmra.mxu1 %v445_v51  ;;  %v981_v52 = vpack.c.b16 %v955_v35, %v954_v34  ;;  %v881_v25 = vpack.c.bf16 %v850_v40, %v850_v40  ;;  %v9530_v56 = vunpack.c.l.b16 %v1646_v42  ;;  %v1613_v43 = vld [vmem:[%s12705_s0 + $0x2] sm:$0xff] }
  0xae   :  { %v9457_v46 = vpop.f32.mrf.mxu3  ;;  %v9469_v3 = vunpack.c.l.b16 %v877_v57 }
  0xb0   :  { %v747_v55 = vpop.f32.mrf.mxu2  ;;  %v297_v61 = vpop.f32.mrf.mxu0  ;;  %v980_v10 = vpack.c.b16 %v9469_v3, %v952_v0  ;;  %v1182_v7 = vpack.c.b16 %v954_v34, %v9469_v3  ;;  %v1616_v3 = vld [vmem:[%s12705_s0 + $0x1a] sm:$0xff] }
  0xb1   :  { %v9462_v59 = vadd.f32 %v747_v55, %v595_v54  ;;  %v366_v62 = vadd.f32 %v9422_v21, %v297_v61  ;;  %v880_v54 = vpack.c.bf16 %v849_v37, %v849_v37  ;;  %v9528_v55 = vunpack.c.l.b16 %v1645_v32 }
  0xb2   :  { %v527_v4 = vpop.f32.mrf.mxu1  ;;  %v1647_v5 = vpack.c.bf16 %v1616_v3, %v1616_v3 }
  0xb3   :  { %v596_v63 = vadd.f32 %v527_v4, %v366_v62  ;;  %v956_v58 = vunpack.c.l.b16 %v880_v54  ;;  %v957_v62 = vunpack.c.l.b16 %v881_v25 }
  0xb4   :  { %v9574_v37 = vunpack.c.l.b16 %v1647_v5 }
  0xb5   :  { %v1183_v0 = vpack.c.b16 %v956_v58, %v955_v35  ;;  %v9548_v47 = vpack.c.b16 %v957_v62, %v956_v58 }
  0xb6   :  { %v9480_v2 = vpop.f32.mrf.mxu3 }
  0xb7   :  { %v1197_v15 = vrot.slane %v1183_v0, 1 }
  0xb8   :  { %v749_v14 = vpop.f32.mrf.mxu2  ;;  %v300_v16 = vpop.f32.mrf.mxu0 }
  0xb9   :  { %v9486_v20 = vadd.f32 %v749_v14, %v596_v63  ;;  %v367_v17 = vadd.f32 %v9422_v21, %v300_v16 }
  0xba   :  { %v530_v18 = vpop.f32.mrf.mxu1 }
  0xbb   :  { %v597_v23 = vadd.f32 %v530_v18, %v367_v17  ;;  %339 = vmatmul.bf16.gmra.mxu0 %v9377_v6  ;;  %1064 = vmatmul.bf16.vlgmr.msrb.gmra.mxu3 %v980_v10  ;;  %v1196_v10 = vrot.slane %v1182_v7, 1  ;;  %v1415_v17 = vrot.slane %v981_v52, 2  ;;  %v851_v18 = vld [vmem:[%s12705_s0 + $0x31] sm:$0xff] }
  0xbc   :  { %v882_v26 = vpack.c.bf16 %v851_v18, %v851_v18 }
  0xbd   :  { %791 = vmatmul.bf16.gmra.mxu2 %v667_v19  ;;  %569 = vmatmul.bf16.gmra.mxu1 %v447_v31  ;;  %v1416_v19 = vrot.slane %v9548_v47, 2  ;;  %v1617_v31 = vld [vmem:[%s12705_s0 + $0x22] sm:$0xff] }
  0xbe   :  { %v9504_v50 = vpop.f32.mrf.mxu3  ;;  %v1648_v41 = vpack.c.bf16 %v1617_v31, %v1617_v31  ;;  %v958_v32 = vunpack.c.l.b16 %v882_v26 }
  0xbf   :  { %v1417_v35 = vsel %vm646_vm0, %v1415_v17, %v1416_v19  ;;  %v389_v5 = vadd.f32 %v9422_v21, %v9504_v50 }
  0xc0   :  { %v752_v6 = vpop.f32.mrf.mxu2  ;;  %v302_v11 = vpop.f32.mrf.mxu0  ;;  %v9576_v38 = vunpack.c.l.b16 %v1648_v41 }
  0xc1   :  { %v9506_v27 = vadd.f32 %v752_v6, %v597_v23  ;;  %v368_v29 = vadd.f32 %v9422_v21, %v302_v11  ;;  %v852_v23 = vld [vmem:[%s12705_s0 + $0x39] sm:$0xff]  ;;  %v1198_v11 = vsel %vm426_vm1, %v1196_v10, %v1197_v15 }
  0xc2   :  { %v532_v30 = vpop.f32.mrf.mxu1  ;;  %v883_v36 = vpack.c.bf16 %v852_v23, %v852_v23 }
  0xc3   :  { %v598_v33 = vadd.f32 %v532_v30, %v368_v29  ;;  %v8743_v30 = vld [vmem:[%s12708_s3 + $0x230] sm:$0xff] }
  0xc4   :  { %2275 = vmatpush.bf16.msra.mxu0 %v8743_v30 }
  0xc6   :  { %v9518_v39 = vpop.f32.mrf.mxu3 }
  0xc8   :  { %v754_v49 = vpop.f32.mrf.mxu2  ;;  %v305_v53 = vpop.f32.mrf.mxu0 }
  0xc9   :  { %v9523_v51 = vadd.f32 %v754_v49, %v598_v33  ;;  %v369_v1 = vadd.f32 %v9422_v21, %v305_v53  ;;  %v387_v49 = vadd.f32 %v9422_v21, %v9457_v46  ;;  %v853_v46 = vld [vmem:[%s12705_s0 + $0x41] sm:$0xff] }
  0xca   :  { %v535_v45 = vpop.f32.mrf.mxu1  ;;  %v884_v3 = vpack.c.bf16 %v853_v46, %v853_v46 }
  0xcb   :  { %v599_v57 = vadd.f32 %v535_v45, %v369_v1  ;;  %344 = vmatmul.bf16.gmra.mxu0 %v9408_v28  ;;  %1069 = vmatmul.bf16.gmra.mxu3 %v981_v52  ;;  %v959_v52 = vunpack.c.l.b16 %v883_v36  ;;  %v1184_v45 = vpack.c.b16 %v958_v32, %v957_v62  ;;  %v854_v62 = vld [vmem:[%s12705_s0 + $0x49] sm:$0xff] }
  0xcc   :  { %v885_v18 = vpack.c.bf16 %v854_v62, %v854_v62  ;;  %v960_v23 = vunpack.c.l.b16 %v884_v3 }
  0xcd   :  { %796 = vmatmul.bf16.gmra.mxu2 %v9443_v60  ;;  %574 = vmatmul.bf16.gmra.mxu1 %v449_v44  ;;  %v1644_v60 = vpack.c.bf16 %v1613_v43, %v1613_v43  ;;  %v983_v43 = vpack.c.b16 %v959_v52, %v958_v32  ;;  %v1199_v7 = vrot.slane %v1184_v45, 1 }
  0xce   :  { %v9539_v4 = vpop.f32.mrf.mxu3  ;;  %v961_v41 = vunpack.c.l.b16 %v885_v18  ;;  %v1185_v30 = vpack.c.b16 %v960_v23, %v959_v52  ;;  %v855_v52 = vld [vmem:[%s12705_s0 + $0x51] sm:$0xff] }
  0xcf   :  { %v1720_v16 = vunpack.c.l.b16 %v1644_v60  ;;  %v1418_v0 = vrot.slane %v983_v43, 2  ;;  %v886_v46 = vpack.c.bf16 %v855_v52, %v855_v52 }
  0xd0   :  { %v757_v48 = vpop.f32.mrf.mxu2  ;;  %v307_v28 = vpop.f32.mrf.mxu0  ;;  %v9621_v36 = vpack.c.b16 %v961_v41, %v960_v23  ;;  %v1201_v32 = vrot.slane %v1185_v30, 1 }
  0xd1   :  { %v9542_v63 = vadd.f32 %v757_v48, %v599_v57  ;;  %v370_v12 = vadd.f32 %v9422_v21, %v307_v28  ;;  %v1748_v29 = vpack.c.b16 %v9528_v55, %v1720_v16  ;;  %v388_v28 = vadd.f32 %v9422_v21, %v9480_v2 }
  0xd2   :  { %v537_v13 = vpop.f32.mrf.mxu1  ;;  %v9603_v2 = vpack.c.b16 %v9574_v37, %v9530_v56  ;;  %v1419_v17 = vsel %vm646_vm0, %v1416_v19, %v1418_v0  ;;  %v1618_v19 = vld [vmem:[%s12705_s0 + $0x2a] sm:$0xff]  ;;  %v962_v3 = vunpack.c.l.b16 %v886_v46  ;;  %v8733_v46 = vld [vmem:[%s12708_s3 + $0x160] sm:$0xff] }
  0xd3   :  { %v600_v14 = vadd.f32 %v537_v13, %v370_v12 }
  0xd6   :  { %v9560_v22 = vpop.f32.mrf.mxu3 }
  0xd8   :  { %v759_v24 = vpop.f32.mrf.mxu2  ;;  %v310_v8 = vpop.f32.mrf.mxu0 }
  0xd9   :  { %v9565_v6 = vadd.f32 %v759_v24, %v600_v14  ;;  %v371_v33 = vadd.f32 %v9422_v21, %v310_v8  ;;  %v1200_v14 = vsel %vm426_vm1, %v1197_v15, %v1199_v7  ;;  %v8734_v15 = vld [vmem:[%s12708_s3 + $0x168] sm:$0xff] }
  0xda   :  { %v540_v34 = vpop.f32.mrf.mxu1  ;;  %2055 = vmatpush.bf16.msra.mxu3 %v8734_v15 }
  0xdb   :  { %v601_v40 = vadd.f32 %v540_v34, %v371_v33  ;;  %1074 = vmatmul.bf16.gmra.mxu3 %v9548_v47  ;;  %1293 = vmatmul.bf16.vlgmr.msrb.gmra.mxu0 %v1198_v11  ;;  %v1649_v33 = vpack.c.bf16 %v1618_v19, %v1618_v19 }
  0xdd   :  { %1832 = vmatmul.bf16.vlgmr.msrb.gmra.mxu2 %v1748_v29  ;;  %1514 = vmatmul.bf16.vlgmr.msrb.gmra.mxu1 %v1417_v35 }
  0xde   :  { %v580_v53 = vpop.f32.mrf.mxu3  ;;  %2056 = vmatpush.bf16.msra.mxu3 %v8733_v46 }
  0xdf   :  { %v9583_v54 = vadd.f32 %v580_v53, %v387_v49  ;;  %v9626_v49 = vunpack.c.l.b16 %v1649_v33  ;;  %v390_v53 = vadd.f32 %v9422_v21, %v9518_v39  ;;  %v1202_v39 = vsel %vm426_vm1, %v1199_v7, %v1201_v32 }
  0xe0   :  { %v762_v1 = vpop.f32.mrf.mxu2  ;;  %v312_v25 = vpop.f32.mrf.mxu0  ;;  %v391_v7 = vadd.f32 %v9422_v21, %v9539_v4 }
  0xe1   :  { %v9585_v44 = vadd.f32 %v762_v1, %v601_v40  ;;  %v372_v57 = vadd.f32 %v9422_v21, %v312_v25  ;;  %v8742_v40 = vld [vmem:[%s12708_s3 + $0x228] sm:$0xff]  ;;  %v1420_v1 = vrot.slane %v9621_v36, 2  ;;  %v856_v25 = vld [vmem:[%s12705_s0 + $0x59] sm:$0xff] }
  0xe2   :  { %v542_v58 = vpop.f32.mrf.mxu1  ;;  %2276 = vmatpush.bf16.msra.mxu0 %v8742_v40 }
  0xe3   :  { %v602_v48 = vadd.f32 %v542_v58, %v372_v57 }
  0xe6   :  { %v582_v60 = vpop.f32.mrf.mxu3 }
  0xe7   :  { %v9596_v9 = vadd.f32 %v582_v60, %v388_v28  ;;  %v9644_v28 = vpack.c.b16 %v9626_v49, %v9576_v38 }
  0xe8   :  { %v764_v12 = vpop.f32.mrf.mxu2  ;;  %v315_v47 = vpop.f32.mrf.mxu0 }
  0xe9   :  { %v9598_v13 = vadd.f32 %v764_v12, %v602_v48  ;;  %v373_v10 = vadd.f32 %v9422_v21, %v315_v47  ;;  %v1421_v12 = vsel %vm646_vm0, %v1418_v0, %v1420_v1  ;;  %v887_v47 = vpack.c.bf16 %v856_v25, %v856_v25  ;;  %v1620_v0 = vld [vmem:[%s12705_s0 + $0x3a] sm:$0xff] }
  0xea   :  { %v545_v16 = vpop.f32.mrf.mxu1 }
  0xeb   :  { %v603_v31 = vadd.f32 %v545_v16, %v373_v10  ;;  %1079 = vmatmul.bf16.gmra.mxu3 %v983_v43  ;;  %1298 = vmatmul.bf16.gmra.mxu0 %v1200_v14  ;;  %v963_v10 = vunpack.c.l.b16 %v887_v47  ;;  %v1619_v16 = vld [vmem:[%s12705_s0 + $0x32] sm:$0xff] }
  0xec   :  { %v1650_v19 = vpack.c.bf16 %v1619_v16, %v1619_v16 }
  0xed   :  { %1837 = vmatmul.bf16.gmra.mxu2 %v9603_v2  ;;  %1519 = vmatmul.bf16.gmra.mxu1 %v1419_v17 }
  0xee   :  { %v585_v24 = vpop.f32.mrf.mxu3 }
  0xef   :  { %v9616_v8 = vadd.f32 %v585_v24, %v389_v5  ;;  %v1186_v5 = vpack.c.b16 %v962_v3, %v961_v41  ;;  %v1651_v24 = vpack.c.bf16 %v1620_v0, %v1620_v0  ;;  %v857_v41 = vld [vmem:[%s12705_s0 + $0x61] sm:$0xff] }
  0xf0   :  { %v767_v26 = vpop.f32.mrf.mxu2  ;;  %v317_v29 = vpop.f32.mrf.mxu0 }
  0xf1   :  { %v9618_v11 = vadd.f32 %v767_v26, %v603_v31  ;;  %v374_v34 = vadd.f32 %v9422_v21, %v317_v29  ;;  %v9663_v29 = vpack.c.b16 %v963_v10, %v962_v3  ;;  %v1203_v33 = vrot.slane %v1186_v5, 1 }
  0xf2   :  { %v547_v35 = vpop.f32.mrf.mxu1 }
  0xf3   :  { %v604_v50 = vadd.f32 %v547_v35, %v374_v34  ;;  %v9665_v34 = vunpack.c.l.b16 %v1650_v19  ;;  %v9667_v35 = vunpack.c.l.b16 %v1651_v24 }
  0xf6   :  { %v587_v45 = vpop.f32.mrf.mxu3 }
  0xf7   :  { %v9637_v57 = vadd.f32 %v587_v45, %v390_v53  ;;  %v858_v53 = vld [vmem:[%s12705_s0 + $0x69] sm:$0xff] }
  0xf8   :  { %v769_v58 = vpop.f32.mrf.mxu2  ;;  %v320_v48 = vpop.f32.mrf.mxu0  ;;  %v889_v47 = vpack.c.bf16 %v858_v53, %v858_v53  ;;  %v859_v53 = vld [vmem:[%s12705_s0 + $0x71] sm:$0xff] }
  0xf9   :  { %v9639_v43 = vadd.f32 %v769_v58, %v604_v50  ;;  %v375_v60 = vadd.f32 %v9422_v21, %v320_v48  ;;  %v1422_v50 = vrot.slane %v9663_v29, 2  ;;  %v1204_v48 = vsel %vm426_vm1, %v1201_v32, %v1203_v33 }
  0xfa   :  { %v550_v62 = vpop.f32.mrf.mxu1  ;;  %v9694_v3 = vunpack.c.l.b16 %v889_v47  ;;  %v890_v47 = vpack.c.bf16 %v859_v53, %v859_v53 }
  0xfb   :  { %v605_v14 = vadd.f32 %v550_v62, %v375_v60  ;;  %1084 = vmatmul.bf16.gmra.mxu3 %v9621_v36  ;;  %1303 = vmatmul.bf16.gmra.mxu0 %v1202_v39  ;;  %v392_v36 = vadd.f32 %v9422_v21, %v9560_v22  ;;  %v9685_v22 = vpack.c.b16 %v9667_v35, %v9665_v34 }
  0xfc   :  { %v888_v39 = vpack.c.bf16 %v857_v41, %v857_v41 }
  0xfd   :  { %1842 = vmatmul.bf16.gmra.mxu2 %v9644_v28  ;;  %1524 = vmatmul.bf16.gmra.mxu1 %v1421_v12  ;;  %v1423_v12 = vsel %vm646_vm0, %v1420_v1, %v1422_v50  ;;  %v1622_v1 = vld [vmem:[%s12705_s0 + $0x4a] sm:$0xff] }
  0xfe   :  { %v590_v17 = vpop.f32.mrf.mxu3  ;;  %v964_v32 = vunpack.c.l.b16 %v888_v39  ;;  %v1653_v24 = vpack.c.bf16 %v1622_v1, %v1622_v1 }
  0xff   :  { %v9658_v18 = vadd.f32 %v590_v17, %v391_v7  ;;  %v1621_v7 = vld [vmem:[%s12705_s0 + $0x42] sm:$0xff] }
 0x100   :  { %v772_v31 = vpop.f32.mrf.mxu2  ;;  %v322_v15 = vpop.f32.mrf.mxu0  ;;  %v1187_v5 = vpack.c.b16 %v964_v32, %v963_v10  ;;  %v1652_v19 = vpack.c.bf16 %v1621_v7, %v1621_v7 }
 0x101   :  { %v9660_v23 = vadd.f32 %v772_v31, %v605_v14  ;;  %v376_v4 = vadd.f32 %v9422_v21, %v322_v15 }
 0x102   :  { %v552_v26 = vpop.f32.mrf.mxu1  ;;  %v9714_v41 = vunpack.c.l.b16 %v1652_v19 }
 0x103   :  { %v606_v30 = vadd.f32 %v552_v26, %v376_v4  ;;  %v8741_v4 = vld [vmem:[%s12708_s3 + $0x220] sm:$0xff] }
 0x104   :  { %2277 = vmatpush.bf16.msra.mxu0 %v8741_v4 }
 0x106   :  { %v592_v40 = vpop.f32.mrf.mxu3 }
 0x107   :  { %v9678_v52 = vadd.f32 %v592_v40, %v392_v36  ;;  %v9716_v40 = vunpack.c.l.b16 %v1653_v24 }
 0x108   :  { %v774_v45 = vpop.f32.mrf.mxu2  ;;  %v325_v58 = vpop.f32.mrf.mxu0 }
 0x109   :  { %v9680_v25 = vadd.f32 %v774_v45, %v606_v30  ;;  %v377_v60 = vadd.f32 %v9422_v21, %v325_v58  ;;  %v9712_v30 = vpack.c.b16 %v9694_v3, %v964_v32  ;;  %v860_v58 = vld [vmem:[%s12705_s0 + $0x79] sm:$0xff] }
 0x10a   :  { %v555_v62 = vpop.f32.mrf.mxu1  ;;  %v891_v1 = vpack.c.bf16 %v860_v58, %v860_v58 }
 0x10b   :  { %v607_v14 = vadd.f32 %v555_v62, %v377_v60  ;;  %1089 = vmatmul.bf16.gmra.mxu3 %v9663_v29  ;;  %1308 = vmatmul.bf16.gmra.mxu0 %v1204_v48  ;;  %v1424_v10 = vrot.slane %v9712_v30, 2 }
 0x10d   :  { %1847 = vmatmul.bf16.gmra.mxu2 %v9685_v22  ;;  %1529 = vmatmul.bf16.gmra.mxu1 %v1423_v12  ;;  %v9733_v12 = vpack.c.b16 %v9716_v40, %v9714_v41  ;;  %v1425_v7 = vsel %vm646_vm0, %v1422_v50, %v1424_v10  ;;  %v1623_v50 = vld [vmem:[%s12705_s0 + $0x52] sm:$0xff] }
 0x10e   :  { %v802_v16 = vpop.f32.mrf.mxu3  ;;  %v1654_v53 = vpack.c.bf16 %v1623_v50, %v1623_v50 }
 0x10f   :  { %v9703_v17 = vadd.f32 %v802_v16, %v9583_v54  ;;  %v1205_v54 = vrot.slane %v1187_v5, 1  ;;  %v9742_v16 = vld [vmem:[%s12706_s1] sm:$0xff] }
 0x110   :  { %v777_v0 = vpop.f32.mrf.mxu2  ;;  %v327_v15 = vpop.f32.mrf.mxu0  ;;  %v1624_v5 = vld [vmem:[%s12705_s0 + $0x5a] sm:$0xff] }
 0x111   :  { %12741 = vst [vmem:[#allocation10_spill] sm:$0xff] %v9703_v17  ;;  %v9705_v31 = vadd.f32 %v777_v0, %v607_v14  ;;  %v378_v26 = vadd.f32 %v9422_v21, %v327_v15  ;;  %v1206_v62 = vsel %vm426_vm1, %v1203_v33, %v1205_v54  ;;  %v966_v0 = vunpack.c.l.b16 %v890_v47  ;;  %v8732_v47 = vld [vmem:[%s12708_s3 + $0x158] sm:$0xff] }
 0x112   :  { %v557_v29 = vpop.f32.mrf.mxu1  ;;  %v9746_v15 = vunpack.c.l.b16 %v891_v1  ;;  %v861_v1 = vld [vmem:[%s12705_s0 + $0x81] sm:$0xff]  ;;  %2057 = vmatpush.bf16.msra.mxu3 %v8732_v47 }
 0x113   :  { %v608_v36 = vadd.f32 %v557_v29, %v378_v26 }
 0x116   :  { %v804_v45 = vpop.f32.mrf.mxu3 }
 0x117   :  { %v9726_v39 = vadd.f32 %v804_v45, %v9596_v9  ;;  %v8989_v9 = vmov 0   ;;  %v1655_v45 = vpack.c.bf16 %v1624_v5, %v1624_v5 }
 0x118   :  { %v779_v48 = vpop.f32.mrf.mxu2  ;;  %v330_v60 = vpop.f32.mrf.mxu0  ;;  %8919 = vset.pattern.permute.xlu0 %v8989_v9  ;;  %8920 = vset.pattern.permute.xlu1 %v8989_v9 }
 0x119   :  { %12742 = vst [vmem:[#allocation11_spill] sm:$0xff] %v9726_v39  ;;  %v9728_v46 = vadd.f32 %v779_v48, %v608_v36  ;;  %v379_v14 = vadd.f32 %v9422_v21, %v330_v60  ;;  %2439 = vperm.xlu0 %8919, %v9742_v16   ;;  %8921 = vset.pattern.permute.xlu2 %v8989_v9 }
 0x11a   :  { %v560_v32 = vpop.f32.mrf.mxu1  ;;  %v1188_v36 = vpack.c.b16 %v966_v0, %v9694_v3  ;;  %v9763_v60 = vpack.c.b16 %v9746_v15, %v966_v0  ;;  %v9775_v3 = vunpack.c.l.b16 %v1654_v53 }
 0x11b   :  { %v609_v33 = vadd.f32 %v560_v32, %v379_v14  ;;  %1094 = vmatmul.bf16.gmra.mxu3 %v9712_v30  ;;  %1313 = vmatmul.bf16.gmra.mxu0 %v1206_v62  ;;  %v9768_v62 = vld [vmem:[%s12706_s1 + $0x8] sm:$0xff]  ;;  %v9777_v32 = vunpack.c.l.b16 %v1655_v45 }
 0x11c   :  { %v9773_v14 = vrot.slane %v1188_v36, 1  ;;  %12744 = vst [vmem:[#allocation13_spill] sm:$0xff] %v9775_v3  ;;  %v892_v36 = vpack.c.bf16 %v861_v1, %v861_v1  ;;  %v1625_v1 = vld [vmem:[%s12705_s0 + $0x62] sm:$0xff]  ;;  %v12755_v39 = vrot.slane %v9763_v60, 2 }
 0x11d   :  { %1852 = vmatmul.bf16.gmra.mxu2 %v9733_v12  ;;  %1534 = vmatmul.bf16.gmra.mxu1 %v1425_v7  ;;  %12745 = vst [vmem:[#allocation14_spill] sm:$0xff] %v9777_v32  ;;  %v12715_v7 = vrot.slane %v9763_v60, 2 }
 0x11e   :  { %v807_v19 = vpop.f32.mrf.mxu3  ;;  %v968_v30 = vunpack.c.l.b16 %v892_v36 }
 0x11f   :  { %v9756_v4 = vadd.f32 %v807_v19, %v9616_v8 }
 0x120   :  { %v782_v24 = vpop.f32.mrf.mxu2  ;;  %v332_v29 = vpop.f32.mrf.mxu0 }
 0x121   :  { %12743 = vst [vmem:[#allocation12_spill] sm:$0xff] %v9756_v4  ;;  %v9758_v26 = vadd.f32 %v782_v24, %v609_v33  ;;  %v380_v58 = vadd.f32 %v9422_v21, %v332_v29  ;;  %2444 = vperm.xlu0 %8919, %v9768_v62   ;;  %v862_v33 = vld [vmem:[%s12705_s0 + $0x89] sm:$0xff]  ;;  %v1208_v24 = vsel %vm426_vm1, %v1205_v54, %v9773_v14 }
 0x122   :  { %v562_v48 = vpop.f32.mrf.mxu1  ;;  %v9796_v29 = vpack.c.b16 %v9777_v32, %v9775_v3  ;;  %v9813_v54 = vld [vmem:[%s12706_s1 + $0x30] sm:$0xff] }
 0x123   :  { %v610_v8 = vadd.f32 %v562_v48, %v380_v58  ;;  %v893_v58 = vpack.c.bf16 %v862_v33, %v862_v33  ;;  %v9807_v48 = vld [vmem:[%s12706_s1 + $0x10] sm:$0xff] }
 0x124   :  { %12747 = vst [vmem:[#allocation16_spill] sm:$0xff] %v9796_v29  ;;  %2449 = vperm.xlu1 %8920, %v9807_v48   ;;  %v8739_v32 = vld [vmem:[%s12708_s3 + $0x210] sm:$0xff] }
 0x125   :  { %v9820_v47 = vunpack.c.l.b16 %v893_v58 }
 0x126   :  { %v809_v9 = vpop.f32.mrf.mxu3 }
 0x127   :  { %v9788_v50 = vadd.f32 %v809_v9, %v9637_v57  ;;  %v1427_v57 = vsel %vm646_vm0, %v1424_v10, %v12715_v7  ;;  %v8740_v10 = vld [vmem:[%s12708_s3 + $0x218] sm:$0xff]  ;;  %v1626_v9 = vld [vmem:[%s12705_s0 + $0x6a] sm:$0xff]  ;;  %v9837_v61 = vpack.c.b16 %v9820_v47, %v968_v30 }
 0x128   :  { %v784_v0 = vpop.f32.mrf.mxu2  ;;  %v335_v19 = vpop.f32.mrf.mxu0  ;;  %2278 = vmatpush.bf16.msra.mxu0 %v8740_v10  ;;  %v9842_v10 = vld [vmem:[%s12706_s1 + $0x18] sm:$0xff] }
 0x129   :  { %12746 = vst [vmem:[#allocation15_spill] sm:$0xff] %v9788_v50  ;;  %v9790_v5 = vadd.f32 %v784_v0, %v610_v8  ;;  %v381_v53 = vadd.f32 %v9422_v21, %v335_v19  ;;  %2469 = vperm.xlu0 %8919, %v9813_v54   ;;  %v12754_v4 = vrot.slane %v9837_v61, 2 }
 0x12a   :  { %v565_v45 = vpop.f32.mrf.mxu1 }
 0x12b   :  { %v611_v8 = vadd.f32 %v565_v45, %v381_v53  ;;  %1099 = vmatmul.bf16.gmra.mxu3 %v9763_v60  ;;  %1318 = vmatmul.bf16.gmra.mxu0 %v1208_v24  ;;  %v1189_v53 = vpack.c.b16 %v968_v30, %v9746_v15  ;;  %v1656_v45 = vpack.c.bf16 %v1625_v1, %v1625_v1  ;;  %v1627_v60 = vld [vmem:[%s12705_s0 + $0x72] sm:$0xff] }
 0x12c   :  { %2454 = vperm.xlu1 %8920, %v9842_v10   ;;  %2279 = vmatpush.bf16.msra.mxu0 %v8739_v32  ;;  %v1629_v32 = vld [vmem:[%s12705_s0 + $0x82] sm:$0xff] }
 0x12d   :  { %1857 = vmatmul.bf16.gmra.mxu2 %v9796_v29  ;;  %1539 = vmatmul.bf16.gmra.mxu1 %v1427_v57  ;;  %v1657_v57 = vpack.c.bf16 %v1626_v9, %v1626_v9  ;;  %v9850_v1 = vunpack.c.l.b16 %v1656_v45 }
 0x12e   :  { %v812_v33 = vpop.f32.mrf.mxu3 }
 0x12f   :  { %v9830_v19 = vadd.f32 %v812_v33, %v9658_v18  ;;  %v9848_v18 = vld [vmem:[%s12706_s1 + $0x48] sm:$0xff]  ;;  %12749 = vst [vmem:[#allocation18_spill] sm:$0xff] %v9850_v1  ;;  %v9852_v9 = vunpack.c.l.b16 %v1657_v57  ;;  %v863_v33 = vld [vmem:[%s12705_s0 + $0x91] sm:$0xff] }
 0x130   :  { %v787_v0 = vpop.f32.mrf.mxu2  ;;  %v337_v36 = vpop.f32.mrf.mxu0  ;;  %v894_v30 = vpack.c.bf16 %v863_v33, %v863_v33 }
 0x131   :  { %12748 = vst [vmem:[#allocation17_spill] sm:$0xff] %v9830_v19  ;;  %v9832_v24 = vadd.f32 %v787_v0, %v611_v8  ;;  %v382_v58 = vadd.f32 %v9422_v21, %v337_v36  ;;  %v1209_v8 = vrot.slane %v1189_v53, 1  ;;  %2484 = vperm.xlu0 %8919, %v9848_v18   ;;  %v864_v36 = vld [vmem:[%s12705_s0 + $0x99] sm:$0xff] }
 0x132   :  { %v567_v42 = vpop.f32.mrf.mxu1  ;;  %12750 = vst [vmem:[#allocation19_spill] sm:$0xff] %v9852_v9 }
 0x133   :  { %v612_v15 = vadd.f32 %v567_v42, %v382_v58  ;;  %v1210_v57 = vsel %vm426_vm1, %v9773_v14, %v1209_v8  ;;  %v9871_v58 = vpack.c.b16 %v9852_v9, %v9850_v1  ;;  %v9888_v14 = vld [vmem:[%s12706_s1 + $0x60] sm:$0xff] }
 0x135   :  { %12753 = vst [vmem:[#allocation22_spill] sm:$0xff] %v9871_v58 }
 0x136   :  { %v814_v0 = vpop.f32.mrf.mxu3 }
 0x137   :  { %v9863_v42 = vadd.f32 %v814_v0, %v9678_v52  ;;  %v1429_v52 = vsel %vm646_vm0, %v12755_v39, %v12754_v4  ;;  %v970_v39 = vunpack.c.l.b16 %v894_v30  ;;  %v1628_v0 = vld [vmem:[%s12705_s0 + $0x7a] sm:$0xff] }
 0x138   :  { %v789_v7 = vpop.f32.mrf.mxu2  ;;  %v340_v45 = vpop.f32.mrf.mxu0 }
 0x139   :  { %12751 = vst [vmem:[#allocation20_spill] sm:$0xff] %v9863_v42  ;;  %v9865_v53 = vadd.f32 %v789_v7, %v612_v15  ;;  %v383_v19 = vadd.f32 %v9422_v21, %v340_v45  ;;  %v895_v7 = vpack.c.bf16 %v864_v36, %v864_v36  ;;  %v9882_v15 = vld [vmem:[%s12706_s1 + $0x38] sm:$0xff]  ;;  %2499 = vperm.xlu0 %8919, %v9888_v14   ;;  %v8731_v42 = vld [vmem:[%s12708_s3 + $0x150] sm:$0xff] }
 0x13a   :  { %v570_v50 = vpop.f32.mrf.mxu1  ;;  %2474 = vperm.xlu1 %8920, %v9882_v15   ;;  %2058 = vmatpush.bf16.msra.mxu3 %v8731_v42  ;;  %v865_v42 = vld [vmem:[%s12705_s0 + $0xa1] sm:$0xff] }
 0x13b   :  { %12752 = vst [vmem:[#allocation21_spill] sm:$0xff] %v9865_v53  ;;  %v613_v33 = vadd.f32 %v570_v50, %v383_v19  ;;  %1104 = vmatmul.bf16.gmra.mxu3 %v9837_v61  ;;  %1323 = vmatmul.bf16.gmra.mxu0 %v1210_v57  ;;  %v9892_v4 = vunpack.c.l.b16 %v895_v7  ;;  %v1190_v57 = vpack.c.b16 %v970_v39, %v9820_v47  ;;  %v9923_v47 = vld [vmem:[%s12706_s1 + $0x78] sm:$0xff] }
 0x13c   :  { %v1659_v7 = vpack.c.bf16 %v1628_v0, %v1628_v0  ;;  %v896_v1 = vpack.c.bf16 %v865_v42, %v865_v42  ;;  %v9968_v42 = vld [vmem:[%s12706_s1 + $0x90] sm:$0xff] }
 0x13d   :  { %1862 = vmatmul.bf16.gmra.mxu2 %v9871_v58  ;;  %1544 = vmatmul.bf16.gmra.mxu1 %v1429_v52  ;;  %v1658_v52 = vpack.c.bf16 %v1627_v60, %v1627_v60  ;;  %v9912_v58 = vpack.c.b16 %v9892_v4, %v970_v39  ;;  %v9925_v60 = vrot.slane %v1190_v57, 1 }
 0x13e   :  { %v1065_v50 = vpop.f32.mrf.mxu3  ;;  %v9929_v39 = vunpack.c.l.b16 %v1659_v7 }
 0x13f   :  { %v9902_v36 = vadd.f32 %v1065_v50, %v9462_v59  ;;  %v9917_v59 = vld [vmem:[%s12706_s1 + $0x50] sm:$0xff]  ;;  %v9927_v0 = vunpack.c.l.b16 %v1658_v52  ;;  %v1212_v7 = vsel %vm426_vm1, %v1209_v8, %v9925_v60  ;;  %v9962_v8 = vld [vmem:[%s12706_s1 + $0x68] sm:$0xff] }
 0x140   :  { %v792_v19 = vpop.f32.mrf.mxu2  ;;  %v342_v30 = vpop.f32.mrf.mxu0  ;;  %12758 = vst [vmem:[#allocation25_spill] sm:$0xff] %v9929_v39 }
 0x141   :  { %v9904_v45 = vadd.f32 %v792_v19, %v613_v33  ;;  %v384_v17 = vadd.f32 %v9422_v21, %v342_v30  ;;  %12757 = vst [vmem:[#allocation24_spill] sm:$0xff] %v9927_v0  ;;  %2514 = vperm.xlu0 %8919, %v9923_v47   ;;  %v866_v30 = vld [vmem:[%s12705_s0 + $0xa9] sm:$0xff]  ;;  %v9948_v50 = vpack.c.b16 %v9929_v39, %v9927_v0 }
 0x142   :  { %v572_v9 = vpop.f32.mrf.mxu1  ;;  %2489 = vperm.xlu1 %8920, %v9917_v59   ;;  %12763 = vst [vmem:[#allocation28_spill] sm:$0xff] %v9962_v8 }
 0x143   :  { %12756 = vst [vmem:[#allocation23_spill] sm:$0xff] %v9904_v45  ;;  %v614_v33 = vadd.f32 %v572_v9, %v384_v17 }
 0x144   :  { %12760 = vst [vmem:[#allocation27_spill] sm:$0xff] %v9948_v50 }
 0x146   :  { %v1067_v19 = vpop.f32.mrf.mxu3 }
 0x147   :  { %v9940_v9 = vadd.f32 %v1067_v19, %v9486_v20  ;;  %v12761_v20 = vrot.slane %v9912_v58, 2 }
 0x148   :  { %v794_v17 = vpop.f32.mrf.mxu2  ;;  %v345_v52 = vpop.f32.mrf.mxu0 }
 0x149   :  { %v9942_v57 = vadd.f32 %v794_v17, %v614_v33  ;;  %v385_v45 = vadd.f32 %v9422_v21, %v345_v52  ;;  %v12762_v33 = vrot.slane %v9837_v61, 2  ;;  %v897_v17 = vpack.c.bf16 %v866_v30, %v866_v30  ;;  %2529 = vperm.xlu0 %8919, %v9968_v42  }
 0x14a   :  { %v575_v53 = vpop.f32.mrf.mxu1  ;;  %2504 = vperm.xlu1 %8920, %v9962_v8   ;;  %v972_v61 = vunpack.c.l.b16 %v896_v1  ;;  %v9994_v8 = vld [vmem:[%s12706_s1 + $0x80] sm:$0xff] }
 0x14b   :  { %12759 = vst [vmem:[#allocation26_spill] sm:$0xff] %v9942_v57  ;;  %v1431_v19 = vsel %vm646_vm0, %v12762_v33, %v12761_v20  ;;  %v615_v52 = vadd.f32 %v575_v53, %v385_v45  ;;  %1109 = vmatmul.bf16.gmra.mxu3 %v9912_v58  ;;  %1328 = vmatmul.bf16.gmra.mxu0 %v1212_v7  ;;  %v9972_v30 = vunpack.c.l.b16 %v897_v17  ;;  %v1630_v20 = vld [vmem:[%s12705_s0 + $0x8a] sm:$0xff] }
 0x14c   :  { %v1660_v17 = vpack.c.bf16 %v1629_v32, %v1629_v32  ;;  %v1661_v39 = vpack.c.bf16 %v1630_v20, %v1630_v20  ;;  %12765 = vst [vmem:[#allocation30_spill] sm:$0xff] %v9994_v8 }
 0x14d   :  { %1867 = vmatmul.bf16.gmra.mxu2 %v9948_v50  ;;  %1549 = vmatmul.bf16.gmra.mxu1 %v1431_v19  ;;  %v1191_v19 = vpack.c.b16 %v972_v61, %v9892_v4  ;;  %v8752_v50 = vld [vmem:[#allocation4 + $0x38] sm:$0xff]  ;;  %v9989_v29 = vpack.c.b16 %v9972_v30, %v972_v61 }
 0x14e   :  { %v1070_v53 = vpop.f32.mrf.mxu3  ;;  %2879 = vmatpush.bf16.msra.mxu1 %v8752_v50  ;;  %v10006_v61 = vunpack.c.l.b16 %v1661_v39  ;;  %v867_v50 = vld [vmem:[%s12705_s0 + $0xb1] sm:$0xff] }
 0x14f   :  { %v9982_v7 = vadd.f32 %v1070_v53, %v9506_v27  ;;  %v10000_v27 = vld [vmem:[%s12706_s1 + $0xa8] sm:$0xff]  ;;  %v868_v53 = vld [vmem:[%s12705_s0 + $0xb9] sm:$0xff] }
 0x150   :  { %v797_v45 = vpop.f32.mrf.mxu2  ;;  %v347_v1 = vpop.f32.mrf.mxu0  ;;  %12767 = vst [vmem:[#allocation32_spill] sm:$0xff] %v10006_v61 }
 0x151   :  { %v9984_v33 = vadd.f32 %v797_v45, %v615_v52  ;;  %v386_v0 = vadd.f32 %v9422_v21, %v347_v1  ;;  %v10002_v52 = vrot.slane %v1191_v19, 1  ;;  %v10004_v21 = vunpack.c.l.b16 %v1660_v17  ;;  %2544 = vperm.xlu0 %8919, %v10000_v27  }
 0x152   :  { %v577_v57 = vpop.f32.mrf.mxu1  ;;  %2519 = vperm.xlu1 %8920, %v9994_v8   ;;  %v898_v17 = vpack.c.bf16 %v867_v50, %v867_v50  ;;  %v12770_v8 = vrot.slane %v9989_v29, 2  ;;  %v8730_v50 = vld [vmem:[%s12708_s3 + $0x148] sm:$0xff] }
 0x153   :  { %12764 = vst [vmem:[#allocation29_spill] sm:$0xff] %v9984_v33  ;;  %v616_v4 = vadd.f32 %v577_v57, %v386_v0  ;;  %v1214_v1 = vsel %vm426_vm1, %v9925_v60, %v10002_v52  ;;  %v10026_v19 = vpack.c.b16 %v10006_v61, %v10004_v21  ;;  %v10042_v60 = vld [vmem:[%s12706_s1 + $0x98] sm:$0xff]  ;;  %2059 = vmatpush.bf16.msra.mxu3 %v8730_v50  ;;  %v2414_v50 = vld [vmem:[%s12706_s1 + $0x28] sm:$0xff] }
 0x154   :  { %12766 = vst [vmem:[#allocation31_spill] sm:$0xff] %v10004_v21 }
 0x155   :  { %12769 = vst [vmem:[#allocation34_spill] sm:$0xff] %v10026_v19 }
 0x156   :  { %v1072_v20 = vpop.f32.mrf.mxu3  ;;  %12772 = vst [vmem:[#allocation35_spill] sm:$0xff] %v10042_v60 }
 0x157   :  { %v10017_v57 = vadd.f32 %v1072_v20, %v9523_v51  ;;  %v12771_v51 = vrot.slane %v9912_v58, 2  ;;  %v899_v20 = vpack.c.bf16 %v868_v53, %v868_v53  ;;  %v10049_v58 = vld [vmem:[%s12706_s1 + $0xc0] sm:$0xff] }
 0x158   :  { %v799_v0 = vpop.f32.mrf.mxu2  ;;  %v1294_v39 = vpop.f32.mrf.mxu0 }
 0x159   :  { %v10019_v45 = vadd.f32 %v799_v0, %v616_v4  ;;  %v1364_v32 = vadd.f32 %v1294_v39, %v9902_v36  ;;  %v1433_v4 = vsel %vm646_vm0, %v12771_v51, %v12770_v8  ;;  %v10037_v0 = vld [vmem:[%s12706_s1 + $0x20] sm:$0xff]  ;;  %v974_v8 = vunpack.c.l.b16 %v898_v17  ;;  %v1631_v39 = vld [vmem:[%s12705_s0 + $0x92] sm:$0xff]  ;;  %2559 = vperm.xlu0 %8919, %v10049_v58  }
 0x15a   :  { %v1515_v33 = vpop.f32.mrf.mxu1  ;;  %2459 = vperm.xlu2 %8921, %v10037_v0   ;;  %2534 = vperm.xlu1 %8920, %v10042_v60   ;;  %v10056_v53 = vunpack.c.l.b16 %v899_v20  ;;  %v1662_v61 = vpack.c.bf16 %v1631_v39, %v1631_v39 }
 0x15b   :  { %12768 = vst [vmem:[#allocation33_spill] sm:$0xff] %v10019_v45  ;;  %v1585_v36 = vadd.f32 %v1515_v33, %v1364_v32  ;;  %1114 = vmatmul.bf16.gmra.mxu3 %v9989_v29  ;;  %1333 = vmatmul.bf16.gmra.mxu0 %v1214_v1  ;;  %v1632_v33 = vld [vmem:[%s12705_s0 + $0x9a] sm:$0xff]  ;;  %v1192_v20 = vpack.c.b16 %v974_v8, %v9972_v30 }
 0x15c   :  { %v10073_v60 = vpack.c.b16 %v10056_v53, %v974_v8  ;;  %v10092_v39 = vunpack.c.l.b16 %v1662_v61 }
 0x15d   :  { %1872 = vmatmul.bf16.gmra.mxu2 %v10026_v19  ;;  %1554 = vmatmul.bf16.gmra.mxu1 %v1433_v4  ;;  %v1663_v19 = vpack.c.bf16 %v1632_v33, %v1632_v33  ;;  %v10090_v8 = vrot.slane %v1192_v20, 1 }
 0x15e   :  { %v1075_v32 = vpop.f32.mrf.mxu3  ;;  %12775 = vst [vmem:[#allocation38_spill] sm:$0xff] %v10092_v39  ;;  %v12779_v3 = vrot.slane %v10073_v60, 2 }
 0x15f   :  { %v10066_v1 = vadd.f32 %v1075_v32, %v9542_v63  ;;  %v10081_v63 = vld [vmem:[%s12706_s1 + $0xb0] sm:$0xff]  ;;  %v10094_v33 = vunpack.c.l.b16 %v1663_v19  ;;  %v1216_v32 = vsel %vm426_vm1, %v10002_v52, %v10090_v8  ;;  %v10129_v52 = vld [vmem:[%s12706_s1 + $0xc8] sm:$0xff] }
 0x160   :  { %v1833_v17 = vpop.f32.mrf.mxu2  ;;  %v1296_v4 = vpop.f32.mrf.mxu0  ;;  %12774 = vst [vmem:[#allocation37_spill] sm:$0xff] %v10081_v63 }
 0x161   :  { %v10068_v51 = vadd.f32 %v1833_v17, %v1585_v36  ;;  %v1365_v21 = vadd.f32 %v1296_v4, %v9940_v9  ;;  %v2436_v9 = vld [vmem:[%s12706_s1 + $0xd8] sm:$0x3f]  ;;  %v8738_v36 = vld [vmem:[%s12708_s3 + $0x208] sm:$0xff]  ;;  %12776 = vst [vmem:[#allocation39_spill] sm:$0xff] %v10094_v33 }
 0x162   :  { %v1517_v45 = vpop.f32.mrf.mxu1  ;;  %2464 = vperm.xlu2 %8921, %v2414_v50   ;;  %2549 = vperm.xlu1 %8920, %v10081_v63   ;;  %v869_v17 = vld [vmem:[%s12705_s0 + $0xc1] sm:$0xff] }
 0x163   :  { %12773 = vst [vmem:[#allocation36_spill] sm:$0xff] %v10068_v51  ;;  %v1586_v30 = vadd.f32 %v1517_v45, %v1365_v21  ;;  %2574 = vperm.xlu0 %8919, %v2436_v9   ;;  %2280 = vmatpush.bf16.msra.mxu0 %v8738_v36  ;;  %v870_v21 = vld [vmem:[%s12705_s0 + $0xc9] sm:$0xff]  ;;  %v10113_v9 = vpack.c.b16 %v10094_v33, %v10092_v39 }
 0x164   :  { %v900_v36 = vpack.c.bf16 %v869_v17, %v869_v17 }
 0x165   :  { %12778 = vst [vmem:[#allocation41_spill] sm:$0xff] %v10113_v9 }
 0x166   :  { %v1077_v4 = vpop.f32.mrf.mxu3 }
 0x167   :  { %v10104_v45 = vadd.f32 %v1077_v4, %v9565_v6  ;;  %v12780_v6 = vrot.slane %v9989_v29, 2  ;;  %v901_v4 = vpack.c.bf16 %v870_v21, %v870_v21  ;;  %v8751_v29 = vld [vmem:[#allocation4 + $0x30] sm:$0xff] }
 0x168   :  { %v1835_v61 = vpop.f32.mrf.mxu2  ;;  %v1299_v19 = vpop.f32.mrf.mxu0  ;;  %v1633_v21 = vld [vmem:[%s12705_s0 + $0xa2] sm:$0xff]  ;;  %2880 = vmatpush.bf16.msra.mxu1 %v8751_v29 }
 0x169   :  { %v10106_v20 = vadd.f32 %v1835_v61, %v1586_v30  ;;  %v1366_v51 = vadd.f32 %v1299_v19, %v9982_v7  ;;  %v1435_v30 = vsel %vm646_vm0, %v12780_v6, %v12779_v3  ;;  %v10124_v61 = vld [vmem:[%s12706_s1 + $0x40] sm:$0xff]  ;;  %v976_v3 = vunpack.c.l.b16 %v900_v36  ;;  %v1634_v19 = vld [vmem:[%s12705_s0 + $0xaa] sm:$0xff] }
 0x16a   :  { %v1520_v63 = vpop.f32.mrf.mxu1  ;;  %2479 = vperm.xlu2 %8921, %v10124_v61   ;;  %2564 = vperm.xlu1 %8920, %v10129_v52   ;;  %v10135_v17 = vunpack.c.l.b16 %v901_v4  ;;  %v1664_v4 = vpack.c.bf16 %v1633_v21, %v1633_v21 }
 0x16b   :  { %12777 = vst [vmem:[#allocation40_spill] sm:$0xff] %v10106_v20  ;;  %v1587_v7 = vadd.f32 %v1520_v63, %v1366_v51  ;;  %1119 = vmatmul.bf16.gmra.mxu3 %v10073_v60  ;;  %1338 = vmatmul.bf16.gmra.mxu0 %v1216_v32  ;;  %v1665_v20 = vpack.c.bf16 %v1634_v19, %v1634_v19  ;;  %v872_v19 = vld [vmem:[%s12705_s0 + $0xd9] sm:$0xff] }
 0x16c   :  { %5040 = vperm.xlu0 %8919, %v9807_v48   ;;  %v10152_v39 = vpack.c.b16 %v10135_v17, %v976_v3  ;;  %v2420_v48 = vld [vmem:[%s12706_s1 + $0x58] sm:$0xff]  ;;  %v10160_v29 = vunpack.c.l.b16 %v1664_v4  ;;  %v12783_v4 = vrot.slane %v10073_v60, 2 }
 0x16d   :  { %1877 = vmatmul.bf16.gmra.mxu2 %v10113_v9  ;;  %1559 = vmatmul.bf16.gmra.mxu1 %v1435_v30  ;;  %v1193_v30 = vpack.c.b16 %v976_v3, %v10056_v53  ;;  %v10162_v53 = vunpack.c.l.b16 %v1665_v20  ;;  %v871_v3 = vld [vmem:[%s12705_s0 + $0xd1] sm:$0xff]  ;;  %v12782_v20 = vpack.c.b16 %v9576_v38, %v9574_v37 }
 0x16e   :  { %v1080_v51 = vpop.f32.mrf.mxu3  ;;  %v902_v37 = vpack.c.bf16 %v871_v3, %v871_v3 }
 0x16f   :  { %v10145_v63 = vadd.f32 %v1080_v51, %v9585_v44 }
 0x170   :  { %v1838_v32 = vpop.f32.mrf.mxu2  ;;  %v1301_v6 = vpop.f32.mrf.mxu0  ;;  %v978_v60 = vunpack.c.l.b16 %v902_v37  ;;  %v8737_v37 = vld [vmem:[%s12708_s3 + $0x200] sm:$0xff] }
 0x171   :  { %v10147_v36 = vadd.f32 %v1838_v32, %v1587_v7  ;;  %v1367_v33 = vadd.f32 %v1301_v6, %v10017_v57  ;;  %v10158_v7 = vrot.slane %v1193_v30, 1  ;;  %v1436_v57 = vrot.slane %v10152_v39, 2  ;;  %2281 = vmatpush.bf16.msra.mxu0 %v8737_v37 }
 0x172   :  { %v1522_v9 = vpop.f32.mrf.mxu1  ;;  %2494 = vperm.xlu2 %8921, %v2420_v48   ;;  %5030 = vperm.xlu1 %8920, %v9742_v16   ;;  %v12781_v16 = vpack.c.b16 %v9530_v56, %v9528_v55  ;;  %v10192_v56 = vpack.c.b16 %v10162_v53, %v10160_v29 }
 0x173   :  { %v1588_v44 = vadd.f32 %v1522_v9, %v1367_v33  ;;  %v10177_v9 = vrot.slane %v12782_v20, 1  ;;  %v1218_v55 = vsel %vm426_vm1, %v10090_v8, %v10158_v7  ;;  %v2423_v8 = vld [vmem:[%s12706_s1 + $0x70] sm:$0xff] }
 0x174   :  { %5055 = vperm.xlu0 %8919, %v2414_v50   ;;  %v1964_v33 = vrot.slane %v12781_v16, 1  ;;  %v8729_v50 = vld [vmem:[%s12708_s3 + $0x140] sm:$0xff] }
 0x175   :  { %2060 = vmatpush.bf16.msra.mxu3 %v8729_v50  ;;  %v1194_v50 = vpack.c.b16 %v978_v60, %v10135_v17 }
 0x176   :  { %v1082_v21 = vpop.f32.mrf.mxu3 }
 0x177   :  { %v10180_v51 = vadd.f32 %v1082_v21, %v9598_v13  ;;  %v903_v21 = vpack.c.bf16 %v872_v19, %v872_v19  ;;  %v1635_v19 = vld [vmem:[%s12705_s0 + $0xb2] sm:$0xff]  ;;  %v1219_v17 = vrot.slane %v1194_v50, 1 }
 0x178   :  { %v1840_v32 = vpop.f32.mrf.mxu2  ;;  %v1304_v30 = vpop.f32.mrf.mxu0 }
 0x179   :  { %v10185_v6 = vadd.f32 %v1840_v32, %v1588_v44  ;;  %v1368_v38 = vadd.f32 %v1304_v30, %v10066_v1  ;;  %v1437_v44 = vsel %vm646_vm0, %v12783_v4, %v1436_v57  ;;  %v10209_v1 = vsel %vm426_vm1, %v1964_v33, %v10177_v9 }
 0x17a   :  { %v1525_v13 = vpop.f32.mrf.mxu1  ;;  %2509 = vperm.xlu2 %8921, %v2423_v8   ;;  %5045 = vperm.xlu1 %8920, %v9842_v10   ;;  %v10212_v3 = vunpack.c.l.b16 %v903_v21  ;;  %v1636_v10 = vld [vmem:[%s12705_s0 + $0xba] sm:$0xff]  ;;  %v1666_v30 = vpack.c.bf16 %v1635_v19, %v1635_v19 }
 0x17b   :  { %v10204_v16 = vadd.f32 %v1525_v13, %v1368_v38  ;;  %1124 = vmatmul.bf16.gmra.mxu3 %v10152_v39  ;;  %1343 = vmatmul.bf16.gmra.mxu0 %v1218_v55  ;;  %v1667_v55 = vpack.c.bf16 %v1636_v10, %v1636_v10  ;;  %v874_v10 = vld [vmem:[%s12705_s0 + $0xe9] sm:$0xff] }
 0x17c   :  { %5070 = vperm.xlu0 %8919, %v10124_v61   ;;  %v10230_v4 = vpack.c.b16 %v10212_v3, %v978_v60  ;;  %v873_v60 = vld [vmem:[%s12705_s0 + $0xe1] sm:$0xff] }
 0x17d   :  { %1882 = vmatmul.bf16.gmra.mxu2 %v10192_v56  ;;  %1564 = vmatmul.bf16.gmra.mxu1 %v1437_v44  ;;  %v10238_v44 = vunpack.c.l.b16 %v1666_v30  ;;  %v10240_v21 = vunpack.c.l.b16 %v1667_v55  ;;  %v904_v30 = vpack.c.bf16 %v873_v60, %v873_v60  ;;  %v8750_v55 = vld [vmem:[#allocation4 + $0x28] sm:$0xff]  ;;  %v1637_v39 = vld [vmem:[%s12705_s0 + $0xc2] sm:$0xff] }
 0x17e   :  { %v1085_v20 = vpop.f32.mrf.mxu3  ;;  %2881 = vmatpush.bf16.msra.mxu1 %v8750_v55 }
 0x17f   :  { %v10222_v33 = vadd.f32 %v1085_v20, %v9618_v11  ;;  %v2426_v11 = vld [vmem:[%s12706_s1 + $0x88] sm:$0xff]  ;;  %v10256_v50 = vpack.c.b16 %v10240_v21, %v10238_v44 }
 0x180   :  { %v1306_v32 = vpop.f32.mrf.mxu0 }
 0x181   :  { %v1369_v38 = vadd.f32 %v1306_v32, %v10104_v45  ;;  %v1438_v45 = vrot.slane %v10230_v4, 2  ;;  %v1220_v32 = vsel %vm426_vm1, %v10158_v7, %v1219_v17 }
 0x182   :  { %v1527_v13 = vpop.f32.mrf.mxu1  ;;  %2524 = vperm.xlu2 %8921, %v2426_v11   ;;  %5060 = vperm.xlu1 %8920, %v9813_v54  }
 0x183   :  { %v10235_v61 = vadd.f32 %v1527_v13, %v1369_v38  ;;  %v1439_v38 = vsel %vm646_vm0, %v1436_v57, %v1438_v45  ;;  %v905_v13 = vpack.c.bf16 %v874_v10, %v874_v10  ;;  %v1638_v57 = vld [vmem:[%s12705_s0 + $0xca] sm:$0xff] }
 0x184   :  { %5085 = vperm.xlu0 %8919, %v2420_v48  }
 0x185   :  { %v1411_v60 = vunpack.c.l.b16 %v905_v13 }
 0x186   :  { %v1087_v19 = vpop.f32.mrf.mxu3 }
 0x187   :  { %v10250_v20 = vadd.f32 %v1087_v19, %v9639_v43  ;;  %v2429_v43 = vld [vmem:[%s12706_s1 + $0xa0] sm:$0xff] }
 0x188   :  { %v1309_v54 = vpop.f32.mrf.mxu0 }
 0x189   :  { %v1370_v48 = vadd.f32 %v1309_v54, %v10145_v63  ;;  %v1181_v63 = vunpack.c.l.b16 %v904_v30  ;;  %v1669_v30 = vpack.c.bf16 %v1638_v57, %v1638_v57 }
 0x18a   :  { %v1530_v37 = vpop.f32.mrf.mxu1  ;;  %2539 = vperm.xlu2 %8921, %v2429_v43   ;;  %5075 = vperm.xlu1 %8920, %v9848_v18  }
 0x18b   :  { %v10265_v7 = vadd.f32 %v1530_v37, %v1370_v48  ;;  %1129 = vmatmul.bf16.gmra.mxu3 %v10230_v4  ;;  %1348 = vmatmul.bf16.gmra.mxu0 %v1220_v32  ;;  %v1195_v54 = vpack.c.b16 %v1181_v63, %v10212_v3  ;;  %v1668_v32 = vpack.c.bf16 %v1637_v39, %v1637_v39  ;;  %v2184_v39 = vrot.slane %v9644_v28, 2 }
 0x18c   :  { %5100 = vperm.xlu0 %8919, %v2423_v8   ;;  %v1413_v37 = vpack.c.b16 %v1411_v60, %v1181_v63  ;;  %v2183_v63 = vrot.slane %v9603_v2, 2  ;;  %v2435_v2 = vld [vmem:[%s12706_s1 + $0xd0] sm:$0xff] }
 0x18d   :  { %1887 = vmatmul.bf16.gmra.mxu2 %v10256_v50  ;;  %1569 = vmatmul.bf16.gmra.mxu1 %v1439_v38  ;;  %v2432_v38 = vld [vmem:[%s12706_s1 + $0xb8] sm:$0xff]  ;;  %v1221_v8 = vrot.slane %v1195_v54, 1  ;;  %v10286_v13 = vunpack.c.l.b16 %v1668_v32 }
 0x18e   :  { %v1090_v19 = vpop.f32.mrf.mxu3 }
 0x18f   :  { %v10277_v4 = vadd.f32 %v1090_v19, %v9660_v23  ;;  %v10288_v23 = vunpack.c.l.b16 %v1669_v30  ;;  %v1440_v19 = vrot.slane %v1413_v37, 2 }
 0x190   :  { %v1311_v10 = vpop.f32.mrf.mxu0 }
 0x191   :  { %v1371_v55 = vadd.f32 %v1311_v10, %v10180_v51  ;;  %v875_v51 = vld [vmem:[%s12705_s0 + $0xf1] sm:$0x3]  ;;  %v1222_v10 = vsel %vm426_vm1, %v1219_v17, %v1221_v8  ;;  %v10300_v54 = vpack.c.b16 %v10288_v23, %v10286_v13  ;;  %v1441_v32 = vsel %vm646_vm0, %v1438_v45, %v1440_v19  ;;  %v1640_v17 = vld [vmem:[%s12705_s0 + $0xda] sm:$0xff] }
 0x192   :  { %v1532_v48 = vpop.f32.mrf.mxu1  ;;  %2554 = vperm.xlu2 %8921, %v2432_v38   ;;  %5090 = vperm.xlu1 %8920, %v9888_v14   ;;  %v906_v30 = vpack.c.bf16 %v875_v51, %v875_v51  ;;  %v1952_v51 = vpack.c.b16 %v9665_v34, %v9626_v49  ;;  %v2186_v49 = vrot.slane %v9685_v22, 2 }
 0x193   :  { %v10284_v18 = vadd.f32 %v1532_v48, %v1371_v55 }
 0x194   :  { %5115 = vperm.xlu0 %8919, %v2426_v11   ;;  %v1412_v45 = vunpack.c.l.b16 %v906_v30  ;;  %v2187_v22 = vsel %vm646_vm0, %v2184_v39, %v2186_v49 }
 0x196   :  { %v1092_v3 = vpop.f32.mrf.mxu3 }
 0x197   :  { %v1146_v57 = vadd.f32 %v1092_v3, %v9680_v25  ;;  %v10311_v25 = vsel %vm646_vm0, %v2183_v63, %v2184_v39  ;;  %v1671_v3 = vpack.c.bf16 %v1640_v17, %v1640_v17 }
 0x198   :  { %v1314_v60 = vpop.f32.mrf.mxu0 }
 0x199   :  { %v1372_v14 = vadd.f32 %v1314_v60, %v10222_v33  ;;  %v1639_v33 = vld [vmem:[%s12705_s0 + $0xd2] sm:$0xff] }
 0x19a   :  { %v1535_v11 = vpop.f32.mrf.mxu1  ;;  %2569 = vperm.xlu2 %8921, %v2435_v2   ;;  %5105 = vperm.xlu1 %8920, %v9923_v47   ;;  %v1670_v37 = vpack.c.bf16 %v1639_v33, %v1639_v33 }
 0x19b   :  { %v10307_v28 = vadd.f32 %v1535_v11, %v1372_v14  ;;  %1353 = vmatmul.bf16.gmra.mxu0 %v1222_v10  ;;  %2061 = vmatmul.bf16.vlgmr.msra.gmra.mxu3 %v10209_v1  ;;  %v1414_v10 = vpack.c.b16 %v1412_v45, %v1412_v45  ;;  %v8749_v11 = vld [vmem:[#allocation4 + $0x20] sm:$0xff] }
 0x19c   :  { %5130 = vperm.xlu0 %8919, %v2429_v43   ;;  %v10328_v47 = vunpack.c.l.b16 %v1670_v37  ;;  %v10330_v43 = vunpack.c.l.b16 %v1671_v3  ;;  %2882 = vmatpush.bf16.msra.mxu1 %v8749_v11 }
 0x19d   :  { %1892 = vmatmul.bf16.gmra.mxu2 %v10300_v54  ;;  %1574 = vmatmul.bf16.gmra.mxu1 %v1441_v32  ;;  %v1442_v32 = vrot.slane %v1414_v10, 2  ;;  %v12785_v10 = vld [vmem:[#allocation28_spill] sm:$0xff] }
 0x19e   :  { %v1095_v55 = vpop.f32.mrf.mxu3 }
 0x19f   :  { %v1147_v1 = vadd.f32 %v1095_v55, %v9705_v31  ;;  %v1967_v31 = vrot.slane %v1952_v51, 1 }
 0x1a0   :  { %v1316_v48 = vpop.f32.mrf.mxu0 }
 0x1a1   :  { %v1373_v63 = vadd.f32 %v1316_v48, %v10250_v20  ;;  %v1968_v33 = vsel %vm426_vm1, %v10177_v9, %v1967_v31 }
 0x1a2   :  { %v1537_v60 = vpop.f32.mrf.mxu1  ;;  %5035 = vperm.xlu2 %8921, %v9768_v62   ;;  %5120 = vperm.xlu1 %8920, %v9968_v42   ;;  %v10337_v62 = vpack.c.b16 %v10330_v43, %v10328_v47  ;;  %v1443_v42 = vsel %vm646_vm0, %v1440_v19, %v1442_v32  ;;  %v1953_v19 = vpack.c.b16 %v9714_v41, %v9667_v35  ;;  %v5027_v35 = vld [vmem:[%s12706_s1 + $0xd8] sm:$0x3f]  ;;  %v12786_v32 = vld [vmem:[#allocation16_spill] sm:$0xff] }
 0x1a3   :  { %v10326_v14 = vadd.f32 %v1537_v60, %v1373_v63 }
 0x1a4   :  { %5145 = vperm.xlu0 %8919, %v2432_v38   ;;  %v1969_v39 = vrot.slane %v1953_v19, 1 }
 0x1a6   :  { %v1097_v30 = vpop.f32.mrf.mxu3 }
 0x1a7   :  { %v1148_v34 = vadd.f32 %v1097_v30, %v9728_v46  ;;  %v2190_v30 = vrot.slane %v12786_v32, 2 }
 0x1a8   :  { %v1319_v20 = vpop.f32.mrf.mxu0 }
 0x1a9   :  { %v1374_v17 = vadd.f32 %v1319_v20, %v10277_v4 }
 0x1aa   :  { %v1540_v45 = vpop.f32.mrf.mxu1  ;;  %5050 = vperm.xlu2 %8921, %v10037_v0   ;;  %5135 = vperm.xlu1 %8920, %v10000_v27   ;;  %v2188_v27 = vrot.slane %v9733_v12, 2 }
 0x1ab   :  { %v10344_v38 = vadd.f32 %v1540_v45, %v1374_v17  ;;  %1358 = vmatmul.bf16.gmra.mxu0 %v1221_v8  ;;  %2066 = vmatmul.bf16.gmra.mxu3 %v1968_v33 }
 0x1ac   :  { %5160 = vperm.xlu0 %8919, %v2435_v2   ;;  %v2189_v12 = vsel %vm646_vm0, %v2186_v49, %v2188_v27  ;;  %v12787_v49 = vld [vmem:[#allocation21_spill] sm:$0xff] }
 0x1ad   :  { %1897 = vmatmul.bf16.gmra.mxu2 %v10337_v62  ;;  %1579 = vmatmul.bf16.gmra.mxu1 %v1443_v42  ;;  %v2191_v42 = vsel %vm646_vm0, %v2188_v27, %v2190_v30 }
 0x1ae   :  { %v1100_v46 = vpop.f32.mrf.mxu3 }
 0x1af   :  { %v1149_v9 = vadd.f32 %v1100_v46, %v9758_v26  ;;  %v1970_v26 = vsel %vm426_vm1, %v1967_v31, %v1969_v39 }
 0x1b0   :  { %v1321_v4 = vpop.f32.mrf.mxu0 }
 0x1b1   :  { %v1375_v0 = vadd.f32 %v1321_v4, %v1146_v57  ;;  %v12784_v57 = vld [vmem:[#allocation13_spill] sm:$0xff]  ;;  %v12789_v4 = vld [vmem:[#allocation23_spill] sm:$0xff] }
 0x1b2   :  { %v1542_v55 = vpop.f32.mrf.mxu1  ;;  %5065 = vperm.xlu2 %8921, %v9882_v15   ;;  %5150 = vperm.xlu1 %8920, %v10049_v58  }
 0x1b3   :  { %v10353_v8 = vadd.f32 %v1542_v55, %v1375_v0  ;;  %v12790_v55 = vld [vmem:[#allocation14_spill] sm:$0xff] }
 0x1b6   :  { %v1102_v48 = vpop.f32.mrf.mxu3 }
 0x1b7   :  { %v1150_v2 = vadd.f32 %v1102_v48, %v9790_v5  ;;  %v12791_v48 = vld [vmem:[#allocation18_spill] sm:$0xff] }
 0x1b8   :  { %v1324_v37 = vpop.f32.mrf.mxu0 }
 0x1b9   :  { %v1376_v3 = vadd.f32 %v1324_v37, %v1147_v1  ;;  %v1954_v1 = vpack.c.b16 %v12784_v57, %v9716_v40  ;;  %v12788_v40 = vld [vmem:[#allocation30_spill] sm:$0xff]  ;;  %v1955_v37 = vpack.c.b16 %v12791_v48, %v12790_v55  ;;  %v12800_v48 = vld [vmem:[#allocation33_spill] sm:$0xff] }
 0x1ba   :  { %v1545_v51 = vpop.f32.mrf.mxu1  ;;  %5080 = vperm.xlu2 %8921, %v9917_v59   ;;  %5165 = vperm.xlu1 %8920, %v5027_v35   ;;  %v8748_v59 = vld [vmem:[#allocation4 + $0x18] sm:$0xff] }
 0x1bb   :  { %v10363_v41 = vadd.f32 %v1545_v51, %v1376_v3  ;;  %2071 = vmatmul.bf16.gmra.mxu3 %v1970_v26  ;;  %2282 = vmatmul.bf16.vlgmr.msra.gmra.mxu0 %v10311_v25  ;;  %v1971_v31 = vrot.slane %v1954_v1, 1  ;;  %v1973_v51 = vrot.slane %v1955_v37, 1 }
 0x1bc   :  { %2883 = vmatpush.bf16.msra.mxu1 %v8748_v59 }
 0x1bd   :  { %v1974_v1 = vsel %vm426_vm1, %v1971_v31, %v1973_v51 }
 0x1be   :  { %v1105_v5 = vpop.f32.mrf.mxu3 }
 0x1bf   :  { %v1151_v15 = vadd.f32 %v1105_v5, %v9832_v24  ;;  %v1972_v24 = vsel %vm426_vm1, %v1969_v39, %v1971_v31  ;;  %v12792_v39 = vld [vmem:[#allocation35_spill] sm:$0xff]  ;;  %v12793_v5 = vld [vmem:[#allocation22_spill] sm:$0xff] }
 0x1c0   :  { %v1326_v58 = vpop.f32.mrf.mxu0 }
 0x1c1   :  { %v1377_v63 = vadd.f32 %v1326_v58, %v1148_v34  ;;  %v2192_v58 = vrot.slane %v12793_v5, 2 }
 0x1c2   :  { %v1547_v60 = vpop.f32.mrf.mxu1  ;;  %5095 = vperm.xlu2 %8921, %v12785_v10  }
 0x1c3   :  { %v10371_v11 = vadd.f32 %v1547_v60, %v1377_v63  ;;  %v12795_v60 = vld [vmem:[#allocation37_spill] sm:$0xff] }
 0x1c6   :  { %v1107_v25 = vpop.f32.mrf.mxu3 }
 0x1c7   :  { %v1152_v20 = vadd.f32 %v1107_v25, %v12787_v49  ;;  %v8747_v25 = vld [vmem:[#allocation4 + $0x10] sm:$0xff]  ;;  %v12796_v49 = vld [vmem:[#allocation29_spill] sm:$0xff] }
 0x1c8   :  { %v1329_v33 = vpop.f32.mrf.mxu0  ;;  %2884 = vmatpush.bf16.msra.mxu1 %v8747_v25 }
 0x1c9   :  { %v1378_v17 = vadd.f32 %v1329_v33, %v1149_v9 }
 0x1ca   :  { %v1550_v45 = vpop.f32.mrf.mxu1  ;;  %5110 = vperm.xlu2 %8921, %v12788_v40  }
 0x1cb   :  { %v10377_v34 = vadd.f32 %v1550_v45, %v1378_v17  ;;  %2076 = vmatmul.bf16.gmra.mxu3 %v1972_v24  ;;  %2287 = vmatmul.bf16.gmra.mxu0 %v2187_v22  ;;  %v12794_v22 = vld [vmem:[#allocation26_spill] sm:$0xff]  ;;  %v12797_v17 = vld [vmem:[#allocation19_spill] sm:$0xff]  ;;  %v12798_v45 = vld [vmem:[#allocation24_spill] sm:$0xff] }
 0x1cc   :  { %v1956_v40 = vpack.c.b16 %v12798_v45, %v12797_v17  ;;  %v12805_v45 = vld [vmem:[#allocation11_spill] sm:$0xff] }
 0x1ce   :  { %v1110_v46 = vpop.f32.mrf.mxu3 }
 0x1cf   :  { %v1153_v19 = vadd.f32 %v1110_v46, %v12789_v4  ;;  %v8760_v4 = vld [vmem:[#allocation4 + $0xf8] sm:$0xff] }
 0x1d0   :  { %v1331_v0 = vpop.f32.mrf.mxu0  ;;  %3108 = vmatpush.bf16.msra.mxu2 %v8760_v4 }
 0x1d1   :  { %v1379_v26 = vadd.f32 %v1331_v0, %v1150_v2  ;;  %v2193_v2 = vsel %vm646_vm0, %v2190_v30, %v2192_v58  ;;  %v1975_v0 = vrot.slane %v1956_v40, 1  ;;  %v12799_v30 = vld [vmem:[#allocation27_spill] sm:$0xff] }
 0x1d2   :  { %v1552_v3 = vpop.f32.mrf.mxu1  ;;  %5125 = vperm.xlu2 %8921, %v12792_v39   ;;  %v2194_v55 = vrot.slane %v12799_v30, 2 }
 0x1d3   :  { %v10384_v9 = vadd.f32 %v1552_v3, %v1379_v26  ;;  %v1976_v3 = vsel %vm426_vm1, %v1973_v51, %v1975_v0 }
 0x1d6   :  { %v1112_v35 = vpop.f32.mrf.mxu3 }
 0x1d7   :  { %v1154_v57 = vadd.f32 %v1112_v35, %v12794_v22  ;;  %v12801_v22 = vld [vmem:[#allocation10_spill] sm:$0xff] }
 0x1d8   :  { %v1334_v27 = vpop.f32.mrf.mxu0 }
 0x1d9   :  { %v1380_v59 = vadd.f32 %v1334_v27, %v1151_v15 }
 0x1da   :  { %v1555_v63 = vpop.f32.mrf.mxu1  ;;  %5140 = vperm.xlu2 %8921, %v12795_v60  }
 0x1db   :  { %v10390_v10 = vadd.f32 %v1555_v63, %v1380_v59  ;;  %2081 = vmatmul.bf16.gmra.mxu3 %v1974_v1  ;;  %2292 = vmatmul.bf16.gmra.mxu0 %v2189_v12  ;;  %v12802_v59 = vld [vmem:[#allocation25_spill] sm:$0xff]  ;;  %v12803_v63 = vld [vmem:[#allocation31_spill] sm:$0xff] }
 0x1dc   :  { %v1957_v60 = vpack.c.b16 %v12803_v63, %v12802_v59 }
 0x1de   :  { %v1115_v32 = vpop.f32.mrf.mxu3  ;;  %v1977_v51 = vrot.slane %v1957_v60, 1 }
 0x1df   :  { %v1155_v33 = vadd.f32 %v1115_v32, %v12796_v49 }
 0x1e0   :  { %v1336_v24 = vpop.f32.mrf.mxu0 }
 0x1e1   :  { %v1381_v31 = vadd.f32 %v1336_v24, %v1152_v20  ;;  %v12804_v24 = vld [vmem:[#allocation34_spill] sm:$0xff] }
 0x1e2   :  { %v1557_v15 = vpop.f32.mrf.mxu1  ;;  %5155 = vperm.xlu2 %8921, %v10129_v52   ;;  %v2195_v52 = vsel %vm646_vm0, %v2192_v58, %v2194_v55  ;;  %v2196_v17 = vrot.slane %v12804_v24, 2  ;;  %v1978_v58 = vsel %vm426_vm1, %v1975_v0, %v1977_v51  ;;  %v8759_v0 = vld [vmem:[#allocation4 + $0xf0] sm:$0xff] }
 0x1e3   :  { %v10397_v46 = vadd.f32 %v1557_v15, %v1381_v31  ;;  %v8746_v31 = vld [vmem:[#allocation4 + $0x8] sm:$0xff]  ;;  %3109 = vmatpush.bf16.msra.mxu2 %v8759_v0 }
 0x1e4   :  { %2885 = vmatpush.bf16.msra.mxu1 %v8746_v31 }
 0x1e6   :  { %v1117_v12 = vpop.f32.mrf.mxu3 }
 0x1e7   :  { %v1156_v37 = vadd.f32 %v1117_v12, %v12800_v48  ;;  %v10416_v48 = vpop.f32.mrf.mxu2 }
 0x1e8   :  { %v1339_v26 = vpop.f32.mrf.mxu0 }
 0x1e9   :  { %v1382_v39 = vadd.f32 %v1339_v26, %v1153_v19  ;;  %v12806_v26 = vld [vmem:[#allocation12_spill] sm:$0xff] }
 0x1ea   :  { %v1560_v35 = vpop.f32.mrf.mxu1 }
 0x1eb   :  { %v10402_v5 = vadd.f32 %v1560_v35, %v1382_v39  ;;  %2086 = vmatmul.bf16.gmra.mxu3 %v1976_v3  ;;  %2297 = vmatmul.bf16.gmra.mxu0 %v2191_v42  ;;  %v12807_v35 = vld [vmem:[#allocation32_spill] sm:$0xff] }
 0x1ee   :  { %v1120_v20 = vpop.f32.mrf.mxu3 }
 0x1ef   :  { %v1157_v27 = vadd.f32 %v1120_v20, %v12801_v22  ;;  %v12808_v20 = vld [vmem:[#allocation38_spill] sm:$0xff] }
 0x1f0   :  { %v1341_v1 = vpop.f32.mrf.mxu0  ;;  %v1958_v22 = vpack.c.b16 %v12808_v20, %v12807_v35 }
 0x1f1   :  { %v1383_v25 = vadd.f32 %v1341_v1, %v1154_v57  ;;  %v2197_v57 = vsel %vm646_vm0, %v2194_v55, %v2196_v17  ;;  %v12810_v55 = vld [vmem:[#allocation15_spill] sm:$0xff] }
 0x1f2   :  { %v1562_v32 = vpop.f32.mrf.mxu1  ;;  %v1979_v63 = vrot.slane %v1958_v22, 1 }
 0x1f3   :  { %v10408_v49 = vadd.f32 %v1562_v32, %v1383_v25 }
 0x1f4   :  { %v1980_v24 = vsel %vm426_vm1, %v1977_v51, %v1979_v63 }
 0x1f6   :  { %v1122_v19 = vpop.f32.mrf.mxu3 }
 0x1f7   :  { %v1158_v40 = vadd.f32 %v1122_v19, %v12805_v45  ;;  %v10426_v45 = vpop.f32.mrf.mxu2 }
 0x1f8   :  { %v1344_v42 = vpop.f32.mrf.mxu0 }
 0x1f9   :  { %v1384_v15 = vadd.f32 %v1344_v42, %v1155_v33 }
 0x1fa   :  { %v1565_v4 = vpop.f32.mrf.mxu1 }
 0x1fb   :  { %v10413_v12 = vadd.f32 %v1565_v4, %v1384_v15  ;;  %2091 = vmatmul.bf16.gmra.mxu3 %v1978_v58  ;;  %2302 = vmatmul.bf16.gmra.mxu0 %v2193_v2  ;;  %v12809_v2 = vld [vmem:[#allocation41_spill] sm:$0xff] }
 0x1fc   :  { %v2198_v25 = vrot.slane %v12809_v2, 2  ;;  %v12811_v4 = vld [vmem:[#allocation17_spill] sm:$0xff] }
 0x1fe   :  { %v1125_v30 = vpop.f32.mrf.mxu3 }
 0x1ff   :  { %v1159_v3 = vadd.f32 %v1125_v30, %v12806_v26  ;;  %v10434_v51 = vpop.f32.mrf.mxu2 }
 0x200   :  { %v1346_v39 = vpop.f32.mrf.mxu0 }
 0x201   :  { %v1385_v1 = vadd.f32 %v1346_v39, %v1156_v37  ;;  %v2199_v37 = vsel %vm646_vm0, %v2196_v17, %v2198_v25  ;;  %v12812_v39 = vld [vmem:[#allocation39_spill] sm:$0xff]  ;;  %v12813_v17 = vld [vmem:[#allocation20_spill] sm:$0xff] }
 0x202   :  { %v1567_v33 = vpop.f32.mrf.mxu1  ;;  %v1959_v35 = vpack.c.b16 %v10160_v29, %v12812_v39  ;;  %v8758_v39 = vld [vmem:[#allocation4 + $0xe8] sm:$0xff] }
 0x203   :  { %v10421_v59 = vadd.f32 %v1567_v33, %v1385_v1  ;;  %3110 = vmatpush.bf16.msra.mxu2 %v8758_v39  ;;  %v12815_v39 = vld [vmem:[#allocation36_spill] sm:$0xff] }
 0x204   :  { %v1981_v1 = vrot.slane %v1959_v35, 1  ;;  %v8990_v35 = vmov 0.0  }
 0x205   :  { %64 = vst [vmem:[#allocation2] sm:$0xff] %v8990_v35 }
 0x206   :  { %v1127_v60 = vpop.f32.mrf.mxu3  ;;  %65 = vst [vmem:[#allocation2 + $0x8] sm:$0x7] %v8990_v35 }
 0x207   :  { %v1160_v32 = vadd.f32 %v1127_v60, %v12810_v55  ;;  %v1982_v55 = vsel %vm426_vm1, %v1979_v63, %v1981_v1  ;;  %66 = vst [vmem:[#allocation2 + $0xe9] sm:$0xff] %v8990_v35 }
 0x208   :  { %v1349_v19 = vpop.f32.mrf.mxu0  ;;  %67 = vst [vmem:[#allocation2 + $0xf1] sm:$0x7] %v8990_v35 }
 0x209   :  { %v1386_v42 = vadd.f32 %v1349_v19, %v1157_v27  ;;  %v8745_v27 = vld [vmem:[#allocation4] sm:$0xff]  ;;  %68 = vst [vmem:[#allocation3] sm:$0xff] %v8990_v35 }
 0x20a   :  { %v1570_v58 = vpop.f32.mrf.mxu1  ;;  %2886 = vmatpush.bf16.msra.mxu1 %v8745_v27  ;;  %69 = vst [vmem:[#allocation3 + $0x8] sm:$0x7] %v8990_v35  ;;  %v8768_v27 = vld [vmem:[#allocation4 + $0x1b8] sm:$0xff] }
 0x20b   :  { %v10428_v31 = vadd.f32 %v1570_v58, %v1386_v42  ;;  %2096 = vmatmul.bf16.gmra.mxu3 %v1980_v24  ;;  %2307 = vmatmul.bf16.gmra.mxu0 %v2195_v52  ;;  %v2200_v52 = vrot.slane %v10192_v56, 2  ;;  %v10444_v42 = vpop.f32.mrf.mxu2  ;;  %v1960_v56 = vpack.c.b16 %v10238_v44, %v10162_v53  ;;  %70 = vst [vmem:[#allocation3 + $0xe9] sm:$0xff] %v8990_v35 }
 0x20c   :  { %71 = vst [vmem:[#allocation3 + $0xf1] sm:$0x7] %v8990_v35  ;;  %3329 = vmatpush.bf16.msrb.mxu3 %v8768_v27  ;;  %v10475_v27 = vld [vmem:[%s12707_s2] ss:$0 sm:$0xff] }
 0x20d   :  { %v1983_v63 = vrot.slane %v1960_v56, 1 }
 0x20e   :  { %v1130_v15 = vpop.f32.mrf.mxu3 }
 0x20f   :  { %v1161_v30 = vadd.f32 %v1130_v15, %v12811_v4  ;;  %v1984_v44 = vsel %vm426_vm1, %v1981_v1, %v1983_v63 }
 0x210   :  { %v1351_v26 = vpop.f32.mrf.mxu0 }
 0x211   :  { %v1387_v20 = vadd.f32 %v1351_v26, %v1158_v40  ;;  %v2201_v40 = vsel %vm646_vm0, %v2198_v25, %v2200_v52  ;;  %v2202_v25 = vrot.slane %v10256_v50, 2 }
 0x212   :  { %v1572_v22 = vpop.f32.mrf.mxu1 }
 0x213   :  { %v10436_v0 = vadd.f32 %v1572_v22, %v1387_v20  ;;  %v10451_v20 = vpop.f32.mrf.mxu2 }
 0x216   :  { %v1132_v33 = vpop.f32.mrf.mxu3 }
 0x217   :  { %v1162_v60 = vadd.f32 %v1132_v33, %v12813_v17  ;;  %v10457_v17 = vsel %vm646_vm0, %v2200_v52, %v2202_v25  ;;  %v8757_v52 = vld [vmem:[#allocation4 + $0xe0] sm:$0xff] }
 0x218   :  { %v1354_v2 = vpop.f32.mrf.mxu0  ;;  %3111 = vmatpush.bf16.msra.mxu2 %v8757_v52  ;;  %v1962_v52 = vpack.c.b16 %v10328_v47, %v10288_v23  ;;  %v8753_v47 = vld [vmem:[#allocation4 + $0xc0] sm:$0xff] }
 0x219   :  { %v1388_v19 = vadd.f32 %v1354_v2, %v1159_v3 }
 0x21a   :  { %v1575_v24 = vpop.f32.mrf.mxu1 }
 0x21b   :  { %v10441_v29 = vadd.f32 %v1575_v24, %v1388_v19  ;;  %2101 = vmatmul.bf16.gmra.mxu3 %v1982_v55  ;;  %2312 = vmatmul.bf16.gmra.mxu0 %v2197_v57  ;;  %v1961_v55 = vpack.c.b16 %v10286_v13, %v10240_v21  ;;  %v10461_v19 = vpop.f32.mrf.mxu2  ;;  %v8776_v24 = vld [vmem:[#allocation4 + $0x78] sm:$0xff] }
 0x21c   :  { %3647 = vmatpush.bf16.msrb.mxu0 %v8776_v24  ;;  %v8767_v24 = vld [vmem:[#allocation4 + $0x1b0] sm:$0xff] }
 0x21d   :  { %3330 = vmatpush.bf16.msrb.mxu3 %v8767_v24 }
 0x21e   :  { %v2062_v58 = vpop.f32.mrf.mxu3 }
 0x21f   :  { %v2132_v35 = vadd.f32 %v2062_v58, %v12815_v39 }
 0x220   :  { %v1356_v15 = vpop.f32.mrf.mxu0 }
 0x221   :  { %v1389_v4 = vadd.f32 %v1356_v15, %v1160_v32  ;;  %v8784_v15 = vld [vmem:[#allocation4 + $0x138] sm:$0xff] }
 0x222   :  { %v1577_v26 = vpop.f32.mrf.mxu1  ;;  %3876 = vmatpush.bf16.msrb.mxu1 %v8784_v15 }
 0x223   :  { %v10448_v3 = vadd.f32 %v1577_v26, %v1389_v4  ;;  %v2204_v26 = vrot.slane %v10300_v54, 2 }
 0x225   :  { %v10478_v54 = vsel %vm646_vm0, %v2202_v25, %v2204_v26  ;;  %v8754_v25 = vld [vmem:[#allocation4 + $0xc8] sm:$0xff] }
 0x226   :  { %v2064_v57 = vpop.f32.mrf.mxu3 }
 0x228   :  { %v1359_v53 = vpop.f32.mrf.mxu0 }
 0x229   :  { %v1390_v32 = vadd.f32 %v1359_v53, %v1161_v30 }
 0x22a   :  { %v1580_v22 = vpop.f32.mrf.mxu1 }
 0x22b   :  { %v10454_v33 = vadd.f32 %v1580_v22, %v1390_v32  ;;  %2106 = vmatmul.bf16.gmra.mxu3 %v1984_v44  ;;  %2317 = vmatmul.bf16.gmra.mxu0 %v2199_v37  ;;  %v1985_v37 = vrot.slane %v1961_v55, 1  ;;  %v8756_v44 = vld [vmem:[#allocation4 + $0xd8] sm:$0xff]  ;;  %v10470_v32 = vpop.f32.mrf.mxu2  ;;  %v12816_v55 = vld [vmem:[#allocation40_spill] sm:$0xff] }
 0x22c   :  { %3112 = vmatpush.bf16.msra.mxu2 %v8756_v44  ;;  %v12735_v44 = vrot.slane %v10337_v62, 2 }
 0x22d   :  { %v1986_v21 = vsel %vm426_vm1, %v1983_v63, %v1985_v37 }
 0x22e   :  { %v2067_v50 = vpop.f32.mrf.mxu3 }
 0x230   :  { %v1361_v2 = vpop.f32.mrf.mxu0 }
 0x231   :  { %v1391_v1 = vadd.f32 %v1361_v2, %v1162_v60  ;;  %v2440_v60 = vpop.permute.xlu0 %2439  ;;  %v8755_v2 = vld [vmem:[#allocation4 + $0xd0] sm:$0xff] }
 0x232   :  { %v1582_v30 = vpop.f32.mrf.mxu1  ;;  %3113 = vmatpush.bf16.msra.mxu2 %v8755_v2  ;;  %v8765_v2 = vld [vmem:[#allocation4 + $0x1a0] sm:$0xff] }
 0x233   :  { %v10463_v56 = vadd.f32 %v1582_v30, %v1391_v1  ;;  %v2133_v1 = vadd.f32 %v2064_v57, %v12816_v55 }
 0x235   :  { %12814 = vst [vmem:[#allocation13_spill] sm:$0xff] %v10463_v56  ;;  %v8782_v56 = vld [vmem:[#allocation4 + $0x128] sm:$0xff] }
 0x236   :  { %v10465_v4 = vpop.f32.mrf.mxu3  ;;  %3114 = vmatpush.bf16.msra.mxu2 %v8754_v25 }
 0x238   :  { %v2283_v53 = vpop.f32.mrf.mxu0 }
 0x239   :  { %v2353_v13 = vadd.f32 %v2283_v53, %v2132_v35  ;;  %v8766_v35 = vld [vmem:[#allocation4 + $0x1a8] sm:$0xff]  ;;  %v2445_v53 = vpop.permute.xlu0 %2444 }
 0x23a   :  { %3331 = vmatpush.bf16.msrb.mxu3 %v8766_v35  ;;  %3115 = vmatpush.bf16.msra.mxu2 %v8753_v47 }
 0x23b   :  { %v2381_v22 = vmax.f32 %v2353_v13, 0.0  ;;  %2111 = vmatmul.bf16.gmra.mxu3 %v1986_v21  ;;  %2322 = vmatmul.bf16.gmra.mxu0 %v2201_v40  ;;  %v10486_v21 = vrot.slane %v1962_v52, 1  ;;  %v10488_v13 = vpop.f32.mrf.mxu2 }
 0x23d   :  { %v2577_v58 = vmul.f32 %v2440_v60, %v2381_v22  ;;  %v1641_v60 = vld [vmem:[%s12705_s0 + $0xe2] sm:$0xff]  ;;  %v2134_v22 = vadd.f32 %v2067_v50, %v10147_v36  ;;  %v10506_v50 = vsel %vm646_vm0, %v2204_v26, %v12735_v44 }
 0x23e   :  { %v10480_v63 = vpop.f32.mrf.mxu3  ;;  %v1672_v24 = vpack.c.bf16 %v1641_v60, %v1641_v60  ;;  %3332 = vmatpush.bf16.msrb.mxu3 %v8765_v2  ;;  %v8763_v26 = vld [vmem:[#allocation4 + $0x190] sm:$0xff] }
 0x23f   :  { %v2609_v30 = vmul.f32 %v10475_v27, %v2577_v58 }
 0x240   :  { %v2285_v15 = vpop.f32.mrf.mxu0 }
 0x241   :  { %2637 = vst [vmem:[#allocation2 + $0xb] sm:$0xff] %v2609_v30  ;;  %v2354_v40 = vadd.f32 %v2285_v15, %v2133_v1  ;;  %v1988_v1 = vsel %vm426_vm1, %v1985_v37, %v10486_v21  ;;  %v8764_v37 = vld [vmem:[#allocation4 + $0x198] sm:$0xff] }
 0x242   :  { %3333 = vmatpush.bf16.msrb.mxu3 %v8764_v37 }
 0x243   :  { %v2382_v39 = vmax.f32 %v2354_v40, 0.0  ;;  %v8991_v40 = vmov 0.0|0.0  }
 0x244   :  { %v2775_v25 = vunpack.c.l.b16 %v8991_v40  ;;  %v8783_v40 = vld [vmem:[#allocation4 + $0x130] sm:$0xff] }
 0x245   :  { %v2578_v57 = vmul.f32 %v2445_v53, %v2382_v39  ;;  %v2450_v39 = vpop.permute.xlu1 %2449  ;;  %v10508_v53 = vunpack.c.l.b16 %v1672_v24  ;;  %3877 = vmatpush.bf16.msrb.mxu1 %v8783_v40 }
 0x246   :  { %v10493_v23 = vpop.f32.mrf.mxu3  ;;  %3334 = vmatpush.bf16.msrb.mxu3 %v8763_v26 }
 0x247   :  { %v2610_v58 = vmul.f32 %v10475_v27, %v2578_v57 }
 0x248   :  { %v2288_v55 = vpop.f32.mrf.mxu0  ;;  %v2670_v30 = vld [vmem:[#allocation2 + $0x8] sm:$0xff] }
 0x249   :  { %2638 = vst [vmem:[#allocation2 + $0x13] sm:$0xff] %v2610_v58  ;;  %v2355_v15 = vadd.f32 %v2288_v55, %v2134_v22  ;;  %v2701_v52 = vpack.c.bf16 %v2670_v30, %v2670_v30  ;;  %v3437_v57 = vld [vmem:[#allocation2 + $0x9] sm:$0xff]  ;;  %v10513_v58 = vpop.f32.mrf.mxu2  ;;  %v1963_v30 = vpack.c.b16 %v10508_v53, %v10330_v43  ;;  %v1907_v43 = vadd.f32 %v10416_v48, %v10204_v16 }
 0x24a   :  { %v3468_v55 = vpack.c.bf16 %v3437_v57, %v3437_v57  ;;  %3878 = vmatpush.bf16.msrb.mxu1 %v8782_v56 }
 0x24b   :  { %v2383_v35 = vmax.f32 %v2355_v15, 0.0  ;;  %2116 = vmatmul.bf16.gmra.mxu3 %v1988_v1  ;;  %2327 = vmatmul.bf16.gmra.mxu0 %v10457_v17  ;;  %v10501_v36 = vunpack.c.l.b16 %v2701_v52  ;;  %v2135_v17 = vadd.f32 %v10465_v4, %v10185_v6  ;;  %v8775_v52 = vld [vmem:[#allocation4 + $0x70] sm:$0xff]  ;;  %v8762_v6 = vld [vmem:[#allocation4 + $0x188] sm:$0xff]  ;;  %v10524_v57 = vrot.slane %v1963_v30, 1 }
 0x24c   :  { %3648 = vmatpush.bf16.msrb.mxu0 %v8775_v52  ;;  %v10520_v4 = vunpack.c.l.b16 %v3468_v55  ;;  %3335 = vmatpush.bf16.msrb.mxu3 %v8762_v6  ;;  %v2136_v26 = vadd.f32 %v10480_v63, %v1907_v43 }
 0x24d   :  { %v2579_v60 = vmul.f32 %v2450_v39, %v2383_v35  ;;  %v2803_v47 = vpack.c.b16 %v10501_v36, %v2775_v25  ;;  %v2455_v37 = vpop.permute.xlu1 %2454  ;;  %v1990_v30 = vsel %vm426_vm1, %v10486_v21, %v10524_v57 }
 0x24e   :  { %v10511_v22 = vpop.f32.mrf.mxu3 }
 0x24f   :  { %v2611_v2 = vmul.f32 %v10475_v27, %v2579_v60  ;;  %2887 = vmatmul.bf16.vlgmr.msra.gmra.mxu1 %v2803_v47 }
 0x250   :  { %v2290_v1 = vpop.f32.mrf.mxu0  ;;  %v3438_v24 = vld [vmem:[#allocation2 + $0x11] sm:$0xff] }
 0x251   :  { %2639 = vst [vmem:[#allocation2 + $0x1b] sm:$0xff] %v2611_v2  ;;  %v2356_v15 = vadd.f32 %v2290_v1, %v2135_v17  ;;  %v3469_v25 = vpack.c.bf16 %v3438_v24, %v3438_v24  ;;  %v2671_v60 = vld [vmem:[#allocation2 + $0x10] sm:$0xff]  ;;  %v10537_v16 = vpop.f32.mrf.mxu2 }
 0x252   :  { %v2702_v1 = vpack.c.bf16 %v2671_v60, %v2671_v60  ;;  %v8761_v24 = vld [vmem:[#allocation4 + $0x180] sm:$0xff]  ;;  %v1908_v60 = vadd.f32 %v10426_v45, %v10235_v61 }
 0x253   :  { %v2384_v39 = vmax.f32 %v2356_v15, 0.0  ;;  %v10522_v35 = vunpack.c.l.b16 %v3469_v25  ;;  %3336 = vmatpush.bf16.msrb.mxu3 %v8761_v24  ;;  %v2460_v25 = vpop.permute.xlu2 %2459 }
 0x254   :  { %v2777_v63 = vunpack.c.l.b16 %v2702_v1 }
 0x255   :  { %v2580_v47 = vmul.f32 %v2455_v37, %v2384_v39  ;;  %v3773_v17 = vpack.c.b16 %v10522_v35, %v10520_v4 }
 0x256   :  { %v10530_v2 = vpop.f32.mrf.mxu3  ;;  %v3005_v61 = vpack.c.b16 %v2777_v63, %v10501_v36 }
 0x257   :  { %v2612_v55 = vmul.f32 %v10475_v27, %v2580_v47 }
 0x258   :  { %v2293_v15 = vpop.f32.mrf.mxu0  ;;  %v2672_v52 = vld [vmem:[#allocation2 + $0x18] sm:$0xff] }
 0x259   :  { %2640 = vst [vmem:[#allocation2 + $0x23] sm:$0xff] %v2612_v55  ;;  %v2357_v48 = vadd.f32 %v2293_v15, %v2136_v26  ;;  %v2703_v40 = vpack.c.bf16 %v2672_v52, %v2672_v52  ;;  %v3439_v37 = vld [vmem:[#allocation2 + $0x19] sm:$0xff]  ;;  %v2137_v26 = vadd.f32 %v10493_v23, %v1908_v60  ;;  %v10550_v45 = vpop.f32.mrf.mxu2 }
 0x25a   :  { %v3470_v24 = vpack.c.bf16 %v3439_v37, %v3439_v37  ;;  %v1909_v37 = vadd.f32 %v10434_v51, %v10265_v7  ;;  %v8773_v7 = vld [vmem:[#allocation4 + $0x60] sm:$0xff] }
 0x25b   :  { %v2385_v39 = vmax.f32 %v2357_v48, 0.0  ;;  %2121 = vmatmul.bf16.gmra.mxu3 %v1990_v30  ;;  %2332 = vmatmul.bf16.gmra.mxu0 %v10478_v54  ;;  %v2778_v6 = vunpack.c.l.b16 %v2703_v40 }
 0x25c   :  { %v10552_v23 = vunpack.c.l.b16 %v3470_v24  ;;  %v2138_v24 = vadd.f32 %v10511_v22, %v1909_v37  ;;  %v2470_v37 = vpop.permute.xlu0 %2469 }
 0x25d   :  { %v2581_v43 = vmul.f32 %v2460_v25, %v2385_v39  ;;  %v10542_v21 = vpack.c.b16 %v2778_v6, %v2777_v63  ;;  %v8774_v39 = vld [vmem:[#allocation4 + $0x68] sm:$0xff] }
 0x25e   :  { %v10544_v47 = vpop.f32.mrf.mxu3  ;;  %3649 = vmatpush.bf16.msrb.mxu0 %v8774_v39 }
 0x25f   :  { %v2613_v55 = vmul.f32 %v10475_v27, %v2581_v43  ;;  %2892 = vmatmul.bf16.gmra.mxu1 %v10542_v21  ;;  %v2465_v43 = vpop.permute.xlu2 %2464 }
 0x260   :  { %v2673_v15 = vld [vmem:[#allocation2 + $0x20] sm:$0xff]  ;;  %v2295_v54 = vpop.f32.mrf.mxu0 }
 0x261   :  { %v3440_v1 = vld [vmem:[#allocation2 + $0x21] sm:$0xff]  ;;  %2641 = vst [vmem:[#allocation2 + $0x2b] sm:$0xff] %v2613_v55  ;;  %v2704_v30 = vpack.c.bf16 %v2673_v15, %v2673_v15  ;;  %v2358_v52 = vadd.f32 %v2295_v54, %v2137_v26  ;;  %v1642_v26 = vld [vmem:[%s12705_s0 + $0xea] sm:$0xff]  ;;  %v3019_v15 = vrot.slane %v3005_v61, 1 }
 0x262   :  { %v3471_v48 = vpack.c.bf16 %v3440_v1, %v3440_v1  ;;  %3650 = vmatpush.bf16.msrb.mxu0 %v8773_v7  ;;  %v8772_v61 = vld [vmem:[#allocation4 + $0x58] sm:$0xff] }
 0x263   :  { %v2779_v40 = vunpack.c.l.b16 %v2704_v30  ;;  %v2386_v25 = vmax.f32 %v2358_v52, 0.0  ;;  %v1673_v30 = vpack.c.bf16 %v1642_v26, %v1642_v26  ;;  %v3787_v52 = vrot.slane %v3773_v17, 1 }
 0x264   :  { %v10554_v60 = vunpack.c.l.b16 %v3471_v48  ;;  %v1910_v26 = vadd.f32 %v10444_v42, %v10284_v18 }
 0x265   :  { %v3006_v44 = vpack.c.b16 %v2779_v40, %v2778_v6  ;;  %v2582_v55 = vmul.f32 %v2465_v43, %v2386_v25 }
 0x266   :  { %v3774_v36 = vpack.c.b16 %v10554_v60, %v10552_v23  ;;  %v10563_v63 = vpop.f32.mrf.mxu3  ;;  %3651 = vmatpush.bf16.msrb.mxu0 %v8772_v61 }
 0x267   :  { %v10566_v54 = vrot.slane %v3006_v44, 1  ;;  %v2614_v1 = vmul.f32 %v10475_v27, %v2582_v55  ;;  %v2179_v55 = vunpack.c.l.b16 %v1673_v30 }
 0x268   :  { %v2298_v51 = vpop.f32.mrf.mxu0  ;;  %v2674_v6 = vld [vmem:[#allocation2 + $0x28] sm:$0xff]  ;;  %v10569_v48 = vrot.slane %v3774_v36, 1  ;;  %v10581_v36 = vpop.f32.mrf.mxu2 }
 0x269   :  { %2642 = vst [vmem:[#allocation2 + $0x33] sm:$0xff] %v2614_v1  ;;  %v2359_v25 = vadd.f32 %v2298_v51, %v2138_v24  ;;  %v3021_v39 = vsel %vm426_vm1, %v3019_v15, %v10566_v54  ;;  %v2705_v43 = vpack.c.bf16 %v2674_v6, %v2674_v6  ;;  %v3441_v1 = vld [vmem:[#allocation2 + $0x29] sm:$0xff]  ;;  %v8771_v51 = vld [vmem:[#allocation4 + $0x50] sm:$0xff]  ;;  %v2181_v18 = vpack.c.b16 %v2179_v55, %v10508_v53 }
 0x26a   :  { %3116 = vmatmul.bf16.vlgmr.msra.gmra.mxu2 %v3021_v39  ;;  %v10575_v44 = vsel %vm426_vm1, %v3787_v52, %v10569_v48  ;;  %v3472_v42 = vpack.c.bf16 %v3441_v1, %v3441_v1  ;;  %3652 = vmatpush.bf16.msrb.mxu0 %v8771_v51  ;;  %v1911_v53 = vadd.f32 %v10451_v20, %v10307_v28  ;;  %v1643_v1 = vld [vmem:[%s12705_s0 + $0xf2] sm:$0x3] }
 0x26b   :  { %v2387_v22 = vmax.f32 %v2359_v25, 0.0  ;;  %2126 = vmatmul.bf16.gmra.mxu3 %v10524_v57  ;;  %2337 = vmatmul.bf16.gmra.mxu0 %v10506_v50  ;;  %v2780_v17 = vunpack.c.l.b16 %v2705_v43  ;;  %v2139_v57 = vadd.f32 %v10530_v2, %v1910_v26  ;;  %v2475_v2 = vpop.permute.xlu1 %2474  ;;  %v10591_v61 = vrot.slane %v2181_v18, 2 }
 0x26c   :  { %v3238_v18 = vrot.slane %v10542_v21, 2 }
 0x26d   :  { %v2583_v24 = vmul.f32 %v2470_v37, %v2387_v22  ;;  %v10583_v15 = vpack.c.b16 %v2780_v17, %v2779_v40  ;;  %v8770_v22 = vld [vmem:[#allocation4 + $0x48] sm:$0xff]  ;;  %v10593_v37 = vunpack.c.l.b16 %v3472_v42 }
 0x26e   :  { %v10585_v7 = vpop.f32.mrf.mxu3  ;;  %3653 = vmatpush.bf16.msrb.mxu0 %v8770_v22 }
 0x26f   :  { %v2615_v50 = vmul.f32 %v10475_v27, %v2583_v24  ;;  %2897 = vmatmul.bf16.gmra.mxu1 %v10583_v15 }
 0x270   :  { %v2300_v56 = vpop.f32.mrf.mxu0  ;;  %v2675_v6 = vld [vmem:[#allocation2 + $0x30] sm:$0xff] }
 0x271   :  { %v3442_v30 = vld [vmem:[#allocation2 + $0x31] sm:$0xff]  ;;  %2643 = vst [vmem:[#allocation2 + $0x3b] sm:$0xff] %v2615_v50  ;;  %v2360_v40 = vadd.f32 %v2300_v56, %v2139_v57  ;;  %v2706_v52 = vpack.c.bf16 %v2675_v6, %v2675_v6  ;;  %v3239_v57 = vrot.slane %v10583_v15, 2  ;;  %v10607_v56 = vpop.f32.mrf.mxu2  ;;  %v2140_v6 = vadd.f32 %v10544_v47, %v1911_v53 }
 0x272   :  { %v3473_v25 = vpack.c.bf16 %v3442_v30, %v3442_v30  ;;  %v12817_v30 = vrot.slane %v10337_v62, 2 }
 0x273   :  { %v2388_v39 = vmax.f32 %v2360_v40, 0.0  ;;  %v2781_v43 = vunpack.c.l.b16 %v2706_v52  ;;  %v3240_v21 = vsel %vm646_vm0, %v3238_v18, %v3239_v57 }
 0x274   :  { %v10595_v26 = vunpack.c.l.b16 %v3473_v25  ;;  %v2209_v40 = vsel %vm646_vm0, %v12817_v30, %v10591_v61  ;;  %v1674_v25 = vpack.c.bf16 %v1643_v1, %v1643_v1 }
 0x275   :  { %v2584_v55 = vmul.f32 %v2475_v2, %v2388_v39  ;;  %v3007_v24 = vpack.c.b16 %v2781_v43, %v2780_v17  ;;  %v8769_v17 = vld [vmem:[#allocation4 + $0x40] sm:$0xff] }
 0x276   :  { %v10603_v50 = vpop.f32.mrf.mxu3  ;;  %v3775_v51 = vpack.c.b16 %v10595_v26, %v10593_v37  ;;  %3654 = vmatpush.bf16.msrb.mxu0 %v8769_v17  ;;  %v2180_v1 = vunpack.c.l.b16 %v1674_v25 }
 0x277   :  { %v2616_v28 = vmul.f32 %v10475_v27, %v2584_v55  ;;  %v3022_v20 = vrot.slane %v3007_v24, 1  ;;  %v2480_v24 = vpop.permute.xlu2 %2479 }
 0x278   :  { %v2303_v42 = vpop.f32.mrf.mxu0  ;;  %v2676_v52 = vld [vmem:[#allocation2 + $0x38] sm:$0xff]  ;;  %v3790_v39 = vrot.slane %v3775_v51, 1 }
 0x279   :  { %2644 = vst [vmem:[#allocation2 + $0x43] sm:$0xff] %v2616_v28  ;;  %v2361_v22 = vadd.f32 %v2303_v42, %v2140_v6  ;;  %v3023_v47 = vsel %vm426_vm1, %v10566_v54, %v3022_v20  ;;  %v2707_v2 = vpack.c.bf16 %v2676_v52, %v2676_v52  ;;  %v3443_v51 = vld [vmem:[#allocation2 + $0x39] sm:$0xff]  ;;  %v1912_v54 = vadd.f32 %v10461_v19, %v10326_v14 }
 0x27a   :  { %3121 = vmatmul.bf16.gmra.mxu2 %v3023_v47  ;;  %v10623_v62 = vsel %vm426_vm1, %v10569_v48, %v3790_v39  ;;  %v3474_v42 = vpack.c.bf16 %v3443_v51, %v3443_v51  ;;  %v2182_v52 = vpack.c.b16 %v2180_v1, %v2180_v1  ;;  %v1913_v51 = vadd.f32 %v10470_v32, %v10344_v38 }
 0x27b   :  { %v2389_v53 = vmax.f32 %v2361_v22, 0.0  ;;  %2342 = vmatmul.bf16.gmra.mxu0 %v2209_v40  ;;  %3337 = vmatmul.bf16.vlgmr.msrb.gmra.mxu3 %v3240_v21  ;;  %v2782_v55 = vunpack.c.l.b16 %v2707_v2  ;;  %v2141_v18 = vadd.f32 %v10563_v63, %v1912_v54  ;;  %v10634_v22 = vpop.f32.mrf.mxu2 }
 0x27c   :  { %v10636_v21 = vunpack.c.l.b16 %v3474_v42 }
 0x27d   :  { %v2585_v6 = vmul.f32 %v2480_v24, %v2389_v53  ;;  %v10627_v28 = vpack.c.b16 %v2782_v55, %v2781_v43  ;;  %v2485_v53 = vpop.permute.xlu0 %2484  ;;  %v2210_v24 = vrot.slane %v2182_v52, 2 }
 0x27e   :  { %v10629_v17 = vpop.f32.mrf.mxu3 }
 0x27f   :  { %v2617_v48 = vmul.f32 %v10475_v27, %v2585_v6  ;;  %2902 = vmatmul.bf16.gmra.mxu1 %v10627_v28  ;;  %v2211_v38 = vsel %vm646_vm0, %v10591_v61, %v2210_v24 }
 0x280   :  { %v2305_v30 = vpop.f32.mrf.mxu0  ;;  %v2677_v40 = vld [vmem:[#allocation2 + $0x40] sm:$0xff] }
 0x281   :  { %v3444_v25 = vld [vmem:[#allocation2 + $0x41] sm:$0xff]  ;;  %2645 = vst [vmem:[#allocation2 + $0x4b] sm:$0xff] %v2617_v48  ;;  %v2362_v14 = vadd.f32 %v2305_v30, %v2141_v18  ;;  %v2708_v19 = vpack.c.bf16 %v2677_v40, %v2677_v40  ;;  %v3241_v18 = vrot.slane %v10627_v28, 2  ;;  %v2142_v30 = vadd.f32 %v10585_v7, %v1913_v51 }
 0x282   :  { %v3475_v43 = vpack.c.bf16 %v3444_v25, %v3444_v25 }
 0x283   :  { %v2390_v47 = vmax.f32 %v2362_v14, 0.0  ;;  %v2783_v2 = vunpack.c.l.b16 %v2708_v19  ;;  %v3242_v7 = vsel %vm646_vm0, %v3239_v57, %v3241_v18 }
 0x284   :  { %v10638_v63 = vunpack.c.l.b16 %v3475_v43  ;;  %v8781_v43 = vld [vmem:[#allocation4 + $0x120] sm:$0xff] }
 0x285   :  { %v2586_v54 = vmul.f32 %v2485_v53, %v2390_v47  ;;  %v3008_v1 = vpack.c.b16 %v2783_v2, %v2782_v55  ;;  %v10663_v53 = vpop.f32.mrf.mxu2  ;;  %3879 = vmatpush.bf16.msrb.mxu1 %v8781_v43 }
 0x286   :  { %v3776_v6 = vpack.c.b16 %v10638_v63, %v10636_v21  ;;  %v10645_v48 = vpop.f32.mrf.mxu3 }
 0x287   :  { %v2618_v42 = vmul.f32 %v10475_v27, %v2586_v54  ;;  %v3024_v40 = vrot.slane %v3008_v1, 1  ;;  %v1914_v54 = vadd.f32 %v10488_v13, %v10353_v8 }
 0x288   :  { %v10649_v25 = vrot.slane %v3776_v6, 1  ;;  %v2308_v52 = vpop.f32.mrf.mxu0  ;;  %v2678_v32 = vld [vmem:[#allocation2 + $0x48] sm:$0xff] }
 0x289   :  { %2646 = vst [vmem:[#allocation2 + $0x53] sm:$0xff] %v2618_v42  ;;  %v2363_v55 = vadd.f32 %v2308_v52, %v2142_v30  ;;  %v3025_v14 = vsel %vm426_vm1, %v3022_v20, %v3024_v40  ;;  %v2709_v19 = vpack.c.bf16 %v2678_v32, %v2678_v32  ;;  %v2490_v20 = vpop.permute.xlu1 %2489  ;;  %v3445_v51 = vld [vmem:[#allocation2 + $0x49] sm:$0xff]  ;;  %v3436_v6 = vld [vmem:[#allocation2 + $0x1] sm:$0xff] }
 0x28a   :  { %3126 = vmatmul.bf16.gmra.mxu2 %v3025_v14  ;;  %v10661_v47 = vsel %vm426_vm1, %v3790_v39, %v10649_v25  ;;  %v2143_v39 = vadd.f32 %v10603_v50, %v1914_v54  ;;  %v3476_v42 = vpack.c.bf16 %v3445_v51, %v3445_v51  ;;  %v3467_v8 = vpack.c.bf16 %v3436_v6, %v3436_v6 }
 0x28b   :  { %v2391_v61 = vmax.f32 %v2363_v55, 0.0  ;;  %2347 = vmatmul.bf16.gmra.mxu0 %v2211_v38  ;;  %3342 = vmatmul.bf16.gmra.mxu3 %v3242_v7  ;;  %v2784_v24 = vunpack.c.l.b16 %v2709_v19  ;;  %v1915_v50 = vadd.f32 %v10513_v58, %v10363_v41 }
 0x28c   :  { %v10674_v43 = vunpack.c.l.b16 %v3476_v42 }
 0x28d   :  { %v2587_v1 = vmul.f32 %v2490_v20, %v2391_v61  ;;  %v10667_v15 = vpack.c.b16 %v2784_v24, %v2783_v2  ;;  %v2495_v61 = vpop.permute.xlu2 %2494  ;;  %v10680_v20 = vpop.f32.mrf.mxu2  ;;  %v2144_v42 = vadd.f32 %v10629_v17, %v1915_v50 }
 0x28e   :  { %v10669_v57 = vpop.f32.mrf.mxu3 }
 0x28f   :  { %v2619_v30 = vmul.f32 %v10475_v27, %v2587_v1  ;;  %2907 = vmatmul.bf16.gmra.mxu1 %v10667_v15  ;;  %v3543_v1 = vunpack.c.l.b16 %v3467_v8  ;;  %v3243_v6 = vrot.slane %v10667_v15, 2 }
 0x290   :  { %v2310_v52 = vpop.f32.mrf.mxu0  ;;  %v2679_v38 = vld [vmem:[#allocation2 + $0x50] sm:$0xff] }
 0x291   :  { %v3446_v32 = vld [vmem:[#allocation2 + $0x51] sm:$0xff]  ;;  %2647 = vst [vmem:[#allocation2 + $0x5b] sm:$0xff] %v2619_v30  ;;  %v2364_v55 = vadd.f32 %v2310_v52, %v2143_v39  ;;  %v2710_v14 = vpack.c.bf16 %v2679_v38, %v2679_v38  ;;  %v3244_v17 = vsel %vm646_vm0, %v3241_v18, %v3243_v6 }
 0x292   :  { %v3477_v13 = vpack.c.bf16 %v3446_v32, %v3446_v32 }
 0x293   :  { %v2392_v2 = vmax.f32 %v2364_v55, 0.0  ;;  %v2785_v19 = vunpack.c.l.b16 %v2710_v14  ;;  %v3571_v14 = vpack.c.b16 %v10520_v4, %v3543_v1  ;;  %v1916_v4 = vadd.f32 %v10537_v16, %v10371_v11  ;;  %v8780_v16 = vld [vmem:[#allocation4 + $0x118] sm:$0xff] }
 0x294   :  { %v10676_v7 = vunpack.c.l.b16 %v3477_v13  ;;  %3880 = vmatpush.bf16.msrb.mxu1 %v8780_v16 }
 0x295   :  { %v2588_v51 = vmul.f32 %v2495_v61, %v2392_v2  ;;  %v3009_v54 = vpack.c.b16 %v2785_v19, %v2784_v24  ;;  %v2500_v61 = vpop.permute.xlu0 %2499  ;;  %v10706_v28 = vpop.f32.mrf.mxu2  ;;  %v2145_v18 = vadd.f32 %v10645_v48, %v1916_v4 }
 0x296   :  { %v3777_v39 = vpack.c.b16 %v10676_v7, %v10674_v43  ;;  %v10685_v30 = vpop.f32.mrf.mxu3  ;;  %v2505_v48 = vpop.permute.xlu1 %2504 }
 0x297   :  { %v2620_v52 = vmul.f32 %v10475_v27, %v2588_v51  ;;  %v3026_v38 = vrot.slane %v3009_v54, 1 }
 0x298   :  { %v3794_v32 = vrot.slane %v3777_v39, 1  ;;  %v2313_v41 = vpop.f32.mrf.mxu0  ;;  %v2680_v58 = vld [vmem:[#allocation2 + $0x58] sm:$0xff] }
 0x299   :  { %2648 = vst [vmem:[#allocation2 + $0x63] sm:$0xff] %v2620_v52  ;;  %v2365_v55 = vadd.f32 %v2313_v41, %v2144_v42  ;;  %v3027_v24 = vsel %vm426_vm1, %v3024_v40, %v3026_v38  ;;  %v2711_v8 = vpack.c.bf16 %v2680_v58, %v2680_v58  ;;  %v3447_v40 = vld [vmem:[#allocation2 + $0x59] sm:$0xff] }
 0x29a   :  { %3131 = vmatmul.bf16.gmra.mxu2 %v3027_v24  ;;  %v10698_v13 = vsel %vm426_vm1, %v10649_v25, %v3794_v32  ;;  %v3478_v39 = vpack.c.bf16 %v3447_v40, %v3447_v40 }
 0x29b   :  { %v2393_v2 = vmax.f32 %v2365_v55, 0.0  ;;  %3347 = vmatmul.bf16.gmra.mxu3 %v3244_v17  ;;  %3655 = vmatmul.bf16.vlgmr.msrb.gmra.mxu0 %v3571_v14  ;;  %v2786_v50 = vunpack.c.l.b16 %v2711_v8  ;;  %v1917_v17 = vadd.f32 %v10550_v45, %v10377_v34 }
 0x29c   :  { %v10711_v14 = vunpack.c.l.b16 %v3478_v39 }
 0x29d   :  { %v2589_v51 = vmul.f32 %v2500_v61, %v2393_v2  ;;  %v10702_v54 = vpack.c.b16 %v2786_v50, %v2785_v19 }
 0x29e   :  { %v10704_v1 = vpop.f32.mrf.mxu3 }
 0x29f   :  { %v2621_v25 = vmul.f32 %v10475_v27, %v2589_v51  ;;  %2912 = vmatmul.bf16.gmra.mxu1 %v10702_v54  ;;  %v3245_v4 = vrot.slane %v10702_v54, 2 }
 0x2a0   :  { %v2315_v42 = vpop.f32.mrf.mxu0  ;;  %v2681_v52 = vld [vmem:[#allocation2 + $0x60] sm:$0xff] }
 0x2a1   :  { %v3448_v41 = vld [vmem:[#allocation2 + $0x61] sm:$0xff]  ;;  %2649 = vst [vmem:[#allocation2 + $0x6b] sm:$0xff] %v2621_v25  ;;  %v2366_v58 = vadd.f32 %v2315_v42, %v2145_v18  ;;  %v2712_v11 = vpack.c.bf16 %v2681_v52, %v2681_v52  ;;  %v2146_v18 = vadd.f32 %v10669_v57, %v1917_v17  ;;  %v3246_v57 = vsel %vm646_vm0, %v3243_v6, %v3245_v4 }
 0x2a2   :  { %v3479_v19 = vpack.c.bf16 %v3448_v41, %v3448_v41 }
 0x2a3   :  { %v2394_v55 = vmax.f32 %v2366_v58, 0.0  ;;  %v2787_v24 = vunpack.c.l.b16 %v2712_v11  ;;  %v10724_v58 = vpop.f32.mrf.mxu2 }
 0x2a4   :  { %v10713_v8 = vunpack.c.l.b16 %v3479_v19 }
 0x2a5   :  { %v2590_v2 = vmul.f32 %v2505_v48, %v2394_v55  ;;  %v3010_v61 = vpack.c.b16 %v2787_v24, %v2786_v50  ;;  %v10729_v50 = vpack.c.b16 %v10552_v23, %v10522_v35  ;;  %v2510_v55 = vpop.permute.xlu2 %2509  ;;  %v1918_v35 = vadd.f32 %v10581_v36, %v10384_v9 }
 0x2a6   :  { %v3778_v40 = vpack.c.b16 %v10713_v8, %v10711_v14  ;;  %v10720_v51 = vpop.f32.mrf.mxu3 }
 0x2a7   :  { %v2622_v25 = vmul.f32 %v10475_v27, %v2590_v2  ;;  %v3028_v39 = vrot.slane %v3010_v61, 1  ;;  %v2147_v15 = vadd.f32 %v10685_v30, %v1918_v35  ;;  %v2515_v30 = vpop.permute.xlu0 %2514 }
 0x2a8   :  { %v3796_v42 = vrot.slane %v3778_v40, 1  ;;  %v2318_v52 = vpop.f32.mrf.mxu0  ;;  %v2682_v41 = vld [vmem:[#allocation2 + $0x68] sm:$0xff] }
 0x2a9   :  { %2650 = vst [vmem:[#allocation2 + $0x73] sm:$0xff] %v2622_v25  ;;  %v2367_v34 = vadd.f32 %v2318_v52, %v2146_v18  ;;  %v3029_v45 = vsel %vm426_vm1, %v3026_v38, %v3028_v39  ;;  %v2713_v11 = vpack.c.bf16 %v2682_v41, %v2682_v41  ;;  %v3449_v48 = vld [vmem:[#allocation2 + $0x69] sm:$0xff] }
 0x2aa   :  { %3136 = vmatmul.bf16.gmra.mxu2 %v3029_v45  ;;  %v10737_v16 = vsel %vm426_vm1, %v3794_v32, %v3796_v42  ;;  %v3480_v32 = vpack.c.bf16 %v3449_v48, %v3449_v48 }
 0x2ab   :  { %v2395_v19 = vmax.f32 %v2367_v34, 0.0  ;;  %3352 = vmatmul.bf16.gmra.mxu3 %v3246_v57  ;;  %3660 = vmatmul.bf16.gmra.mxu0 %v10729_v50  ;;  %v2788_v38 = vunpack.c.l.b16 %v2713_v11  ;;  %v10749_v9 = vpop.f32.mrf.mxu2  ;;  %v1919_v11 = vadd.f32 %v10607_v56, %v10390_v10  ;;  %v10767_v56 = vpack.c.b16 %v10593_v37, %v10554_v60 }
 0x2ac   :  { %v10751_v34 = vunpack.c.l.b16 %v3480_v32  ;;  %v1920_v60 = vadd.f32 %v10634_v22, %v10397_v46  ;;  %v8779_v22 = vld [vmem:[#allocation4 + $0x110] sm:$0xff] }
 0x2ad   :  { %v2591_v23 = vmul.f32 %v2510_v55, %v2395_v19  ;;  %v10742_v17 = vpack.c.b16 %v2788_v38, %v2787_v24  ;;  %3881 = vmatpush.bf16.msrb.mxu1 %v8779_v22 }
 0x2ae   :  { %v10744_v2 = vpop.f32.mrf.mxu3 }
 0x2af   :  { %v2623_v6 = vmul.f32 %v10475_v27, %v2591_v23  ;;  %2917 = vmatmul.bf16.gmra.mxu1 %v10742_v17  ;;  %v3247_v48 = vrot.slane %v10742_v17, 2  ;;  %v2148_v23 = vadd.f32 %v10704_v1, %v1919_v11 }
 0x2b0   :  { %v2320_v61 = vpop.f32.mrf.mxu0  ;;  %v2683_v40 = vld [vmem:[#allocation2 + $0x70] sm:$0xff] }
 0x2b1   :  { %v3450_v18 = vld [vmem:[#allocation2 + $0x71] sm:$0xff]  ;;  %2651 = vst [vmem:[#allocation2 + $0x7b] sm:$0xff] %v2623_v6  ;;  %v2368_v25 = vadd.f32 %v2320_v61, %v2147_v15  ;;  %v2714_v52 = vpack.c.bf16 %v2683_v40, %v2683_v40  ;;  %v3248_v1 = vsel %vm646_vm0, %v3245_v4, %v3247_v48  ;;  %v2149_v4 = vadd.f32 %v10720_v51, %v1920_v60  ;;  %v2525_v51 = vpop.permute.xlu2 %2524 }
 0x2b2   :  { %v3481_v41 = vpack.c.bf16 %v3450_v18, %v3450_v18 }
 0x2b3   :  { %v2396_v36 = vmax.f32 %v2368_v25, 0.0  ;;  %v2789_v24 = vunpack.c.l.b16 %v2714_v52  ;;  %v10780_v37 = vpop.f32.mrf.mxu2 }
 0x2b4   :  { %v10753_v45 = vunpack.c.l.b16 %v3481_v41  ;;  %v2520_v41 = vpop.permute.xlu1 %2519 }
 0x2b5   :  { %v2592_v57 = vmul.f32 %v2515_v30, %v2396_v36  ;;  %v3011_v19 = vpack.c.b16 %v2789_v24, %v2788_v38 }
 0x2b6   :  { %v3779_v55 = vpack.c.b16 %v10753_v45, %v10751_v34  ;;  %v10760_v35 = vpop.f32.mrf.mxu3 }
 0x2b7   :  { %v2624_v15 = vmul.f32 %v10475_v27, %v2592_v57  ;;  %v3030_v6 = vrot.slane %v3011_v19, 1 }
 0x2b8   :  { %v3798_v32 = vrot.slane %v3779_v55, 1  ;;  %v2323_v61 = vpop.f32.mrf.mxu0  ;;  %v2684_v40 = vld [vmem:[#allocation2 + $0x78] sm:$0xff] }
 0x2b9   :  { %2652 = vst [vmem:[#allocation2 + $0x83] sm:$0xff] %v2624_v15  ;;  %v2369_v18 = vadd.f32 %v2323_v61, %v2148_v23  ;;  %v3031_v10 = vsel %vm426_vm1, %v3028_v39, %v3030_v6  ;;  %v2715_v38 = vpack.c.bf16 %v2684_v40, %v2684_v40  ;;  %v3451_v36 = vld [vmem:[#allocation2 + $0x79] sm:$0xff] }
 0x2ba   :  { %3141 = vmatmul.bf16.gmra.mxu2 %v3031_v10  ;;  %v10775_v25 = vsel %vm426_vm1, %v3796_v42, %v3798_v32  ;;  %v3482_v57 = vpack.c.bf16 %v3451_v36, %v3451_v36 }
 0x2bb   :  { %v2397_v52 = vmax.f32 %v2369_v18, 0.0  ;;  %3357 = vmatmul.bf16.gmra.mxu3 %v3248_v1  ;;  %3665 = vmatmul.bf16.gmra.mxu0 %v10767_v56  ;;  %v2790_v39 = vunpack.c.l.b16 %v2715_v38  ;;  %v1921_v38 = vadd.f32 %v10663_v53, %v10402_v5 }
 0x2bc   :  { %v10789_v18 = vunpack.c.l.b16 %v3482_v57 }
 0x2bd   :  { %v2593_v30 = vmul.f32 %v2520_v41, %v2397_v52  ;;  %v10782_v11 = vpack.c.b16 %v2790_v39, %v2789_v24 }
 0x2be   :  { %v10784_v54 = vpop.f32.mrf.mxu3 }
 0x2bf   :  { %v2625_v42 = vmul.f32 %v10475_v27, %v2593_v30  ;;  %2922 = vmatmul.bf16.gmra.mxu1 %v10782_v11  ;;  %v3249_v36 = vrot.slane %v10782_v11, 2  ;;  %v10800_v30 = vpop.f32.mrf.mxu2  ;;  %v1924_v11 = vadd.f32 %v10724_v58, %v10421_v59 }
 0x2c0   :  { %v2325_v19 = vpop.f32.mrf.mxu0  ;;  %v2685_v55 = vld [vmem:[#allocation2 + $0x80] sm:$0xff] }
 0x2c1   :  { %v3452_v23 = vld [vmem:[#allocation2 + $0x81] sm:$0xff]  ;;  %2653 = vst [vmem:[#allocation2 + $0x8b] sm:$0xff] %v2625_v42  ;;  %v2370_v15 = vadd.f32 %v2325_v19, %v2149_v4  ;;  %v2716_v46 = vpack.c.bf16 %v2685_v55, %v2685_v55  ;;  %v2150_v4 = vadd.f32 %v10744_v2, %v1921_v38  ;;  %v3250_v2 = vsel %vm646_vm0, %v3247_v48, %v3249_v36 }
 0x2c2   :  { %v3483_v61 = vpack.c.bf16 %v3452_v23, %v3452_v23  ;;  %v10809_v23 = vpack.c.b16 %v10636_v21, %v10595_v26  ;;  %v2530_v26 = vpop.permute.xlu0 %2529 }
 0x2c3   :  { %v2398_v40 = vmax.f32 %v2370_v15, 0.0  ;;  %v2791_v24 = vunpack.c.l.b16 %v2716_v46  ;;  %v8792_v46 = vld [vmem:[#allocation4 + $0x1f8] sm:$0xff] }
 0x2c4   :  { %v10791_v10 = vunpack.c.l.b16 %v3483_v61  ;;  %4097 = vmatpush.bf16.msrb.mxu2 %v8792_v46 }
 0x2c5   :  { %v2594_v1 = vmul.f32 %v2525_v51, %v2398_v40  ;;  %v3012_v52 = vpack.c.b16 %v2791_v24, %v2790_v39  ;;  %v1922_v51 = vadd.f32 %v10680_v20, %v10408_v49 }
 0x2c6   :  { %v3780_v41 = vpack.c.b16 %v10791_v10, %v10789_v18  ;;  %v10798_v60 = vpop.f32.mrf.mxu3 }
 0x2c7   :  { %v2626_v42 = vmul.f32 %v10475_v27, %v2594_v1  ;;  %v3032_v57 = vrot.slane %v3012_v52, 1 }
 0x2c8   :  { %v10804_v19 = vrot.slane %v3780_v41, 1  ;;  %v2328_v55 = vpop.f32.mrf.mxu0  ;;  %v2686_v5 = vld [vmem:[#allocation2 + $0x88] sm:$0xff] }
 0x2c9   :  { %2654 = vst [vmem:[#allocation2 + $0x93] sm:$0xff] %v2626_v42  ;;  %v2371_v53 = vadd.f32 %v2328_v55, %v2150_v4  ;;  %v3033_v39 = vsel %vm426_vm1, %v3030_v6, %v3032_v57  ;;  %v2717_v15 = vpack.c.bf16 %v2686_v5, %v2686_v5  ;;  %v3453_v40 = vld [vmem:[#allocation2 + $0x89] sm:$0xff]  ;;  %v10832_v55 = vpop.f32.mrf.mxu2 }
 0x2ca   :  { %3146 = vmatmul.bf16.gmra.mxu2 %v3033_v39  ;;  %v10818_v22 = vsel %vm426_vm1, %v3798_v32, %v10804_v19  ;;  %v2151_v32 = vadd.f32 %v10760_v35, %v1922_v51  ;;  %v3484_v52 = vpack.c.bf16 %v3453_v40, %v3453_v40  ;;  %v2535_v35 = vpop.permute.xlu1 %2534 }
 0x2cb   :  { %v2399_v61 = vmax.f32 %v2371_v53, 0.0  ;;  %3362 = vmatmul.bf16.gmra.mxu3 %v3250_v2  ;;  %3670 = vmatmul.bf16.gmra.mxu0 %v10809_v23  ;;  %v2792_v6 = vunpack.c.l.b16 %v2717_v15  ;;  %v1923_v2 = vadd.f32 %v10706_v28, %v10413_v12 }
 0x2cc   :  { %v10821_v21 = vpop.f32.mrf.mxu1  ;;  %v10834_v39 = vunpack.c.l.b16 %v3484_v52 }
 0x2cd   :  { %v2595_v17 = vmul.f32 %v2530_v26, %v2399_v61  ;;  %v10825_v38 = vpack.c.b16 %v2792_v6, %v2791_v24 }
 0x2ce   :  { %v10827_v48 = vpop.f32.mrf.mxu3 }
 0x2cf   :  { %v2627_v1 = vmul.f32 %v10475_v27, %v2595_v17  ;;  %2927 = vmatmul.bf16.gmra.mxu1 %v10825_v38  ;;  %v3251_v51 = vrot.slane %v10825_v38, 2  ;;  %v1926_v38 = vadd.f32 %v10780_v37, %v10436_v0 }
 0x2d0   :  { %v2330_v41 = vpop.f32.mrf.mxu0  ;;  %v2687_v4 = vld [vmem:[#allocation2 + $0x90] sm:$0xff] }
 0x2d1   :  { %v3454_v42 = vld [vmem:[#allocation2 + $0x91] sm:$0xff]  ;;  %2655 = vst [vmem:[#allocation2 + $0x9b] sm:$0xff] %v2627_v1  ;;  %v2372_v5 = vadd.f32 %v2330_v41, %v2151_v32  ;;  %v2718_v49 = vpack.c.bf16 %v2687_v4, %v2687_v4  ;;  %v2152_v32 = vadd.f32 %v10784_v54, %v1923_v2 }
 0x2d2   :  { %v3485_v20 = vpack.c.bf16 %v3454_v42, %v3454_v42 }
 0x2d3   :  { %v2400_v24 = vmax.f32 %v2372_v5, 0.0  ;;  %v2793_v53 = vunpack.c.l.b16 %v2718_v49  ;;  %v8778_v49 = vld [vmem:[#allocation4 + $0x108] sm:$0xff] }
 0x2d4   :  { %v10836_v15 = vunpack.c.l.b16 %v3485_v20  ;;  %v10838_v46 = vpop.f32.mrf.mxu1  ;;  %v10869_v20 = vpop.f32.mrf.mxu2  ;;  %3882 = vmatpush.bf16.msrb.mxu1 %v8778_v49 }
 0x2d5   :  { %v2596_v61 = vmul.f32 %v2535_v35, %v2400_v24  ;;  %v3013_v26 = vpack.c.b16 %v2793_v53, %v2792_v6  ;;  %v10857_v6 = vpack.c.b16 %v10674_v43, %v10638_v63  ;;  %v2540_v43 = vpop.permute.xlu2 %2539 }
 0x2d6   :  { %v3781_v40 = vpack.c.b16 %v10836_v15, %v10834_v39  ;;  %v10845_v17 = vpop.f32.mrf.mxu3 }
 0x2d7   :  { %v2628_v1 = vmul.f32 %v10475_v27, %v2596_v61  ;;  %v10849_v52 = vrot.slane %v3013_v26, 1  ;;  %v3252_v27 = vsel %vm646_vm0, %v3249_v36, %v3251_v51  ;;  %v2153_v61 = vadd.f32 %v10798_v60, %v1924_v11  ;;  %v10884_v26 = vld [vmem:[%s12707_s2] ss:$0 sm:$0xff] }
 0x2d8   :  { %v10851_v41 = vrot.slane %v3781_v40, 1  ;;  %v2333_v4 = vpop.f32.mrf.mxu0  ;;  %v2688_v42 = vld [vmem:[#allocation2 + $0x98] sm:$0xff] }
 0x2d9   :  { %2656 = vst [vmem:[#allocation2 + $0xa3] sm:$0xff] %v2628_v1  ;;  %v2373_v12 = vadd.f32 %v2333_v4, %v2152_v32  ;;  %v3035_v28 = vsel %vm426_vm1, %v3032_v57, %v10849_v52  ;;  %v2719_v5 = vpack.c.bf16 %v2688_v42, %v2688_v42  ;;  %v3455_v35 = vld [vmem:[#allocation2 + $0x99] sm:$0xff] }
 0x2da   :  { %3151 = vmatmul.bf16.gmra.mxu2 %v3035_v28  ;;  %v10867_v54 = vsel %vm426_vm1, %v10804_v19, %v10851_v41  ;;  %v3486_v32 = vpack.c.bf16 %v3455_v35, %v3455_v35  ;;  %v8791_v42 = vld [vmem:[#allocation4 + $0x1f0] sm:$0xff] }
 0x2db   :  { %v2401_v57 = vmax.f32 %v2373_v12, 0.0  ;;  %3367 = vmatmul.bf16.gmra.mxu3 %v3252_v27  ;;  %3675 = vmatmul.bf16.gmra.mxu0 %v10857_v6  ;;  %v2794_v63 = vunpack.c.l.b16 %v2719_v5  ;;  %v2545_v27 = vpop.permute.xlu0 %2544 }
 0x2dc   :  { %v10872_v24 = vpop.f32.mrf.mxu1  ;;  %4098 = vmatpush.bf16.msrb.mxu2 %v8791_v42  ;;  %v10888_v5 = vunpack.c.l.b16 %v3486_v32  ;;  %v10896_v35 = vpop.f32.mrf.mxu2 }
 0x2dd   :  { %v2597_v36 = vmul.f32 %v2540_v43, %v2401_v57  ;;  %v10876_v2 = vpack.c.b16 %v2794_v63, %v2793_v53  ;;  %v1925_v43 = vadd.f32 %v10749_v9, %v10428_v31  ;;  %v10910_v31 = vld [vmem:[%s12711_s6] ss:$0 sm:$0xff] }
 0x2de   :  { %v10878_v19 = vpop.f32.mrf.mxu3 }
 0x2df   :  { %v2629_v40 = vmul.f32 %v10884_v26, %v2597_v36  ;;  %2932 = vmatmul.bf16.gmra.mxu1 %v10876_v2  ;;  %v2154_v32 = vadd.f32 %v10827_v48, %v1925_v43  ;;  %v10916_v48 = vpack.c.b16 %v10711_v14, %v10676_v7  ;;  %v2550_v7 = vpop.permute.xlu1 %2549  ;;  %v2958_v14 = vadd.f32 %v10910_v31, %v10821_v21 }
 0x2e0   :  { %v2335_v1 = vpop.f32.mrf.mxu0  ;;  %v2689_v4 = vld [vmem:[#allocation2 + $0xa0] sm:$0xff] }
 0x2e1   :  { %v3456_v59 = vld [vmem:[#allocation2 + $0xa1] sm:$0xff]  ;;  %2657 = vst [vmem:[#allocation2 + $0xab] sm:$0xff] %v2629_v40  ;;  %v2374_v58 = vadd.f32 %v2335_v1, %v2153_v61  ;;  %v2720_v53 = vpack.c.bf16 %v2689_v4, %v2689_v4  ;;  %v3253_v40 = vrot.slane %v10876_v2, 2 }
 0x2e2   :  { %v3487_v12 = vpack.c.bf16 %v3456_v59, %v3456_v59 }
 0x2e3   :  { %v2402_v28 = vmax.f32 %v2374_v58, 0.0  ;;  %v2795_v60 = vunpack.c.l.b16 %v2720_v53 }
 0x2e4   :  { %v10890_v49 = vunpack.c.l.b16 %v3487_v12  ;;  %v10892_v57 = vpop.f32.mrf.mxu1 }
 0x2e5   :  { %v2598_v11 = vmul.f32 %v2545_v27, %v2402_v28  ;;  %v3014_v36 = vpack.c.b16 %v2795_v60, %v2794_v63  ;;  %v3254_v28 = vsel %vm646_vm0, %v3251_v51, %v3253_v40 }
 0x2e6   :  { %v3782_v61 = vpack.c.b16 %v10890_v49, %v10888_v5  ;;  %v10901_v1 = vpop.f32.mrf.mxu3 }
 0x2e7   :  { %v2630_v4 = vmul.f32 %v10884_v26, %v2598_v11  ;;  %v3036_v59 = vrot.slane %v3014_v36, 1 }
 0x2e8   :  { %v10905_v58 = vrot.slane %v3782_v61, 1  ;;  %v2338_v9 = vpop.f32.mrf.mxu0  ;;  %v2690_v63 = vld [vmem:[#allocation2 + $0xa8] sm:$0xff] }
 0x2e9   :  { %2658 = vst [vmem:[#allocation2 + $0xb3] sm:$0xff] %v2630_v4  ;;  %v2375_v53 = vadd.f32 %v2338_v9, %v2154_v32  ;;  %v3037_v42 = vsel %vm426_vm1, %v10849_v52, %v3036_v59  ;;  %v2721_v12 = vpack.c.bf16 %v2690_v63, %v2690_v63  ;;  %v3457_v36 = vld [vmem:[#allocation2 + $0xa9] sm:$0xff]  ;;  %v2155_v9 = vadd.f32 %v10845_v17, %v1926_v38 }
 0x2ea   :  { %3156 = vmatmul.bf16.gmra.mxu2 %v3037_v42  ;;  %v10926_v27 = vsel %vm426_vm1, %v10851_v41, %v10905_v58  ;;  %v3488_v21 = vpack.c.bf16 %v3457_v36, %v3457_v36  ;;  %v2959_v17 = vadd.f32 %v10910_v31, %v10838_v46  ;;  %v1927_v36 = vadd.f32 %v10800_v30, %v10441_v29 }
 0x2eb   :  { %v2403_v43 = vmax.f32 %v2375_v53, 0.0  ;;  %3372 = vmatmul.bf16.gmra.mxu3 %v3254_v28  ;;  %3680 = vmatmul.bf16.gmra.mxu0 %v10916_v48  ;;  %v2796_v52 = vunpack.c.l.b16 %v2721_v12 }
 0x2ec   :  { %v10931_v11 = vpop.f32.mrf.mxu1 }
 0x2ed   :  { %v2599_v51 = vmul.f32 %v2550_v7, %v2403_v43  ;;  %v3117_v61 = vpop.f32.mrf.mxu2  ;;  %v10935_v32 = vpack.c.b16 %v2796_v52, %v2795_v60  ;;  %v10942_v7 = vunpack.c.l.b16 %v3488_v21 }
 0x2ee   :  { %v3187_v41 = vadd.f32 %v3117_v61, %v2958_v14  ;;  %v10937_v4 = vpop.f32.mrf.mxu3  ;;  %v2555_v61 = vpop.permute.xlu2 %2554 }
 0x2ef   :  { %v2631_v63 = vmul.f32 %v10884_v26, %v2599_v51  ;;  %2937 = vmatmul.bf16.gmra.mxu1 %v10935_v32  ;;  %v3255_v21 = vrot.slane %v10935_v32, 2 }
 0x2f0   :  { %v2340_v53 = vpop.f32.mrf.mxu0  ;;  %v2691_v42 = vld [vmem:[#allocation2 + $0xb0] sm:$0xff] }
 0x2f1   :  { %v3458_v12 = vld [vmem:[#allocation2 + $0xb1] sm:$0xff]  ;;  %2659 = vst [vmem:[#allocation2 + $0xbb] sm:$0xff] %v2631_v63  ;;  %v2376_v28 = vadd.f32 %v2340_v53, %v2155_v9  ;;  %v2722_v0 = vpack.c.bf16 %v2691_v42, %v2691_v42 }
 0x2f2   :  { %v3489_v37 = vpack.c.bf16 %v3458_v12, %v3458_v12 }
 0x2f3   :  { %v2404_v43 = vmax.f32 %v2376_v28, 0.0  ;;  %v2797_v60 = vunpack.c.l.b16 %v2722_v0  ;;  %v2156_v28 = vadd.f32 %v10878_v19, %v1927_v36  ;;  %v3256_v19 = vsel %vm646_vm0, %v3253_v40, %v3255_v21 }
 0x2f4   :  { %v10944_v14 = vunpack.c.l.b16 %v3489_v37  ;;  %v10948_v38 = vpop.f32.mrf.mxu1  ;;  %v1928_v40 = vadd.f32 %v10832_v55, %v10448_v3 }
 0x2f5   :  { %v2600_v51 = vmul.f32 %v2555_v61, %v2404_v43  ;;  %v3119_v63 = vpop.f32.mrf.mxu2  ;;  %v3015_v9 = vpack.c.b16 %v2797_v60, %v2796_v52  ;;  %v10969_v61 = vpack.c.b16 %v10751_v34, %v10713_v8  ;;  %v8790_v34 = vld [vmem:[#allocation4 + $0x1e8] sm:$0xff] }
 0x2f6   :  { %v3783_v53 = vpack.c.b16 %v10944_v14, %v10942_v7  ;;  %v10955_v42 = vadd.f32 %v3119_v63, %v2959_v17  ;;  %v10957_v12 = vpop.f32.mrf.mxu3  ;;  %v8777_v63 = vld [vmem:[#allocation4 + $0x100] sm:$0xff]  ;;  %4099 = vmatpush.bf16.msrb.mxu2 %v8790_v34 }
 0x2f7   :  { %v2632_v46 = vmul.f32 %v10884_v26, %v2600_v51  ;;  %v10961_v0 = vrot.slane %v3015_v9, 1  ;;  %v2960_v9 = vadd.f32 %v10910_v31, %v10872_v24  ;;  %3883 = vmatpush.bf16.msrb.mxu1 %v8777_v63 }
 0x2f8   :  { %v10963_v37 = vrot.slane %v3783_v53, 1  ;;  %v2343_v29 = vpop.f32.mrf.mxu0  ;;  %v2692_v30 = vld [vmem:[#allocation2 + $0xb8] sm:$0xff] }
 0x2f9   :  { %2660 = vst [vmem:[#allocation2 + $0xc3] sm:$0xff] %v2632_v46  ;;  %v2377_v52 = vadd.f32 %v2343_v29, %v2156_v28  ;;  %v3039_v43 = vsel %vm426_vm1, %v3036_v59, %v10961_v0  ;;  %v2723_v17 = vpack.c.bf16 %v2692_v30, %v2692_v30  ;;  %v2560_v59 = vpop.permute.xlu0 %2559  ;;  %v3459_v2 = vld [vmem:[#allocation2 + $0xb9] sm:$0xff] }
 0x2fa   :  { %3161 = vmatmul.bf16.gmra.mxu2 %v3039_v43  ;;  %v10979_v36 = vsel %vm426_vm1, %v10905_v58, %v10963_v37 }
 0x2fb   :  { %v2405_v51 = vmax.f32 %v2377_v52, 0.0  ;;  %3377 = vmatmul.bf16.gmra.mxu3 %v3256_v19  ;;  %3685 = vmatmul.bf16.gmra.mxu0 %v10969_v61  ;;  %v2798_v8 = vunpack.c.l.b16 %v2723_v17  ;;  %v2157_v52 = vadd.f32 %v10901_v1, %v1928_v40  ;;  %v3490_v17 = vpack.c.bf16 %v3459_v2, %v3459_v2  ;;  %v2565_v1 = vpop.permute.xlu1 %2564 }
 0x2fc   :  { %v10984_v53 = vpop.f32.mrf.mxu1  ;;  %v2961_v2 = vadd.f32 %v10910_v31, %v10892_v57 }
 0x2fd   :  { %v2601_v28 = vmul.f32 %v2560_v59, %v2405_v51  ;;  %v3122_v58 = vpop.f32.mrf.mxu2  ;;  %v10988_v46 = vpack.c.b16 %v2798_v8, %v2797_v60 }
 0x2fe   :  { %v10990_v29 = vadd.f32 %v3122_v58, %v2960_v9  ;;  %v3338_v30 = vpop.f32.mrf.mxu3  ;;  %v10997_v9 = vunpack.c.l.b16 %v3490_v17 }
 0x2ff   :  { %v2633_v43 = vmul.f32 %v10884_v26, %v2601_v28  ;;  %v10994_v24 = vadd.f32 %v3338_v30, %v3187_v41  ;;  %2942 = vmatmul.bf16.gmra.mxu1 %v10988_v46  ;;  %v1929_v41 = vadd.f32 %v10869_v20, %v10454_v33 }
 0x300   :  { %v2345_v63 = vpop.f32.mrf.mxu0  ;;  %v2693_v19 = vld [vmem:[#allocation2 + $0xc0] sm:$0xff] }
 0x301   :  { %v3460_v3 = vld [vmem:[#allocation2 + $0xc1] sm:$0xff]  ;;  %2661 = vst [vmem:[#allocation2 + $0xcb] sm:$0xff] %v2633_v43  ;;  %v2378_v55 = vadd.f32 %v2345_v63, %v2157_v52  ;;  %v2724_v60 = vpack.c.bf16 %v2693_v19, %v2693_v19  ;;  %v2158_v17 = vadd.f32 %v10937_v4, %v1929_v41  ;;  %v3257_v63 = vrot.slane %v10988_v46, 2 }
 0x302   :  { %v3491_v51 = vpack.c.bf16 %v3460_v3, %v3460_v3 }
 0x303   :  { %v2406_v34 = vmax.f32 %v2378_v55, 0.0  ;;  %v2799_v59 = vunpack.c.l.b16 %v2724_v60  ;;  %v8800_v55 = vld [vmem:[#allocation4 + $0xb8] sm:$0xff] }
 0x304   :  { %v10999_v58 = vunpack.c.l.b16 %v3491_v51  ;;  %v11005_v40 = vpop.f32.mrf.mxu1  ;;  %4415 = vmatpush.bf16.msra.mxu3 %v8800_v55 }
 0x305   :  { %v2602_v28 = vmul.f32 %v2565_v1, %v2406_v34  ;;  %v3124_v30 = vpop.f32.mrf.mxu2  ;;  %v3016_v52 = vpack.c.b16 %v2799_v59, %v2798_v8  ;;  %v11026_v1 = vpack.c.b16 %v10789_v18, %v10753_v45  ;;  %v2570_v45 = vpop.permute.xlu2 %2569  ;;  %v2962_v18 = vadd.f32 %v10910_v31, %v10931_v11  ;;  %v8816_v11 = vld [vmem:[#allocation4 + $0x238] sm:$0xff] }
 0x306   :  { %v3784_v43 = vpack.c.b16 %v10999_v58, %v10997_v9  ;;  %v11011_v19 = vadd.f32 %v3124_v30, %v2961_v2  ;;  %v3340_v3 = vpop.f32.mrf.mxu3  ;;  %4865 = vmatpush.bf16.msra.mxu1 %v8816_v11 }
 0x307   :  { %v2634_v33 = vmul.f32 %v10884_v26, %v2602_v28  ;;  %v11015_v20 = vadd.f32 %v3340_v3, %v10955_v42  ;;  %v11017_v57 = vrot.slane %v3016_v52, 1  ;;  %v3258_v42 = vsel %vm646_vm0, %v3255_v21, %v3257_v63  ;;  %v12818_v52 = vld [vmem:[#allocation13_spill] sm:$0xff] }
 0x308   :  { %v11019_v60 = vrot.slane %v3784_v43, 1  ;;  %v2348_v8 = vpop.f32.mrf.mxu0  ;;  %v2694_v51 = vld [vmem:[#allocation2 + $0xc8] sm:$0xff]  ;;  %v1930_v32 = vadd.f32 %v10896_v35, %v12818_v52  ;;  %v2575_v52 = vpop.permute.xlu0 %2574 }
 0x309   :  { %2662 = vst [vmem:[#allocation2 + $0xd3] sm:$0xff] %v2634_v33  ;;  %v2379_v4 = vadd.f32 %v2348_v8, %v2158_v17  ;;  %v3041_v34 = vsel %vm426_vm1, %v10961_v0, %v11017_v57  ;;  %v2725_v41 = vpack.c.bf16 %v2694_v51, %v2694_v51  ;;  %v8808_v33 = vld [vmem:[#allocation4 + $0x178] sm:$0xff] }
 0x30a   :  { %3166 = vmatmul.bf16.gmra.mxu2 %v3041_v34  ;;  %v11036_v2 = vsel %vm426_vm1, %v10963_v37, %v11019_v60  ;;  %v3461_v37 = vld [vmem:[#allocation2 + $0xc9] sm:$0xff]  ;;  %v2159_v8 = vadd.f32 %v10957_v12, %v1930_v32  ;;  %4644 = vmatpush.bf16.msra.mxu0 %v8808_v33 }
 0x30b   :  { %v2407_v28 = vmax.f32 %v2379_v4, 0.0  ;;  %3382 = vmatmul.bf16.gmra.mxu3 %v3258_v42  ;;  %3690 = vmatmul.bf16.gmra.mxu0 %v11026_v1  ;;  %v2800_v0 = vunpack.c.l.b16 %v2725_v41  ;;  %v3492_v41 = vpack.c.bf16 %v3461_v37, %v3461_v37 }
 0x30c   :  { %v11041_v30 = vpop.f32.mrf.mxu1 }
 0x30d   :  { %v2603_v21 = vmul.f32 %v2570_v45, %v2407_v28  ;;  %v3127_v43 = vpop.f32.mrf.mxu2  ;;  %v11045_v17 = vpack.c.b16 %v2800_v0, %v2799_v59 }
 0x30e   :  { %v3191_v3 = vadd.f32 %v3127_v43, %v2962_v18  ;;  %v3343_v55 = vpop.f32.mrf.mxu3 }
 0x30f   :  { %v2635_v51 = vmul.f32 %v10884_v26, %v2603_v21  ;;  %v11050_v4 = vadd.f32 %v3343_v55, %v10990_v29  ;;  %2947 = vmatmul.bf16.gmra.mxu1 %v11045_v17  ;;  %v2963_v29 = vadd.f32 %v10910_v31, %v10948_v38  ;;  %v11057_v21 = vunpack.c.l.b16 %v3492_v41 }
 0x310   :  { %v2350_v34 = vpop.f32.mrf.mxu0  ;;  %v2695_v35 = vld [vmem:[#allocation2 + $0xd0] sm:$0xff] }
 0x311   :  { %v3462_v59 = vld [vmem:[#allocation2 + $0xd1] sm:$0xff]  ;;  %2663 = vst [vmem:[#allocation2 + $0xdb] sm:$0xff] %v2635_v51  ;;  %v2380_v42 = vadd.f32 %v2350_v34, %v2159_v8  ;;  %v2726_v28 = vpack.c.bf16 %v2695_v35, %v2695_v35  ;;  %v12736_v8 = vrot.slane %v11045_v17, 2 }
 0x312   :  { %v3493_v45 = vpack.c.bf16 %v3462_v59, %v3462_v59  ;;  %v8789_v34 = vld [vmem:[#allocation4 + $0x1e0] sm:$0xff] }
 0x313   :  { %v2408_v18 = vmax.f32 %v2380_v42, 0.0  ;;  %v2801_v12 = vunpack.c.l.b16 %v2726_v28  ;;  %4100 = vmatpush.bf16.msrb.mxu2 %v8789_v34 }
 0x314   :  { %v11055_v32 = vpop.f32.mrf.mxu1  ;;  %v11059_v43 = vunpack.c.l.b16 %v3493_v45 }
 0x315   :  { %v2604_v55 = vmul.f32 %v2575_v52, %v2408_v18  ;;  %v3129_v37 = vpop.f32.mrf.mxu2  ;;  %v3017_v33 = vpack.c.b16 %v2801_v12, %v2800_v0  ;;  %v3260_v52 = vsel %vm646_vm0, %v3257_v63, %v12736_v8 }
 0x316   :  { %v3192_v51 = vadd.f32 %v3129_v37, %v2963_v29  ;;  %v3345_v11 = vpop.f32.mrf.mxu3  ;;  %v3785_v35 = vpack.c.b16 %v11059_v43, %v11057_v21  ;;  %v8788_v29 = vld [vmem:[#allocation4 + $0x1d8] sm:$0xff] }
 0x317   :  { %v2636_v59 = vmul.f32 %v10884_v26, %v2604_v55  ;;  %v11066_v38 = vadd.f32 %v3345_v11, %v11011_v19  ;;  %v11068_v41 = vrot.slane %v3017_v33, 1  ;;  %v11080_v26 = vpack.c.b16 %v10834_v39, %v10791_v10  ;;  %4101 = vmatpush.bf16.msrb.mxu2 %v8788_v29  ;;  %v8787_v11 = vld [vmem:[#allocation4 + $0x1d0] sm:$0xff]  ;;  %v8798_v29 = vld [vmem:[#allocation4 + $0xa8] sm:$0xff] }
 0x318   :  { %v3656_v42 = vpop.f32.mrf.mxu0  ;;  %v2696_v28 = vld [vmem:[#allocation2 + $0xd8] sm:$0xff]  ;;  %v11070_v45 = vrot.slane %v3785_v35, 1  ;;  %v2964_v10 = vadd.f32 %v10910_v31, %v10984_v53 }
 0x319   :  { %2664 = vst [vmem:[#allocation2 + $0xe3] sm:$0x3f] %v2636_v59  ;;  %v11073_v0 = vadd.f32 %v3656_v42, %v10994_v24  ;;  %v3043_v18 = vsel %vm426_vm1, %v11017_v57, %v11068_v41  ;;  %v2727_v19 = vpack.c.bf16 %v2696_v28, %v2696_v28  ;;  %v3463_v63 = vld [vmem:[#allocation2 + $0xd9] sm:$0xff] }
 0x31a   :  { %3171 = vmatmul.bf16.gmra.mxu2 %v3043_v18  ;;  %v11090_v24 = vsel %vm426_vm1, %v11019_v60, %v11070_v45  ;;  %v8799_v60 = vld [vmem:[#allocation4 + $0xb0] sm:$0xff]  ;;  %v3494_v42 = vpack.c.bf16 %v3463_v63, %v3463_v63 }
 0x31b   :  { %3387 = vmatmul.bf16.gmra.mxu3 %v3260_v52  ;;  %3695 = vmatmul.bf16.gmra.mxu0 %v11080_v26  ;;  %v2802_v57 = vunpack.c.l.b16 %v2727_v19 }
 0x31c   :  { %v11095_v39 = vpop.f32.mrf.mxu1  ;;  %4102 = vmatpush.bf16.msrb.mxu2 %v8787_v11  ;;  %4416 = vmatpush.bf16.msra.mxu3 %v8799_v60 }
 0x31d   :  { %v3132_v55 = vpop.f32.mrf.mxu2  ;;  %v11097_v46 = vpack.c.b16 %v2802_v57, %v2801_v12  ;;  %v8786_v12 = vld [vmem:[#allocation4 + $0x1c8] sm:$0xff] }
 0x31e   :  { %v3193_v37 = vadd.f32 %v3132_v55, %v2964_v10  ;;  %v3348_v33 = vpop.f32.mrf.mxu3  ;;  %v11109_v55 = vunpack.c.l.b16 %v3494_v42 }
 0x31f   :  { %v11099_v34 = vadd.f32 %v3348_v33, %v3191_v3  ;;  %2952 = vmatmul.bf16.gmra.mxu1 %v11097_v46  ;;  %v2965_v3 = vadd.f32 %v10910_v31, %v11005_v40 }
 0x320   :  { %v3658_v35 = vpop.f32.mrf.mxu0  ;;  %v2697_v59 = vld [vmem:[#allocation2 + $0xe0] sm:$0xff]  ;;  %4103 = vmatpush.bf16.msrb.mxu2 %v8786_v12  ;;  %4417 = vmatpush.bf16.msra.mxu3 %v8798_v29  ;;  %v2698_v8 = vld [vmem:[#allocation2 + $0xe8] sm:$0xff]  ;;  %v8797_v12 = vld [vmem:[#allocation4 + $0xa0] sm:$0xff]  ;;  %v11127_v29 = vpack.c.b16 %v10888_v5, %v10836_v15  ;;  %v2966_v15 = vadd.f32 %v10910_v31, %v11041_v30 }
 0x321   :  { %v3464_v53 = vld [vmem:[#allocation2 + $0xe1] sm:$0xff]  ;;  %v11103_v28 = vadd.f32 %v3658_v35, %v11015_v20  ;;  %v2728_v18 = vpack.c.bf16 %v2697_v59, %v2697_v59  ;;  %v3261_v20 = vrot.slane %v11097_v46, 2  ;;  %v8785_v59 = vld [vmem:[#allocation4 + $0x1c0] sm:$0xff]  ;;  %v8794_v30 = vld [vmem:[#allocation4 + $0x88] sm:$0xff] }
 0x322   :  { %v3495_v19 = vpack.c.bf16 %v3464_v53, %v3464_v53 }
 0x323   :  { %v3004_v52 = vunpack.c.l.b16 %v2728_v18 }
 0x324   :  { %v11107_v10 = vpop.f32.mrf.mxu1  ;;  %v11111_v33 = vunpack.c.l.b16 %v3495_v19  ;;  %4104 = vmatpush.bf16.msrb.mxu2 %v8785_v59  ;;  %4418 = vmatpush.bf16.msra.mxu3 %v8797_v12 }
 0x325   :  { %v3134_v63 = vpop.f32.mrf.mxu2  ;;  %v3018_v11 = vpack.c.b16 %v3004_v52, %v2802_v57 }
 0x326   :  { %v3194_v60 = vadd.f32 %v3134_v63, %v2965_v3  ;;  %v3350_v35 = vpop.f32.mrf.mxu3  ;;  %v3786_v53 = vpack.c.b16 %v11111_v33, %v11109_v55  ;;  %v12819_v3 = vrot.slane %v11045_v17, 2 }
 0x327   :  { %v11116_v18 = vadd.f32 %v3350_v35, %v3192_v51  ;;  %v3044_v40 = vrot.slane %v3018_v11, 1  ;;  %v8807_v51 = vld [vmem:[#allocation4 + $0x170] sm:$0xff]  ;;  %v2729_v11 = vpack.c.bf16 %v2698_v8, %v2698_v8  ;;  %v8796_v35 = vld [vmem:[#allocation4 + $0x98] sm:$0xff] }
 0x328   :  { %v3661_v42 = vpop.f32.mrf.mxu0  ;;  %v11118_v19 = vrot.slane %v3786_v53, 1  ;;  %v3262_v63 = vsel %vm646_vm0, %v12819_v3, %v3261_v20  ;;  %4645 = vmatpush.bf16.msra.mxu0 %v8807_v51  ;;  %4419 = vmatpush.bf16.msra.mxu3 %v8796_v35  ;;  %v2967_v51 = vadd.f32 %v10910_v31, %v11055_v32 }
 0x329   :  { %v11121_v57 = vadd.f32 %v3661_v42, %v11050_v4  ;;  %v3045_v46 = vsel %vm426_vm1, %v11068_v41, %v3044_v40  ;;  %v8815_v41 = vld [vmem:[#allocation4 + $0x230] sm:$0xff]  ;;  %v3234_v53 = vunpack.c.l.b16 %v2729_v11 }
 0x32a   :  { %3176 = vmatmul.bf16.gmra.mxu2 %v3045_v46  ;;  %v11135_v4 = vsel %vm426_vm1, %v11070_v45, %v11118_v19  ;;  %4866 = vmatpush.bf16.msra.mxu1 %v8815_v41  ;;  %v8795_v45 = vld [vmem:[#allocation4 + $0x90] sm:$0xff] }
 0x32b   :  { %3392 = vmatmul.bf16.gmra.mxu3 %v3262_v63  ;;  %3700 = vmatmul.bf16.gmra.mxu0 %v11127_v29  ;;  %v3236_v3 = vpack.c.b16 %v3234_v53, %v3004_v52  ;;  %v11155_v52 = vpack.c.b16 %v10942_v7, %v10890_v49 }
 0x32c   :  { %v11140_v5 = vpop.f32.mrf.mxu1  ;;  %4420 = vmatpush.bf16.msra.mxu3 %v8795_v45 }
 0x32d   :  { %v3137_v17 = vpop.f32.mrf.mxu2 }
 0x32e   :  { %v3195_v8 = vadd.f32 %v3137_v17, %v2966_v15  ;;  %v3353_v59 = vpop.f32.mrf.mxu3  ;;  %v8793_v17 = vld [vmem:[#allocation4 + $0x80] sm:$0xff] }
 0x32f   :  { %v3414_v12 = vadd.f32 %v3353_v59, %v3193_v37  ;;  %3884 = vmatmul.bf16.vlgmr.msrb.gmra.mxu1 %v10575_v44  ;;  %v3263_v37 = vrot.slane %v3236_v3, 2  ;;  %v2699_v44 = vld [vmem:[#allocation2 + $0xf0] sm:$0x3] }
 0x330   :  { %v3663_v42 = vpop.f32.mrf.mxu0  ;;  %4421 = vmatpush.bf16.msra.mxu3 %v8794_v30  ;;  %v2730_v53 = vpack.c.bf16 %v2699_v44, %v2699_v44 }
 0x331   :  { %v11144_v46 = vadd.f32 %v3663_v42, %v11066_v38  ;;  %v3264_v32 = vsel %vm646_vm0, %v3261_v20, %v3263_v37 }
 0x332   :  { %v3235_v30 = vunpack.c.l.b16 %v2730_v53  ;;  %v8814_v53 = vld [vmem:[#allocation4 + $0x228] sm:$0xff] }
 0x333   :  { %4867 = vmatpush.bf16.msra.mxu1 %v8814_v53 }
 0x334   :  { %v11148_v63 = vpop.f32.mrf.mxu1  ;;  %4422 = vmatpush.bf16.msra.mxu3 %v8793_v17  ;;  %v3237_v20 = vpack.c.b16 %v3235_v30, %v3235_v30 }
 0x335   :  { %v3139_v41 = vpop.f32.mrf.mxu2 }
 0x336   :  { %v3196_v35 = vadd.f32 %v3139_v41, %v2967_v51  ;;  %v3355_v11 = vpop.f32.mrf.mxu3  ;;  %v2969_v41 = vadd.f32 %v10910_v31, %v11107_v10  ;;  %v11178_v10 = vpack.c.b16 %v10997_v9, %v10944_v14  ;;  %v4204_v14 = vld [vmem:[#allocation2 + $0x2] sm:$0xff]  ;;  %v4205_v9 = vld [vmem:[#allocation2 + $0xa] sm:$0xff] }
 0x337   :  { %v3415_v15 = vadd.f32 %v3355_v11, %v3194_v60  ;;  %v2968_v60 = vadd.f32 %v10910_v31, %v11095_v39  ;;  %v4007_v39 = vrot.slane %v10767_v56, 2 }
 0x338   :  { %v3666_v59 = vpop.f32.mrf.mxu0 }
 0x339   :  { %v11151_v38 = vadd.f32 %v3666_v59, %v11099_v34 }
 0x33a   :  { %3181 = vmatmul.bf16.gmra.mxu2 %v3044_v40  ;;  %v8806_v40 = vld [vmem:[#allocation4 + $0x168] sm:$0xff] }
 0x33b   :  { %3397 = vmatmul.bf16.gmra.mxu3 %v3264_v32  ;;  %3705 = vmatmul.bf16.gmra.mxu0 %v11155_v52 }
 0x33c   :  { %v11161_v45 = vpop.f32.mrf.mxu1  ;;  %4646 = vmatpush.bf16.msra.mxu0 %v8806_v40 }
 0x33d   :  { %v3142_v42 = vpop.f32.mrf.mxu2 }
 0x33e   :  { %v3197_v34 = vadd.f32 %v3142_v42, %v2968_v60  ;;  %v3358_v3 = vpop.f32.mrf.mxu3 }
 0x33f   :  { %v3416_v51 = vadd.f32 %v3358_v3, %v3195_v8  ;;  %3889 = vmatmul.bf16.gmra.mxu1 %v10623_v62  ;;  %v3265_v8 = vrot.slane %v3237_v20, 2  ;;  %v4006_v62 = vrot.slane %v10729_v50, 2  ;;  %v8804_v50 = vld [vmem:[#allocation4 + $0x158] sm:$0xff] }
 0x340   :  { %v3668_v49 = vpop.f32.mrf.mxu0 }
 0x341   :  { %v11165_v7 = vadd.f32 %v3668_v49, %v11116_v18  ;;  %v8805_v18 = vld [vmem:[#allocation4 + $0x160] sm:$0xff]  ;;  %v4008_v3 = vsel %vm646_vm0, %v4006_v62, %v4007_v39  ;;  %v3266_v56 = vsel %vm646_vm0, %v3263_v37, %v3265_v8  ;;  %v4236_v8 = vpack.c.bf16 %v4205_v9, %v4205_v9  ;;  %v8802_v62 = vld [vmem:[#allocation4 + $0x148] sm:$0xff] }
 0x342   :  { %4647 = vmatpush.bf16.msra.mxu0 %v8805_v18  ;;  %v4009_v18 = vrot.slane %v10809_v23, 2 }
 0x344   :  { %v11169_v11 = vpop.f32.mrf.mxu1 }
 0x345   :  { %v3144_v44 = vpop.f32.mrf.mxu2 }
 0x346   :  { %v3198_v17 = vadd.f32 %v3144_v44, %v2969_v41  ;;  %v3360_v59 = vpop.f32.mrf.mxu3  ;;  %4648 = vmatpush.bf16.msra.mxu0 %v8804_v50  ;;  %v8803_v41 = vld [vmem:[#allocation4 + $0x150] sm:$0xff]  ;;  %v8801_v50 = vld [vmem:[#allocation4 + $0x140] sm:$0xff] }
 0x347   :  { %v3417_v32 = vadd.f32 %v3360_v59, %v3196_v35  ;;  %v2970_v35 = vadd.f32 %v10910_v31, %v11140_v5  ;;  %v4235_v59 = vpack.c.bf16 %v4204_v14, %v4204_v14  ;;  %v2971_v5 = vadd.f32 %v10910_v31, %v11148_v63 }
 0x348   :  { %v3671_v60 = vpop.f32.mrf.mxu0  ;;  %v11201_v63 = vpack.c.b16 %v11057_v21, %v10999_v58  ;;  %v4206_v21 = vld [vmem:[#allocation2 + $0x12] sm:$0xff] }
 0x349   :  { %v11173_v42 = vadd.f32 %v3671_v60, %v3414_v12 }
 0x34a   :  { %4105 = vmatmul.bf16.vlgmr.msrb.gmra.mxu2 %v4008_v3  ;;  %4649 = vmatpush.bf16.msra.mxu0 %v8803_v41  ;;  %v4311_v3 = vunpack.c.l.b16 %v4235_v59 }
 0x34b   :  { %3402 = vmatmul.bf16.gmra.mxu3 %v3266_v56  ;;  %3710 = vmatmul.bf16.gmra.mxu0 %v11178_v10 }
 0x34c   :  { %v11184_v12 = vpop.f32.mrf.mxu1 }
 0x34d   :  { %v3147_v30 = vpop.f32.mrf.mxu2 }
 0x34e   :  { %v3199_v49 = vadd.f32 %v3147_v30, %v2970_v35  ;;  %v3363_v20 = vpop.f32.mrf.mxu3  ;;  %4650 = vmatpush.bf16.msra.mxu0 %v8802_v62  ;;  %v8813_v62 = vld [vmem:[#allocation4 + $0x220] sm:$0xff] }
 0x34f   :  { %v3418_v40 = vadd.f32 %v3363_v20, %v3197_v34  ;;  %3894 = vmatmul.bf16.gmra.mxu1 %v10661_v47  ;;  %v11194_v34 = vunpack.c.l.b16 %v4236_v8  ;;  %v4010_v20 = vsel %vm646_vm0, %v4007_v39, %v4009_v18  ;;  %v4207_v39 = vld [vmem:[#allocation2 + $0x1a] sm:$0xff] }
 0x350   :  { %v3673_v37 = vpop.f32.mrf.mxu0  ;;  %v4238_v8 = vpack.c.bf16 %v4207_v39, %v4207_v39  ;;  %4868 = vmatpush.bf16.msra.mxu1 %v8813_v62 }
 0x351   :  { %v11187_v44 = vadd.f32 %v3673_v37, %v3415_v15  ;;  %v4339_v23 = vpack.c.b16 %v11194_v34, %v4311_v3  ;;  %v4011_v3 = vrot.slane %v10857_v6, 2 }
 0x352   :  { %4651 = vmatpush.bf16.msra.mxu0 %v8801_v50  ;;  %v4314_v50 = vunpack.c.l.b16 %v4238_v8 }
 0x354   :  { %v11191_v53 = vpop.f32.mrf.mxu1 }
 0x355   :  { %v3149_v60 = vpop.f32.mrf.mxu2 }
 0x356   :  { %v3200_v47 = vadd.f32 %v3149_v60, %v2971_v5  ;;  %v3365_v56 = vpop.f32.mrf.mxu3  ;;  %v4237_v5 = vpack.c.bf16 %v4206_v21, %v4206_v21  ;;  %v4209_v21 = vld [vmem:[#allocation2 + $0x2a] sm:$0xff] }
 0x357   :  { %v3419_v15 = vadd.f32 %v3365_v56, %v3198_v17  ;;  %v2972_v17 = vadd.f32 %v10910_v31, %v11161_v45  ;;  %v2973_v45 = vadd.f32 %v10910_v31, %v11169_v11 }
 0x358   :  { %v3676_v35 = vpop.f32.mrf.mxu0 }
 0x359   :  { %v11196_v30 = vadd.f32 %v3676_v35, %v3416_v51 }
 0x35a   :  { %4110 = vmatmul.bf16.gmra.mxu2 %v4010_v20  ;;  %v4313_v20 = vunpack.c.l.b16 %v4237_v5  ;;  %v4240_v5 = vpack.c.bf16 %v4209_v21, %v4209_v21 }
 0x35b   :  { %3715 = vmatmul.bf16.gmra.mxu0 %v11201_v63  ;;  %4423 = vmatmul.bf16.vlgmr.msra.gmra.mxu3 %v4339_v23  ;;  %v4208_v23 = vld [vmem:[#allocation2 + $0x22] sm:$0xff] }
 0x35c   :  { %v11207_v14 = vpop.f32.mrf.mxu1  ;;  %v11224_v11 = vpack.c.b16 %v4314_v50, %v4313_v20  ;;  %v4239_v6 = vpack.c.bf16 %v4208_v23, %v4208_v23  ;;  %v4013_v23 = vrot.slane %v10916_v48, 2 }
 0x35d   :  { %v3152_v51 = vpop.f32.mrf.mxu2  ;;  %v2976_v48 = vadd.f32 %v10910_v31, %v11207_v14 }
 0x35e   :  { %v3201_v9 = vadd.f32 %v3152_v51, %v2972_v17  ;;  %v3368_v41 = vpop.f32.mrf.mxu3  ;;  %v4012_v51 = vsel %vm646_vm0, %v4009_v18, %v4011_v3  ;;  %v4315_v8 = vunpack.c.l.b16 %v4239_v6 }
 0x35f   :  { %v3420_v37 = vadd.f32 %v3368_v41, %v3199_v49  ;;  %3899 = vmatmul.bf16.gmra.mxu1 %v10698_v13  ;;  %v11222_v41 = vpack.c.b16 %v11109_v55, %v11059_v43 }
 0x360   :  { %v3678_v58 = vpop.f32.mrf.mxu0 }
 0x361   :  { %v11210_v59 = vadd.f32 %v3678_v58, %v3417_v32 }
 0x364   :  { %v11214_v60 = vpop.f32.mrf.mxu1 }
 0x365   :  { %v3154_v56 = vpop.f32.mrf.mxu2  ;;  %v2977_v14 = vadd.f32 %v10910_v31, %v11214_v60 }
 0x366   :  { %v3202_v49 = vadd.f32 %v3154_v56, %v2973_v45  ;;  %v3370_v35 = vpop.f32.mrf.mxu3  ;;  %v4542_v45 = vpack.c.b16 %v4315_v8, %v4314_v50  ;;  %v2975_v56 = vadd.f32 %v10910_v31, %v11191_v53  ;;  %v4014_v50 = vsel %vm646_vm0, %v4011_v3, %v4013_v23 }
 0x367   :  { %v3421_v13 = vadd.f32 %v3370_v35, %v3200_v47  ;;  %v2974_v47 = vadd.f32 %v10910_v31, %v11184_v12  ;;  %v4541_v12 = vpack.c.b16 %v4313_v20, %v11194_v34 }
 0x368   :  { %v3681_v32 = vpop.f32.mrf.mxu0 }
 0x369   :  { %v11217_v17 = vadd.f32 %v3681_v32, %v3418_v40 }
 0x36a   :  { %4115 = vmatmul.bf16.gmra.mxu2 %v4012_v51  ;;  %v4316_v51 = vunpack.c.l.b16 %v4240_v5 }
 0x36b   :  { %3720 = vmatmul.bf16.gmra.mxu0 %v11222_v41  ;;  %4428 = vmatmul.bf16.gmra.mxu3 %v11224_v11 }
 0x36c   :  { %v11230_v39 = vpop.f32.mrf.mxu1  ;;  %v11244_v53 = vpack.c.b16 %v4316_v51, %v4315_v8  ;;  %v8812_v8 = vld [vmem:[#allocation4 + $0x218] sm:$0xff] }
 0x36d   :  { %v3157_v40 = vpop.f32.mrf.mxu2  ;;  %4869 = vmatpush.bf16.msra.mxu1 %v8812_v8 }
 0x36e   :  { %v3203_v58 = vadd.f32 %v3157_v40, %v2974_v47  ;;  %v3373_v18 = vpop.f32.mrf.mxu3  ;;  %v4556_v47 = vrot.slane %v4542_v45, 1  ;;  %v4210_v40 = vld [vmem:[#allocation2 + $0x32] sm:$0xff]  ;;  %v4211_v45 = vld [vmem:[#allocation2 + $0x3a] sm:$0xff] }
 0x36f   :  { %v3422_v43 = vadd.f32 %v3373_v18, %v3201_v9  ;;  %3904 = vmatmul.bf16.gmra.mxu1 %v10737_v16  ;;  %v4241_v20 = vpack.c.bf16 %v4210_v40, %v4210_v40 }
 0x370   :  { %v3683_v55 = vpop.f32.mrf.mxu0 }
 0x371   :  { %v11233_v62 = vadd.f32 %v3683_v55, %v3419_v15  ;;  %v4555_v15 = vrot.slane %v4541_v12, 1 }
 0x373   :  { %v4557_v34 = vsel %vm426_vm1, %v4555_v15, %v4556_v47 }
 0x374   :  { %v11238_v35 = vpop.f32.mrf.mxu1 }
 0x375   :  { %v3159_v32 = vpop.f32.mrf.mxu2 }
 0x376   :  { %v3204_v6 = vadd.f32 %v3159_v32, %v2975_v56  ;;  %v3375_v9 = vpop.f32.mrf.mxu3  ;;  %v4317_v56 = vunpack.c.l.b16 %v4241_v20 }
 0x377   :  { %v3423_v16 = vadd.f32 %v3375_v9, %v3202_v49  ;;  %v4242_v9 = vpack.c.bf16 %v4211_v45, %v4211_v45 }
 0x378   :  { %v3686_v18 = vpop.f32.mrf.mxu0  ;;  %v4543_v40 = vpack.c.b16 %v4317_v56, %v4316_v51 }
 0x379   :  { %v11241_v21 = vadd.f32 %v3686_v18, %v3420_v37  ;;  %v4015_v18 = vrot.slane %v10969_v61, 2  ;;  %v2978_v61 = vadd.f32 %v10910_v31, %v11230_v39  ;;  %v4017_v39 = vrot.slane %v11026_v1, 2  ;;  %v8811_v1 = vld [vmem:[#allocation4 + $0x210] sm:$0xff] }
 0x37a   :  { %4120 = vmatmul.bf16.gmra.mxu2 %v4014_v50  ;;  %4870 = vmatpush.bf16.msra.mxu1 %v8811_v1 }
 0x37b   :  { %4433 = vmatmul.bf16.gmra.mxu3 %v11244_v53  ;;  %4652 = vmatmul.bf16.vlgmr.msra.gmra.mxu0 %v4557_v34  ;;  %v4318_v34 = vunpack.c.l.b16 %v4242_v9  ;;  %v4016_v45 = vsel %vm646_vm0, %v4013_v23, %v4015_v18 }
 0x37c   :  { %v11250_v49 = vpop.f32.mrf.mxu1 }
 0x37d   :  { %v3162_v55 = vpop.f32.mrf.mxu2  ;;  %v11263_v51 = vpack.c.b16 %v4318_v34, %v4317_v56 }
 0x37e   :  { %v3205_v5 = vadd.f32 %v3162_v55, %v2976_v48  ;;  %v3378_v37 = vpop.f32.mrf.mxu3  ;;  %v4558_v48 = vrot.slane %v4543_v40, 1  ;;  %v4212_v55 = vld [vmem:[#allocation2 + $0x42] sm:$0xff]  ;;  %v4213_v40 = vld [vmem:[#allocation2 + $0x4a] sm:$0xff] }
 0x37f   :  { %v3424_v3 = vadd.f32 %v3378_v37, %v3203_v58  ;;  %3909 = vmatmul.bf16.gmra.mxu1 %v10775_v25  ;;  %v4243_v8 = vpack.c.bf16 %v4212_v55, %v4212_v55  ;;  %v2979_v55 = vadd.f32 %v10910_v31, %v11238_v35 }
 0x380   :  { %v3688_v12 = vpop.f32.mrf.mxu0  ;;  %v4559_v60 = vsel %vm426_vm1, %v4556_v47, %v4558_v48  ;;  %v4244_v47 = vpack.c.bf16 %v4213_v40, %v4213_v40 }
 0x381   :  { %v11253_v32 = vadd.f32 %v3688_v12, %v3421_v13 }
 0x384   :  { %v11257_v15 = vpop.f32.mrf.mxu1 }
 0x385   :  { %v3164_v50 = vpop.f32.mrf.mxu2 }
 0x386   :  { %v3206_v20 = vadd.f32 %v3164_v50, %v2977_v14  ;;  %v3380_v58 = vpop.f32.mrf.mxu3  ;;  %v4319_v14 = vunpack.c.l.b16 %v4243_v8 }
 0x387   :  { %v3425_v25 = vadd.f32 %v3380_v58, %v3204_v6 }
 0x388   :  { %v3691_v37 = vpop.f32.mrf.mxu0  ;;  %v4544_v58 = vpack.c.b16 %v4319_v14, %v4318_v34 }
 0x389   :  { %v11260_v13 = vadd.f32 %v3691_v37, %v3422_v43 }
 0x38a   :  { %4125 = vmatmul.bf16.gmra.mxu2 %v4016_v45  ;;  %v4560_v8 = vrot.slane %v4544_v58, 1 }
 0x38b   :  { %12820 = vst [vmem:[#allocation28_spill] sm:$0xff] %v11260_v13  ;;  %4438 = vmatmul.bf16.gmra.mxu3 %v11263_v51  ;;  %4657 = vmatmul.bf16.gmra.mxu0 %v4559_v60  ;;  %v4320_v60 = vunpack.c.l.b16 %v4244_v47 }
 0x38c   :  { %v11269_v12 = vpop.f32.mrf.mxu1  ;;  %v4561_v35 = vsel %vm426_vm1, %v4558_v48, %v4560_v8 }
 0x38d   :  { %v3167_v6 = vpop.f32.mrf.mxu2  ;;  %v11282_v34 = vpack.c.b16 %v4320_v60, %v4319_v14 }
 0x38e   :  { %v3207_v9 = vadd.f32 %v3167_v6, %v2978_v61  ;;  %v3383_v43 = vpop.f32.mrf.mxu3 }
 0x38f   :  { %v3426_v23 = vadd.f32 %v3383_v43, %v3205_v5  ;;  %3914 = vmatmul.bf16.gmra.mxu1 %v10818_v22  ;;  %v4214_v43 = vld [vmem:[#allocation2 + $0x52] sm:$0xff] }
 0x390   :  { %v3693_v56 = vpop.f32.mrf.mxu0  ;;  %v4245_v40 = vpack.c.bf16 %v4214_v43, %v4214_v43  ;;  %v8824_v43 = vld [vmem:[#allocation6 + $0x38] sm:$0xff] }
 0x391   :  { %v11272_v50 = vadd.f32 %v3693_v56, %v3423_v16  ;;  %v4018_v16 = vsel %vm646_vm0, %v4015_v18, %v4017_v39  ;;  %v2980_v56 = vadd.f32 %v10910_v31, %v11250_v49  ;;  %v4215_v18 = vld [vmem:[#allocation2 + $0x5a] sm:$0xff]  ;;  %5470 = vmatpush.bf16.msra.mxu2 %v8824_v43  ;;  %v2981_v49 = vadd.f32 %v10910_v31, %v11257_v15 }
 0x392   :  { %v4321_v14 = vunpack.c.l.b16 %v4245_v40 }
 0x394   :  { %v11276_v37 = vpop.f32.mrf.mxu1 }
 0x395   :  { %v3169_v45 = vpop.f32.mrf.mxu2 }
 0x396   :  { %v3208_v61 = vadd.f32 %v3169_v45, %v2979_v55  ;;  %v3385_v6 = vpop.f32.mrf.mxu3 }
 0x397   :  { %v3427_v5 = vadd.f32 %v3385_v6, %v3206_v20  ;;  %v4246_v6 = vpack.c.bf16 %v4215_v18, %v4215_v18 }
 0x398   :  { %v3696_v22 = vpop.f32.mrf.mxu0 }
 0x399   :  { %v11279_v13 = vadd.f32 %v3696_v22, %v3424_v3  ;;  %v4545_v22 = vpack.c.b16 %v4321_v14, %v4320_v60 }
 0x39a   :  { %4130 = vmatmul.bf16.gmra.mxu2 %v4018_v16 }
 0x39b   :  { %4443 = vmatmul.bf16.gmra.mxu3 %v11282_v34  ;;  %4662 = vmatmul.bf16.gmra.mxu0 %v4561_v35  ;;  %v4019_v35 = vrot.slane %v11080_v26, 2  ;;  %v8928_v26 = vld [vmem:[%s12711_s6] ss:$0 sm:$0xff] }
 0x39c   :  { %v11288_v20 = vpop.f32.mrf.mxu1 }
 0x39d   :  { %v3172_v47 = vpop.f32.mrf.mxu2  ;;  %v4020_v60 = vsel %vm646_vm0, %v4017_v39, %v4019_v35 }
 0x39e   :  { %v3209_v3 = vadd.f32 %v3172_v47, %v2980_v56  ;;  %v3388_v58 = vpop.f32.mrf.mxu3  ;;  %v4322_v56 = vunpack.c.l.b16 %v4246_v6  ;;  %v4562_v47 = vrot.slane %v4545_v22, 1  ;;  %v4217_v22 = vld [vmem:[#allocation2 + $0x6a] sm:$0xff] }
 0x39f   :  { %v3428_v55 = vadd.f32 %v3388_v58, %v3207_v9  ;;  %3919 = vmatmul.bf16.gmra.mxu1 %v10867_v54  ;;  %v4216_v58 = vld [vmem:[#allocation2 + $0x62] sm:$0xff] }
 0x3a0   :  { %v3698_v48 = vpop.f32.mrf.mxu0  ;;  %v11301_v18 = vpack.c.b16 %v4322_v56, %v4321_v14  ;;  %v4563_v31 = vsel %vm426_vm1, %v4560_v8, %v4562_v47  ;;  %v4247_v15 = vpack.c.bf16 %v4216_v58, %v4216_v58  ;;  %v4248_v58 = vpack.c.bf16 %v4217_v22, %v4217_v22 }
 0x3a1   :  { %v11291_v45 = vadd.f32 %v3698_v48, %v3425_v25  ;;  %v2984_v22 = vadd.f32 %v8928_v26, %v11288_v20 }
 0x3a4   :  { %v11295_v16 = vpop.f32.mrf.mxu1 }
 0x3a5   :  { %v3174_v1 = vpop.f32.mrf.mxu2  ;;  %v2985_v20 = vadd.f32 %v8928_v26, %v11295_v16 }
 0x3a6   :  { %v3210_v40 = vadd.f32 %v3174_v1, %v2981_v49  ;;  %v3390_v9 = vpop.f32.mrf.mxu3  ;;  %v4323_v49 = vunpack.c.l.b16 %v4247_v15 }
 0x3a7   :  { %v3429_v54 = vadd.f32 %v3390_v9, %v3208_v61  ;;  %v2982_v61 = vadd.f32 %v8928_v26, %v11269_v12 }
 0x3a8   :  { %v3701_v25 = vpop.f32.mrf.mxu0 }
 0x3a9   :  { %v11298_v48 = vadd.f32 %v3701_v25, %v3426_v23  ;;  %v4546_v25 = vpack.c.b16 %v4323_v49, %v4322_v56 }
 0x3aa   :  { %4135 = vmatmul.bf16.gmra.mxu2 %v4020_v60  ;;  %v2983_v60 = vadd.f32 %v8928_v26, %v11276_v37 }
 0x3ab   :  { %12821 = vst [vmem:[#allocation16_spill] sm:$0xff] %v11298_v48  ;;  %4448 = vmatmul.bf16.gmra.mxu3 %v11301_v18  ;;  %4667 = vmatmul.bf16.gmra.mxu0 %v4563_v31  ;;  %v4021_v31 = vrot.slane %v11127_v29, 2  ;;  %v8810_v48 = vld [vmem:[#allocation4 + $0x208] sm:$0xff] }
 0x3ac   :  { %v3885_v6 = vpop.f32.mrf.mxu1  ;;  %4871 = vmatpush.bf16.msra.mxu1 %v8810_v48  ;;  %v8823_v48 = vld [vmem:[#allocation6 + $0x30] sm:$0xff] }
 0x3ad   :  { %v11310_v23 = vadd.f32 %v3885_v6, %v11073_v0  ;;  %v3177_v39 = vpop.f32.mrf.mxu2  ;;  %v4324_v6 = vunpack.c.l.b16 %v4248_v58  ;;  %v4022_v56 = vsel %vm646_vm0, %v4019_v35, %v4021_v31  ;;  %v4219_v35 = vld [vmem:[#allocation2 + $0x7a] sm:$0xff]  ;;  %5471 = vmatpush.bf16.msra.mxu2 %v8823_v48 }
 0x3ae   :  { %v3211_v14 = vadd.f32 %v3177_v39, %v2982_v61  ;;  %v3393_v43 = vpop.f32.mrf.mxu3 }
 0x3af   :  { %v3430_v8 = vadd.f32 %v3393_v43, %v3209_v3  ;;  %3924 = vmatmul.bf16.gmra.mxu1 %v10926_v27  ;;  %v4564_v3 = vrot.slane %v4546_v25, 1  ;;  %v4218_v27 = vld [vmem:[#allocation2 + $0x72] sm:$0xff]  ;;  %v11323_v37 = vpack.c.b16 %v4324_v6, %v4323_v49 }
 0x3b0   :  { %v3703_v1 = vpop.f32.mrf.mxu0  ;;  %v4249_v29 = vpack.c.bf16 %v4218_v27, %v4218_v27 }
 0x3b1   :  { %v11313_v9 = vadd.f32 %v3703_v1, %v3427_v5 }
 0x3b2   :  { %v4325_v49 = vunpack.c.l.b16 %v4249_v29 }
 0x3b4   :  { %v3887_v12 = vpop.f32.mrf.mxu1  ;;  %v4547_v27 = vpack.c.b16 %v4325_v49, %v4324_v6 }
 0x3b5   :  { %v11318_v0 = vadd.f32 %v3887_v12, %v11103_v28  ;;  %v3179_v61 = vpop.f32.mrf.mxu2  ;;  %v4565_v28 = vsel %vm426_vm1, %v4562_v47, %v4564_v3 }
 0x3b6   :  { %v3212_v39 = vadd.f32 %v3179_v61, %v2983_v60  ;;  %v3395_v15 = vpop.f32.mrf.mxu3 }
 0x3b7   :  { %v3431_v43 = vadd.f32 %v3395_v15, %v3210_v40  ;;  %v4250_v15 = vpack.c.bf16 %v4219_v35, %v4219_v35 }
 0x3b8   :  { %v3706_v5 = vpop.f32.mrf.mxu0 }
 0x3b9   :  { %v11320_v1 = vadd.f32 %v3706_v5, %v3428_v55  ;;  %v4326_v29 = vunpack.c.l.b16 %v4250_v15 }
 0x3ba   :  { %4140 = vmatmul.bf16.gmra.mxu2 %v4022_v56 }
 0x3bb   :  { %4453 = vmatmul.bf16.gmra.mxu3 %v11323_v37  ;;  %4672 = vmatmul.bf16.gmra.mxu0 %v4565_v28  ;;  %v11342_v35 = vpack.c.b16 %v4326_v29, %v4325_v49 }
 0x3bc   :  { %v3890_v40 = vpop.f32.mrf.mxu1 }
 0x3bd   :  { %v11329_v58 = vadd.f32 %v3890_v40, %v11121_v57  ;;  %v3182_v55 = vpop.f32.mrf.mxu2  ;;  %v4023_v57 = vrot.slane %v11155_v52, 2 }
 0x3be   :  { %v3213_v25 = vadd.f32 %v3182_v55, %v2984_v22  ;;  %v3398_v60 = vpop.f32.mrf.mxu3  ;;  %v4220_v55 = vld [vmem:[#allocation2 + $0x82] sm:$0xff] }
 0x3bf   :  { %v3432_v12 = vadd.f32 %v3398_v60, %v3211_v14  ;;  %3929 = vmatmul.bf16.gmra.mxu1 %v10979_v36  ;;  %v4566_v36 = vrot.slane %v4547_v27, 1  ;;  %v4024_v6 = vsel %vm646_vm0, %v4021_v31, %v4023_v57  ;;  %v4251_v16 = vpack.c.bf16 %v4220_v55, %v4220_v55 }
 0x3c0   :  { %v3708_v47 = vpop.f32.mrf.mxu0 }
 0x3c1   :  { %v11332_v61 = vadd.f32 %v3708_v47, %v3429_v54  ;;  %v4567_v52 = vsel %vm426_vm1, %v4564_v3, %v4566_v36  ;;  %v4221_v47 = vld [vmem:[#allocation2 + $0x8a] sm:$0xff]  ;;  %v4327_v15 = vunpack.c.l.b16 %v4251_v16 }
 0x3c2   :  { %v4252_v3 = vpack.c.bf16 %v4221_v47, %v4221_v47 }
 0x3c4   :  { %v3892_v5 = vpop.f32.mrf.mxu1  ;;  %v4328_v55 = vunpack.c.l.b16 %v4252_v3 }
 0x3c5   :  { %v11337_v56 = vadd.f32 %v3892_v5, %v11144_v46  ;;  %v3184_v28 = vpop.f32.mrf.mxu2  ;;  %v4548_v5 = vpack.c.b16 %v4327_v15, %v4326_v29 }
 0x3c6   :  { %v3214_v14 = vadd.f32 %v3184_v28, %v2985_v20  ;;  %v3400_v22 = vpop.f32.mrf.mxu3  ;;  %v8809_v20 = vld [vmem:[#allocation4 + $0x200] sm:$0xff] }
 0x3c7   :  { %v3433_v40 = vadd.f32 %v3400_v22, %v3212_v39  ;;  %4872 = vmatpush.bf16.msra.mxu1 %v8809_v20 }
 0x3c8   :  { %v3711_v54 = vpop.f32.mrf.mxu0 }
 0x3c9   :  { %v11339_v60 = vadd.f32 %v3711_v54, %v3430_v8 }
 0x3ca   :  { %4145 = vmatmul.bf16.gmra.mxu2 %v4024_v6  ;;  %v4568_v6 = vrot.slane %v4548_v5, 1 }
 0x3cb   :  { %4458 = vmatmul.bf16.gmra.mxu3 %v11342_v35  ;;  %4677 = vmatmul.bf16.gmra.mxu0 %v4567_v52  ;;  %v4222_v52 = vld [vmem:[#allocation2 + $0x92] sm:$0xff] }
 0x3cc   :  { %v3895_v46 = vpop.f32.mrf.mxu1 }
 0x3cd   :  { %v11347_v26 = vadd.f32 %v3895_v46, %v11151_v38  ;;  %v4106_v39 = vpop.f32.mrf.mxu2  ;;  %v4025_v38 = vrot.slane %v11178_v10, 2  ;;  %v11361_v46 = vpack.c.b16 %v4328_v55, %v4327_v15  ;;  %v4569_v10 = vsel %vm426_vm1, %v4566_v36, %v4568_v6 }
 0x3ce   :  { %v4176_v48 = vadd.f32 %v4106_v39, %v11310_v23  ;;  %v3403_v8 = vpop.f32.mrf.mxu3  ;;  %v8822_v39 = vld [vmem:[#allocation6 + $0x28] sm:$0xff] }
 0x3cf   :  { %v3434_v31 = vadd.f32 %v3403_v8, %v3213_v25  ;;  %3934 = vmatmul.bf16.gmra.mxu1 %v11036_v2  ;;  %v4026_v29 = vsel %vm646_vm0, %v4023_v57, %v4025_v38  ;;  %5472 = vmatpush.bf16.msra.mxu2 %v8822_v39  ;;  %v4223_v57 = vld [vmem:[#allocation2 + $0x9a] sm:$0xff] }
 0x3d0   :  { %v3713_v49 = vpop.f32.mrf.mxu0  ;;  %v4254_v20 = vpack.c.bf16 %v4223_v57, %v4223_v57 }
 0x3d1   :  { %v11351_v27 = vadd.f32 %v3713_v49, %v3431_v43 }
 0x3d4   :  { %v3897_v28 = vpop.f32.mrf.mxu1 }
 0x3d5   :  { %v11355_v22 = vadd.f32 %v3897_v28, %v11165_v7  ;;  %v4108_v23 = vpop.f32.mrf.mxu2  ;;  %v4253_v7 = vpack.c.bf16 %v4222_v52, %v4222_v52  ;;  %v4330_v52 = vunpack.c.l.b16 %v4254_v20 }
 0x3d6   :  { %v4177_v54 = vadd.f32 %v4108_v23, %v11318_v0  ;;  %v3405_v25 = vpop.f32.mrf.mxu3  ;;  %v4027_v23 = vrot.slane %v11201_v63, 2 }
 0x3d7   :  { %v3435_v2 = vadd.f32 %v3405_v25, %v3214_v14  ;;  %v4329_v15 = vunpack.c.l.b16 %v4253_v7 }
 0x3d8   :  { %v3716_v43 = vpop.f32.mrf.mxu0 }
 0x3d9   :  { %v11358_v16 = vadd.f32 %v3716_v43, %v3432_v12  ;;  %v4549_v5 = vpack.c.b16 %v4329_v15, %v4328_v55  ;;  %v11380_v55 = vpack.c.b16 %v4330_v52, %v4329_v15 }
 0x3da   :  { %4150 = vmatmul.bf16.gmra.mxu2 %v4026_v29 }
 0x3db   :  { %4463 = vmatmul.bf16.gmra.mxu3 %v11361_v46  ;;  %4682 = vmatmul.bf16.gmra.mxu0 %v4569_v10  ;;  %v4570_v29 = vrot.slane %v4549_v5, 1  ;;  %v4224_v10 = vld [vmem:[#allocation2 + $0xa2] sm:$0xff]  ;;  %v4029_v5 = vrot.slane %v11222_v41, 2 }
 0x3dc   :  { %v3900_v0 = vpop.f32.mrf.mxu1  ;;  %v8929_v41 = vld [vmem:[#allocation2] sm:$0xff] }
 0x3dd   :  { %v11366_v8 = vadd.f32 %v3900_v0, %v11173_v42  ;;  %v4111_v14 = vpop.f32.mrf.mxu2  ;;  %v4571_v63 = vsel %vm426_vm1, %v4568_v6, %v4570_v29 }
 0x3de   :  { %v4178_v12 = vadd.f32 %v4111_v14, %v11329_v58  ;;  %v4424_v47 = vpop.f32.mrf.mxu3  ;;  %v4225_v14 = vld [vmem:[#allocation2 + $0xaa] sm:$0xff] }
 0x3df   :  { %v4494_v49 = vadd.f32 %v4424_v47, %v4176_v48  ;;  %3939 = vmatmul.bf16.gmra.mxu1 %v11090_v24  ;;  %v4256_v15 = vpack.c.bf16 %v4225_v14, %v4225_v14 }
 0x3e0   :  { %v3718_v36 = vpop.f32.mrf.mxu0 }
 0x3e1   :  { %v11370_v3 = vadd.f32 %v3718_v36, %v3433_v40  ;;  %v4028_v40 = vsel %vm646_vm0, %v4025_v38, %v4027_v23 }
 0x3e4   :  { %v3902_v28 = vpop.f32.mrf.mxu1 }
 0x3e5   :  { %v11374_v42 = vadd.f32 %v3902_v28, %v11187_v44  ;;  %v4113_v25 = vpop.f32.mrf.mxu2  ;;  %v4255_v44 = vpack.c.bf16 %v4224_v10, %v4224_v10 }
 0x3e6   :  { %v4179_v58 = vadd.f32 %v4113_v25, %v11337_v56  ;;  %v4426_v43 = vpop.f32.mrf.mxu3 }
 0x3e7   :  { %v4495_v48 = vadd.f32 %v4426_v43, %v4177_v54  ;;  %v4331_v38 = vunpack.c.l.b16 %v4255_v44 }
 0x3e8   :  { %v3721_v24 = vpop.f32.mrf.mxu0 }
 0x3e9   :  { %v11377_v7 = vadd.f32 %v3721_v24, %v3434_v31  ;;  %v4550_v36 = vpack.c.b16 %v4331_v38, %v4330_v52  ;;  %v8821_v24 = vld [vmem:[#allocation6 + $0x20] sm:$0xff]  ;;  %v4030_v52 = vsel %vm646_vm0, %v4027_v23, %v4029_v5 }
 0x3ea   :  { %4155 = vmatmul.bf16.gmra.mxu2 %v4028_v40 }
 0x3eb   :  { %4468 = vmatmul.bf16.gmra.mxu3 %v11380_v55  ;;  %4687 = vmatmul.bf16.gmra.mxu0 %v4571_v63 }
 0x3ec   :  { %v3905_v39 = vpop.f32.mrf.mxu1  ;;  %5473 = vmatpush.bf16.msra.mxu2 %v8821_v24 }
 0x3ed   :  { %v11385_v56 = vadd.f32 %v3905_v39, %v11196_v30  ;;  %v4116_v54 = vpop.f32.mrf.mxu2 }
 0x3ee   :  { %v11388_v0 = vadd.f32 %v4116_v54, %v11347_v26  ;;  %v4429_v31 = vpop.f32.mrf.mxu3  ;;  %v4332_v26 = vunpack.c.l.b16 %v4256_v15 }
 0x3ef   :  { %v4496_v47 = vadd.f32 %v4429_v31, %v4178_v12  ;;  %3944 = vmatmul.bf16.gmra.mxu1 %v11135_v4  ;;  %v4572_v12 = vrot.slane %v4550_v36, 1  ;;  %v4226_v4 = vld [vmem:[#allocation2 + $0xb2] sm:$0xff]  ;;  %v4227_v31 = vld [vmem:[#allocation2 + $0xba] sm:$0xff] }
 0x3f0   :  { %v3723_v57 = vpop.f32.mrf.mxu0  ;;  %v11403_v63 = vpack.c.b16 %v4332_v26, %v4331_v38  ;;  %v4258_v15 = vpack.c.bf16 %v4227_v31, %v4227_v31 }
 0x3f1   :  { %v11391_v6 = vadd.f32 %v3723_v57, %v3435_v2  ;;  %v4573_v44 = vsel %vm426_vm1, %v4570_v29, %v4572_v12 }
 0x3f4   :  { %v3907_v20 = vpop.f32.mrf.mxu1 }
 0x3f5   :  { %v11395_v30 = vadd.f32 %v3907_v20, %v11210_v59  ;;  %v4118_v28 = vpop.f32.mrf.mxu2  ;;  %v3496_v59 = vpack.c.bf16 %v8929_v41, %v8929_v41 }
 0x3f6   :  { %v11398_v25 = vadd.f32 %v4118_v28, %v11355_v22  ;;  %v4431_v43 = vpop.f32.mrf.mxu3  ;;  %v4257_v22 = vpack.c.bf16 %v4226_v4, %v4226_v4 }
 0x3f7   :  { %v4497_v10 = vadd.f32 %v4431_v43, %v4179_v58  ;;  %v11410_v54 = vunpack.c.l.b16 %v3496_v59 }
 0x3f8   :  { %v4653_v2 = vpop.f32.mrf.mxu0  ;;  %v4333_v14 = vunpack.c.l.b16 %v4257_v22 }
 0x3f9   :  { %v11400_v40 = vadd.f32 %v4653_v2, %v4494_v49  ;;  %v4004_v57 = vpack.c.b16 %v11410_v54, %v11111_v33  ;;  %v4228_v2 = vld [vmem:[#allocation2 + $0xc2] sm:$0xff] }
 0x3fa   :  { %4160 = vmatmul.bf16.gmra.mxu2 %v4030_v52  ;;  %v4551_v36 = vpack.c.b16 %v4333_v14, %v4332_v26 }
 0x3fb   :  { %4473 = vmatmul.bf16.gmra.mxu3 %v11403_v63  ;;  %4692 = vmatmul.bf16.gmra.mxu0 %v4573_v44  ;;  %v4031_v43 = vrot.slane %v4004_v57, 2  ;;  %v4259_v44 = vpack.c.bf16 %v4228_v2, %v4228_v2 }
 0x3fc   :  { %v3910_v58 = vpop.f32.mrf.mxu1  ;;  %v4574_v24 = vrot.slane %v4551_v36, 1  ;;  %v8820_v36 = vld [vmem:[#allocation6 + $0x18] sm:$0xff] }
 0x3fd   :  { %v11408_v39 = vadd.f32 %v3910_v58, %v11217_v17  ;;  %v4121_v49 = vpop.f32.mrf.mxu2  ;;  %v4032_v33 = vsel %vm646_vm0, %v4029_v5, %v4031_v43  ;;  %5474 = vmatpush.bf16.msra.mxu2 %v8820_v36 }
 0x3fe   :  { %v11413_v23 = vadd.f32 %v4121_v49, %v11366_v8  ;;  %v4334_v8 = vunpack.c.l.b16 %v4258_v15  ;;  %v4575_v59 = vsel %vm426_vm1, %v4572_v12, %v4574_v24 }
 0x3ff   :  { %3949 = vmatmul.bf16.gmra.mxu1 %v11118_v19  ;;  %v3466_v19 = vld [vmem:[#allocation2 + $0xf1] sm:$0x3] }
 0x400   :  { %v4655_v38 = vpop.f32.mrf.mxu0  ;;  %v11429_v41 = vpack.c.b16 %v4334_v8, %v4333_v14  ;;  %v3497_v26 = vpack.c.bf16 %v3466_v19, %v3466_v19  ;;  %v4335_v14 = vunpack.c.l.b16 %v4259_v44 }
 0x401   :  { %v11416_v29 = vadd.f32 %v4655_v38, %v4495_v48 }
 0x402   :  { %v4003_v49 = vunpack.c.l.b16 %v3497_v26 }
 0x404   :  { %v3912_v17 = vpop.f32.mrf.mxu1  ;;  %v4005_v57 = vpack.c.b16 %v4003_v49, %v4003_v49  ;;  %v4231_v49 = vld [vmem:[#allocation2 + $0xda] sm:$0xff] }
 0x405   :  { %v11421_v20 = vadd.f32 %v3912_v17, %v11233_v62  ;;  %v4123_v28 = vpop.f32.mrf.mxu2  ;;  %v4775_v62 = vrot.slane %v11244_v53, 2  ;;  %v4229_v53 = vld [vmem:[#allocation2 + $0xca] sm:$0xff] }
 0x406   :  { %v11424_v4 = vadd.f32 %v4123_v28, %v11374_v42  ;;  %v4774_v42 = vrot.slane %v11224_v11, 2  ;;  %v4260_v15 = vpack.c.bf16 %v4229_v53, %v4229_v53  ;;  %v4552_v11 = vpack.c.b16 %v4335_v14, %v4334_v8 }
 0x407   :  { %v4033_v19 = vrot.slane %v4005_v57, 2 }
 0x408   :  { %v4658_v48 = vpop.f32.mrf.mxu0  ;;  %v4776_v31 = vsel %vm646_vm0, %v4774_v42, %v4775_v62  ;;  %v12822_v42 = vld [vmem:[#allocation28_spill] sm:$0xff] }
 0x409   :  { %v11426_v52 = vadd.f32 %v4658_v48, %v4496_v47  ;;  %v4576_v48 = vrot.slane %v4552_v11, 1  ;;  %v4034_v26 = vsel %vm646_vm0, %v4031_v43, %v4033_v19  ;;  %v4232_v11 = vld [vmem:[#allocation2 + $0xe2] sm:$0xff] }
 0x40a   :  { %4165 = vmatmul.bf16.gmra.mxu2 %v4032_v33  ;;  %v4230_v33 = vld [vmem:[#allocation2 + $0xd2] sm:$0xff] }
 0x40b   :  { %4478 = vmatmul.bf16.gmra.mxu3 %v11429_v41  ;;  %4697 = vmatmul.bf16.gmra.mxu0 %v4575_v59  ;;  %v4777_v59 = vrot.slane %v11263_v51, 2  ;;  %v4577_v8 = vsel %vm426_vm1, %v4574_v24, %v4576_v48  ;;  %v4261_v44 = vpack.c.bf16 %v4230_v33, %v4230_v33  ;;  %v4262_v51 = vpack.c.bf16 %v4231_v49, %v4231_v49 }
 0x40c   :  { %v3915_v22 = vpop.f32.mrf.mxu1 }
 0x40d   :  { %v3967_v47 = vadd.f32 %v3915_v22, %v11241_v21  ;;  %v4126_v58 = vpop.f32.mrf.mxu2  ;;  %v4778_v43 = vsel %vm646_vm0, %v4775_v62, %v4777_v59  ;;  %v4338_v57 = vunpack.c.l.b16 %v4262_v51 }
 0x40e   :  { %v11437_v5 = vadd.f32 %v4126_v58, %v11385_v56  ;;  %v4336_v56 = vunpack.c.l.b16 %v4260_v15 }
 0x40f   :  { %4873 = vmatmul.bf16.vlgmr.msra.gmra.mxu1 %v4776_v31  ;;  %v4337_v31 = vunpack.c.l.b16 %v4261_v44 }
 0x410   :  { %v4660_v12 = vpop.f32.mrf.mxu0 }
 0x411   :  { %v11440_v38 = vadd.f32 %v4660_v12, %v4497_v10  ;;  %v11447_v10 = vpack.c.b16 %v4336_v56, %v4335_v14  ;;  %v4553_v53 = vpack.c.b16 %v4337_v31, %v4336_v56 }
 0x413   :  { %v4578_v36 = vrot.slane %v4553_v53, 1 }
 0x414   :  { %v3917_v17 = vpop.f32.mrf.mxu1 }
 0x415   :  { %v3968_v21 = vadd.f32 %v3917_v17, %v11253_v32  ;;  %v4128_v28 = vpop.f32.mrf.mxu2  ;;  %v11461_v17 = vpack.c.b16 %v4338_v57, %v4337_v31  ;;  %v4579_v62 = vsel %vm426_vm1, %v4576_v48, %v4578_v36 }
 0x416   :  { %v11444_v2 = vadd.f32 %v4128_v28, %v11395_v30  ;;  %v4263_v28 = vpack.c.bf16 %v4232_v11, %v4232_v11 }
 0x41a   :  { %4170 = vmatmul.bf16.gmra.mxu2 %v4034_v26  ;;  %v11470_v26 = vunpack.c.l.b16 %v4263_v28  ;;  %v11490_v28 = vpop.f32.mrf.mxu3 }
 0x41b   :  { %4483 = vmatmul.bf16.gmra.mxu3 %v11447_v10  ;;  %4702 = vmatmul.bf16.gmra.mxu0 %v4577_v8  ;;  %v8819_v8 = vld [vmem:[#allocation6 + $0x10] sm:$0xff] }
 0x41c   :  { %v3920_v32 = vpop.f32.mrf.mxu1  ;;  %5475 = vmatpush.bf16.msra.mxu2 %v8819_v8 }
 0x41d   :  { %v3969_v22 = vadd.f32 %v3920_v32, %v12822_v42  ;;  %v4131_v30 = vpop.f32.mrf.mxu2 }
 0x41e   :  { %v11454_v58 = vadd.f32 %v4131_v30, %v11408_v39  ;;  %v4779_v39 = vrot.slane %v11282_v34, 2  ;;  %v4554_v34 = vpack.c.b16 %v11470_v26, %v4338_v57  ;;  %v8818_v57 = vld [vmem:[#allocation6 + $0x8] sm:$0xff] }
 0x41f   :  { %4878 = vmatmul.bf16.gmra.mxu1 %v4778_v43  ;;  %v12823_v43 = vld [vmem:[#allocation16_spill] sm:$0xff] }
 0x420   :  { %v4580_v30 = vrot.slane %v4554_v34, 1  ;;  %5476 = vmatpush.bf16.msra.mxu2 %v8818_v57 }
 0x424   :  { %v3922_v14 = vpop.f32.mrf.mxu1 }
 0x425   :  { %v3970_v24 = vadd.f32 %v3922_v14, %v11272_v50  ;;  %v4133_v12 = vpop.f32.mrf.mxu2 }
 0x426   :  { %v11459_v15 = vadd.f32 %v4133_v12, %v11421_v20  ;;  %v4780_v20 = vsel %vm646_vm0, %v4777_v59, %v4779_v39 }
 0x42b   :  { %4488 = vmatmul.bf16.gmra.mxu3 %v11461_v17  ;;  %4707 = vmatmul.bf16.gmra.mxu0 %v4579_v62 }
 0x42c   :  { %v3925_v19 = vpop.f32.mrf.mxu1 }
 0x42d   :  { %v3971_v50 = vadd.f32 %v3925_v19, %v11279_v13  ;;  %v4136_v56 = vpop.f32.mrf.mxu2  ;;  %v4781_v13 = vrot.slane %v11301_v18, 2  ;;  %v4783_v18 = vrot.slane %v11323_v37, 2  ;;  %v11492_v19 = vpop.f32.mrf.mxu0 }
 0x42e   :  { %v11467_v33 = vadd.f32 %v4136_v56, %v3967_v47  ;;  %v4581_v47 = vsel %vm426_vm1, %v4578_v36, %v4580_v30 }
 0x42f   :  { %4883 = vmatmul.bf16.gmra.mxu1 %v4780_v20  ;;  %v4782_v53 = vsel %vm646_vm0, %v4779_v39, %v4781_v13  ;;  %v4784_v39 = vsel %vm646_vm0, %v4781_v13, %v4783_v18  ;;  %v4785_v20 = vrot.slane %v11342_v35, 2 }
 0x434   :  { %v3927_v48 = vpop.f32.mrf.mxu1 }
 0x435   :  { %v3972_v44 = vadd.f32 %v3927_v48, %v11291_v45  ;;  %v4138_v32 = vpop.f32.mrf.mxu2 }
 0x436   :  { %v11474_v42 = vadd.f32 %v4138_v32, %v3968_v21  ;;  %v4786_v32 = vsel %vm646_vm0, %v4783_v18, %v4785_v20 }
 0x43b   :  { %4712 = vmatmul.bf16.gmra.mxu0 %v4581_v47 }
 0x43c   :  { %v3930_v59 = vpop.f32.mrf.mxu1 }
 0x43d   :  { %v3973_v49 = vadd.f32 %v3930_v59, %v12823_v43  ;;  %v4141_v31 = vpop.f32.mrf.mxu2  ;;  %v8817_v59 = vld [vmem:[#allocation6] sm:$0xff] }
 0x43e   :  { %v11479_v51 = vadd.f32 %v4141_v31, %v3969_v22  ;;  %5477 = vmatpush.bf16.msra.mxu2 %v8817_v59 }
 0x43f   :  { %4888 = vmatmul.bf16.gmra.mxu1 %v4782_v53 }
 0x444   :  { %v3932_v14 = vpop.f32.mrf.mxu1 }
 0x445   :  { %v3974_v45 = vadd.f32 %v3932_v14, %v11313_v9  ;;  %v4143_v21 = vpop.f32.mrf.mxu2 }
 0x446   :  { %v11483_v12 = vadd.f32 %v4143_v21, %v3970_v24 }
 0x44b   :  { %4717 = vmatmul.bf16.gmra.mxu0 %v4580_v30  ;;  %v11504_v30 = vpop.f32.mrf.mxu0 }
 0x44c   :  { %v3935_v36 = vpop.f32.mrf.mxu1 }
 0x44d   :  { %v3975_v11 = vadd.f32 %v3935_v36, %v11320_v1  ;;  %v4146_v62 = vpop.f32.mrf.mxu2  ;;  %v11498_v1 = vpop.f32.mrf.mxu3 }
 0x44e   :  { %v11487_v22 = vadd.f32 %v4146_v62, %v3971_v50 }
 0x44f   :  { %4893 = vmatmul.bf16.gmra.mxu1 %v4784_v39 }
 0x453   :  { %v11511_v43 = vpop.f32.mrf.mxu0 }
 0x454   :  { %v3937_v9 = vpop.f32.mrf.mxu1 }
 0x455   :  { %v3976_v24 = vadd.f32 %v3937_v9, %v11332_v61  ;;  %v4148_v56 = vpop.f32.mrf.mxu2  ;;  %v11509_v35 = vpop.f32.mrf.mxu3 }
 0x456   :  { %v11495_v37 = vadd.f32 %v4148_v56, %v3972_v44 }
 0x45c   :  { %v3940_v8 = vpop.f32.mrf.mxu1 }
 0x45d   :  { %v3977_v50 = vadd.f32 %v3940_v8, %v11339_v60  ;;  %v4151_v34 = vpop.f32.mrf.mxu2  ;;  %v4787_v60 = vrot.slane %v11361_v46, 2  ;;  %v4789_v46 = vrot.slane %v11380_v55, 2 }
 0x45e   :  { %v11501_v48 = vadd.f32 %v4151_v34, %v3973_v49  ;;  %v8831_v34 = vld [vmem:[#allocation6 + $0xf0] sm:$0xff] }
 0x45f   :  { %4898 = vmatmul.bf16.gmra.mxu1 %v4786_v32  ;;  %v4788_v21 = vsel %vm646_vm0, %v4785_v20, %v4787_v60  ;;  %v4790_v8 = vsel %vm646_vm0, %v4787_v60, %v4789_v46  ;;  %v8830_v60 = vld [vmem:[#allocation6 + $0xe8] sm:$0xff] }
 0x464   :  { %v3942_v13 = vpop.f32.mrf.mxu1 }
 0x465   :  { %v3978_v61 = vadd.f32 %v3942_v13, %v11351_v27  ;;  %v4153_v44 = vpop.f32.mrf.mxu2  ;;  %v11518_v27 = vpop.f32.mrf.mxu3 }
 0x466   :  { %v11507_v47 = vadd.f32 %v4153_v44, %v3974_v45  ;;  %v11520_v45 = vpop.f32.mrf.mxu0  ;;  %v8856_v44 = vld [vmem:[#allocation6 + $0x138] sm:$0xff] }
 0x467   :  { %6467 = vmatpush.bf16.msrb.mxu2 %v8856_v44 }
 0x46c   :  { %v3945_v49 = vpop.f32.mrf.mxu1 }
 0x46d   :  { %v3979_v31 = vadd.f32 %v3945_v49, %v11358_v16  ;;  %v4156_v53 = vpop.f32.mrf.mxu2  ;;  %v11526_v39 = vpop.f32.mrf.mxu3  ;;  %v4791_v49 = vrot.slane %v11403_v63, 2  ;;  %v11555_v63 = vld [vmem:[%s12707_s2] ss:$0 sm:$0xff] }
 0x46e   :  { %v11515_v14 = vadd.f32 %v4156_v53, %v3975_v11  ;;  %v11528_v11 = vpop.f32.mrf.mxu0 }
 0x46f   :  { %4903 = vmatmul.bf16.gmra.mxu1 %v4788_v21  ;;  %v8829_v21 = vld [vmem:[#allocation6 + $0xe0] sm:$0xff] }
 0x474   :  { %v3947_v57 = vpop.f32.mrf.mxu1 }
 0x475   :  { %v3980_v18 = vadd.f32 %v3947_v57, %v11370_v3  ;;  %v4158_v36 = vpop.f32.mrf.mxu2  ;;  %v8832_v3 = vld [vmem:[#allocation6 + $0xf8] sm:$0xff]  ;;  %v11536_v32 = vpop.f32.mrf.mxu3  ;;  %v8839_v57 = vld [vmem:[#allocation6 + $0x1b0] sm:$0xff] }
 0x476   :  { %v11523_v62 = vadd.f32 %v4158_v36, %v3976_v24  ;;  %5699 = vmatpush.bf16.msrb.mxu3 %v8832_v3 }
 0x47a   :  { %5700 = vmatpush.bf16.msrb.mxu3 %v8831_v34  ;;  %v8838_v34 = vld [vmem:[#allocation6 + $0x1a8] sm:$0xff] }
 0x47c   :  { %v3950_v16 = vpop.f32.mrf.mxu1 }
 0x47d   :  { %v11531_v9 = vadd.f32 %v3950_v16, %v11377_v7  ;;  %v4161_v56 = vpop.f32.mrf.mxu2  ;;  %v11543_v7 = vpop.f32.mrf.mxu0  ;;  %v8848_v16 = vld [vmem:[#allocation6 + $0x78] sm:$0xff] }
 0x47e   :  { %v11533_v20 = vadd.f32 %v4161_v56, %v3977_v50  ;;  %v8840_v50 = vld [vmem:[#allocation6 + $0x1b8] sm:$0xff]  ;;  %5701 = vmatpush.bf16.msrb.mxu3 %v8830_v60  ;;  %6238 = vmatpush.bf16.msrb.mxu1 %v8848_v16  ;;  %v8837_v60 = vld [vmem:[#allocation6 + $0x1a0] sm:$0xff]  ;;  %v8826_v16 = vld [vmem:[#allocation6 + $0xc8] sm:$0xff] }
 0x47f   :  { %4908 = vmatmul.bf16.gmra.mxu1 %v4790_v8  ;;  %5920 = vmatpush.bf16.msrb.mxu0 %v8840_v50  ;;  %v11550_v8 = vpop.f32.mrf.mxu3  ;;  %v8827_v50 = vld [vmem:[#allocation6 + $0xd0] sm:$0xff] }
 0x482   :  { %5702 = vmatpush.bf16.msrb.mxu3 %v8829_v21 }
 0x483   :  { %5921 = vmatpush.bf16.msrb.mxu0 %v8839_v57 }
 0x484   :  { %v3952_v24 = vpop.f32.mrf.mxu1 }
 0x485   :  { %v11539_v55 = vadd.f32 %v3952_v24, %v11391_v6  ;;  %v4163_v13 = vpop.f32.mrf.mxu2  ;;  %v5031_v24 = vpop.permute.xlu1 %5030 }
 0x486   :  { %v11541_v59 = vadd.f32 %v4163_v13, %v3978_v61  ;;  %v4792_v61 = vsel %vm646_vm0, %v4789_v46, %v4791_v49  ;;  %v11557_v13 = vpop.f32.mrf.mxu0 }
 0x487   :  { %5922 = vmatpush.bf16.msrb.mxu0 %v8838_v34 }
 0x48b   :  { %5923 = vmatpush.bf16.msrb.mxu0 %v8837_v60 }
 0x48c   :  { %v4874_v53 = vpop.f32.mrf.mxu1 }
 0x48d   :  { %v4944_v6 = vadd.f32 %v4874_v53, %v11400_v40  ;;  %v4166_v36 = vpop.f32.mrf.mxu2  ;;  %v8828_v40 = vld [vmem:[#allocation6 + $0xd8] sm:$0xff] }
 0x48e   :  { %v11547_v56 = vadd.f32 %v4166_v36, %v3979_v31  ;;  %5703 = vmatpush.bf16.msrb.mxu3 %v8828_v40  ;;  %v5036_v36 = vpop.permute.xlu2 %5035  ;;  %v12737_v40 = vrot.slane %v11429_v41, 2  ;;  %v11566_v34 = vpop.f32.mrf.mxu0 }
 0x48f   :  { %v4972_v3 = vmax.f32 %v4944_v6, 0.0  ;;  %4913 = vmatmul.bf16.gmra.mxu1 %v4792_v61  ;;  %v8836_v61 = vld [vmem:[#allocation6 + $0x198] sm:$0xff] }
 0x490   :  { %5924 = vmatpush.bf16.msrb.mxu0 %v8836_v61  ;;  %v5041_v61 = vpop.permute.xlu0 %5040 }
 0x491   :  { %v5168_v31 = vmul.f32 %v5031_v24, %v4972_v3  ;;  %v11563_v3 = vpop.f32.mrf.mxu3 }
 0x492   :  { %5704 = vmatpush.bf16.msrb.mxu3 %v8827_v50 }
 0x493   :  { %v5200_v46 = vmul.f32 %v11555_v63, %v5168_v31 }
 0x494   :  { %v4876_v44 = vpop.f32.mrf.mxu1 }
 0x495   :  { %5228 = vst [vmem:[#allocation3 + $0xb] sm:$0xff] %v5200_v46  ;;  %v4945_v53 = vadd.f32 %v4876_v44, %v11416_v29  ;;  %v4168_v21 = vpop.f32.mrf.mxu2  ;;  %v8825_v46 = vld [vmem:[#allocation6 + $0xc0] sm:$0xff]  ;;  %v8835_v44 = vld [vmem:[#allocation6 + $0x190] sm:$0xff] }
 0x496   :  { %v11561_v57 = vadd.f32 %v4168_v21, %v3980_v18  ;;  %5705 = vmatpush.bf16.msrb.mxu3 %v8826_v16  ;;  %5925 = vmatpush.bf16.msrb.mxu0 %v8835_v44 }
 0x497   :  { %v4973_v6 = vmax.f32 %v4945_v53, 0.0 }
 0x498   :  { %12824 = vst [vmem:[#allocation21_spill] sm:$0xff] %v11561_v57 }
 0x499   :  { %v5169_v24 = vmul.f32 %v5036_v36, %v4973_v6  ;;  %v4794_v6 = vsel %vm646_vm0, %v4791_v49, %v12737_v40 }
 0x49a   :  { %5706 = vmatpush.bf16.msrb.mxu3 %v8825_v46  ;;  %v8833_v46 = vld [vmem:[#allocation6 + $0x180] sm:$0xff] }
 0x49b   :  { %v5201_v29 = vmul.f32 %v11555_v63, %v5169_v24  ;;  %v8834_v24 = vld [vmem:[#allocation6 + $0x188] sm:$0xff] }
 0x49c   :  { %v4879_v31 = vpop.f32.mrf.mxu1  ;;  %v5261_v18 = vld [vmem:[#allocation3 + $0x8] sm:$0xff]  ;;  %5926 = vmatpush.bf16.msrb.mxu0 %v8834_v24 }
 0x49d   :  { %5229 = vst [vmem:[#allocation3 + $0x13] sm:$0xff] %v5201_v29  ;;  %v4946_v50 = vadd.f32 %v4879_v31, %v11426_v52  ;;  %v4171_v60 = vpop.f32.mrf.mxu2  ;;  %v5292_v53 = vpack.c.bf16 %v5261_v18, %v5261_v18  ;;  %v6028_v29 = vld [vmem:[#allocation3 + $0x9] sm:$0xff] }
 0x49e   :  { %v11571_v21 = vadd.f32 %v4171_v60, %v11531_v9  ;;  %v11580_v9 = vpop.f32.mrf.mxu3  ;;  %v6059_v49 = vpack.c.bf16 %v6028_v29, %v6028_v29 }
 0x49f   :  { %v4974_v36 = vmax.f32 %v4946_v50, 0.0  ;;  %4918 = vmatmul.bf16.gmra.mxu1 %v4794_v6  ;;  %v11576_v16 = vunpack.c.l.b16 %v5292_v53  ;;  %v11583_v50 = vpop.f32.mrf.mxu0  ;;  %v8855_v6 = vld [vmem:[#allocation6 + $0x130] sm:$0xff] }
 0x4a0   :  { %12825 = vst [vmem:[#allocation30_spill] sm:$0xff] %v11571_v21  ;;  %5927 = vmatpush.bf16.msrb.mxu0 %v8833_v46  ;;  %6468 = vmatpush.bf16.msrb.mxu2 %v8855_v6 }
 0x4a1   :  { %v5170_v57 = vmul.f32 %v5041_v61, %v4974_v36  ;;  %v5394_v52 = vpack.c.b16 %v11576_v16, %v11410_v54  ;;  %v8847_v36 = vld [vmem:[#allocation6 + $0x70] sm:$0xff] }
 0x4a2   :  { %6239 = vmatpush.bf16.msrb.mxu1 %v8847_v36 }
 0x4a3   :  { %v5202_v31 = vmul.f32 %v11555_v63, %v5170_v57  ;;  %5478 = vmatmul.bf16.vlgmr.msra.gmra.mxu2 %v5394_v52  ;;  %v11589_v57 = vunpack.c.l.b16 %v6059_v49  ;;  %v5046_v52 = vpop.permute.xlu1 %5045 }
 0x4a4   :  { %v4881_v18 = vpop.f32.mrf.mxu1  ;;  %v6029_v44 = vld [vmem:[#allocation3 + $0x11] sm:$0xff] }
 0x4a5   :  { %5230 = vst [vmem:[#allocation3 + $0x1b] sm:$0xff] %v5202_v31  ;;  %v4947_v60 = vadd.f32 %v4881_v18, %v11440_v38  ;;  %v4173_v53 = vpop.f32.mrf.mxu2  ;;  %v6060_v61 = vpack.c.bf16 %v6029_v44, %v6029_v44  ;;  %v5262_v40 = vld [vmem:[#allocation3 + $0x10] sm:$0xff]  ;;  %v4498_v38 = vadd.f32 %v11490_v28, %v11388_v0  ;;  %v12827_v0 = vrot.slane %v11429_v41, 2 }
 0x4a6   :  { %v11587_v54 = vadd.f32 %v4173_v53, %v11539_v55  ;;  %v12738_v55 = vrot.slane %v11447_v10, 2  ;;  %v11600_v6 = vpop.f32.mrf.mxu3 }
 0x4a7   :  { %v4975_v24 = vmax.f32 %v4947_v60, 0.0  ;;  %v11591_v29 = vunpack.c.l.b16 %v6060_v61  ;;  %v4727_v46 = vadd.f32 %v11492_v19, %v4498_v38  ;;  %v5293_v60 = vpack.c.bf16 %v5262_v40, %v5262_v40  ;;  %v5051_v40 = vpop.permute.xlu2 %5050 }
 0x4a8   :  { %12826 = vst [vmem:[#allocation23_spill] sm:$0xff] %v11587_v54  ;;  %v4796_v28 = vsel %vm646_vm0, %v12827_v0, %v12738_v55  ;;  %v4499_v54 = vadd.f32 %v11498_v1, %v11398_v25 }
 0x4a9   :  { %v5171_v31 = vmul.f32 %v5046_v52, %v4975_v24  ;;  %v6364_v18 = vpack.c.b16 %v11591_v29, %v11589_v57  ;;  %v11607_v24 = vpop.f32.mrf.mxu0  ;;  %v5368_v19 = vunpack.c.l.b16 %v5293_v60 }
 0x4ab   :  { %v5203_v44 = vmul.f32 %v11555_v63, %v5171_v31  ;;  %v5596_v21 = vpack.c.b16 %v5368_v19, %v11576_v16 }
 0x4ac   :  { %v4884_v49 = vpop.f32.mrf.mxu1  ;;  %v5263_v53 = vld [vmem:[#allocation3 + $0x18] sm:$0xff] }
 0x4ad   :  { %5231 = vst [vmem:[#allocation3 + $0x23] sm:$0xff] %v5203_v44  ;;  %v4948_v36 = vadd.f32 %v4884_v49, %v4727_v46  ;;  %v5294_v61 = vpack.c.bf16 %v5263_v53, %v5263_v53  ;;  %v6030_v31 = vld [vmem:[#allocation3 + $0x19] sm:$0xff]  ;;  %v4728_v49 = vadd.f32 %v11504_v30, %v4499_v54  ;;  %v5056_v54 = vpop.permute.xlu0 %5055 }
 0x4ae   :  { %v6061_v53 = vpack.c.bf16 %v6030_v31, %v6030_v31  ;;  %v11617_v25 = vpop.f32.mrf.mxu3  ;;  %v4500_v31 = vadd.f32 %v11509_v35, %v11413_v23 }
 0x4af   :  { %v4976_v52 = vmax.f32 %v4948_v36, 0.0  ;;  %4923 = vmatmul.bf16.gmra.mxu1 %v4796_v28  ;;  %v5369_v38 = vunpack.c.l.b16 %v5294_v61 }
 0x4b0   :  { %v4729_v16 = vadd.f32 %v11511_v43, %v4500_v31  ;;  %v8854_v31 = vld [vmem:[#allocation6 + $0x128] sm:$0xff] }
 0x4b1   :  { %v5172_v44 = vmul.f32 %v5051_v40, %v4976_v52  ;;  %v11611_v46 = vpack.c.b16 %v5369_v38, %v5368_v19  ;;  %v11619_v40 = vunpack.c.l.b16 %v6061_v53  ;;  %v12739_v19 = vrot.slane %v11461_v17, 2  ;;  %6469 = vmatpush.bf16.msrb.mxu2 %v8854_v31 }
 0x4b2   :  { %v5610_v53 = vrot.slane %v5596_v21, 1  ;;  %v12828_v21 = vrot.slane %v11447_v10, 2 }
 0x4b3   :  { %v5204_v41 = vmul.f32 %v11555_v63, %v5172_v44  ;;  %5483 = vmatmul.bf16.gmra.mxu2 %v11611_v46  ;;  %v11625_v44 = vpop.f32.mrf.mxu0 }
 0x4b4   :  { %v5264_v0 = vld [vmem:[#allocation3 + $0x20] sm:$0xff]  ;;  %v4886_v36 = vpop.f32.mrf.mxu1 }
 0x4b5   :  { %v6031_v28 = vld [vmem:[#allocation3 + $0x21] sm:$0xff]  ;;  %5232 = vst [vmem:[#allocation3 + $0x2b] sm:$0xff] %v5204_v41  ;;  %v5295_v60 = vpack.c.bf16 %v5264_v0, %v5264_v0  ;;  %v4949_v61 = vadd.f32 %v4886_v36, %v4728_v49 }
 0x4b6   :  { %v6062_v55 = vpack.c.bf16 %v6031_v28, %v6031_v28  ;;  %v8846_v36 = vld [vmem:[#allocation6 + $0x68] sm:$0xff] }
 0x4b7   :  { %v5370_v1 = vunpack.c.l.b16 %v5295_v60  ;;  %v4977_v52 = vmax.f32 %v4949_v61, 0.0  ;;  %v4233_v60 = vld [vmem:[#allocation2 + $0xea] sm:$0xff]  ;;  %6240 = vmatpush.bf16.msrb.mxu1 %v8846_v36 }
 0x4b8   :  { %v11621_v30 = vunpack.c.l.b16 %v6062_v55 }
 0x4b9   :  { %v5597_v41 = vpack.c.b16 %v5370_v1, %v5369_v38  ;;  %v5173_v0 = vmul.f32 %v5056_v54, %v4977_v52  ;;  %v6378_v38 = vrot.slane %v6364_v18, 1 }
 0x4ba   :  { %v6365_v49 = vpack.c.b16 %v11621_v30, %v11619_v40 }
 0x4bb   :  { %v11631_v28 = vrot.slane %v5597_v41, 1  ;;  %v5205_v55 = vmul.f32 %v11555_v63, %v5173_v0  ;;  %v4798_v41 = vsel %vm646_vm0, %v12828_v21, %v12739_v19  ;;  %v4264_v0 = vpack.c.bf16 %v4233_v60, %v4233_v60  ;;  %v11654_v19 = vpop.f32.mrf.mxu0 }
 0x4bc   :  { %v11634_v61 = vrot.slane %v6365_v49, 1  ;;  %v4889_v23 = vpop.f32.mrf.mxu1  ;;  %v5265_v35 = vld [vmem:[#allocation3 + $0x28] sm:$0xff]  ;;  %v8845_v49 = vld [vmem:[#allocation6 + $0x60] sm:$0xff] }
 0x4bd   :  { %5233 = vst [vmem:[#allocation3 + $0x33] sm:$0xff] %v5205_v55  ;;  %v4950_v52 = vadd.f32 %v4889_v23, %v4729_v16  ;;  %v5612_v43 = vsel %vm426_vm1, %v5610_v53, %v11631_v28  ;;  %v5296_v54 = vpack.c.bf16 %v5265_v35, %v5265_v35  ;;  %v5061_v53 = vpop.permute.xlu1 %5060  ;;  %v4501_v55 = vadd.f32 %v11518_v27, %v11424_v4  ;;  %v6032_v23 = vld [vmem:[#allocation3 + $0x29] sm:$0xff]  ;;  %v11649_v35 = vpop.f32.mrf.mxu3 }
 0x4be   :  { %5707 = vmatmul.bf16.vlgmr.msrb.gmra.mxu3 %v5612_v43  ;;  %v11645_v36 = vsel %vm426_vm1, %v6378_v38, %v11634_v61  ;;  %6241 = vmatpush.bf16.msrb.mxu1 %v8845_v49  ;;  %v4770_v21 = vunpack.c.l.b16 %v4264_v0  ;;  %v8844_v38 = vld [vmem:[#allocation6 + $0x58] sm:$0xff]  ;;  %v6063_v27 = vpack.c.bf16 %v6032_v23, %v6032_v23 }
 0x4bf   :  { %12829 = vst [vmem:[#allocation14_spill] sm:$0xff] %v11645_v36  ;;  %v4978_v18 = vmax.f32 %v4950_v52, 0.0  ;;  %4928 = vmatmul.bf16.gmra.mxu1 %v4798_v41  ;;  %v5371_v16 = vunpack.c.l.b16 %v5296_v54  ;;  %v4730_v60 = vadd.f32 %v11520_v45, %v4501_v55  ;;  %v5829_v52 = vrot.slane %v11611_v46, 2 }
 0x4c0   :  { %v4772_v46 = vpack.c.b16 %v4770_v21, %v11470_v26  ;;  %v11664_v36 = vunpack.c.l.b16 %v6063_v27  ;;  %v8842_v26 = vld [vmem:[#allocation6 + $0x48] sm:$0xff] }
 0x4c1   :  { %v5174_v10 = vmul.f32 %v5061_v53, %v4978_v18  ;;  %v11651_v43 = vpack.c.b16 %v5371_v16, %v5370_v1  ;;  %v8843_v53 = vld [vmem:[#allocation6 + $0x50] sm:$0xff] }
 0x4c2   :  { %6242 = vmatpush.bf16.msrb.mxu1 %v8844_v38  ;;  %v5066_v38 = vpop.permute.xlu2 %5065 }
 0x4c3   :  { %v5206_v54 = vmul.f32 %v11555_v63, %v5174_v10  ;;  %5488 = vmatmul.bf16.gmra.mxu2 %v11651_v43  ;;  %v5830_v4 = vrot.slane %v11651_v43, 2 }
 0x4c4   :  { %v4891_v31 = vpop.f32.mrf.mxu1  ;;  %v5266_v41 = vld [vmem:[#allocation3 + $0x30] sm:$0xff] }
 0x4c5   :  { %v6033_v1 = vld [vmem:[#allocation3 + $0x31] sm:$0xff]  ;;  %5234 = vst [vmem:[#allocation3 + $0x3b] sm:$0xff] %v5206_v54  ;;  %v4951_v49 = vadd.f32 %v4891_v31, %v4730_v60  ;;  %v5831_v45 = vsel %vm646_vm0, %v5829_v52, %v5830_v4  ;;  %v5297_v0 = vpack.c.bf16 %v5266_v41, %v5266_v41  ;;  %v4502_v60 = vadd.f32 %v11526_v39, %v11437_v5  ;;  %v11680_v39 = vpop.f32.mrf.mxu0 }
 0x4c6   :  { %v6064_v18 = vpack.c.bf16 %v6033_v1, %v6033_v1  ;;  %5928 = vmatmul.bf16.vlgmr.msrb.gmra.mxu0 %v5831_v45  ;;  %6243 = vmatpush.bf16.msrb.mxu1 %v8843_v53  ;;  %v11672_v41 = vrot.slane %v4772_v46, 2  ;;  %v11675_v1 = vpop.f32.mrf.mxu3  ;;  %v4234_v45 = vld [vmem:[#allocation2 + $0xf2] sm:$0x3] }
 0x4c7   :  { %v4979_v55 = vmax.f32 %v4951_v49, 0.0  ;;  %v5372_v10 = vunpack.c.l.b16 %v5297_v0  ;;  %v4731_v21 = vadd.f32 %v11528_v11, %v4502_v60  ;;  %v12830_v11 = vrot.slane %v11461_v17, 2  ;;  %v8841_v60 = vld [vmem:[#allocation6 + $0x40] sm:$0xff] }
 0x4c8   :  { %v11666_v23 = vunpack.c.l.b16 %v6064_v18 }
 0x4c9   :  { %v5175_v54 = vmul.f32 %v5066_v38, %v4979_v55  ;;  %v5598_v31 = vpack.c.b16 %v5372_v10, %v5371_v16  ;;  %v4800_v55 = vsel %vm646_vm0, %v12830_v11, %v11672_v41  ;;  %v4265_v38 = vpack.c.bf16 %v4234_v45, %v4234_v45 }
 0x4ca   :  { %v6366_v52 = vpack.c.b16 %v11666_v23, %v11664_v36  ;;  %6244 = vmatpush.bf16.msrb.mxu1 %v8842_v26  ;;  %v5071_v26 = vpop.permute.xlu0 %5070 }
 0x4cb   :  { %v5207_v27 = vmul.f32 %v11555_v63, %v5175_v54  ;;  %v5613_v49 = vrot.slane %v5598_v31, 1 }
 0x4cc   :  { %v11678_v0 = vrot.slane %v6366_v52, 1  ;;  %v4894_v18 = vpop.f32.mrf.mxu1  ;;  %v5267_v5 = vld [vmem:[#allocation3 + $0x38] sm:$0xff] }
 0x4cd   :  { %5235 = vst [vmem:[#allocation3 + $0x43] sm:$0xff] %v5207_v27  ;;  %v4952_v16 = vadd.f32 %v4894_v18, %v4731_v21  ;;  %v5614_v46 = vsel %vm426_vm1, %v11631_v28, %v5613_v49  ;;  %v5298_v53 = vpack.c.bf16 %v5267_v5, %v5267_v5  ;;  %v6034_v28 = vld [vmem:[#allocation3 + $0x39] sm:$0xff]  ;;  %v4503_v21 = vadd.f32 %v11536_v32, %v11444_v2 }
 0x4ce   :  { %5712 = vmatmul.bf16.gmra.mxu3 %v5614_v46  ;;  %v11691_v54 = vsel %vm426_vm1, %v11634_v61, %v11678_v0  ;;  %6245 = vmatpush.bf16.msrb.mxu1 %v8841_v60  ;;  %v4771_v18 = vunpack.c.l.b16 %v4265_v38  ;;  %v11706_v60 = vpop.f32.mrf.mxu0 }
 0x4cf   :  { %v4980_v31 = vmax.f32 %v4952_v16, 0.0  ;;  %4933 = vmatmul.bf16.gmra.mxu1 %v4800_v55  ;;  %v5373_v52 = vunpack.c.l.b16 %v5298_v53  ;;  %v4732_v45 = vadd.f32 %v11543_v7, %v4503_v21  ;;  %v6065_v16 = vpack.c.bf16 %v6034_v28, %v6034_v28  ;;  %v11701_v55 = vpop.f32.mrf.mxu3 }
 0x4d0   :  { %v4773_v38 = vpack.c.b16 %v4771_v18, %v4771_v18 }
 0x4d1   :  { %v5176_v27 = vmul.f32 %v5071_v26, %v4980_v31  ;;  %v11695_v17 = vpack.c.b16 %v5373_v52, %v5372_v10  ;;  %v11708_v28 = vunpack.c.l.b16 %v6065_v16 }
 0x4d3   :  { %v5208_v5 = vmul.f32 %v11555_v63, %v5176_v27  ;;  %5493 = vmatmul.bf16.gmra.mxu2 %v11695_v17  ;;  %v5832_v61 = vrot.slane %v11695_v17, 2  ;;  %v5076_v27 = vpop.permute.xlu1 %5075  ;;  %v4504_v17 = vadd.f32 %v11550_v8, %v11454_v58  ;;  %v8853_v8 = vld [vmem:[#allocation6 + $0x120] sm:$0xff] }
 0x4d4   :  { %v4896_v46 = vpop.f32.mrf.mxu1  ;;  %v5268_v53 = vld [vmem:[#allocation3 + $0x40] sm:$0xff]  ;;  %6470 = vmatpush.bf16.msrb.mxu2 %v8853_v8 }
 0x4d5   :  { %v6035_v11 = vld [vmem:[#allocation3 + $0x41] sm:$0xff]  ;;  %5236 = vst [vmem:[#allocation3 + $0x4b] sm:$0xff] %v5208_v5  ;;  %v4953_v2 = vadd.f32 %v4896_v46, %v4732_v45  ;;  %v5833_v32 = vsel %vm646_vm0, %v5830_v4, %v5832_v61  ;;  %v5299_v10 = vpack.c.bf16 %v5268_v53, %v5268_v53  ;;  %v4801_v5 = vrot.slane %v4773_v38, 2 }
 0x4d6   :  { %v6066_v7 = vpack.c.bf16 %v6035_v11, %v6035_v11  ;;  %5933 = vmatmul.bf16.gmra.mxu0 %v5833_v32  ;;  %v4733_v18 = vadd.f32 %v11557_v13, %v4504_v17 }
 0x4d7   :  { %v4981_v31 = vmax.f32 %v4953_v2, 0.0  ;;  %v5374_v26 = vunpack.c.l.b16 %v5299_v10 }
 0x4d8   :  { %v11710_v21 = vunpack.c.l.b16 %v6066_v7  ;;  %v11728_v7 = vpop.f32.mrf.mxu3 }
 0x4d9   :  { %v5177_v45 = vmul.f32 %v5076_v27, %v4981_v31  ;;  %v5599_v43 = vpack.c.b16 %v5374_v26, %v5373_v52  ;;  %v4802_v52 = vsel %vm646_vm0, %v11672_v41, %v4801_v5  ;;  %v5081_v27 = vpop.permute.xlu2 %5080 }
 0x4da   :  { %v6367_v4 = vpack.c.b16 %v11710_v21, %v11708_v28 }
 0x4db   :  { %v5209_v46 = vmul.f32 %v11555_v63, %v5177_v45  ;;  %v5615_v53 = vrot.slane %v5599_v43, 1  ;;  %v11732_v45 = vpop.f32.mrf.mxu0 }
 0x4dc   :  { %v11718_v11 = vrot.slane %v6367_v4, 1  ;;  %v4899_v16 = vpop.f32.mrf.mxu1  ;;  %v5269_v2 = vld [vmem:[#allocation3 + $0x48] sm:$0xff] }
 0x4dd   :  { %5237 = vst [vmem:[#allocation3 + $0x53] sm:$0xff] %v5209_v46  ;;  %v4954_v32 = vadd.f32 %v4899_v16, %v4733_v18  ;;  %v5616_v10 = vsel %vm426_vm1, %v5613_v49, %v5615_v53  ;;  %v5300_v58 = vpack.c.bf16 %v5269_v2, %v5269_v2  ;;  %v6036_v17 = vld [vmem:[#allocation3 + $0x49] sm:$0xff]  ;;  %v4505_v49 = vadd.f32 %v11563_v3, %v11459_v15  ;;  %v6027_v4 = vld [vmem:[#allocation3 + $0x1] sm:$0xff] }
 0x4de   :  { %5717 = vmatmul.bf16.gmra.mxu3 %v5616_v10  ;;  %v11726_v13 = vsel %vm426_vm1, %v11678_v0, %v11718_v11  ;;  %v6067_v46 = vpack.c.bf16 %v6036_v17, %v6036_v17  ;;  %v4506_v17 = vadd.f32 %v11580_v9, %v11467_v33 }
 0x4df   :  { %v4982_v38 = vmax.f32 %v4954_v32, 0.0  ;;  %4938 = vmatmul.bf16.gmra.mxu1 %v4802_v52  ;;  %v5375_v31 = vunpack.c.l.b16 %v5300_v58  ;;  %v4734_v0 = vadd.f32 %v11566_v34, %v4505_v49  ;;  %v6058_v32 = vpack.c.bf16 %v6027_v4, %v6027_v4 }
 0x4e0   :  { %v11741_v52 = vunpack.c.l.b16 %v6067_v46  ;;  %v11747_v49 = vpop.f32.mrf.mxu3 }
 0x4e1   :  { %v5178_v43 = vmul.f32 %v5081_v27, %v4982_v38  ;;  %v11734_v41 = vpack.c.b16 %v5375_v31, %v5374_v26  ;;  %v5086_v27 = vpop.permute.xlu0 %5085  ;;  %v6134_v4 = vunpack.c.l.b16 %v6058_v32 }
 0x4e3   :  { %v5210_v5 = vmul.f32 %v11555_v63, %v5178_v43  ;;  %5498 = vmatmul.bf16.gmra.mxu2 %v11734_v41  ;;  %v5834_v18 = vrot.slane %v11734_v41, 2 }
 0x4e4   :  { %v4901_v16 = vpop.f32.mrf.mxu1  ;;  %v5270_v2 = vld [vmem:[#allocation3 + $0x50] sm:$0xff] }
 0x4e5   :  { %v6037_v10 = vld [vmem:[#allocation3 + $0x51] sm:$0xff]  ;;  %5238 = vst [vmem:[#allocation3 + $0x5b] sm:$0xff] %v5210_v5  ;;  %v4955_v15 = vadd.f32 %v4901_v16, %v4734_v0  ;;  %v5835_v3 = vsel %vm646_vm0, %v5832_v61, %v5834_v18  ;;  %v5301_v26 = vpack.c.bf16 %v5270_v2, %v5270_v2  ;;  %v4735_v0 = vadd.f32 %v11583_v50, %v4506_v17  ;;  %v11752_v5 = vpop.f32.mrf.mxu0 }
 0x4e6   :  { %v6068_v58 = vpack.c.bf16 %v6037_v10, %v6037_v10  ;;  %5938 = vmatmul.bf16.gmra.mxu0 %v5835_v3 }
 0x4e7   :  { %v4983_v8 = vmax.f32 %v4955_v15, 0.0  ;;  %v5376_v34 = vunpack.c.l.b16 %v5301_v26 }
 0x4e8   :  { %v11743_v38 = vunpack.c.l.b16 %v6068_v58  ;;  %v5091_v58 = vpop.permute.xlu1 %5090 }
 0x4e9   :  { %v5179_v43 = vmul.f32 %v5086_v27, %v4983_v8  ;;  %v5600_v41 = vpack.c.b16 %v5376_v34, %v5375_v31  ;;  %v6162_v31 = vpack.c.b16 %v11589_v57, %v6134_v4  ;;  %v4507_v27 = vadd.f32 %v11600_v6, %v11474_v42  ;;  %v11766_v57 = vpop.f32.mrf.mxu3 }
 0x4ea   :  { %v6368_v61 = vpack.c.b16 %v11743_v38, %v11741_v52 }
 0x4eb   :  { %v5211_v46 = vmul.f32 %v11555_v63, %v5179_v43  ;;  %v5617_v16 = vrot.slane %v5600_v41, 1 }
 0x4ec   :  { %v6385_v2 = vrot.slane %v6368_v61, 1  ;;  %v4904_v10 = vpop.f32.mrf.mxu1  ;;  %v5271_v15 = vld [vmem:[#allocation3 + $0x58] sm:$0xff] }
 0x4ed   :  { %5239 = vst [vmem:[#allocation3 + $0x63] sm:$0xff] %v5211_v46  ;;  %v4956_v33 = vadd.f32 %v4904_v10, %v4735_v0  ;;  %v5618_v9 = vsel %vm426_vm1, %v5615_v53, %v5617_v16  ;;  %v5302_v32 = vpack.c.bf16 %v5271_v15, %v5271_v15  ;;  %v6038_v8 = vld [vmem:[#allocation3 + $0x59] sm:$0xff]  ;;  %v4736_v53 = vadd.f32 %v11607_v24, %v4507_v27  ;;  %v11771_v10 = vpop.f32.mrf.mxu0  ;;  %v8852_v24 = vld [vmem:[#allocation6 + $0x118] sm:$0xff] }
 0x4ee   :  { %5722 = vmatmul.bf16.gmra.mxu3 %v5618_v9  ;;  %v11759_v3 = vsel %vm426_vm1, %v11718_v11, %v6385_v2  ;;  %v6069_v4 = vpack.c.bf16 %v6038_v8, %v6038_v8  ;;  %6471 = vmatpush.bf16.msrb.mxu2 %v8852_v24  ;;  %v5101_v24 = vpop.permute.xlu0 %5100 }
 0x4ef   :  { %v4984_v50 = vmax.f32 %v4956_v33, 0.0  ;;  %6246 = vmatmul.bf16.vlgmr.msrb.gmra.mxu1 %v6162_v31  ;;  %v5377_v26 = vunpack.c.l.b16 %v5302_v32 }
 0x4f0   :  { %v11774_v31 = vunpack.c.l.b16 %v6069_v4 }
 0x4f1   :  { %v5180_v17 = vmul.f32 %v5091_v58, %v4984_v50  ;;  %v11763_v43 = vpack.c.b16 %v5377_v26, %v5376_v34  ;;  %v5096_v50 = vpop.permute.xlu2 %5095  ;;  %v4508_v58 = vadd.f32 %v11617_v25, %v11479_v51  ;;  %v11789_v51 = vpack.c.b16 %v11619_v40, %v11591_v29 }
 0x4f3   :  { %v5212_v41 = vmul.f32 %v11555_v63, %v5180_v17  ;;  %5503 = vmatmul.bf16.gmra.mxu2 %v11763_v43  ;;  %v5836_v11 = vrot.slane %v11763_v43, 2  ;;  %v4737_v17 = vadd.f32 %v11625_v44, %v4508_v58 }
 0x4f4   :  { %v4906_v61 = vpop.f32.mrf.mxu1  ;;  %v5272_v0 = vld [vmem:[#allocation3 + $0x60] sm:$0xff] }
 0x4f5   :  { %v6039_v46 = vld [vmem:[#allocation3 + $0x61] sm:$0xff]  ;;  %5240 = vst [vmem:[#allocation3 + $0x6b] sm:$0xff] %v5212_v41  ;;  %v4957_v42 = vadd.f32 %v4906_v61, %v4736_v53  ;;  %v5837_v6 = vsel %vm646_vm0, %v5834_v18, %v5836_v11  ;;  %v5303_v34 = vpack.c.bf16 %v5272_v0, %v5272_v0  ;;  %v11784_v0 = vpop.f32.mrf.mxu3 }
 0x4f6   :  { %v6070_v15 = vpack.c.bf16 %v6039_v46, %v6039_v46  ;;  %5943 = vmatmul.bf16.gmra.mxu0 %v5837_v6 }
 0x4f7   :  { %v4985_v33 = vmax.f32 %v4957_v42, 0.0  ;;  %v5378_v9 = vunpack.c.l.b16 %v5303_v34 }
 0x4f8   :  { %v11776_v32 = vunpack.c.l.b16 %v6070_v15 }
 0x4f9   :  { %v5181_v8 = vmul.f32 %v5096_v50, %v4985_v33  ;;  %v5601_v27 = vpack.c.b16 %v5378_v9, %v5377_v26  ;;  %v11794_v26 = vpop.f32.mrf.mxu0 }
 0x4fa   :  { %v6369_v18 = vpack.c.b16 %v11776_v32, %v11774_v31 }
 0x4fb   :  { %v5213_v43 = vmul.f32 %v11555_v63, %v5181_v8  ;;  %v5619_v53 = vrot.slane %v5601_v27, 1 }
 0x4fc   :  { %v6387_v41 = vrot.slane %v6369_v18, 1  ;;  %v4909_v61 = vpop.f32.mrf.mxu1  ;;  %v5273_v4 = vld [vmem:[#allocation3 + $0x68] sm:$0xff] }
 0x4fd   :  { %5241 = vst [vmem:[#allocation3 + $0x73] sm:$0xff] %v5213_v43  ;;  %v4958_v46 = vadd.f32 %v4909_v61, %v4737_v17  ;;  %v5620_v42 = vsel %vm426_vm1, %v5617_v16, %v5619_v53  ;;  %v5304_v25 = vpack.c.bf16 %v5273_v4, %v5273_v4  ;;  %v6040_v15 = vld [vmem:[#allocation3 + $0x69] sm:$0xff]  ;;  %v4509_v16 = vadd.f32 %v11649_v35, %v11483_v12  ;;  %v11802_v12 = vpop.f32.mrf.mxu3 }
 0x4fe   :  { %5727 = vmatmul.bf16.gmra.mxu3 %v5620_v42  ;;  %v11792_v44 = vsel %vm426_vm1, %v6385_v2, %v6387_v41  ;;  %v6071_v58 = vpack.c.bf16 %v6040_v15, %v6040_v15  ;;  %v5106_v42 = vpop.permute.xlu1 %5105 }
 0x4ff   :  { %v4986_v6 = vmax.f32 %v4958_v46, 0.0  ;;  %6251 = vmatmul.bf16.gmra.mxu1 %v11789_v51  ;;  %v5379_v34 = vunpack.c.l.b16 %v5304_v25  ;;  %v4738_v29 = vadd.f32 %v11654_v19, %v4509_v16  ;;  %v4510_v25 = vadd.f32 %v11675_v1, %v11487_v22 }
 0x500   :  { %v11804_v19 = vunpack.c.l.b16 %v6071_v58  ;;  %v11819_v22 = vpack.c.b16 %v11664_v36, %v11621_v30 }
 0x501   :  { %v5182_v33 = vmul.f32 %v5101_v24, %v4986_v6  ;;  %v5400_v50 = vpack.c.b16 %v5379_v34, %v5378_v9  ;;  %v11810_v6 = vpop.f32.mrf.mxu0  ;;  %v4739_v16 = vadd.f32 %v11680_v39, %v4510_v25 }
 0x503   :  { %v5214_v40 = vmul.f32 %v11555_v63, %v5182_v33  ;;  %5508 = vmatmul.bf16.gmra.mxu2 %v5400_v50  ;;  %v5838_v2 = vrot.slane %v5400_v50, 2 }
 0x504   :  { %v4911_v8 = vpop.f32.mrf.mxu1  ;;  %v5274_v27 = vld [vmem:[#allocation3 + $0x70] sm:$0xff] }
 0x505   :  { %v6041_v18 = vld [vmem:[#allocation3 + $0x71] sm:$0xff]  ;;  %5242 = vst [vmem:[#allocation3 + $0x7b] sm:$0xff] %v5214_v40  ;;  %v4959_v17 = vadd.f32 %v4911_v8, %v4738_v29  ;;  %v5839_v43 = vsel %vm646_vm0, %v5836_v11, %v5838_v2  ;;  %v5305_v61 = vpack.c.bf16 %v5274_v27, %v5274_v27 }
 0x506   :  { %v6072_v4 = vpack.c.bf16 %v6041_v18, %v6041_v18  ;;  %5948 = vmatmul.bf16.gmra.mxu0 %v5839_v43 }
 0x507   :  { %v4987_v35 = vmax.f32 %v4959_v17, 0.0  ;;  %v5380_v9 = vunpack.c.l.b16 %v5305_v61  ;;  %v5111_v17 = vpop.permute.xlu2 %5110  ;;  %v4511_v61 = vadd.f32 %v11701_v55, %v11495_v37 }
 0x508   :  { %v11806_v46 = vunpack.c.l.b16 %v6072_v4  ;;  %v11827_v4 = vpop.f32.mrf.mxu3 }
 0x509   :  { %v5183_v24 = vmul.f32 %v5106_v42, %v4987_v35  ;;  %v5602_v15 = vpack.c.b16 %v5380_v9, %v5379_v34  ;;  %v4740_v30 = vadd.f32 %v11706_v60, %v4511_v61  ;;  %v11832_v36 = vpop.f32.mrf.mxu0 }
 0x50a   :  { %v6370_v11 = vpack.c.b16 %v11806_v46, %v11804_v19 }
 0x50b   :  { %v5215_v33 = vmul.f32 %v11555_v63, %v5183_v24  ;;  %v5621_v50 = vrot.slane %v5602_v15, 1 }
 0x50c   :  { %v6389_v29 = vrot.slane %v6370_v11, 1  ;;  %v4914_v40 = vpop.f32.mrf.mxu1  ;;  %v5275_v58 = vld [vmem:[#allocation3 + $0x78] sm:$0xff] }
 0x50d   :  { %5243 = vst [vmem:[#allocation3 + $0x83] sm:$0xff] %v5215_v33  ;;  %v4960_v8 = vadd.f32 %v4914_v40, %v4739_v16  ;;  %v5622_v27 = vsel %vm426_vm1, %v5619_v53, %v5621_v50  ;;  %v5306_v1 = vpack.c.bf16 %v5275_v58, %v5275_v58  ;;  %v6042_v43 = vld [vmem:[#allocation3 + $0x79] sm:$0xff]  ;;  %v8851_v16 = vld [vmem:[#allocation6 + $0x110] sm:$0xff] }
 0x50e   :  { %5732 = vmatmul.bf16.gmra.mxu3 %v5622_v27  ;;  %v11822_v34 = vsel %vm426_vm1, %v6387_v41, %v6389_v29  ;;  %v6073_v25 = vpack.c.bf16 %v6042_v43, %v6042_v43  ;;  %6472 = vmatpush.bf16.msrb.mxu2 %v8851_v16  ;;  %v5116_v27 = vpop.permute.xlu0 %5115  ;;  %v4513_v16 = vadd.f32 %v11747_v49, %v11507_v47 }
 0x50f   :  { %v4988_v39 = vmax.f32 %v4960_v8, 0.0  ;;  %6256 = vmatmul.bf16.gmra.mxu1 %v11819_v22  ;;  %v5381_v18 = vunpack.c.l.b16 %v5306_v1  ;;  %v4512_v1 = vadd.f32 %v11728_v7, %v11501_v48  ;;  %v11855_v7 = vpack.c.b16 %v11708_v28, %v11666_v23 }
 0x510   :  { %v11838_v58 = vunpack.c.l.b16 %v6073_v25  ;;  %v11847_v61 = vpop.f32.mrf.mxu3  ;;  %v4742_v23 = vadd.f32 %v11752_v5, %v4513_v16 }
 0x511   :  { %v5184_v53 = vmul.f32 %v5111_v17, %v4988_v39  ;;  %v11829_v35 = vpack.c.b16 %v5381_v18, %v5380_v9  ;;  %v4741_v43 = vadd.f32 %v11732_v45, %v4512_v1 }
 0x513   :  { %v5216_v41 = vmul.f32 %v11555_v63, %v5184_v53  ;;  %5513 = vmatmul.bf16.gmra.mxu2 %v11829_v35  ;;  %v5840_v42 = vrot.slane %v11829_v35, 2 }
 0x514   :  { %v4916_v24 = vpop.f32.mrf.mxu1  ;;  %v5276_v15 = vld [vmem:[#allocation3 + $0x80] sm:$0xff] }
 0x515   :  { %v6043_v11 = vld [vmem:[#allocation3 + $0x81] sm:$0xff]  ;;  %5244 = vst [vmem:[#allocation3 + $0x8b] sm:$0xff] %v5216_v41  ;;  %v4961_v37 = vadd.f32 %v4916_v24, %v4740_v30  ;;  %v5841_v55 = vsel %vm646_vm0, %v5838_v2, %v5840_v42  ;;  %v5307_v9 = vpack.c.bf16 %v5276_v15, %v5276_v15  ;;  %v11850_v24 = vpop.f32.mrf.mxu0 }
 0x516   :  { %v6074_v33 = vpack.c.bf16 %v6043_v11, %v6043_v11  ;;  %5953 = vmatmul.bf16.gmra.mxu0 %v5841_v55  ;;  %v5121_v55 = vpop.permute.xlu1 %5120 }
 0x517   :  { %v4989_v60 = vmax.f32 %v4961_v37, 0.0  ;;  %v5382_v40 = vunpack.c.l.b16 %v5307_v9 }
 0x518   :  { %v11840_v8 = vunpack.c.l.b16 %v6074_v33 }
 0x519   :  { %v5185_v39 = vmul.f32 %v5116_v27, %v4989_v60  ;;  %v5603_v17 = vpack.c.b16 %v5382_v40, %v5381_v18 }
 0x51a   :  { %v6371_v2 = vpack.c.b16 %v11840_v8, %v11838_v58 }
 0x51b   :  { %v5217_v53 = vmul.f32 %v11555_v63, %v5185_v39  ;;  %v5623_v35 = vrot.slane %v5603_v17, 1  ;;  %v11869_v17 = vpop.f32.mrf.mxu3 }
 0x51c   :  { %v6391_v30 = vrot.slane %v6371_v2, 1  ;;  %v4919_v41 = vpop.f32.mrf.mxu1  ;;  %v5277_v25 = vld [vmem:[#allocation3 + $0x88] sm:$0xff] }
 0x51d   :  { %5245 = vst [vmem:[#allocation3 + $0x93] sm:$0xff] %v5217_v53  ;;  %v4962_v15 = vadd.f32 %v4919_v41, %v4741_v43  ;;  %v5624_v48 = vsel %vm426_vm1, %v5621_v50, %v5623_v35  ;;  %v5308_v18 = vpack.c.bf16 %v5277_v25, %v5277_v25  ;;  %v6044_v9 = vld [vmem:[#allocation3 + $0x89] sm:$0xff]  ;;  %v11874_v5 = vpop.f32.mrf.mxu0 }
 0x51e   :  { %5737 = vmatmul.bf16.gmra.mxu3 %v5624_v48  ;;  %v11858_v45 = vsel %vm426_vm1, %v6389_v29, %v6391_v30  ;;  %v6075_v60 = vpack.c.bf16 %v6044_v9, %v6044_v9  ;;  %v5126_v48 = vpop.permute.xlu2 %5125 }
 0x51f   :  { %v4990_v11 = vmax.f32 %v4962_v15, 0.0  ;;  %6261 = vmatmul.bf16.gmra.mxu1 %v11855_v7  ;;  %v5383_v37 = vunpack.c.l.b16 %v5308_v18  ;;  %v4514_v18 = vadd.f32 %v11766_v57, %v11515_v14  ;;  %v11891_v14 = vpack.c.b16 %v11741_v52, %v11710_v21 }
 0x520   :  { %v11876_v25 = vunpack.c.l.b16 %v6075_v60  ;;  %v4515_v21 = vadd.f32 %v11784_v0, %v11523_v62 }
 0x521   :  { %v5186_v33 = vmul.f32 %v5121_v55, %v4990_v11  ;;  %v11863_v50 = vpack.c.b16 %v5383_v37, %v5382_v40  ;;  %v4743_v9 = vadd.f32 %v11771_v10, %v4514_v18 }
 0x523   :  { %v5218_v28 = vmul.f32 %v11555_v63, %v5186_v33  ;;  %5518 = vmatmul.bf16.gmra.mxu2 %v11863_v50  ;;  %v5842_v29 = vrot.slane %v11863_v50, 2  ;;  %v11899_v10 = vpop.f32.mrf.mxu3 }
 0x524   :  { %v4921_v27 = vpop.f32.mrf.mxu1  ;;  %v5278_v1 = vld [vmem:[#allocation3 + $0x90] sm:$0xff] }
 0x525   :  { %v6045_v39 = vld [vmem:[#allocation3 + $0x91] sm:$0xff]  ;;  %5246 = vst [vmem:[#allocation3 + $0x9b] sm:$0xff] %v5218_v28  ;;  %v4963_v2 = vadd.f32 %v4921_v27, %v4742_v23  ;;  %v5843_v47 = vsel %vm646_vm0, %v5840_v42, %v5842_v29  ;;  %v5309_v49 = vpack.c.bf16 %v5278_v1, %v5278_v1  ;;  %v11904_v52 = vpop.f32.mrf.mxu0 }
 0x526   :  { %v6076_v40 = vpack.c.bf16 %v6045_v39, %v6045_v39  ;;  %v11872_v43 = vpop.f32.mrf.mxu2  ;;  %5958 = vmatmul.bf16.gmra.mxu0 %v5843_v47 }
 0x527   :  { %v4991_v53 = vmax.f32 %v4963_v2, 0.0  ;;  %v5384_v41 = vunpack.c.l.b16 %v5309_v49 }
 0x528   :  { %v11878_v15 = vunpack.c.l.b16 %v6076_v40 }
 0x529   :  { %v5187_v11 = vmul.f32 %v5126_v48, %v4991_v53  ;;  %v5604_v55 = vpack.c.b16 %v5384_v41, %v5383_v37  ;;  %v8850_v37 = vld [vmem:[#allocation6 + $0x108] sm:$0xff]  ;;  %v11912_v53 = vld [vmem:[%s12707_s2] ss:$0 sm:$0xff] }
 0x52a   :  { %v6372_v42 = vpack.c.b16 %v11878_v15, %v11876_v25  ;;  %6473 = vmatpush.bf16.msrb.mxu2 %v8850_v37  ;;  %v4516_v37 = vadd.f32 %v11802_v12, %v11533_v20  ;;  %v11941_v20 = vld [vmem:[%s12713_s8] ss:$0 sm:$0xff] }
 0x52b   :  { %v5219_v16 = vmul.f32 %v11555_v63, %v5187_v11  ;;  %v5625_v33 = vrot.slane %v5604_v55, 1 }
 0x52c   :  { %v11886_v50 = vrot.slane %v6372_v42, 1  ;;  %v4924_v23 = vpop.f32.mrf.mxu1  ;;  %v5279_v28 = vld [vmem:[#allocation3 + $0x98] sm:$0xff] }
 0x52d   :  { %5247 = vst [vmem:[#allocation3 + $0xa3] sm:$0xff] %v5219_v16  ;;  %v4964_v60 = vadd.f32 %v4924_v23, %v4743_v9  ;;  %v5626_v27 = vsel %vm426_vm1, %v5623_v35, %v5625_v33  ;;  %v5310_v57 = vpack.c.bf16 %v5279_v28, %v5279_v28  ;;  %v5131_v35 = vpop.permute.xlu0 %5130  ;;  %v6046_v47 = vld [vmem:[#allocation3 + $0x99] sm:$0xff] }
 0x52e   :  { %v11893_v1 = vpop.f32.mrf.mxu2  ;;  %5742 = vmatmul.bf16.gmra.mxu3 %v5626_v27  ;;  %v11897_v63 = vsel %vm426_vm1, %v6391_v30, %v11886_v50  ;;  %v4744_v30 = vadd.f32 %v11794_v26, %v4515_v21  ;;  %v6077_v11 = vpack.c.bf16 %v6046_v47, %v6046_v47  ;;  %v4745_v21 = vadd.f32 %v11810_v6, %v4516_v37 }
 0x52f   :  { %v4992_v39 = vmax.f32 %v4964_v60, 0.0  ;;  %6266 = vmatmul.bf16.gmra.mxu1 %v11891_v14  ;;  %v5385_v2 = vunpack.c.l.b16 %v5310_v57  ;;  %v5136_v57 = vpop.permute.xlu1 %5135 }
 0x530   :  { %v11920_v60 = vunpack.c.l.b16 %v6077_v11 }
 0x531   :  { %v5188_v49 = vmul.f32 %v5131_v35, %v4992_v39  ;;  %v11906_v40 = vpack.c.b16 %v5385_v2, %v5384_v41  ;;  %v11926_v39 = vpop.f32.mrf.mxu3 }
 0x533   :  { %v5220_v48 = vmul.f32 %v11912_v53, %v5188_v49  ;;  %5523 = vmatmul.bf16.gmra.mxu2 %v11906_v40  ;;  %v5844_v18 = vrot.slane %v11906_v40, 2  ;;  %v11931_v49 = vpop.f32.mrf.mxu0 }
 0x534   :  { %v4926_v62 = vpop.f32.mrf.mxu1  ;;  %v5280_v0 = vld [vmem:[#allocation3 + $0xa0] sm:$0xff] }
 0x535   :  { %v6047_v55 = vld [vmem:[#allocation3 + $0xa1] sm:$0xff]  ;;  %5248 = vst [vmem:[#allocation3 + $0xab] sm:$0xff] %v5220_v48  ;;  %v4965_v41 = vadd.f32 %v4926_v62, %v4744_v30  ;;  %v5845_v42 = vsel %vm646_vm0, %v5842_v29, %v5844_v18  ;;  %v5311_v26 = vpack.c.bf16 %v5280_v0, %v5280_v0  ;;  %v11947_v62 = vpack.c.b16 %v11774_v31, %v11743_v38 }
 0x536   :  { %v6078_v9 = vpack.c.bf16 %v6047_v55, %v6047_v55  ;;  %v11918_v16 = vpop.f32.mrf.mxu2  ;;  %5963 = vmatmul.bf16.gmra.mxu0 %v5845_v42  ;;  %v4517_v38 = vadd.f32 %v11827_v4, %v11541_v59 }
 0x537   :  { %v4993_v23 = vmax.f32 %v4965_v41, 0.0  ;;  %v5386_v28 = vunpack.c.l.b16 %v5311_v26 }
 0x538   :  { %v11922_v27 = vunpack.c.l.b16 %v6078_v9  ;;  %v5141_v9 = vpop.permute.xlu2 %5140 }
 0x539   :  { %v5189_v35 = vmul.f32 %v5136_v57, %v4993_v23  ;;  %v5605_v47 = vpack.c.b16 %v5386_v28, %v5385_v2 }
 0x53a   :  { %v6373_v29 = vpack.c.b16 %v11922_v27, %v11920_v60 }
 0x53b   :  { %v5221_v40 = vmul.f32 %v11912_v53, %v5189_v35  ;;  %v11934_v30 = vrot.slane %v5605_v47, 1 }
 0x53c   :  { %v11936_v48 = vrot.slane %v6373_v29, 1  ;;  %v4929_v12 = vpop.f32.mrf.mxu1  ;;  %v5281_v2 = vld [vmem:[#allocation3 + $0xa8] sm:$0xff] }
 0x53d   :  { %5249 = vst [vmem:[#allocation3 + $0xb3] sm:$0xff] %v5221_v40  ;;  %v4966_v11 = vadd.f32 %v4929_v12, %v4745_v21  ;;  %v5628_v6 = vsel %vm426_vm1, %v5625_v33, %v11934_v30  ;;  %v5312_v0 = vpack.c.bf16 %v5281_v2, %v5281_v2  ;;  %v5549_v33 = vadd.f32 %v11941_v20, %v11872_v43  ;;  %v6048_v23 = vld [vmem:[#allocation3 + $0xa9] sm:$0xff] }
 0x53e   :  { %v11949_v55 = vpop.f32.mrf.mxu2  ;;  %5747 = vmatmul.bf16.gmra.mxu3 %v5628_v6  ;;  %v11954_v41 = vsel %vm426_vm1, %v11886_v50, %v11936_v48  ;;  %v4746_v50 = vadd.f32 %v11832_v36, %v4517_v38  ;;  %v6079_v40 = vpack.c.bf16 %v6048_v23, %v6048_v23  ;;  %v5146_v23 = vpop.permute.xlu0 %5145  ;;  %v5550_v38 = vadd.f32 %v11941_v20, %v11893_v1 }
 0x53f   :  { %v4994_v42 = vmax.f32 %v4966_v11, 0.0  ;;  %6271 = vmatmul.bf16.gmra.mxu1 %v11947_v62  ;;  %v5387_v26 = vunpack.c.l.b16 %v5312_v0 }
 0x541   :  { %v5190_v31 = vmul.f32 %v5141_v9, %v4994_v42  ;;  %v5708_v57 = vpop.f32.mrf.mxu3  ;;  %v11961_v37 = vpack.c.b16 %v5387_v26, %v5386_v28  ;;  %v11974_v9 = vunpack.c.l.b16 %v6079_v40 }
 0x542   :  { %v5778_v35 = vadd.f32 %v5708_v57, %v5549_v33 }
 0x543   :  { %v5222_v47 = vmul.f32 %v11912_v53, %v5190_v31  ;;  %5528 = vmatmul.bf16.gmra.mxu2 %v11961_v37  ;;  %v5846_v29 = vrot.slane %v11961_v37, 2  ;;  %v5929_v21 = vpop.f32.mrf.mxu0  ;;  %v4518_v31 = vadd.f32 %v11847_v61, %v11547_v56 }
 0x544   :  { %v11967_v43 = vadd.f32 %v5929_v21, %v5778_v35  ;;  %v4931_v12 = vpop.f32.mrf.mxu1  ;;  %v5282_v2 = vld [vmem:[#allocation3 + $0xb0] sm:$0xff] }
 0x545   :  { %v6049_v59 = vld [vmem:[#allocation3 + $0xb1] sm:$0xff]  ;;  %5250 = vst [vmem:[#allocation3 + $0xbb] sm:$0xff] %v5222_v47  ;;  %v4967_v4 = vadd.f32 %v4931_v12, %v4746_v50  ;;  %v5847_v28 = vsel %vm646_vm0, %v5844_v18, %v5846_v29  ;;  %v5313_v36 = vpack.c.bf16 %v5282_v2, %v5282_v2  ;;  %v4747_v21 = vadd.f32 %v11850_v24, %v4518_v31 }
 0x546   :  { %v6080_v11 = vpack.c.bf16 %v6049_v59, %v6049_v59  ;;  %v11972_v6 = vpop.f32.mrf.mxu2  ;;  %5968 = vmatmul.bf16.gmra.mxu0 %v5847_v28  ;;  %v11997_v24 = vpack.c.b16 %v11804_v19, %v11776_v32  ;;  %v5551_v32 = vadd.f32 %v11941_v20, %v11918_v16  ;;  %v12831_v31 = vld [vmem:[#allocation21_spill] sm:$0xff] }
 0x547   :  { %v4995_v0 = vmax.f32 %v4967_v4, 0.0  ;;  %v5388_v42 = vunpack.c.l.b16 %v5313_v36  ;;  %v8849_v36 = vld [vmem:[#allocation6 + $0x100] sm:$0xff] }
 0x548   :  { %v11976_v33 = vunpack.c.l.b16 %v6080_v11  ;;  %6474 = vmatpush.bf16.msrb.mxu2 %v8849_v36 }
 0x549   :  { %v5191_v57 = vmul.f32 %v5146_v23, %v4995_v0  ;;  %v5710_v18 = vpop.f32.mrf.mxu3  ;;  %v5606_v35 = vpack.c.b16 %v5388_v42, %v5387_v26 }
 0x54a   :  { %v6374_v50 = vpack.c.b16 %v11976_v33, %v11974_v9  ;;  %v5779_v47 = vadd.f32 %v5710_v18, %v5550_v38 }
 0x54b   :  { %v5223_v40 = vmul.f32 %v11912_v53, %v5191_v57  ;;  %v5931_v12 = vpop.f32.mrf.mxu0  ;;  %v11986_v2 = vrot.slane %v5606_v35, 1  ;;  %v4519_v57 = vadd.f32 %v11869_v17, %v12831_v31  ;;  %v5156_v31 = vpop.permute.xlu2 %5155 }
 0x54c   :  { %v11988_v59 = vrot.slane %v6374_v50, 1  ;;  %v11990_v1 = vadd.f32 %v5931_v12, %v5779_v47  ;;  %v4934_v4 = vpop.f32.mrf.mxu1  ;;  %v5283_v56 = vld [vmem:[#allocation3 + $0xb8] sm:$0xff] }
 0x54d   :  { %5251 = vst [vmem:[#allocation3 + $0xc3] sm:$0xff] %v5223_v40  ;;  %v4968_v61 = vadd.f32 %v4934_v4, %v4747_v21  ;;  %v5630_v26 = vsel %vm426_vm1, %v11934_v30, %v11986_v2  ;;  %v5314_v28 = vpack.c.bf16 %v5283_v56, %v5283_v56  ;;  %v5151_v30 = vpop.permute.xlu1 %5150  ;;  %v6050_v19 = vld [vmem:[#allocation3 + $0xb9] sm:$0xff] }
 0x54e   :  { %v11999_v11 = vpop.f32.mrf.mxu2  ;;  %5752 = vmatmul.bf16.gmra.mxu3 %v5630_v26  ;;  %v12004_v0 = vsel %vm426_vm1, %v11936_v48, %v11988_v59  ;;  %v4748_v48 = vadd.f32 %v11874_v5, %v4519_v57  ;;  %v6081_v4 = vpack.c.bf16 %v6050_v19, %v6050_v19  ;;  %v5552_v57 = vadd.f32 %v11941_v20, %v11949_v55 }
 0x54f   :  { %v4996_v23 = vmax.f32 %v4968_v61, 0.0  ;;  %6276 = vmatmul.bf16.gmra.mxu1 %v11997_v24  ;;  %v5389_v38 = vunpack.c.l.b16 %v5314_v28 }
 0x551   :  { %v5192_v18 = vmul.f32 %v5151_v30, %v4996_v23  ;;  %v5713_v35 = vpop.f32.mrf.mxu3  ;;  %v12011_v50 = vpack.c.b16 %v5389_v38, %v5388_v42 }
 0x552   :  { %v5780_v47 = vadd.f32 %v5713_v35, %v5551_v32  ;;  %v12026_v32 = vunpack.c.l.b16 %v6081_v4 }
 0x553   :  { %v5224_v21 = vmul.f32 %v11912_v53, %v5192_v18  ;;  %5533 = vmatmul.bf16.gmra.mxu2 %v12011_v50  ;;  %v5848_v40 = vrot.slane %v12011_v50, 2  ;;  %v5934_v12 = vpop.f32.mrf.mxu0  ;;  %v12832_v18 = vld [vmem:[#allocation30_spill] sm:$0xff]  ;;  %v5554_v50 = vadd.f32 %v11941_v20, %v11999_v11 }
 0x554   :  { %v12017_v16 = vadd.f32 %v5934_v12, %v5780_v47  ;;  %v4936_v56 = vpop.f32.mrf.mxu1  ;;  %v5284_v61 = vld [vmem:[#allocation3 + $0xc0] sm:$0xff]  ;;  %v4520_v37 = vadd.f32 %v11899_v10, %v12832_v18 }
 0x555   :  { %v6051_v17 = vld [vmem:[#allocation3 + $0xc1] sm:$0xff]  ;;  %5252 = vst [vmem:[#allocation3 + $0xcb] sm:$0xff] %v5224_v21  ;;  %v4969_v26 = vadd.f32 %v4936_v56, %v4748_v48  ;;  %v5849_v5 = vsel %vm646_vm0, %v5846_v29, %v5848_v40  ;;  %v5315_v42 = vpack.c.bf16 %v5284_v61, %v5284_v61 }
 0x556   :  { %v6082_v28 = vpack.c.bf16 %v6051_v17, %v6051_v17  ;;  %v12024_v36 = vpop.f32.mrf.mxu2  ;;  %5973 = vmatmul.bf16.gmra.mxu0 %v5849_v5  ;;  %v4749_v12 = vadd.f32 %v11904_v52, %v4520_v37  ;;  %v12049_v52 = vpack.c.b16 %v11838_v58, %v11806_v46  ;;  %v5553_v46 = vadd.f32 %v11941_v20, %v11972_v6  ;;  %v12833_v58 = vld [vmem:[#allocation23_spill] sm:$0xff] }
 0x557   :  { %v4997_v23 = vmax.f32 %v4969_v26, 0.0  ;;  %v5390_v30 = vunpack.c.l.b16 %v5315_v42  ;;  %v4521_v37 = vadd.f32 %v11926_v39, %v12833_v58  ;;  %v8863_v39 = vld [vmem:[#allocation6 + $0x1f0] sm:$0xff] }
 0x558   :  { %v12028_v19 = vunpack.c.l.b16 %v6082_v28  ;;  %v8864_v28 = vld [vmem:[#allocation6 + $0x1f8] sm:$0xff] }
 0x559   :  { %v5193_v35 = vmul.f32 %v5156_v31, %v4997_v23  ;;  %v5715_v29 = vpop.f32.mrf.mxu3  ;;  %v5607_v47 = vpack.c.b16 %v5390_v30, %v5389_v38  ;;  %6688 = vmatpush.bf16.msra.mxu3 %v8864_v28  ;;  %v8872_v28 = vld [vmem:[#allocation6 + $0xb8] sm:$0xff] }
 0x55a   :  { %v6375_v48 = vpack.c.b16 %v12028_v19, %v12026_v32  ;;  %v5781_v21 = vadd.f32 %v5715_v29, %v5552_v57  ;;  %7006 = vmatpush.bf16.msra.mxu0 %v8872_v28  ;;  %v8871_v28 = vld [vmem:[#allocation6 + $0xb0] sm:$0xff] }
 0x55b   :  { %v5225_v4 = vmul.f32 %v11912_v53, %v5193_v35  ;;  %v5936_v56 = vpop.f32.mrf.mxu0  ;;  %v12038_v61 = vrot.slane %v5607_v47, 1 }
 0x55c   :  { %v12040_v17 = vrot.slane %v6375_v48, 1  ;;  %v12042_v55 = vadd.f32 %v5936_v56, %v5781_v21  ;;  %v4939_v26 = vpop.f32.mrf.mxu1  ;;  %v5285_v10 = vld [vmem:[#allocation3 + $0xc8] sm:$0xff] }
 0x55d   :  { %5253 = vst [vmem:[#allocation3 + $0xd3] sm:$0xff] %v5225_v4  ;;  %v4970_v5 = vadd.f32 %v4939_v26, %v4749_v12  ;;  %v5632_v38 = vsel %vm426_vm1, %v11986_v2, %v12038_v61  ;;  %v5316_v42 = vpack.c.bf16 %v5285_v10, %v5285_v10  ;;  %v5161_v2 = vpop.permute.xlu0 %5160  ;;  %v6052_v48 = vld [vmem:[#allocation3 + $0xc9] sm:$0xff]  ;;  %6689 = vmatpush.bf16.msra.mxu3 %v8863_v39 }
 0x55e   :  { %v12051_v23 = vpop.f32.mrf.mxu2  ;;  %5757 = vmatmul.bf16.gmra.mxu3 %v5632_v38  ;;  %v12056_v31 = vsel %vm426_vm1, %v11988_v59, %v12040_v17  ;;  %v4750_v59 = vadd.f32 %v11931_v49, %v4521_v37  ;;  %v6083_v38 = vpack.c.bf16 %v6052_v48, %v6052_v48  ;;  %v5166_v48 = vpop.permute.xlu1 %5165  ;;  %7007 = vmatpush.bf16.msra.mxu0 %v8871_v28 }
 0x55f   :  { %v4998_v57 = vmax.f32 %v4970_v5, 0.0  ;;  %6281 = vmatmul.bf16.gmra.mxu1 %v12049_v52  ;;  %v5391_v18 = vunpack.c.l.b16 %v5316_v42  ;;  %v8888_v5 = vld [vmem:[#allocation6 + $0x238] sm:$0xff] }
 0x560   :  { %7456 = vmatpush.bf16.msra.mxu2 %v8888_v5 }
 0x561   :  { %v5194_v35 = vmul.f32 %v5161_v2, %v4998_v57  ;;  %v5718_v29 = vpop.f32.mrf.mxu3  ;;  %v12063_v47 = vpack.c.b16 %v5391_v18, %v5390_v30 }
 0x562   :  { %v5782_v21 = vadd.f32 %v5718_v29, %v5553_v46  ;;  %v8880_v29 = vld [vmem:[#allocation6 + $0x178] sm:$0xff] }
 0x563   :  { %v5226_v12 = vmul.f32 %v11912_v53, %v5194_v35  ;;  %5538 = vmatmul.bf16.gmra.mxu2 %v12063_v47  ;;  %v5850_v4 = vrot.slane %v12063_v47, 2  ;;  %v5939_v56 = vpop.f32.mrf.mxu0  ;;  %v8862_v35 = vld [vmem:[#allocation6 + $0x1e8] sm:$0xff]  ;;  %7235 = vmatpush.bf16.msra.mxu1 %v8880_v29 }
 0x564   :  { %v12069_v26 = vadd.f32 %v5939_v56, %v5782_v21  ;;  %v4941_v6 = vpop.f32.mrf.mxu1  ;;  %v5286_v10 = vld [vmem:[#allocation3 + $0xd0] sm:$0xff]  ;;  %v12080_v21 = vunpack.c.l.b16 %v6083_v38  ;;  %6690 = vmatpush.bf16.msra.mxu3 %v8862_v35 }
 0x565   :  { %5254 = vst [vmem:[#allocation3 + $0xdb] sm:$0xff] %v5226_v12  ;;  %v4971_v30 = vadd.f32 %v4941_v6, %v4750_v59  ;;  %v5851_v49 = vsel %vm646_vm0, %v5848_v40, %v5850_v4  ;;  %v5317_v42 = vpack.c.bf16 %v5286_v10, %v5286_v10  ;;  %v6053_v57 = vld [vmem:[#allocation3 + $0xd1] sm:$0xff] }
 0x566   :  { %v12076_v2 = vpop.f32.mrf.mxu2  ;;  %5978 = vmatmul.bf16.gmra.mxu0 %v5851_v49  ;;  %v6084_v46 = vpack.c.bf16 %v6053_v57, %v6053_v57 }
 0x567   :  { %v4999_v58 = vmax.f32 %v4971_v30, 0.0  ;;  %v5392_v37 = vunpack.c.l.b16 %v5317_v42  ;;  %v8861_v42 = vld [vmem:[#allocation6 + $0x1e0] sm:$0xff] }
 0x568   :  { %v12082_v40 = vunpack.c.l.b16 %v6084_v46  ;;  %6691 = vmatpush.bf16.msra.mxu3 %v8861_v42 }
 0x569   :  { %v5195_v59 = vmul.f32 %v5166_v48, %v4999_v58  ;;  %v5720_v12 = vpop.f32.mrf.mxu3  ;;  %v5608_v56 = vpack.c.b16 %v5392_v37, %v5391_v18  ;;  %v8860_v48 = vld [vmem:[#allocation6 + $0x1d8] sm:$0xff] }
 0x56a   :  { %v5783_v6 = vadd.f32 %v5720_v12, %v5554_v50  ;;  %v6376_v10 = vpack.c.b16 %v12082_v40, %v12080_v21 }
 0x56b   :  { %v5227_v39 = vmul.f32 %v11912_v53, %v5195_v59  ;;  %v5941_v5 = vpop.f32.mrf.mxu0  ;;  %v12087_v30 = vrot.slane %v5608_v56, 1  ;;  %v12101_v53 = vpack.c.b16 %v11876_v25, %v11840_v8  ;;  %v5555_v8 = vadd.f32 %v11941_v20, %v12024_v36 }
 0x56c   :  { %v12089_v49 = vadd.f32 %v5941_v5, %v5783_v6  ;;  %v6247_v11 = vpop.f32.mrf.mxu1  ;;  %v5287_v38 = vld [vmem:[#allocation3 + $0xd8] sm:$0xff]  ;;  %v12091_v57 = vrot.slane %v6376_v10, 1  ;;  %6692 = vmatpush.bf16.msra.mxu3 %v8860_v48 }
 0x56d   :  { %5255 = vst [vmem:[#allocation3 + $0xe3] sm:$0x3f] %v5227_v39  ;;  %v12094_v18 = vadd.f32 %v6247_v11, %v11967_v43  ;;  %v5634_v46 = vsel %vm426_vm1, %v12038_v61, %v12087_v30  ;;  %v5318_v58 = vpack.c.bf16 %v5287_v38, %v5287_v38  ;;  %v8870_v61 = vld [vmem:[#allocation6 + $0xa8] sm:$0xff]  ;;  %v8859_v11 = vld [vmem:[#allocation6 + $0x1d0] sm:$0xff] }
 0x56e   :  { %v12103_v35 = vpop.f32.mrf.mxu2  ;;  %5762 = vmatmul.bf16.gmra.mxu3 %v5634_v46  ;;  %v12108_v29 = vsel %vm426_vm1, %v12040_v17, %v12091_v57  ;;  %v6054_v59 = vld [vmem:[#allocation3 + $0xd9] sm:$0xff]  ;;  %7008 = vmatpush.bf16.msra.mxu0 %v8870_v61 }
 0x56f   :  { %6286 = vmatmul.bf16.gmra.mxu1 %v12101_v53  ;;  %v5393_v43 = vunpack.c.l.b16 %v5318_v58  ;;  %v6085_v38 = vpack.c.bf16 %v6054_v59, %v6054_v59  ;;  %v8869_v46 = vld [vmem:[#allocation6 + $0xa0] sm:$0xff]  ;;  %v5556_v59 = vadd.f32 %v11941_v20, %v12051_v23  ;;  %v8867_v23 = vld [vmem:[#allocation6 + $0x90] sm:$0xff] }
 0x570   :  { %6693 = vmatpush.bf16.msra.mxu3 %v8859_v11 }
 0x571   :  { %v5723_v25 = vpop.f32.mrf.mxu3  ;;  %v12113_v50 = vpack.c.b16 %v5393_v43, %v5392_v37 }
 0x572   :  { %v5784_v12 = vadd.f32 %v5723_v25, %v5555_v8  ;;  %7009 = vmatpush.bf16.msra.mxu0 %v8869_v46  ;;  %v8858_v25 = vld [vmem:[#allocation6 + $0x1c8] sm:$0xff] }
 0x573   :  { %5543 = vmatmul.bf16.gmra.mxu2 %v12113_v50  ;;  %v5852_v17 = vrot.slane %v12113_v50, 2  ;;  %v5944_v56 = vpop.f32.mrf.mxu0  ;;  %v12176_v50 = vpack.c.b16 %v11974_v9, %v11922_v27 }
 0x574   :  { %v12117_v6 = vadd.f32 %v5944_v56, %v5784_v12  ;;  %v6249_v10 = vpop.f32.mrf.mxu1  ;;  %v5288_v39 = vld [vmem:[#allocation3 + $0xe0] sm:$0xff]  ;;  %v5289_v5 = vld [vmem:[#allocation3 + $0xe8] sm:$0xff]  ;;  %v12131_v12 = vunpack.c.l.b16 %v6085_v38  ;;  %6694 = vmatpush.bf16.msra.mxu3 %v8858_v25 }
 0x575   :  { %v12120_v36 = vadd.f32 %v6249_v10, %v11990_v1  ;;  %v5853_v37 = vsel %vm646_vm0, %v5850_v4, %v5852_v17  ;;  %v5319_v42 = vpack.c.bf16 %v5288_v39, %v5288_v39  ;;  %v5320_v28 = vpack.c.bf16 %v5289_v5, %v5289_v5  ;;  %v6055_v58 = vld [vmem:[#allocation3 + $0xe1] sm:$0xff]  ;;  %v8868_v1 = vld [vmem:[#allocation6 + $0x98] sm:$0xff] }
 0x576   :  { %v12127_v48 = vpop.f32.mrf.mxu2  ;;  %5983 = vmatmul.bf16.gmra.mxu0 %v5853_v37  ;;  %v6086_v61 = vpack.c.bf16 %v6055_v58, %v6055_v58  ;;  %v8857_v58 = vld [vmem:[#allocation6 + $0x1c0] sm:$0xff] }
 0x577   :  { %v5595_v8 = vunpack.c.l.b16 %v5319_v42  ;;  %v5825_v10 = vunpack.c.l.b16 %v5320_v28  ;;  %7010 = vmatpush.bf16.msra.mxu0 %v8868_v1  ;;  %v12148_v28 = vpack.c.b16 %v11920_v60, %v11878_v15 }
 0x578   :  { %v12133_v47 = vunpack.c.l.b16 %v6086_v61  ;;  %6695 = vmatpush.bf16.msra.mxu3 %v8857_v58 }
 0x579   :  { %v5725_v4 = vpop.f32.mrf.mxu3  ;;  %v5609_v56 = vpack.c.b16 %v5595_v8, %v5393_v43 }
 0x57a   :  { %v5785_v39 = vadd.f32 %v5725_v4, %v5556_v59  ;;  %v6377_v5 = vpack.c.b16 %v12133_v47, %v12131_v12  ;;  %v5827_v59 = vpack.c.b16 %v5825_v10, %v5595_v8  ;;  %v5557_v4 = vadd.f32 %v11941_v20, %v12076_v2  ;;  %v5290_v8 = vld [vmem:[#allocation3 + $0xf0] sm:$0x3] }
 0x57b   :  { %v5946_v37 = vpop.f32.mrf.mxu0  ;;  %v5635_v42 = vrot.slane %v5609_v56, 1  ;;  %7011 = vmatpush.bf16.msra.mxu0 %v8867_v23  ;;  %v5321_v23 = vpack.c.bf16 %v5290_v8, %v5290_v8 }
 0x57c   :  { %v12137_v11 = vadd.f32 %v5946_v37, %v5785_v39  ;;  %v6252_v46 = vpop.f32.mrf.mxu1  ;;  %v12139_v38 = vrot.slane %v6377_v5, 1  ;;  %v5854_v15 = vrot.slane %v5827_v59, 2  ;;  %v12834_v39 = vld [vmem:[#allocation14_spill] sm:$0xff]  ;;  %v5558_v59 = vadd.f32 %v11941_v20, %v12103_v35 }
 0x57d   :  { %v12142_v61 = vadd.f32 %v6252_v46, %v12017_v16  ;;  %v5636_v43 = vsel %vm426_vm1, %v12087_v30, %v5635_v42  ;;  %v8887_v16 = vld [vmem:[#allocation6 + $0x230] sm:$0xff]  ;;  %v8866_v30 = vld [vmem:[#allocation6 + $0x88] sm:$0xff]  ;;  %v8865_v37 = vld [vmem:[#allocation6 + $0x80] sm:$0xff]  ;;  %v5559_v35 = vadd.f32 %v11941_v20, %v12127_v48 }
 0x57e   :  { %v5506_v25 = vpop.f32.mrf.mxu2  ;;  %5767 = vmatmul.bf16.gmra.mxu3 %v5636_v43  ;;  %v12153_v1 = vsel %vm426_vm1, %v12091_v57, %v12139_v38  ;;  %7457 = vmatpush.bf16.msra.mxu2 %v8887_v16  ;;  %v8879_v46 = vld [vmem:[#allocation6 + $0x170] sm:$0xff]  ;;  %v5855_v2 = vsel %vm646_vm0, %v5852_v17, %v5854_v15 }
 0x57f   :  { %6291 = vmatmul.bf16.gmra.mxu1 %v12148_v28  ;;  %7012 = vmatpush.bf16.msra.mxu0 %v8866_v30  ;;  %v5560_v48 = vadd.f32 %v11941_v20, %v5506_v25 }
 0x580   :  { %7236 = vmatpush.bf16.msra.mxu1 %v8879_v46 }
 0x581   :  { %v5728_v56 = vpop.f32.mrf.mxu3 }
 0x582   :  { %v5786_v60 = vadd.f32 %v5728_v56, %v5557_v4  ;;  %v5826_v4 = vunpack.c.l.b16 %v5321_v23  ;;  %v8878_v23 = vld [vmem:[#allocation6 + $0x168] sm:$0xff] }
 0x583   :  { %v5949_v10 = vpop.f32.mrf.mxu0  ;;  %6475 = vmatmul.bf16.vlgmr.msrb.gmra.mxu2 %v12834_v39  ;;  %7013 = vmatpush.bf16.msra.mxu0 %v8865_v37 }
 0x584   :  { %v12159_v5 = vadd.f32 %v5949_v10, %v5786_v60  ;;  %v6254_v57 = vpop.f32.mrf.mxu1  ;;  %v5828_v17 = vpack.c.b16 %v5826_v4, %v5826_v4  ;;  %v6795_v4 = vld [vmem:[#allocation3 + $0x2] sm:$0xff]  ;;  %7237 = vmatpush.bf16.msra.mxu1 %v8878_v23 }
 0x585   :  { %v12162_v58 = vadd.f32 %v6254_v57, %v12042_v55 }
 0x586   :  { %v5509_v43 = vpop.f32.mrf.mxu2  ;;  %5988 = vmatmul.bf16.gmra.mxu0 %v5855_v2  ;;  %v5856_v57 = vrot.slane %v5828_v17, 2 }
 0x588   :  { %v5857_v9 = vsel %vm646_vm0, %v5854_v15, %v5856_v57  ;;  %v6826_v15 = vpack.c.bf16 %v6795_v4, %v6795_v4 }
 0x589   :  { %v5730_v16 = vpop.f32.mrf.mxu3 }
 0x58a   :  { %v5787_v30 = vadd.f32 %v5730_v16, %v5558_v59  ;;  %v6598_v59 = vrot.slane %v11819_v22, 2  ;;  %v12201_v22 = vpack.c.b16 %v12026_v32, %v11976_v33 }
 0x58b   :  { %v5951_v56 = vpop.f32.mrf.mxu0 }
 0x58c   :  { %v12169_v60 = vadd.f32 %v5951_v56, %v5787_v30  ;;  %v6257_v55 = vpop.f32.mrf.mxu1  ;;  %v6796_v30 = vld [vmem:[#allocation3 + $0xa] sm:$0xff]  ;;  %v6597_v56 = vrot.slane %v11789_v51, 2  ;;  %v5561_v51 = vadd.f32 %v11941_v20, %v5509_v43 }
 0x58d   :  { %v12172_v10 = vadd.f32 %v6257_v55, %v12069_v26  ;;  %v8875_v43 = vld [vmem:[#allocation6 + $0x150] sm:$0xff] }
 0x58e   :  { %v5511_v8 = vpop.f32.mrf.mxu2  ;;  %5772 = vmatmul.bf16.gmra.mxu3 %v5635_v42  ;;  %v6599_v25 = vsel %vm646_vm0, %v6597_v56, %v6598_v59 }
 0x58f   :  { %6296 = vmatmul.bf16.gmra.mxu1 %v12176_v50  ;;  %v5562_v56 = vadd.f32 %v11941_v20, %v5511_v8  ;;  %v12224_v8 = vpack.c.b16 %v12080_v21, %v12028_v19 }
 0x591   :  { %v5733_v39 = vpop.f32.mrf.mxu3 }
 0x592   :  { %v5788_v37 = vadd.f32 %v5733_v39, %v5559_v35  ;;  %v6827_v35 = vpack.c.bf16 %v6796_v30, %v6796_v30  ;;  %v8886_v39 = vld [vmem:[#allocation6 + $0x228] sm:$0xff] }
 0x593   :  { %v5954_v46 = vpop.f32.mrf.mxu0  ;;  %6480 = vmatmul.bf16.gmra.mxu2 %v11691_v54 }
 0x594   :  { %v12182_v26 = vadd.f32 %v5954_v46, %v5788_v37  ;;  %v6259_v2 = vpop.f32.mrf.mxu1  ;;  %v8877_v37 = vld [vmem:[#allocation6 + $0x160] sm:$0xff]  ;;  %7458 = vmatpush.bf16.msra.mxu2 %v8886_v39 }
 0x595   :  { %v12185_v27 = vadd.f32 %v6259_v2, %v12089_v49  ;;  %v6902_v2 = vunpack.c.l.b16 %v6826_v15  ;;  %7238 = vmatpush.bf16.msra.mxu1 %v8877_v37 }
 0x596   :  { %v12188_v42 = vpop.f32.mrf.mxu2  ;;  %5993 = vmatmul.bf16.gmra.mxu0 %v5857_v9  ;;  %v12205_v9 = vunpack.c.l.b16 %v6827_v35 }
 0x598   :  { %v6930_v4 = vpack.c.b16 %v12205_v9, %v6902_v2 }
 0x599   :  { %v5735_v16 = vpop.f32.mrf.mxu3 }
 0x59a   :  { %v5789_v54 = vadd.f32 %v5735_v16, %v5560_v48 }
 0x59b   :  { %v5956_v55 = vpop.f32.mrf.mxu0 }
 0x59c   :  { %v12193_v49 = vadd.f32 %v5956_v55, %v5789_v54  ;;  %v6262_v17 = vpop.f32.mrf.mxu1  ;;  %v8874_v55 = vld [vmem:[#allocation6 + $0x148] sm:$0xff] }
 0x59d   :  { %v12196_v57 = vadd.f32 %v6262_v17, %v12117_v6  ;;  %v8876_v6 = vld [vmem:[#allocation6 + $0x158] sm:$0xff]  ;;  %v6600_v17 = vrot.slane %v11855_v7, 2  ;;  %v8873_v7 = vld [vmem:[#allocation6 + $0x140] sm:$0xff] }
 0x59e   :  { %v5516_v46 = vpop.f32.mrf.mxu2  ;;  %6696 = vmatmul.bf16.vlgmr.msra.gmra.mxu3 %v6599_v25  ;;  %7239 = vmatpush.bf16.msra.mxu1 %v8876_v6  ;;  %v6797_v25 = vld [vmem:[#allocation3 + $0x12] sm:$0xff] }
 0x59f   :  { %6301 = vmatmul.bf16.gmra.mxu1 %v12201_v22  ;;  %v6601_v6 = vsel %vm646_vm0, %v6598_v59, %v6600_v17 }
 0x5a1   :  { %v5738_v23 = vpop.f32.mrf.mxu3 }
 0x5a2   :  { %v5790_v48 = vadd.f32 %v5738_v23, %v5561_v51  ;;  %7240 = vmatpush.bf16.msra.mxu1 %v8875_v43 }
 0x5a3   :  { %v5959_v16 = vpop.f32.mrf.mxu0  ;;  %6485 = vmatmul.bf16.gmra.mxu2 %v11726_v13  ;;  %v6798_v13 = vld [vmem:[#allocation3 + $0x1a] sm:$0xff] }
 0x5a4   :  { %v12208_v33 = vadd.f32 %v5959_v16, %v5790_v48  ;;  %v6264_v32 = vpop.f32.mrf.mxu1  ;;  %v6829_v2 = vpack.c.bf16 %v6798_v13, %v6798_v13  ;;  %v6828_v48 = vpack.c.bf16 %v6797_v25, %v6797_v25  ;;  %v5563_v16 = vadd.f32 %v11941_v20, %v12188_v42  ;;  %v8885_v42 = vld [vmem:[#allocation6 + $0x220] sm:$0xff]  ;;  %v6800_v25 = vld [vmem:[#allocation3 + $0x2a] sm:$0xff] }
 0x5a5   :  { %v12212_v30 = vadd.f32 %v6264_v32, %v12137_v11  ;;  %v5564_v13 = vadd.f32 %v11941_v20, %v5516_v46  ;;  %7459 = vmatpush.bf16.msra.mxu2 %v8885_v42  ;;  %v12248_v46 = vpack.c.b16 %v12131_v12, %v12082_v40 }
 0x5a6   :  { %v5519_v54 = vpop.f32.mrf.mxu2  ;;  %7014 = vmatmul.bf16.vlgmr.msra.gmra.mxu0 %v6930_v4  ;;  %7241 = vmatpush.bf16.msra.mxu1 %v8874_v55  ;;  %v6905_v32 = vunpack.c.l.b16 %v6829_v2  ;;  %v6904_v43 = vunpack.c.l.b16 %v6828_v48  ;;  %v6799_v2 = vld [vmem:[#allocation3 + $0x22] sm:$0xff]  ;;  %v6831_v48 = vpack.c.bf16 %v6800_v25, %v6800_v25 }
 0x5a8   :  { %v12232_v21 = vpack.c.b16 %v6905_v32, %v6904_v43 }
 0x5a9   :  { %v5740_v15 = vpop.f32.mrf.mxu3 }
 0x5aa   :  { %v5791_v35 = vadd.f32 %v5740_v15, %v5562_v56  ;;  %7242 = vmatpush.bf16.msra.mxu1 %v8873_v7 }
 0x5ab   :  { %v5961_v39 = vpop.f32.mrf.mxu0 }
 0x5ac   :  { %v12216_v37 = vadd.f32 %v5961_v39, %v5791_v35  ;;  %v6267_v51 = vpop.f32.mrf.mxu1  ;;  %v6602_v35 = vrot.slane %v11891_v14, 2 }
 0x5ad   :  { %v12219_v11 = vadd.f32 %v6267_v51, %v12159_v5 }
 0x5ae   :  { %v5521_v23 = vpop.f32.mrf.mxu2  ;;  %6701 = vmatmul.bf16.gmra.mxu3 %v6601_v6 }
 0x5af   :  { %6306 = vmatmul.bf16.gmra.mxu1 %v12224_v8 }
 0x5b1   :  { %v5743_v4 = vpop.f32.mrf.mxu3 }
 0x5b2   :  { %v5792_v5 = vadd.f32 %v5743_v4, %v5563_v16  ;;  %v6603_v16 = vsel %vm646_vm0, %v6600_v17, %v6602_v35  ;;  %v6830_v4 = vpack.c.bf16 %v6799_v2, %v6799_v2  ;;  %v6604_v2 = vrot.slane %v11947_v62, 2 }
 0x5b3   :  { %v5964_v56 = vpop.f32.mrf.mxu0  ;;  %6490 = vmatmul.bf16.gmra.mxu2 %v11759_v3 }
 0x5b4   :  { %v12230_v59 = vadd.f32 %v5964_v56, %v5792_v5  ;;  %v6269_v19 = vpop.f32.mrf.mxu1  ;;  %v5565_v5 = vadd.f32 %v11941_v20, %v5519_v54  ;;  %v6907_v56 = vunpack.c.l.b16 %v6831_v48  ;;  %v5566_v54 = vadd.f32 %v11941_v20, %v5521_v23 }
 0x5b5   :  { %v12235_v55 = vadd.f32 %v6269_v19, %v12169_v60  ;;  %v6605_v23 = vsel %vm646_vm0, %v6602_v35, %v6604_v2  ;;  %v8884_v35 = vld [vmem:[#allocation6 + $0x218] sm:$0xff] }
 0x5b6   :  { %v5524_v15 = vpop.f32.mrf.mxu2  ;;  %7019 = vmatmul.bf16.gmra.mxu0 %v12232_v21  ;;  %7460 = vmatpush.bf16.msra.mxu2 %v8884_v35 }
 0x5b9   :  { %v5745_v39 = vpop.f32.mrf.mxu3 }
 0x5ba   :  { %v5793_v3 = vadd.f32 %v5745_v39, %v5564_v13  ;;  %v6906_v13 = vunpack.c.l.b16 %v6830_v4 }
 0x5bb   :  { %v5966_v51 = vpop.f32.mrf.mxu0 }
 0x5bc   :  { %v12240_v6 = vadd.f32 %v5966_v51, %v5793_v3  ;;  %v6272_v7 = vpop.f32.mrf.mxu1  ;;  %v12255_v25 = vpack.c.b16 %v6907_v56, %v6906_v13  ;;  %v7133_v3 = vpack.c.b16 %v6906_v13, %v6905_v32  ;;  %v7132_v51 = vpack.c.b16 %v6904_v43, %v12205_v9 }
 0x5bd   :  { %v12243_v60 = vadd.f32 %v6272_v7, %v12182_v26  ;;  %v5567_v43 = vadd.f32 %v11941_v20, %v5524_v15 }
 0x5be   :  { %v5526_v14 = vpop.f32.mrf.mxu2  ;;  %6706 = vmatmul.bf16.gmra.mxu3 %v6603_v16  ;;  %v7147_v48 = vrot.slane %v7133_v3, 1 }
 0x5bf   :  { %6311 = vmatmul.bf16.gmra.mxu1 %v12248_v46 }
 0x5c1   :  { %v5748_v19 = vpop.f32.mrf.mxu3 }
 0x5c2   :  { %v5794_v42 = vadd.f32 %v5748_v19, %v5565_v5  ;;  %v6801_v5 = vld [vmem:[#allocation3 + $0x32] sm:$0xff]  ;;  %v7146_v19 = vrot.slane %v7132_v51, 1 }
 0x5c3   :  { %v5969_v39 = vpop.f32.mrf.mxu0  ;;  %6495 = vmatmul.bf16.gmra.mxu2 %v11792_v44  ;;  %v6802_v44 = vld [vmem:[#allocation3 + $0x3a] sm:$0xff]  ;;  %v6832_v9 = vpack.c.bf16 %v6801_v5, %v6801_v5 }
 0x5c4   :  { %v12253_v26 = vadd.f32 %v5969_v39, %v5794_v42  ;;  %v6274_v17 = vpop.f32.mrf.mxu1  ;;  %v6833_v39 = vpack.c.bf16 %v6802_v44, %v6802_v44  ;;  %v7148_v62 = vsel %vm426_vm1, %v7146_v19, %v7147_v48  ;;  %v5568_v19 = vadd.f32 %v11941_v20, %v5526_v14 }
 0x5c5   :  { %v12258_v40 = vadd.f32 %v6274_v17, %v12193_v49  ;;  %v6908_v51 = vunpack.c.l.b16 %v6832_v9 }
 0x5c6   :  { %v5529_v12 = vpop.f32.mrf.mxu2  ;;  %7024 = vmatmul.bf16.gmra.mxu0 %v12255_v25  ;;  %v6909_v13 = vunpack.c.l.b16 %v6833_v39 }
 0x5c7   :  { %v7134_v15 = vpack.c.b16 %v6908_v51, %v6907_v56 }
 0x5c9   :  { %v5750_v7 = vpop.f32.mrf.mxu3 }
 0x5ca   :  { %v5795_v16 = vadd.f32 %v5750_v7, %v5566_v54 }
 0x5cb   :  { %v5971_v4 = vpop.f32.mrf.mxu0 }
 0x5cc   :  { %v12264_v42 = vadd.f32 %v5971_v4, %v5795_v16  ;;  %v6277_v49 = vpop.f32.mrf.mxu1  ;;  %v12275_v16 = vpack.c.b16 %v6909_v13, %v6908_v51 }
 0x5cd   :  { %v12267_v17 = vadd.f32 %v6277_v49, %v12208_v33  ;;  %v6606_v49 = vrot.slane %v11997_v24, 2 }
 0x5ce   :  { %v5531_v32 = vpop.f32.mrf.mxu2  ;;  %6711 = vmatmul.bf16.gmra.mxu3 %v6605_v23 }
 0x5cf   :  { %7243 = vmatmul.bf16.vlgmr.msra.gmra.mxu1 %v7148_v62  ;;  %v7149_v62 = vrot.slane %v7134_v15, 1  ;;  %v6607_v56 = vsel %vm646_vm0, %v6604_v2, %v6606_v49 }
 0x5d1   :  { %v5753_v3 = vpop.f32.mrf.mxu3  ;;  %v7150_v14 = vsel %vm426_vm1, %v7147_v48, %v7149_v62 }
 0x5d2   :  { %v5796_v54 = vadd.f32 %v5753_v3, %v5567_v43  ;;  %v6803_v43 = vld [vmem:[#allocation3 + $0x42] sm:$0xff] }
 0x5d3   :  { %v5974_v7 = vpop.f32.mrf.mxu0  ;;  %6500 = vmatmul.bf16.gmra.mxu2 %v11822_v34  ;;  %v6804_v34 = vld [vmem:[#allocation3 + $0x4a] sm:$0xff]  ;;  %v6834_v24 = vpack.c.bf16 %v6803_v43, %v6803_v43 }
 0x5d4   :  { %v12273_v44 = vadd.f32 %v5974_v7, %v5796_v54  ;;  %v6279_v33 = vpop.f32.mrf.mxu1 }
 0x5d5   :  { %v12278_v4 = vadd.f32 %v6279_v33, %v12216_v37  ;;  %v6835_v37 = vpack.c.bf16 %v6804_v34, %v6804_v34  ;;  %v5569_v33 = vadd.f32 %v11941_v20, %v5529_v12  ;;  %v5570_v12 = vadd.f32 %v11941_v20, %v5531_v32 }
 0x5d6   :  { %v5534_v5 = vpop.f32.mrf.mxu2  ;;  %7029 = vmatmul.bf16.gmra.mxu0 %v12275_v16 }
 0x5d7   :  { %v6911_v35 = vunpack.c.l.b16 %v6835_v37 }
 0x5d9   :  { %v5755_v39 = vpop.f32.mrf.mxu3 }
 0x5da   :  { %v5797_v23 = vadd.f32 %v5755_v39, %v5568_v19  ;;  %v6910_v39 = vunpack.c.l.b16 %v6834_v24 }
 0x5db   :  { %v5976_v9 = vpop.f32.mrf.mxu0 }
 0x5dc   :  { %v12283_v3 = vadd.f32 %v5976_v9, %v5797_v23  ;;  %v6282_v54 = vpop.f32.mrf.mxu1  ;;  %v12294_v9 = vpack.c.b16 %v6911_v35, %v6910_v39  ;;  %v7135_v43 = vpack.c.b16 %v6910_v39, %v6909_v13  ;;  %v8883_v39 = vld [vmem:[#allocation6 + $0x210] sm:$0xff] }
 0x5dd   :  { %v12286_v7 = vadd.f32 %v6282_v54, %v12230_v59  ;;  %v6608_v54 = vrot.slane %v12049_v52, 2  ;;  %7461 = vmatpush.bf16.msra.mxu2 %v8883_v39 }
 0x5de   :  { %v5536_v51 = vpop.f32.mrf.mxu2  ;;  %6716 = vmatmul.bf16.gmra.mxu3 %v6607_v56  ;;  %v6806_v56 = vld [vmem:[#allocation3 + $0x5a] sm:$0xff] }
 0x5df   :  { %7248 = vmatmul.bf16.gmra.mxu1 %v7150_v14 }
 0x5e1   :  { %v5758_v15 = vpop.f32.mrf.mxu3 }
 0x5e2   :  { %v5798_v19 = vadd.f32 %v5758_v15, %v5569_v33  ;;  %v6805_v33 = vld [vmem:[#allocation3 + $0x52] sm:$0xff] }
 0x5e3   :  { %v5979_v23 = vpop.f32.mrf.mxu0  ;;  %6505 = vmatmul.bf16.gmra.mxu2 %v11858_v45  ;;  %v7151_v45 = vrot.slane %v7135_v43, 1  ;;  %v6836_v52 = vpack.c.bf16 %v6805_v33, %v6805_v33  ;;  %v5571_v43 = vadd.f32 %v11941_v20, %v5534_v5  ;;  %v12322_v5 = vld [vmem:[%s12713_s8] ss:$0 sm:$0xff] }
 0x5e4   :  { %v12292_v34 = vadd.f32 %v5979_v23, %v5798_v19  ;;  %v6284_v59 = vpop.f32.mrf.mxu1  ;;  %v6837_v23 = vpack.c.bf16 %v6806_v56, %v6806_v56 }
 0x5e5   :  { %v12297_v2 = vadd.f32 %v6284_v59, %v12240_v6  ;;  %v6609_v59 = vsel %vm646_vm0, %v6606_v49, %v6608_v54  ;;  %v7152_v32 = vsel %vm426_vm1, %v7149_v62, %v7151_v45 }
 0x5e6   :  { %v5539_v48 = vpop.f32.mrf.mxu2  ;;  %7034 = vmatmul.bf16.gmra.mxu0 %v12294_v9 }
 0x5e9   :  { %v5760_v37 = vpop.f32.mrf.mxu3 }
 0x5ea   :  { %v5799_v14 = vadd.f32 %v5760_v37, %v5570_v12  ;;  %v6913_v12 = vunpack.c.l.b16 %v6837_v23  ;;  %v5572_v23 = vadd.f32 %v12322_v5, %v5536_v51 }
 0x5eb   :  { %v5981_v24 = vpop.f32.mrf.mxu0 }
 0x5ec   :  { %v12302_v15 = vadd.f32 %v5981_v24, %v5799_v14  ;;  %v6287_v19 = vpop.f32.mrf.mxu1  ;;  %v6912_v24 = vunpack.c.l.b16 %v6836_v52 }
 0x5ed   :  { %v12305_v6 = vadd.f32 %v6287_v19, %v12253_v26 }
 0x5ee   :  { %v5541_v13 = vpop.f32.mrf.mxu2  ;;  %6721 = vmatmul.bf16.gmra.mxu3 %v6609_v59  ;;  %v12313_v19 = vpack.c.b16 %v6913_v12, %v6912_v24  ;;  %v7136_v20 = vpack.c.b16 %v6912_v24, %v6911_v35 }
 0x5ef   :  { %7253 = vmatmul.bf16.gmra.mxu1 %v7152_v32  ;;  %v6808_v32 = vld [vmem:[#allocation3 + $0x6a] sm:$0xff] }
 0x5f0   :  { %v7153_v39 = vrot.slane %v7136_v20, 1 }
 0x5f1   :  { %v5763_v37 = vpop.f32.mrf.mxu3 }
 0x5f2   :  { %v5800_v14 = vadd.f32 %v5763_v37, %v5571_v43  ;;  %v7154_v51 = vsel %vm426_vm1, %v7151_v45, %v7153_v39 }
 0x5f3   :  { %v5984_v56 = vpop.f32.mrf.mxu0  ;;  %6510 = vmatmul.bf16.gmra.mxu2 %v11897_v63  ;;  %v6610_v63 = vrot.slane %v12101_v53, 2 }
 0x5f4   :  { %v12311_v26 = vadd.f32 %v5984_v56, %v5800_v14  ;;  %v6289_v49 = vpop.f32.mrf.mxu1  ;;  %v6839_v56 = vpack.c.bf16 %v6808_v32, %v6808_v32 }
 0x5f5   :  { %v12316_v62 = vadd.f32 %v6289_v49, %v12264_v42  ;;  %v6807_v42 = vld [vmem:[#allocation3 + $0x62] sm:$0xff]  ;;  %v6611_v24 = vsel %vm646_vm0, %v6608_v54, %v6610_v63 }
 0x5f6   :  { %v5544_v33 = vpop.f32.mrf.mxu2  ;;  %7039 = vmatmul.bf16.gmra.mxu0 %v12313_v19  ;;  %v6838_v53 = vpack.c.bf16 %v6807_v42, %v6807_v42  ;;  %v6915_v20 = vunpack.c.l.b16 %v6839_v56  ;;  %v5574_v56 = vadd.f32 %v12322_v5, %v5541_v13 }
 0x5f7   :  { %12835 = vst [vmem:[#allocation18_spill] sm:$0xff] %v12316_v62 }
 0x5f9   :  { %v5765_v59 = vpop.f32.mrf.mxu3 }
 0x5fa   :  { %v5801_v52 = vadd.f32 %v5765_v59, %v5572_v23  ;;  %v5573_v23 = vadd.f32 %v12322_v5, %v5539_v48 }
 0x5fb   :  { %v5986_v43 = vpop.f32.mrf.mxu0 }
 0x5fc   :  { %v12326_v37 = vadd.f32 %v5986_v43, %v5801_v52  ;;  %v6292_v14 = vpop.f32.mrf.mxu1  ;;  %v6914_v52 = vunpack.c.l.b16 %v6838_v53 }
 0x5fd   :  { %v12329_v35 = vadd.f32 %v6292_v14, %v12273_v44 }
 0x5fe   :  { %v5546_v49 = vpop.f32.mrf.mxu2  ;;  %6726 = vmatmul.bf16.gmra.mxu3 %v6611_v24  ;;  %v12337_v14 = vpack.c.b16 %v6915_v20, %v6914_v52  ;;  %v7137_v42 = vpack.c.b16 %v6914_v52, %v6913_v12  ;;  %v6612_v24 = vrot.slane %v12148_v28, 2 }
 0x5ff   :  { %7258 = vmatmul.bf16.gmra.mxu1 %v7154_v51 }
 0x600   :  { %12836 = vst [vmem:[#allocation35_spill] sm:$0xff] %v12337_v14  ;;  %v7155_v53 = vrot.slane %v7137_v42, 1 }
 0x601   :  { %v5768_v59 = vpop.f32.mrf.mxu3 }
 0x602   :  { %v5802_v62 = vadd.f32 %v5768_v59, %v5573_v23  ;;  %v6809_v59 = vld [vmem:[#allocation3 + $0x72] sm:$0xff]  ;;  %v7156_v28 = vsel %vm426_vm1, %v7153_v39, %v7155_v53 }
 0x603   :  { %v5989_v43 = vpop.f32.mrf.mxu0  ;;  %6515 = vmatmul.bf16.gmra.mxu2 %v11954_v41  ;;  %v6810_v41 = vld [vmem:[#allocation3 + $0x7a] sm:$0xff]  ;;  %v6840_v13 = vpack.c.bf16 %v6809_v59, %v6809_v59  ;;  %v5576_v59 = vadd.f32 %v12322_v5, %v5546_v49 }
 0x604   :  { %v12335_v32 = vadd.f32 %v5989_v43, %v5802_v62  ;;  %v6294_v44 = vpop.f32.mrf.mxu1 }
 0x605   :  { %v12340_v54 = vadd.f32 %v6294_v44, %v12283_v3  ;;  %v6841_v44 = vpack.c.bf16 %v6810_v41, %v6810_v41  ;;  %v6916_v41 = vunpack.c.l.b16 %v6840_v13  ;;  %v6811_v13 = vld [vmem:[#allocation3 + $0x82] sm:$0xff] }
 0x606   :  { %v6476_v45 = vpop.f32.mrf.mxu2  ;;  %7044 = vmatmul.bf16.gmra.mxu0 %v12337_v14 }
 0x607   :  { %12837 = vst [vmem:[#allocation22_spill] sm:$0xff] %v12340_v54  ;;  %v6546_v48 = vadd.f32 %v6476_v45, %v12094_v18  ;;  %v8882_v54 = vld [vmem:[#allocation6 + $0x208] sm:$0xff]  ;;  %v6613_v18 = vsel %vm646_vm0, %v6610_v63, %v6612_v24  ;;  %v5575_v45 = vadd.f32 %v12322_v5, %v5544_v33  ;;  %v6917_v42 = vunpack.c.l.b16 %v6841_v44 }
 0x608   :  { %7462 = vmatpush.bf16.msra.mxu2 %v8882_v54 }
 0x609   :  { %v5770_v51 = vpop.f32.mrf.mxu3 }
 0x60a   :  { %v5803_v62 = vadd.f32 %v5770_v51, %v5574_v56 }
 0x60b   :  { %v5991_v23 = vpop.f32.mrf.mxu0 }
 0x60c   :  { %v12346_v43 = vadd.f32 %v5991_v23, %v5803_v62  ;;  %v6297_v3 = vpop.f32.mrf.mxu1  ;;  %v12358_v23 = vpack.c.b16 %v6917_v42, %v6916_v41 }
 0x60d   :  { %v12349_v14 = vadd.f32 %v6297_v3, %v12292_v34  ;;  %v6614_v3 = vrot.slane %v12176_v50, 2  ;;  %v6842_v50 = vpack.c.bf16 %v6811_v13, %v6811_v13 }
 0x60e   :  { %v6478_v12 = vpop.f32.mrf.mxu2  ;;  %6731 = vmatmul.bf16.gmra.mxu3 %v6613_v18 }
 0x60f   :  { %v6547_v52 = vadd.f32 %v6478_v12, %v12120_v36  ;;  %7263 = vmatmul.bf16.gmra.mxu1 %v7156_v28  ;;  %v7138_v36 = vpack.c.b16 %v6916_v41, %v6915_v20  ;;  %v6615_v20 = vsel %vm646_vm0, %v6612_v24, %v6614_v3 }
 0x611   :  { %v5773_v56 = vpop.f32.mrf.mxu3  ;;  %v7157_v12 = vrot.slane %v7138_v36, 1 }
 0x612   :  { %v5804_v51 = vadd.f32 %v5773_v56, %v5575_v45 }
 0x613   :  { %v5994_v62 = vpop.f32.mrf.mxu0  ;;  %6520 = vmatmul.bf16.gmra.mxu2 %v12004_v0  ;;  %v6812_v0 = vld [vmem:[#allocation3 + $0x8a] sm:$0xff]  ;;  %v7158_v5 = vsel %vm426_vm1, %v7155_v53, %v7157_v12 }
 0x614   :  { %v12356_v34 = vadd.f32 %v5994_v62, %v5804_v51  ;;  %v6299_v63 = vpop.f32.mrf.mxu1  ;;  %v6843_v56 = vpack.c.bf16 %v6812_v0, %v6812_v0 }
 0x615   :  { %v12361_v39 = vadd.f32 %v6299_v63, %v12302_v15 }
 0x616   :  { %v6481_v54 = vpop.f32.mrf.mxu2  ;;  %7049 = vmatmul.bf16.gmra.mxu0 %v12358_v23  ;;  %v6919_v41 = vunpack.c.l.b16 %v6843_v56 }
 0x617   :  { %v6548_v33 = vadd.f32 %v6481_v54, %v12142_v61  ;;  %v6918_v54 = vunpack.c.l.b16 %v6842_v50 }
 0x619   :  { %v5775_v44 = vpop.f32.mrf.mxu3 }
 0x61a   :  { %v5805_v18 = vadd.f32 %v5775_v44, %v5576_v59  ;;  %v12378_v44 = vpack.c.b16 %v6919_v41, %v6918_v54 }
 0x61b   :  { %v5996_v28 = vpop.f32.mrf.mxu0 }
 0x61c   :  { %v12367_v45 = vadd.f32 %v5996_v28, %v5805_v18  ;;  %v6302_v15 = vpop.f32.mrf.mxu1  ;;  %v6616_v18 = vrot.slane %v12201_v22, 2  ;;  %v6814_v28 = vld [vmem:[#allocation3 + $0x9a] sm:$0xff] }
 0x61d   :  { %v12370_v51 = vadd.f32 %v6302_v15, %v12311_v26 }
 0x61e   :  { %v6483_v61 = vpop.f32.mrf.mxu2  ;;  %6736 = vmatmul.bf16.gmra.mxu3 %v6615_v20  ;;  %v6813_v20 = vld [vmem:[#allocation3 + $0x92] sm:$0xff] }
 0x61f   :  { %v6549_v49 = vadd.f32 %v6483_v61, %v12162_v58  ;;  %7268 = vmatmul.bf16.gmra.mxu1 %v7158_v5  ;;  %v7139_v58 = vpack.c.b16 %v6918_v54, %v6917_v42  ;;  %v6845_v5 = vpack.c.bf16 %v6814_v28, %v6814_v28 }
 0x621   :  { %v6697_v62 = vpop.f32.mrf.mxu3  ;;  %v7159_v15 = vrot.slane %v7139_v58, 1 }
 0x622   :  { %v6767_v63 = vadd.f32 %v6697_v62, %v6546_v48  ;;  %v8881_v48 = vld [vmem:[#allocation6 + $0x200] sm:$0xff]  ;;  %v6844_v62 = vpack.c.bf16 %v6813_v20, %v6813_v20 }
 0x623   :  { %6525 = vmatmul.bf16.gmra.mxu2 %v12056_v31  ;;  %v7015_v36 = vpop.f32.mrf.mxu0  ;;  %v7160_v22 = vsel %vm426_vm1, %v7157_v12, %v7159_v15 }
 0x624   :  { %v12376_v59 = vadd.f32 %v7015_v36, %v6767_v63  ;;  %v6304_v26 = vpop.f32.mrf.mxu1  ;;  %7463 = vmatpush.bf16.msra.mxu2 %v8881_v48 }
 0x625   :  { %v12381_v24 = vadd.f32 %v6304_v26, %v12326_v37  ;;  %v6920_v26 = vunpack.c.l.b16 %v6844_v62 }
 0x626   :  { %v6486_v53 = vpop.f32.mrf.mxu2  ;;  %7054 = vmatmul.bf16.gmra.mxu0 %v12378_v44 }
 0x627   :  { %v12385_v0 = vadd.f32 %v6486_v53, %v12172_v10  ;;  %v6617_v10 = vsel %vm646_vm0, %v6614_v3, %v6616_v18 }
 0x629   :  { %v6699_v31 = vpop.f32.mrf.mxu3 }
 0x62a   :  { %v6768_v13 = vadd.f32 %v6699_v31, %v6547_v52  ;;  %v6921_v52 = vunpack.c.l.b16 %v6845_v5 }
 0x62b   :  { %v7017_v56 = vpop.f32.mrf.mxu0 }
 0x62c   :  { %v12388_v61 = vadd.f32 %v7017_v56, %v6768_v13  ;;  %v6307_v37 = vpop.f32.mrf.mxu1  ;;  %v12401_v3 = vpack.c.b16 %v6921_v52, %v6920_v26 }
 0x62d   :  { %v12391_v50 = vadd.f32 %v6307_v37, %v12335_v32  ;;  %v6815_v37 = vld [vmem:[#allocation3 + $0xa2] sm:$0xff] }
 0x62e   :  { %v6488_v42 = vpop.f32.mrf.mxu2  ;;  %6741 = vmatmul.bf16.gmra.mxu3 %v6617_v10 }
 0x62f   :  { %v12396_v63 = vadd.f32 %v6488_v42, %v12185_v27  ;;  %7273 = vmatmul.bf16.gmra.mxu1 %v7160_v22  ;;  %v7140_v27 = vpack.c.b16 %v6920_v26, %v6919_v41 }
 0x631   :  { %v6702_v54 = vpop.f32.mrf.mxu3  ;;  %v7161_v56 = vrot.slane %v7140_v27, 1  ;;  %v6817_v27 = vld [vmem:[#allocation3 + $0xb2] sm:$0xff] }
 0x632   :  { %v6769_v36 = vadd.f32 %v6702_v54, %v6548_v33  ;;  %v6618_v33 = vrot.slane %v12224_v8, 2  ;;  %v6846_v8 = vpack.c.bf16 %v6815_v37, %v6815_v37 }
 0x633   :  { %6530 = vmatmul.bf16.gmra.mxu2 %v12108_v29  ;;  %v7020_v53 = vpop.f32.mrf.mxu0  ;;  %v6816_v29 = vld [vmem:[#allocation3 + $0xaa] sm:$0xff] }
 0x634   :  { %v12399_v32 = vadd.f32 %v7020_v53, %v6769_v36  ;;  %v6309_v58 = vpop.f32.mrf.mxu1  ;;  %v6619_v41 = vsel %vm646_vm0, %v6616_v18, %v6618_v33  ;;  %v6922_v54 = vunpack.c.l.b16 %v6846_v8 }
 0x635   :  { %v12404_v48 = vadd.f32 %v6309_v58, %v12346_v43  ;;  %v6847_v43 = vpack.c.bf16 %v6816_v29, %v6816_v29  ;;  %v6818_v58 = vld [vmem:[#allocation3 + $0xba] sm:$0xff] }
 0x636   :  { %v6491_v12 = vpop.f32.mrf.mxu2  ;;  %7059 = vmatmul.bf16.gmra.mxu0 %v12401_v3  ;;  %v7141_v53 = vpack.c.b16 %v6922_v54, %v6921_v52 }
 0x637   :  { %v12408_v31 = vadd.f32 %v6491_v12, %v12196_v57  ;;  %v7162_v57 = vsel %vm426_vm1, %v7159_v15, %v7161_v56 }
 0x638   :  { %v7163_v12 = vrot.slane %v7141_v53, 1  ;;  %v6057_v53 = vld [vmem:[#allocation3 + $0xf1] sm:$0x3] }
 0x639   :  { %v6704_v28 = vpop.f32.mrf.mxu3 }
 0x63a   :  { %v6770_v13 = vadd.f32 %v6704_v28, %v6549_v49  ;;  %v6923_v49 = vunpack.c.l.b16 %v6847_v43  ;;  %v7164_v52 = vsel %vm426_vm1, %v7161_v56, %v7163_v12 }
 0x63b   :  { %v7022_v20 = vpop.f32.mrf.mxu0 }
 0x63c   :  { %v12411_v5 = vadd.f32 %v7022_v20, %v6770_v13  ;;  %v6312_v10 = vpop.f32.mrf.mxu1  ;;  %v12422_v26 = vpack.c.b16 %v6923_v49, %v6922_v54  ;;  %v8932_v13 = vld [vmem:[#allocation2] sm:$0xff] }
 0x63d   :  { %v12414_v42 = vadd.f32 %v6312_v10, %v12356_v34  ;;  %v6087_v20 = vpack.c.bf16 %v8932_v13, %v8932_v13 }
 0x63e   :  { %v6493_v22 = vpop.f32.mrf.mxu2  ;;  %6746 = vmatmul.bf16.gmra.mxu3 %v6619_v41 }
 0x63f   :  { %v12419_v62 = vadd.f32 %v6493_v22, %v12212_v30  ;;  %7278 = vmatmul.bf16.gmra.mxu1 %v7162_v57  ;;  %v6620_v30 = vrot.slane %v12248_v46, 2  ;;  %v6593_v43 = vunpack.c.l.b16 %v6087_v20  ;;  %v7365_v20 = vrot.slane %v12232_v21, 2 }
 0x641   :  { %v6595_v57 = vpack.c.b16 %v6593_v43, %v12133_v47  ;;  %v6088_v47 = vpack.c.bf16 %v6057_v53, %v6057_v53 }
 0x643   :  { %6535 = vmatmul.bf16.gmra.mxu2 %v12153_v1  ;;  %v6849_v1 = vpack.c.bf16 %v6818_v58, %v6818_v58  ;;  %v6622_v54 = vrot.slane %v6595_v57, 2  ;;  %v6822_v57 = vld [vmem:[#allocation3 + $0xda] sm:$0xff] }
 0x644   :  { %v6314_v36 = vpop.f32.mrf.mxu1 }
 0x645   :  { %v12425_v34 = vadd.f32 %v6314_v36, %v12367_v45  ;;  %v6621_v45 = vsel %vm646_vm0, %v6618_v33, %v6620_v30  ;;  %v6925_v46 = vunpack.c.l.b16 %v6849_v1  ;;  %v6820_v36 = vld [vmem:[#allocation3 + $0xca] sm:$0xff]  ;;  %v7366_v1 = vrot.slane %v12255_v25, 2 }
 0x646   :  { %v6496_v18 = vpop.f32.mrf.mxu2  ;;  %7064 = vmatmul.bf16.gmra.mxu0 %v12422_v26 }
 0x647   :  { %v12429_v15 = vadd.f32 %v6496_v18, %v12219_v11  ;;  %v6848_v11 = vpack.c.bf16 %v6817_v27, %v6817_v27  ;;  %v6851_v27 = vpack.c.bf16 %v6820_v36, %v6820_v36  ;;  %v6853_v36 = vpack.c.bf16 %v6822_v57, %v6822_v57 }
 0x649   :  { %v6924_v41 = vunpack.c.l.b16 %v6848_v11 }
 0x64b   :  { %v12441_v22 = vpack.c.b16 %v6925_v46, %v6924_v41  ;;  %v7142_v56 = vpack.c.b16 %v6924_v41, %v6923_v49 }
 0x64c   :  { %v7244_v28 = vpop.f32.mrf.mxu1 }
 0x64d   :  { %v12433_v29 = vadd.f32 %v7244_v28, %v12376_v59  ;;  %v7165_v18 = vrot.slane %v7142_v56, 1  ;;  %v6821_v56 = vld [vmem:[#allocation3 + $0xd2] sm:$0xff] }
 0x64e   :  { %v6498_v37 = vpop.f32.mrf.mxu2  ;;  %6751 = vmatmul.bf16.gmra.mxu3 %v6621_v45 }
 0x64f   :  { %v12438_v10 = vadd.f32 %v6498_v37, %v12235_v55  ;;  %7283 = vmatmul.bf16.gmra.mxu1 %v7164_v52  ;;  %v6927_v37 = vunpack.c.l.b16 %v6851_v27  ;;  %v6594_v52 = vunpack.c.l.b16 %v6088_v47  ;;  %v6852_v27 = vpack.c.bf16 %v6821_v56, %v6821_v56 }
 0x651   :  { %v6928_v47 = vunpack.c.l.b16 %v6852_v27 }
 0x653   :  { %6540 = vmatmul.bf16.gmra.mxu2 %v12139_v38  ;;  %v6819_v38 = vld [vmem:[#allocation3 + $0xc2] sm:$0xff] }
 0x654   :  { %v7246_v59 = vpop.f32.mrf.mxu1  ;;  %v6850_v49 = vpack.c.bf16 %v6819_v38, %v6819_v38  ;;  %v7368_v38 = vrot.slane %v12275_v16, 2  ;;  %v7144_v16 = vpack.c.b16 %v6928_v47, %v6927_v37 }
 0x655   :  { %v12444_v33 = vadd.f32 %v7246_v59, %v12388_v61  ;;  %v6623_v61 = vsel %vm646_vm0, %v6620_v30, %v6622_v54 }
 0x656   :  { %v6501_v8 = vpop.f32.mrf.mxu2  ;;  %7069 = vmatmul.bf16.gmra.mxu0 %v12441_v22  ;;  %v6926_v11 = vunpack.c.l.b16 %v6850_v49  ;;  %v6823_v49 = vld [vmem:[#allocation3 + $0xe2] sm:$0xff] }
 0x657   :  { %v12449_v55 = vadd.f32 %v6501_v8, %v12243_v60  ;;  %v7166_v60 = vsel %vm426_vm1, %v7163_v12, %v7165_v18  ;;  %v6596_v12 = vpack.c.b16 %v6594_v52, %v6594_v52 }
 0x658   :  { %v12462_v43 = vpack.c.b16 %v6927_v37, %v6926_v11 }
 0x659   :  { %v6624_v21 = vrot.slane %v6596_v12, 2 }
 0x65b   :  { %v6625_v53 = vsel %vm646_vm0, %v6622_v54, %v6624_v21 }
 0x65c   :  { %v7249_v58 = vpop.f32.mrf.mxu1 }
 0x65d   :  { %v12452_v28 = vadd.f32 %v7249_v58, %v12399_v32  ;;  %v7367_v32 = vsel %vm646_vm0, %v7365_v20, %v7366_v1 }
 0x65e   :  { %v6503_v45 = vpop.f32.mrf.mxu2  ;;  %6756 = vmatmul.bf16.gmra.mxu3 %v6623_v61 }
 0x65f   :  { %v12458_v13 = vadd.f32 %v6503_v45, %v12258_v40  ;;  %7288 = vmatmul.bf16.gmra.mxu1 %v7166_v60  ;;  %v7143_v40 = vpack.c.b16 %v6926_v11, %v6925_v46  ;;  %v7369_v46 = vsel %vm646_vm0, %v7366_v1, %v7368_v38 }
 0x661   :  { %v7167_v8 = vrot.slane %v7143_v40, 1 }
 0x663   :  { %7464 = vmatmul.bf16.vlgmr.msra.gmra.mxu2 %v7367_v32  ;;  %v6854_v32 = vpack.c.bf16 %v6823_v49, %v6823_v49  ;;  %v7378_v49 = vrot.slane %v12378_v44, 2 }
 0x664   :  { %v7251_v30 = vpop.f32.mrf.mxu1 }
 0x665   :  { %v12465_v25 = vadd.f32 %v7251_v30, %v12411_v5  ;;  %v7168_v5 = vsel %vm426_vm1, %v7165_v18, %v7167_v8  ;;  %v7169_v18 = vrot.slane %v7144_v16, 1  ;;  %v12490_v30 = vunpack.c.l.b16 %v6854_v32  ;;  %v6707_v32 = vpop.f32.mrf.mxu3 }
 0x666   :  { %v6506_v41 = vpop.f32.mrf.mxu2  ;;  %7074 = vmatmul.bf16.gmra.mxu0 %v12462_v43 }
 0x667   :  { %v12469_v59 = vadd.f32 %v6506_v41, %v12267_v17  ;;  %v6929_v17 = vunpack.c.l.b16 %v6853_v36  ;;  %v7170_v52 = vsel %vm426_vm1, %v7167_v8, %v7169_v18  ;;  %v7372_v41 = vrot.slane %v12313_v19, 2 }
 0x669   :  { %v12478_v45 = vpack.c.b16 %v6929_v17, %v6928_v47 }
 0x66e   :  { %v6508_v58 = vpop.f32.mrf.mxu2  ;;  %6761 = vmatmul.bf16.gmra.mxu3 %v6625_v53  ;;  %v12839_v53 = vld [vmem:[#allocation35_spill] sm:$0xff] }
 0x66f   :  { %v12475_v61 = vadd.f32 %v6508_v58, %v12278_v4  ;;  %7293 = vmatmul.bf16.gmra.mxu1 %v7168_v5  ;;  %v7370_v4 = vrot.slane %v12294_v9, 2  ;;  %v12840_v58 = vld [vmem:[#allocation22_spill] sm:$0xff] }
 0x671   :  { %v7371_v11 = vsel %vm646_vm0, %v7368_v38, %v7370_v4  ;;  %v7373_v8 = vsel %vm646_vm0, %v7370_v4, %v7372_v41 }
 0x673   :  { %7469 = vmatmul.bf16.gmra.mxu2 %v7369_v46  ;;  %v7376_v46 = vrot.slane %v12358_v23, 2 }
 0x676   :  { %v6511_v60 = vpop.f32.mrf.mxu2  ;;  %7079 = vmatmul.bf16.gmra.mxu0 %v12478_v45 }
 0x677   :  { %v12482_v54 = vadd.f32 %v6511_v60, %v12286_v7  ;;  %v7145_v7 = vpack.c.b16 %v12490_v30, %v6929_v17 }
 0x679   :  { %v7171_v9 = vrot.slane %v7145_v7, 1 }
 0x67b   :  { %v7172_v21 = vsel %vm426_vm1, %v7169_v18, %v7171_v9 }
 0x67e   :  { %v6513_v20 = vpop.f32.mrf.mxu2 }
 0x67f   :  { %v12487_v1 = vadd.f32 %v6513_v20, %v12297_v2  ;;  %7298 = vmatmul.bf16.gmra.mxu1 %v7170_v52  ;;  %v12838_v2 = vld [vmem:[#allocation18_spill] sm:$0xff]  ;;  %v7380_v52 = vrot.slane %v12401_v3, 2 }
 0x681   :  { %v7381_v44 = vsel %vm646_vm0, %v7378_v49, %v7380_v52 }
 0x683   :  { %7474 = vmatmul.bf16.gmra.mxu2 %v7371_v11 }
 0x686   :  { %v6516_v37 = vpop.f32.mrf.mxu2 }
 0x687   :  { %v12494_v12 = vadd.f32 %v6516_v37, %v12305_v6  ;;  %v7374_v6 = vrot.slane %v12839_v53, 2  ;;  %v7025_v37 = vpop.f32.mrf.mxu0 }
 0x689   :  { %v7375_v19 = vsel %vm646_vm0, %v7372_v41, %v7374_v6  ;;  %v7377_v60 = vsel %vm646_vm0, %v7374_v6, %v7376_v46  ;;  %v6709_v41 = vpop.f32.mrf.mxu3 }
 0x68e   :  { %v6518_v40 = vpop.f32.mrf.mxu2 }
 0x68f   :  { %v12499_v57 = vadd.f32 %v6518_v40, %v12838_v2  ;;  %7303 = vmatmul.bf16.gmra.mxu1 %v7172_v21  ;;  %v7027_v40 = vpop.f32.mrf.mxu0 }
 0x693   :  { %7479 = vmatmul.bf16.gmra.mxu2 %v7373_v8 }
 0x696   :  { %v6521_v56 = vpop.f32.mrf.mxu2 }
 0x697   :  { %v12503_v36 = vadd.f32 %v6521_v56, %v12329_v35  ;;  %v12542_v56 = vpop.f32.mrf.mxu0 }
 0x69e   :  { %v6523_v38 = vpop.f32.mrf.mxu2 }
 0x69f   :  { %v12507_v5 = vadd.f32 %v6523_v38, %v12840_v58  ;;  %7308 = vmatmul.bf16.gmra.mxu1 %v7171_v9  ;;  %v7563_v38 = vld [vmem:[#allocation2 + $0xb] sm:$0xff] }
 0x6a3   :  { %7484 = vmatmul.bf16.gmra.mxu2 %v7375_v19 }
 0x6a6   :  { %v6526_v27 = vpop.f32.mrf.mxu2 }
 0x6a7   :  { %v12511_v17 = vadd.f32 %v6526_v27, %v12349_v14  ;;  %v7379_v14 = vsel %vm646_vm0, %v7376_v46, %v7378_v49 }
 0x6ae   :  { %v6528_v47 = vpop.f32.mrf.mxu2 }
 0x6af   :  { %v12515_v35 = vadd.f32 %v6528_v47, %v12361_v39  ;;  %v12554_v47 = vpop.f32.mrf.mxu0 }
 0x6b3   :  { %7489 = vmatmul.bf16.gmra.mxu2 %v7377_v60  ;;  %v7564_v60 = vld [vmem:[#allocation2 + $0x13] sm:$0xff] }
 0x6b6   :  { %v6531_v16 = vpop.f32.mrf.mxu2 }
 0x6b7   :  { %v12519_v18 = vadd.f32 %v6531_v16, %v12370_v51 }
 0x6be   :  { %v6533_v4 = vpop.f32.mrf.mxu2 }
 0x6bf   :  { %v12523_v20 = vadd.f32 %v6533_v4, %v12381_v24  ;;  %v7254_v24 = vpop.f32.mrf.mxu1 }
 0x6c3   :  { %7494 = vmatmul.bf16.gmra.mxu2 %v7379_v14 }
 0x6c6   :  { %v6536_v23 = vpop.f32.mrf.mxu2 }
 0x6c7   :  { %v12527_v39 = vadd.f32 %v6536_v23, %v12391_v50  ;;  %v7382_v50 = vrot.slane %v12422_v26, 2  ;;  %v7256_v21 = vpop.f32.mrf.mxu1 }
 0x6c9   :  { %v7383_v8 = vsel %vm646_vm0, %v7380_v52, %v7382_v50 }
 0x6ce   :  { %v6538_v11 = vpop.f32.mrf.mxu2 }
 0x6cf   :  { %v12531_v51 = vadd.f32 %v6538_v11, %v12404_v48  ;;  %v6712_v48 = vpop.f32.mrf.mxu3  ;;  %v12565_v11 = vpop.f32.mrf.mxu0 }
 0x6d3   :  { %7499 = vmatmul.bf16.gmra.mxu2 %v7381_v44 }
 0x6d6   :  { %v6541_v7 = vpop.f32.mrf.mxu2 }
 0x6d7   :  { %v12535_v9 = vadd.f32 %v6541_v7, %v12414_v42  ;;  %v12545_v42 = vpop.f32.mrf.mxu1  ;;  %v12547_v26 = vpop.f32.mrf.mxu3 }
 0x6de   :  { %v6543_v3 = vpop.f32.mrf.mxu2 }
 0x6df   :  { %v12539_v2 = vadd.f32 %v6543_v3, %v12425_v34  ;;  %v7384_v34 = vrot.slane %v12441_v22, 2  ;;  %v12556_v16 = vpop.f32.mrf.mxu1  ;;  %v12562_v14 = vpop.f32.mrf.mxu3 }
 0x6e1   :  { %v7385_v49 = vsel %vm646_vm0, %v7382_v50, %v7384_v34  ;;  %v7386_v50 = vrot.slane %v12462_v43, 2 }
 0x6e3   :  { %7504 = vmatmul.bf16.gmra.mxu2 %v7383_v8  ;;  %v6771_v8 = vadd.f32 %v6707_v32, %v12385_v0 }
 0x6e6   :  { %v7465_v53 = vpop.f32.mrf.mxu2 }
 0x6e7   :  { %v7535_v6 = vadd.f32 %v7465_v53, %v12433_v29  ;;  %v12567_v7 = vpop.f32.mrf.mxu1 }
 0x6e9   :  { %v7591_v58 = vadd.f32 %v7563_v38, %v7535_v6  ;;  %v12575_v6 = vpop.f32.mrf.mxu3 }
 0x6eb   :  { %v7619_v19 = vmax.f32 %v7591_v58, 0.0  ;;  %v7387_v58 = vsel %vm646_vm0, %v7384_v34, %v7386_v50 }
 0x6ed   :  { %7647 = vst [vmem:[%s12714_s9] sm:$0xff] %v7619_v19  ;;  %v7089_v19 = vadd.f32 %v7025_v37, %v6771_v8 }
 0x6ee   :  { %v7467_v27 = vpop.f32.mrf.mxu2 }
 0x6ef   :  { %v7536_v46 = vadd.f32 %v7467_v27, %v12444_v33  ;;  %v7565_v33 = vld [vmem:[#allocation2 + $0x1b] sm:$0xff]  ;;  %v12583_v43 = vpop.f32.mrf.mxu1 }
 0x6f1   :  { %v7592_v29 = vadd.f32 %v7564_v60, %v7536_v46  ;;  %v12578_v46 = vpop.f32.mrf.mxu0  ;;  %v7318_v60 = vadd.f32 %v7254_v24, %v7089_v19 }
 0x6f3   :  { %v7620_v4 = vmax.f32 %v7592_v29, 0.0  ;;  %7509 = vmatmul.bf16.gmra.mxu2 %v7385_v49  ;;  %v7567_v29 = vld [vmem:[#allocation2 + $0x2b] sm:$0xff] }
 0x6f5   :  { %7648 = vst [vmem:[%s12714_s9 + $0x8] sm:$0xff] %v7620_v4  ;;  %v12586_v4 = vpop.f32.mrf.mxu3 }
 0x6f6   :  { %v7470_v22 = vpop.f32.mrf.mxu2 }
 0x6f7   :  { %v7537_v23 = vadd.f32 %v7470_v22, %v12452_v28  ;;  %v7566_v28 = vld [vmem:[#allocation2 + $0x23] sm:$0xff] }
 0x6f9   :  { %v7593_v52 = vadd.f32 %v7565_v33, %v7537_v23  ;;  %v12591_v24 = vpop.f32.mrf.mxu0  ;;  %v7388_v23 = vrot.slane %v12478_v45, 2 }
 0x6fb   :  { %v7621_v44 = vmax.f32 %v7593_v52, 0.0  ;;  %v6773_v52 = vadd.f32 %v6712_v48, %v12408_v31  ;;  %v6774_v48 = vadd.f32 %v12547_v26, %v12419_v62  ;;  %v6775_v62 = vadd.f32 %v12562_v14, %v12429_v15 }
 0x6fd   :  { %7649 = vst [vmem:[%s12714_s9 + $0x10] sm:$0xff] %v7621_v44  ;;  %v12595_v44 = vpop.f32.mrf.mxu1 }
 0x6fe   :  { %v7472_v3 = vpop.f32.mrf.mxu2 }
 0x6ff   :  { %v7538_v53 = vadd.f32 %v7472_v3, %v12465_v25  ;;  %v6772_v25 = vadd.f32 %v6709_v41, %v12396_v63  ;;  %v6824_v41 = vld [vmem:[#allocation3 + $0xea] sm:$0xff]  ;;  %v7568_v3 = vld [vmem:[#allocation2 + $0x33] sm:$0xff] }
 0x701   :  { %v7594_v38 = vadd.f32 %v7566_v28, %v7538_v53  ;;  %v7090_v37 = vadd.f32 %v7027_v40, %v6772_v25  ;;  %v7389_v40 = vsel %vm646_vm0, %v7386_v50, %v7388_v23  ;;  %v7091_v53 = vadd.f32 %v12542_v56, %v6773_v52  ;;  %v7569_v50 = vld [vmem:[#allocation2 + $0x3b] sm:$0xff] }
 0x702   :  { %v7092_v25 = vadd.f32 %v12554_v47, %v6774_v48 }
 0x703   :  { %v7622_v27 = vmax.f32 %v7594_v38, 0.0  ;;  %7514 = vmatmul.bf16.gmra.mxu2 %v7387_v58  ;;  %v7319_v22 = vadd.f32 %v7256_v21, %v7090_v37  ;;  %v6855_v21 = vpack.c.bf16 %v6824_v41, %v6824_v41  ;;  %v6724_v38 = vpop.f32.mrf.mxu3  ;;  %v7320_v58 = vadd.f32 %v12545_v42, %v7091_v53 }
 0x704   :  { %v7321_v42 = vadd.f32 %v12556_v16, %v7092_v25  ;;  %v7093_v16 = vadd.f32 %v12565_v11, %v6775_v62 }
 0x705   :  { %7650 = vst [vmem:[%s12714_s9 + $0x18] sm:$0xff] %v7622_v27  ;;  %v7361_v45 = vunpack.c.l.b16 %v6855_v21  ;;  %v7042_v27 = vpop.f32.mrf.mxu0 }
 0x706   :  { %v7475_v0 = vpop.f32.mrf.mxu2 }
 0x707   :  { %v7539_v32 = vadd.f32 %v7475_v0, %v7318_v60  ;;  %v7271_v0 = vpop.f32.mrf.mxu1  ;;  %v7363_v56 = vpack.c.b16 %v7361_v45, %v12490_v30 }
 0x709   :  { %v7595_v49 = vadd.f32 %v7567_v29, %v7539_v32  ;;  %v7390_v37 = vrot.slane %v7363_v56, 2 }
 0x70b   :  { %v7623_v34 = vmax.f32 %v7595_v49, 0.0  ;;  %v6727_v29 = vpop.f32.mrf.mxu3  ;;  %v7391_v47 = vsel %vm646_vm0, %v7388_v23, %v7390_v37  ;;  %v7571_v23 = vld [vmem:[#allocation2 + $0x4b] sm:$0xff] }
 0x70d   :  { %7651 = vst [vmem:[%s12714_s9 + $0x20] sm:$0xff] %v7623_v34  ;;  %v6825_v34 = vld [vmem:[#allocation3 + $0xf2] sm:$0x3]  ;;  %v7045_v30 = vpop.f32.mrf.mxu0 }
 0x70e   :  { %v7477_v33 = vpop.f32.mrf.mxu2  ;;  %v6856_v52 = vpack.c.bf16 %v6825_v34, %v6825_v34 }
 0x70f   :  { %v7540_v63 = vadd.f32 %v7477_v33, %v7319_v22  ;;  %v7570_v22 = vld [vmem:[#allocation2 + $0x43] sm:$0xff]  ;;  %v7274_v41 = vpop.f32.mrf.mxu1 }
 0x710   :  { %v7362_v14 = vunpack.c.l.b16 %v6856_v52 }
 0x711   :  { %v7596_v8 = vadd.f32 %v7568_v3, %v7540_v63  ;;  %v7322_v3 = vadd.f32 %v12567_v7, %v7093_v16 }
 0x713   :  { %v7624_v28 = vmax.f32 %v7596_v8, 0.0  ;;  %7519 = vmatmul.bf16.gmra.mxu2 %v7389_v40  ;;  %v6776_v8 = vadd.f32 %v12575_v6, %v12438_v10  ;;  %v6729_v21 = vpop.f32.mrf.mxu3  ;;  %v6777_v10 = vadd.f32 %v12586_v4, %v12449_v55  ;;  %v6778_v55 = vadd.f32 %v6724_v38, %v12458_v13 }
 0x715   :  { %7652 = vst [vmem:[%s12714_s9 + $0x28] sm:$0xff] %v7624_v28  ;;  %v7364_v28 = vpack.c.b16 %v7362_v14, %v7362_v14  ;;  %v7094_v11 = vadd.f32 %v12578_v46, %v6776_v8  ;;  %v7095_v25 = vadd.f32 %v12591_v24, %v6777_v10  ;;  %v6780_v8 = vadd.f32 %v6729_v21, %v12475_v61 }
 0x716   :  { %v7480_v31 = vpop.f32.mrf.mxu2 }
 0x717   :  { %v7541_v19 = vadd.f32 %v7480_v31, %v7320_v58  ;;  %v7047_v31 = vpop.f32.mrf.mxu0  ;;  %v7323_v7 = vadd.f32 %v12583_v43, %v7094_v11  ;;  %v7276_v45 = vpop.f32.mrf.mxu1  ;;  %v7324_v43 = vadd.f32 %v12595_v44, %v7095_v25  ;;  %v7577_v25 = vld [vmem:[#allocation2 + $0x7b] sm:$0xff] }
 0x719   :  { %v7597_v60 = vadd.f32 %v7569_v50, %v7541_v19  ;;  %v7392_v19 = vrot.slane %v7364_v28, 2  ;;  %v7572_v50 = vld [vmem:[#allocation2 + $0x53] sm:$0xff] }
 0x71b   :  { %v7625_v32 = vmax.f32 %v7597_v60, 0.0  ;;  %v6732_v56 = vpop.f32.mrf.mxu3  ;;  %v7393_v46 = vsel %vm646_vm0, %v7390_v37, %v7392_v19  ;;  %v7576_v19 = vld [vmem:[#allocation2 + $0x73] sm:$0xff] }
 0x71d   :  { %7653 = vst [vmem:[%s12714_s9 + $0x30] sm:$0xff] %v7625_v32 }
 0x71e   :  { %v7482_v49 = vpop.f32.mrf.mxu2 }
 0x71f   :  { %v7542_v26 = vadd.f32 %v7482_v49, %v7321_v42  ;;  %v7050_v42 = vpop.f32.mrf.mxu0  ;;  %v7279_v62 = vpop.f32.mrf.mxu1 }
 0x721   :  { %v7598_v33 = vadd.f32 %v7570_v22, %v7542_v26  ;;  %v7573_v26 = vld [vmem:[#allocation2 + $0x5b] sm:$0xff]  ;;  %v7096_v22 = vadd.f32 %v7042_v27, %v6778_v55 }
 0x723   :  { %v7626_v63 = vmax.f32 %v7598_v33, 0.0  ;;  %7524 = vmatmul.bf16.gmra.mxu2 %v7391_v47  ;;  %v6734_v33 = vpop.f32.mrf.mxu3  ;;  %v7325_v24 = vadd.f32 %v7271_v0, %v7096_v22  ;;  %v6779_v47 = vadd.f32 %v6727_v29, %v12469_v59  ;;  %v7098_v29 = vadd.f32 %v7047_v31, %v6780_v8 }
 0x725   :  { %7654 = vst [vmem:[%s12714_s9 + $0x38] sm:$0xff] %v7626_v63  ;;  %v7574_v63 = vld [vmem:[#allocation2 + $0x63] sm:$0xff]  ;;  %v7097_v38 = vadd.f32 %v7045_v30, %v6779_v47 }
 0x726   :  { %v7485_v15 = vpop.f32.mrf.mxu2 }
 0x727   :  { %v7543_v40 = vadd.f32 %v7485_v15, %v7322_v3  ;;  %v7052_v16 = vpop.f32.mrf.mxu0  ;;  %v7281_v13 = vpop.f32.mrf.mxu1  ;;  %v7326_v14 = vadd.f32 %v7274_v41, %v7097_v38  ;;  %v6781_v41 = vadd.f32 %v6732_v56, %v12482_v54 }
 0x729   :  { %v7599_v53 = vadd.f32 %v7571_v23, %v7543_v40  ;;  %v7575_v23 = vld [vmem:[#allocation2 + $0x6b] sm:$0xff]  ;;  %v7099_v61 = vadd.f32 %v7050_v42, %v6781_v41 }
 0x72b   :  { %v7627_v58 = vmax.f32 %v7599_v53, 0.0  ;;  %v6737_v27 = vpop.f32.mrf.mxu3 }
 0x72d   :  { %7655 = vst [vmem:[%s12714_s9 + $0x40] sm:$0xff] %v7627_v58  ;;  %v7327_v58 = vadd.f32 %v7276_v45, %v7098_v29 }
 0x72e   :  { %v7487_v48 = vpop.f32.mrf.mxu2 }
 0x72f   :  { %v7544_v6 = vadd.f32 %v7487_v48, %v7323_v7  ;;  %v7055_v59 = vpop.f32.mrf.mxu0  ;;  %v7284_v11 = vpop.f32.mrf.mxu1 }
 0x731   :  { %v7600_v60 = vadd.f32 %v7572_v50, %v7544_v6  ;;  %v7328_v50 = vadd.f32 %v7279_v62, %v7099_v61 }
 0x733   :  { %v7628_v32 = vmax.f32 %v7600_v60, 0.0  ;;  %7529 = vmatmul.bf16.gmra.mxu2 %v7393_v46  ;;  %v6739_v48 = vpop.f32.mrf.mxu3  ;;  %v6782_v60 = vadd.f32 %v6734_v33, %v12487_v1 }
 0x734   :  { %v6784_v47 = vadd.f32 %v6739_v48, %v12499_v57 }
 0x735   :  { %7656 = vst [vmem:[%s12714_s9 + $0x48] sm:$0xff] %v7628_v32  ;;  %v7100_v56 = vadd.f32 %v7052_v16, %v6782_v60 }
 0x736   :  { %v7490_v49 = vpop.f32.mrf.mxu2 }
 0x737   :  { %v7545_v4 = vadd.f32 %v7490_v49, %v7324_v43  ;;  %v7057_v6 = vpop.f32.mrf.mxu0  ;;  %v7286_v31 = vpop.f32.mrf.mxu1  ;;  %v7329_v49 = vadd.f32 %v7281_v13, %v7100_v56 }
 0x738   :  { %v7102_v13 = vadd.f32 %v7057_v6, %v6784_v47 }
 0x739   :  { %v7601_v34 = vadd.f32 %v7573_v26, %v7545_v4  ;;  %v6783_v4 = vadd.f32 %v6737_v27, %v12494_v12 }
 0x73b   :  { %v7629_v37 = vmax.f32 %v7601_v34, 0.0  ;;  %v6742_v54 = vpop.f32.mrf.mxu3  ;;  %v7578_v34 = vld [vmem:[#allocation2 + $0x83] sm:$0xff]  ;;  %v7101_v1 = vadd.f32 %v7055_v59, %v6783_v4 }
 0x73d   :  { %7657 = vst [vmem:[%s12714_s9 + $0x50] sm:$0xff] %v7629_v37 }
 0x73e   :  { %v7492_v44 = vpop.f32.mrf.mxu2 }
 0x73f   :  { %v7546_v52 = vadd.f32 %v7492_v44, %v7325_v24  ;;  %v7060_v42 = vpop.f32.mrf.mxu0  ;;  %v7289_v26 = vpop.f32.mrf.mxu1  ;;  %v7330_v24 = vadd.f32 %v7284_v11, %v7101_v1 }
 0x741   :  { %v7602_v3 = vadd.f32 %v7574_v63, %v7546_v52  ;;  %v7579_v63 = vld [vmem:[#allocation2 + $0x8b] sm:$0xff] }
 0x743   :  { %v7630_v15 = vmax.f32 %v7602_v3, 0.0  ;;  %v6744_v33 = vpop.f32.mrf.mxu3 }
 0x745   :  { %7658 = vst [vmem:[%s12714_s9 + $0x58] sm:$0xff] %v7630_v15  ;;  %v7331_v15 = vadd.f32 %v7286_v31, %v7102_v13 }
 0x746   :  { %v7495_v0 = vpop.f32.mrf.mxu2 }
 0x747   :  { %v7547_v40 = vadd.f32 %v7495_v0, %v7326_v14  ;;  %v7062_v16 = vpop.f32.mrf.mxu0  ;;  %v7291_v12 = vpop.f32.mrf.mxu1  ;;  %v6785_v0 = vadd.f32 %v6742_v54, %v12503_v36 }
 0x749   :  { %v7603_v53 = vadd.f32 %v7575_v23, %v7547_v40  ;;  %v7580_v40 = vld [vmem:[#allocation2 + $0x93] sm:$0xff] }
 0x74b   :  { %v7631_v28 = vmax.f32 %v7603_v53, 0.0  ;;  %v6747_v14 = vpop.f32.mrf.mxu3  ;;  %v7103_v53 = vadd.f32 %v7060_v42, %v6785_v0 }
 0x74d   :  { %7659 = vst [vmem:[%s12714_s9 + $0x60] sm:$0xff] %v7631_v28  ;;  %v7332_v28 = vadd.f32 %v7289_v26, %v7103_v53 }
 0x74e   :  { %v7497_v30 = vpop.f32.mrf.mxu2 }
 0x74f   :  { %v7548_v7 = vadd.f32 %v7497_v30, %v7327_v58  ;;  %v7065_v57 = vpop.f32.mrf.mxu0  ;;  %v7294_v29 = vpop.f32.mrf.mxu1  ;;  %v6786_v58 = vadd.f32 %v6744_v33, %v12507_v5 }
 0x751   :  { %v7604_v10 = vadd.f32 %v7576_v19, %v7548_v7  ;;  %v7581_v7 = vld [vmem:[#allocation2 + $0x9b] sm:$0xff]  ;;  %v7104_v36 = vadd.f32 %v7062_v16, %v6786_v58 }
 0x753   :  { %v7632_v21 = vmax.f32 %v7604_v10, 0.0  ;;  %v6749_v41 = vpop.f32.mrf.mxu3  ;;  %v7333_v61 = vadd.f32 %v7291_v12, %v7104_v36  ;;  %v7587_v36 = vld [vmem:[#allocation2 + $0xcb] sm:$0xff] }
 0x755   :  { %7660 = vst [vmem:[%s12714_s9 + $0x68] sm:$0xff] %v7632_v21 }
 0x756   :  { %v7500_v45 = vpop.f32.mrf.mxu2 }
 0x757   :  { %v7549_v46 = vadd.f32 %v7500_v45, %v7328_v50  ;;  %v7067_v10 = vpop.f32.mrf.mxu0  ;;  %v7296_v21 = vpop.f32.mrf.mxu1  ;;  %v6787_v50 = vadd.f32 %v6747_v14, %v12511_v17  ;;  %v7582_v45 = vld [vmem:[#allocation2 + $0xa3] sm:$0xff] }
 0x759   :  { %v7605_v32 = vadd.f32 %v7577_v25, %v7549_v46  ;;  %v7105_v46 = vadd.f32 %v7065_v57, %v6787_v50 }
 0x75b   :  { %v7633_v43 = vmax.f32 %v7605_v32, 0.0  ;;  %v6752_v5 = vpop.f32.mrf.mxu3  ;;  %v7334_v32 = vadd.f32 %v7294_v29, %v7105_v46 }
 0x75c   :  { %v6789_v1 = vadd.f32 %v6752_v5, %v12519_v18  ;;  %v7588_v5 = vld [vmem:[#allocation2 + $0xd3] sm:$0xff] }
 0x75d   :  { %7661 = vst [vmem:[%s12714_s9 + $0x70] sm:$0xff] %v7633_v43  ;;  %v6788_v43 = vadd.f32 %v6749_v41, %v12515_v35 }
 0x75e   :  { %v7502_v55 = vpop.f32.mrf.mxu2 }
 0x75f   :  { %v7550_v62 = vadd.f32 %v7502_v55, %v7329_v49  ;;  %v7070_v54 = vpop.f32.mrf.mxu0  ;;  %v7299_v42 = vpop.f32.mrf.mxu1  ;;  %v7583_v55 = vld [vmem:[#allocation2 + $0xab] sm:$0xff]  ;;  %v7106_v17 = vadd.f32 %v7067_v10, %v6788_v43 }
 0x760   :  { %v7107_v47 = vadd.f32 %v7070_v54, %v6789_v1  ;;  %v7590_v1 = vld [vmem:[#allocation2 + $0xe3] sm:$0x3f] }
 0x761   :  { %v7606_v22 = vadd.f32 %v7578_v34, %v7550_v62  ;;  %v7335_v34 = vadd.f32 %v7296_v21, %v7106_v17 }
 0x762   :  { %v7336_v16 = vadd.f32 %v7299_v42, %v7107_v47 }
 0x763   :  { %v7634_v37 = vmax.f32 %v7606_v22, 0.0  ;;  %v6754_v26 = vpop.f32.mrf.mxu3 }
 0x764   :  { %v6790_v12 = vadd.f32 %v6754_v26, %v12523_v20 }
 0x765   :  { %7662 = vst [vmem:[%s12714_s9 + $0x78] sm:$0xff] %v7634_v37 }
 0x766   :  { %v7505_v44 = vpop.f32.mrf.mxu2 }
 0x767   :  { %v7551_v52 = vadd.f32 %v7505_v44, %v7330_v24  ;;  %v7072_v33 = vpop.f32.mrf.mxu0  ;;  %v7584_v24 = vld [vmem:[#allocation2 + $0xb3] sm:$0xff]  ;;  %v7301_v35 = vpop.f32.mrf.mxu1 }
 0x768   :  { %v7108_v14 = vadd.f32 %v7072_v33, %v6790_v12 }
 0x769   :  { %v7607_v3 = vadd.f32 %v7579_v63, %v7551_v52 }
 0x76b   :  { %v7635_v38 = vmax.f32 %v7607_v3, 0.0  ;;  %v6757_v63 = vpop.f32.mrf.mxu3 }
 0x76d   :  { %7663 = vst [vmem:[%s12714_s9 + $0x80] sm:$0xff] %v7635_v38  ;;  %v7585_v38 = vld [vmem:[#allocation2 + $0xbb] sm:$0xff] }
 0x76e   :  { %v7507_v27 = vpop.f32.mrf.mxu2 }
 0x76f   :  { %v7552_v8 = vadd.f32 %v7507_v27, %v7331_v15  ;;  %v7075_v18 = vpop.f32.mrf.mxu0  ;;  %v7304_v0 = vpop.f32.mrf.mxu1 }
 0x771   :  { %v7608_v23 = vadd.f32 %v7580_v40, %v7552_v8  ;;  %v7337_v8 = vadd.f32 %v7301_v35, %v7108_v14 }
 0x773   :  { %v7636_v59 = vmax.f32 %v7608_v23, 0.0  ;;  %v6791_v23 = vadd.f32 %v6757_v63, %v12527_v39  ;;  %v6759_v53 = vpop.f32.mrf.mxu3 }
 0x775   :  { %7664 = vst [vmem:[%s12714_s9 + $0x88] sm:$0xff] %v7636_v59  ;;  %v7586_v59 = vld [vmem:[#allocation2 + $0xc3] sm:$0xff]  ;;  %v7109_v20 = vadd.f32 %v7075_v18, %v6791_v23 }
 0x776   :  { %v7510_v11 = vpop.f32.mrf.mxu2 }
 0x777   :  { %v7553_v30 = vadd.f32 %v7510_v11, %v7332_v28  ;;  %v7077_v11 = vpop.f32.mrf.mxu0  ;;  %v7338_v58 = vadd.f32 %v7304_v0, %v7109_v20 }
 0x779   :  { %v7609_v48 = vadd.f32 %v7581_v7, %v7553_v30  ;;  %v7306_v30 = vpop.f32.mrf.mxu1  ;;  %v6792_v7 = vadd.f32 %v6759_v53, %v12531_v51 }
 0x77b   :  { %v7637_v19 = vmax.f32 %v7609_v48, 0.0  ;;  %v6762_v39 = vpop.f32.mrf.mxu3  ;;  %v7110_v10 = vadd.f32 %v7077_v11, %v6792_v7 }
 0x77d   :  { %7665 = vst [vmem:[%s12714_s9 + $0x90] sm:$0xff] %v7637_v19  ;;  %v7339_v21 = vadd.f32 %v7306_v30, %v7110_v10 }
 0x77e   :  { %v7512_v6 = vpop.f32.mrf.mxu2 }
 0x77f   :  { %v7554_v31 = vadd.f32 %v7512_v6, %v7333_v61  ;;  %v7080_v6 = vpop.f32.mrf.mxu0 }
 0x781   :  { %v7610_v60 = vadd.f32 %v7582_v45, %v7554_v31  ;;  %v6793_v31 = vadd.f32 %v6762_v39, %v12535_v9 }
 0x783   :  { %v7638_v25 = vmax.f32 %v7610_v60, 0.0  ;;  %v7309_v60 = vpop.f32.mrf.mxu1  ;;  %v7111_v51 = vadd.f32 %v7080_v6, %v6793_v31 }
 0x785   :  { %7666 = vst [vmem:[%s12714_s9 + $0x98] sm:$0xff] %v7638_v25  ;;  %v7340_v54 = vadd.f32 %v7309_v60, %v7111_v51 }
 0x786   :  { %v7515_v56 = vpop.f32.mrf.mxu2 }
 0x787   :  { %v7555_v49 = vadd.f32 %v7515_v56, %v7334_v32  ;;  %v6764_v32 = vpop.f32.mrf.mxu3  ;;  %v7082_v42 = vpop.f32.mrf.mxu0 }
 0x788   :  { %v6794_v43 = vadd.f32 %v6764_v32, %v12539_v2 }
 0x789   :  { %v7611_v4 = vadd.f32 %v7583_v55, %v7555_v49  ;;  %v7589_v55 = vld [vmem:[#allocation2 + $0xdb] sm:$0xff] }
 0x78a   :  { %v7112_v17 = vadd.f32 %v7082_v42, %v6794_v43 }
 0x78b   :  { %v7639_v62 = vmax.f32 %v7611_v4, 0.0  ;;  %v7311_v9 = vpop.f32.mrf.mxu1 }
 0x78c   :  { %v7341_v26 = vadd.f32 %v7311_v9, %v7112_v17 }
 0x78d   :  { %7667 = vst [vmem:[%s12714_s9 + $0xa0] sm:$0xff] %v7639_v62 }
 0x78e   :  { %v7517_v22 = vpop.f32.mrf.mxu2 }
 0x78f   :  { %v7556_v37 = vadd.f32 %v7517_v22, %v7335_v34 }
 0x791   :  { %v7612_v44 = vadd.f32 %v7584_v24, %v7556_v37 }
 0x793   :  { %v7640_v52 = vmax.f32 %v7612_v44, 0.0 }
 0x795   :  { %7668 = vst [vmem:[%s12714_s9 + $0xa8] sm:$0xff] %v7640_v52 }
 0x796   :  { %v7520_v3 = vpop.f32.mrf.mxu2 }
 0x797   :  { %v7557_v13 = vadd.f32 %v7520_v3, %v7336_v16 }
 0x799   :  { %v7613_v15 = vadd.f32 %v7585_v38, %v7557_v13 }
 0x79b   :  { %v7641_v27 = vmax.f32 %v7613_v15, 0.0 }
 0x79d   :  { %7669 = vst [vmem:[%s12714_s9 + $0xb0] sm:$0xff] %v7641_v27 }
 0x79e   :  { %v7522_v40 = vpop.f32.mrf.mxu2 }
 0x79f   :  { %v7558_v57 = vadd.f32 %v7522_v40, %v7337_v8 }
 0x7a1   :  { %v7614_v29 = vadd.f32 %v7586_v59, %v7558_v57 }
 0x7a3   :  { %v7642_v28 = vmax.f32 %v7614_v29, 0.0 }
 0x7a5   :  { %7670 = vst [vmem:[%s12714_s9 + $0xb8] sm:$0xff] %v7642_v28 }
 0x7a6   :  { %v7525_v41 = vpop.f32.mrf.mxu2 }
 0x7a7   :  { %v7559_v48 = vadd.f32 %v7525_v41, %v7338_v58 }
 0x7a9   :  { %v7615_v19 = vadd.f32 %v7587_v36, %v7559_v48 }
 0x7ab   :  { %v7643_v61 = vmax.f32 %v7615_v19, 0.0 }
 0x7ad   :  { %7671 = vst [vmem:[%s12714_s9 + $0xc0] sm:$0xff] %v7643_v61 }
 0x7ae   :  { %v7527_v50 = vpop.f32.mrf.mxu2 }
 0x7af   :  { %v7560_v45 = vadd.f32 %v7527_v50, %v7339_v21 }
 0x7b1   :  { %v7616_v46 = vadd.f32 %v7588_v5, %v7560_v45 }
 0x7b3   :  { %v7644_v25 = vmax.f32 %v7616_v46, 0.0 }
 0x7b5   :  { %7672 = vst [vmem:[%s12714_s9 + $0xc8] sm:$0xff] %v7644_v25 }
 0x7b6   :  { %v7530_v56 = vpop.f32.mrf.mxu2 }
 0x7b7   :  { %v7561_v49 = vadd.f32 %v7530_v56, %v7340_v54 }
 0x7b9   :  { %v7617_v4 = vadd.f32 %v7589_v55, %v7561_v49 }
 0x7bb   :  { %v7645_v62 = vmax.f32 %v7617_v4, 0.0 }
 0x7bd   :  { %7673 = vst [vmem:[%s12714_s9 + $0xd0] sm:$0xff] %v7645_v62 }
 0x7be   :  { %v7532_v34 = vpop.f32.mrf.mxu2 }
 0x7bf   :  { %v7562_v22 = vadd.f32 %v7532_v34, %v7341_v26 }
 0x7c1   :  { %v7618_v37 = vadd.f32 %v7590_v1, %v7562_v22 }
 0x7c3   :  { %v7646_v33 = vmax.f32 %v7618_v37, 0.0 }
 0x7c5   :  { %7674 = vst [vmem:[%s12714_s9 + $0xd8] sm:$0x3f] %v7646_v33 }
 0x7c6   :  { %7679 = vsyncpa [#allocation5], 1 }
 0x7c7   :  { %7680 = vsyncpa [#allocation7], 1 }

</bundles_post_ra>
